<compile_context>
chip_gen: v7x
topology: tpu7x:2x2x1
jax: 0.10.0
libtpu: 0.0.40
codegen_flags: <defaults>
</compile_context>

<pallas_src>
import functools

import jax
import jax.numpy as jnp
from jax.experimental import pallas as pl
from jax.experimental.pallas import tpu as pltpu

BN_EPS = 1e-3          # nn.BatchNorm2d(eps=0.001)
LANE = 128             # lane width: channel / K dims padded to this
SUB = 8                # sublane width


def _round_up(x, m):
    return (x + m - 1) // m * m


def _pad2d(a, rows, cols):
    r, c = a.shape
    if r == rows and c == cols:
        return a
    return jnp.pad(a, ((0, rows - r), (0, cols - c)))


def _pick_vmem_limit():
    try:
        cap = int(pltpu.get_tpu_info().vmem_capacity_bytes)
    except Exception:
        cap = 64 * 1024 * 1024          # conservative fallback (v7x-sized)
    return int(min(cap * 3 // 4, 96 * 1024 * 1024))


def _view(arr, kp, col=0, scale=None, bias=None, res=None):
    """A lane-padded [Mp, *] activation 'view'.
    col   : column-block offset (units of kp) into arr.
    scale/bias : folded BN (if set, the consumer applies BN+SiLU in-kernel).
    res   : optional residual view (added after the pre-activation)."""
    return dict(arr=arr, kp=kp, col=col, scale=scale, bias=bias, res=res)


# ----------------------------------------------------------------------------
# Pass 1: (pre-activation) -> conv-as-matmul (bf16 MXU, fp32 accum) + BN stats.
# ----------------------------------------------------------------------------
def _make_matmul_stats_kernel(descs, tm, m_real, mp):
    need_mask = mp > m_real

    def kernel(*refs):
        pos = 0
        acc = None
        for has_pre, has_res, res_pre in descs:
            x_ref = refs[pos]; pos += 1
            sc_ref = bi_ref = r_ref = rs_ref = rb_ref = None
            if has_pre:
                sc_ref, bi_ref = refs[pos], refs[pos + 1]; pos += 2
            if has_res:
                r_ref = refs[pos]; pos += 1
                if res_pre:
                    rs_ref, rb_ref = refs[pos], refs[pos + 1]; pos += 2
            w_ref = refs[pos]; pos += 1

            v = x_ref[...]
            if has_pre:                     # folded BN + SiLU (VPU/EUP, hides under MXU)
                v = v.astype(jnp.float32) * sc_ref[...] + bi_ref[...]
                v = v * jax.nn.sigmoid(v)
            if has_res:                     # Bottleneck shortcut
                r = r_ref[...]
                if res_pre:
                    r = r.astype(jnp.float32) * rs_ref[...] + rb_ref[...]
                    r = r * jax.nn.sigmoid(r)
                v = v.astype(jnp.float32) + r.astype(jnp.float32)
            d = jnp.dot(v.astype(jnp.bfloat16), w_ref[...],
                        preferred_element_type=jnp.float32)
            acc = d if acc is None else acc + d

        y_ref = refs[pos]
        st_ref = refs[pos + 1]
        y_ref[...] = acc.astype(y_ref.dtype)        # raw conv output (bf16)

        def write_stats(vals):                      # rows: [sum; sum of squares]
            st_ref[...] = jnp.concatenate(
                [jnp.sum(vals, axis=0, keepdims=True),
                 jnp.sum(vals * vals, axis=0, keepdims=True)], axis=0)

        if need_mask:
            # Padded rows live only in the last row tile -> mask only there.
            is_last = pl.program_id(0) == pl.num_programs(0) - 1

            @pl.when(is_last)
            def _():
                row = (pl.program_id(0) * tm
                       + jax.lax.broadcasted_iota(jnp.int32, (tm, 1), 0))
                write_stats(jnp.where(row < m_real, acc, 0.0))

            @pl.when(jnp.logical_not(is_last))
            def _():
                write_stats(acc)
        else:
            write_stats(acc)

    return kernel


def matmul_with_stats(inputs, weights, m_real, cp_out, *, tm, vmem_limit):
    """inputs: list of _view()s; weights: list of [kp_i, cp_out] bf16 matrices.
    Each view's folded BN+SiLU (and optional residual) is applied to the VMEM
    tile right before the MXU dot.  Returns (y bf16 [Mp, cp_out], channel sum,
    channel sumsq), stats taken from the fp32 accumulator."""
    mp = inputs[0]["arr"].shape[0]
    n_tiles = mp // tm
    args, in_specs, descs = [], [], []
    for v, w in zip(inputs, weights):
        kp = v["kp"]
        has_pre = v.get("scale") is not None
        res = v.get("res")
        has_res = res is not None
        res_pre = has_res and res.get("scale") is not None
        descs.append((has_pre, has_res, res_pre))

        args.append(v["arr"])
        in_specs.append(pl.BlockSpec((tm, kp), lambda i, c=v["col"]: (i, c)))
        if has_pre:
            args += [v["scale"], v["bias"]]
            in_specs += [pl.BlockSpec((1, kp), lambda i: (0, 0))] * 2
        if has_res:
            args.append(res["arr"])
            in_specs.append(pl.BlockSpec((tm, kp), lambda i, c=res["col"]: (i, c)))
            if res_pre:
                args += [res["scale"], res["bias"]]
                in_specs += [pl.BlockSpec((1, kp), lambda i: (0, 0))] * 2
        args.append(w)
        in_specs.append(pl.BlockSpec((kp, cp_out), lambda i: (0, 0)))  # VMEM-resident

    y, stats = pl.pallas_call(
        _make_matmul_stats_kernel(tuple(descs), tm, m_real, mp),
        grid=(n_tiles,),
        in_specs=in_specs,
        out_specs=(pl.BlockSpec((tm, cp_out), lambda i: (i, 0)),
                   pl.BlockSpec((2, cp_out), lambda i: (0, i))),
        out_shape=(jax.ShapeDtypeStruct((mp, cp_out), jnp.bfloat16),
                   jax.ShapeDtypeStruct((2, n_tiles * cp_out), jnp.float32)),
        compiler_params=pltpu.CompilerParams(
            dimension_semantics=("parallel",),      # megacore-shard row tiles
            vmem_limit_bytes=vmem_limit),
    )(*args)
    s = stats.reshape(2, n_tiles, cp_out).sum(axis=1)
    return y, s[0], s[1]


# ----------------------------------------------------------------------------
# Standalone apply pass (only where the activated tensor must be materialized).
# ----------------------------------------------------------------------------
def _make_apply_kernel(has_res, res_pre):
    def kernel(*refs):
        y_ref, sc_ref, bi_ref = refs[0], refs[1], refs[2]
        pos = 3
        r_ref = rs_ref = rb_ref = None
        if has_res:
            r_ref = refs[pos]; pos += 1
            if res_pre:
                rs_ref, rb_ref = refs[pos], refs[pos + 1]; pos += 2
        o_ref = refs[pos]
        v = y_ref[...].astype(jnp.float32) * sc_ref[...] + bi_ref[...]
        v = v * jax.nn.sigmoid(v)                   # SiLU
        if has_res:
            r = r_ref[...]
            if res_pre:
                r = r.astype(jnp.float32) * rs_ref[...] + rb_ref[...]
                r = r * jax.nn.sigmoid(r)
            v = v + r.astype(jnp.float32)
        o_ref[...] = v.astype(o_ref.dtype)
    return kernel


def apply_bn_silu(y, scale, bias, res=None, *, tm, vmem_limit, out_dtype):
    mp, cp = y.shape
    n_tiles = mp // tm
    args = [y, scale, bias]
    in_specs = [pl.BlockSpec((tm, cp), lambda i: (i, 0)),
                pl.BlockSpec((1, cp), lambda i: (0, 0)),
                pl.BlockSpec((1, cp), lambda i: (0, 0))]
    has_res = res is not None
    res_pre = has_res and res.get("scale") is not None
    if has_res:
        args.append(res["arr"])
        in_specs.append(pl.BlockSpec((tm, res["kp"]), lambda i, c=res["col"]: (i, c)))
        if res_pre:
            args += [res["scale"], res["bias"]]
            in_specs += [pl.BlockSpec((1, res["kp"]), lambda i: (0, 0))] * 2
    return pl.pallas_call(
        _make_apply_kernel(has_res, res_pre),
        grid=(n_tiles,),
        in_specs=in_specs,
        out_specs=pl.BlockSpec((tm, cp), lambda i: (i, 0)),
        out_shape=jax.ShapeDtypeStruct((mp, cp), out_dtype),
        compiler_params=pltpu.CompilerParams(
            dimension_semantics=("parallel",), vmem_limit_bytes=vmem_limit),
    )(*args)


# ----------------------------------------------------------------------------
# Tiny JAX glue: BN stat finalize, weight prep, (interim) bf16 im2col.
# ----------------------------------------------------------------------------
def _bn_fold(s, ss, gamma, beta, m_real, cp):
    mean = s / m_real
    var = jnp.maximum(ss / m_real - mean * mean, 0.0)   # E[y^2] - mean^2
    g = jnp.pad(gamma, (0, cp - gamma.shape[0]))
    b = jnp.pad(beta, (0, cp - beta.shape[0]))
    scale = g * jax.lax.rsqrt(var + BN_EPS)
    bias = b - mean * scale
    return scale.reshape(1, cp), bias.reshape(1, cp)


def _prep_w_1x1(w, kp, cp):
    cout, cin = w.shape[0], w.shape[1]
    return _pad2d(w.reshape(cout, cin).T, kp, cp).astype(jnp.bfloat16)


def _prep_w_3x3(w, kp, cp):
    cout, cin = w.shape[0], w.shape[1]
    wm = jnp.transpose(w, (2, 3, 1, 0)).reshape(9 * cin, cout)  # (ky,kx,cin) major
    return _pad2d(wm, kp, cp).astype(jnp.bfloat16)


# TODO(synk): replace with a fully in-kernel 3x3 (9 shifted MXU matmuls over a
# halo'd row window) to remove this 9x (now bf16) activation inflation.
def _im2col_3x3_act(h_raw, scale, bias, n, h, w, c_real, mp):
    hv = (h_raw[:n * h * w, :c_real].astype(jnp.float32)
          * scale[0, :c_real] + bias[0, :c_real])
    hv = (hv * jax.nn.sigmoid(hv)).astype(jnp.bfloat16).reshape(n, h, w, c_real)
    hp = jnp.pad(hv, ((0, 0), (1, 1), (1, 1), (0, 0)))
    patches = jnp.concatenate(
        [hp[:, ky:ky + h, kx:kx + w, :] for ky in range(3) for kx in range(3)],
        axis=-1)
    kp9 = _round_up(9 * c_real, LANE)
    return _pad2d(patches.reshape(n * h * w, 9 * c_real), mp, kp9), kp9


# ----------------------------------------------------------------------------
# C3 forward (NCHW in/out; lane-padded [Mp, Cp] NHWC rows internally).
# ----------------------------------------------------------------------------
def c3_forward(params, x_nchw, shortcut=True, tm=512, vmem_limit=None):
    if vmem_limit is None:
        vmem_limit = _pick_vmem_limit()
    n, c1, h, w = x_nchw.shape
    m = n * h * w
    tm = min(tm, _round_up(m, SUB))
    mp = _round_up(m, tm)

    cv1, cv2, cv3 = params["cv1"], params["cv2"], params["cv3"]
    c_ = cv1["w"].shape[0]
    c2 = cv3["w"].shape[0]
    cpm = _round_up(c_, LANE)        # per-tensor pad for intermediates
    cpo = _round_up(c2, LANE)        # per-tensor pad for cv3 output
    kin = _round_up(c1, LANE)

    x2d = _pad2d(jnp.transpose(x_nchw, (0, 2, 3, 1)).reshape(m, c1),
                 mp, kin).astype(jnp.bfloat16)

    # fused cv1|cv2: one matmul over [W_cv1 | W_cv2]; x read from HBM once.
    wcat = jnp.zeros((kin, 2 * cpm), jnp.float32)
    wcat = wcat.at[:c1, :c_].set(cv1["w"].reshape(c_, c1).T)
    wcat = wcat.at[:c1, cpm:cpm + c_].set(cv2["w"].reshape(c_, c1).T)
    y12, s12, ss12 = matmul_with_stats(
        [_view(x2d, kin)], [wcat.astype(jnp.bfloat16)], m, 2 * cpm,
        tm=tm, vmem_limit=vmem_limit)
    sc1, bi1 = _bn_fold(s12[:cpm], ss12[:cpm], cv1["gamma"], cv1["beta"], m, cpm)
    sc2, bi2 = _bn_fold(s12[cpm:], ss12[cpm:], cv2["gamma"], cv2["beta"], m, cpm)

    # `state` = the out1 chain, kept "lazy" (raw conv + folded BN) so that the
    # consumer's matmul applies BN+SiLU(+residual) in VMEM for free.
    state = _view(y12, cpm, col=0, scale=sc1, bias=bi1)

    nb = len(params["m"])
    for i, bp in enumerate(params["m"]):
        last = (i == nb - 1)

        # Bottleneck cv1 (1x1): pre-activation fused into this matmul pass.
        h_raw, hs, hss = matmul_with_stats(
            [state], [_prep_w_1x1(bp["cv1"]["w"], cpm, cpm)], m, cpm,
            tm=tm, vmem_limit=vmem_limit)
        sch, bih = _bn_fold(hs, hss, bp["cv1"]["gamma"], bp["cv1"]["beta"], m, cpm)

        # Bottleneck cv2 (3x3): bf16 im2col of the activated tensor (interim).
        p2d, kp9 = _im2col_3x3_act(h_raw, sch, bih, n, h, w, c_, mp)
        t_raw, ts, tss = matmul_with_stats(
            [_view(p2d, kp9)], [_prep_w_3x3(bp["cv2"]["w"], kp9, cpm)], m, cpm,
            tm=tm, vmem_limit=vmem_limit)
        sct, bit = _bn_fold(ts, tss, bp["cv2"]["gamma"], bp["cv2"]["beta"], m, cpm)

        new_state = _view(t_raw, cpm, scale=sct, bias=bit,
                          res=state if shortcut else None)
        if last:
            state = new_state            # fused directly into cv3's matmul pass
        elif shortcut:
            # Materialize (bf16) so residual chains stay one level deep (n > 1).
            a_act = apply_bn_silu(t_raw, sct, bit, res=state, tm=tm,
                                  vmem_limit=vmem_limit, out_dtype=jnp.bfloat16)
            state = _view(a_act, cpm)
        else:
            state = _view(t_raw, cpm, scale=sct, bias=bit)

    # cv3 on the virtual concat: out1-chain @ W_top + out2 @ W_bot (no concat).
    w3m = cv3["w"].reshape(c2, 2 * c_)
    w_top = _pad2d(w3m[:, :c_].T, cpm, cpo).astype(jnp.bfloat16)
    w_bot = _pad2d(w3m[:, c_:].T, cpm, cpo).astype(jnp.bfloat16)
    out2_view = _view(y12, cpm, col=1, scale=sc2, bias=bi2)   # cv2 half of y12
    o_raw, os_, oss = matmul_with_stats(
        [state, out2_view], [w_top, w_bot], m, cpo, tm=tm, vmem_limit=vmem_limit)
    sco, bio = _bn_fold(os_, oss, cv3["gamma"], cv3["beta"], m, cpo)
    out2d = apply_bn_silu(o_raw, sco, bio, tm=tm, vmem_limit=vmem_limit,
                          out_dtype=jnp.float32)

    out = out2d[:m, :c2].reshape(n, h, w, c2)
    return jnp.transpose(out, (0, 3, 1, 2))


# ----------------------------------------------------------------------------
# Deterministic parameter init (shapes from the PyTorch __init__)
# ----------------------------------------------------------------------------
def init_conv_block(key, c1, c2, k):
    kw, kg, kb = jax.random.split(key, 3)
    return dict(
        w=jax.random.normal(kw, (c2, c1, k, k), jnp.float32) * 0.1,
        gamma=jax.random.uniform(kg, (c2,), jnp.float32, 0.5, 1.5),
        beta=jax.random.normal(kb, (c2,), jnp.float32) * 0.1,
    )


def init_c3(key, c1, c2, n=1):
    c_ = c2 // 2
    keys = jax.random.split(key, 3 + 2 * n)
    return dict(
        cv1=init_conv_block(keys[0], c1, c_, 1),
        cv2=init_conv_block(keys[1], c1, c_, 1),
        cv3=init_conv_block(keys[2], c2, c2, 1),
        m=[dict(cv1=init_conv_block(keys[3 + 2 * i], c_, c_, 1),
                cv2=init_conv_block(keys[4 + 2 * i], c_, c_, 3))
           for i in range(n)],
    )


# ----------------------------------------------------------------------------
# Pure-JAX reference (training-mode BN batch stats; bf16 conv operands like the
# kernel's MXU path, fp32 accumulation and BN).
# ----------------------------------------------------------------------------
def _ref_conv_block(x, p, k, residual=None):
    y = jax.lax.conv_general_dilated(
        x.astype(jnp.bfloat16),
        jnp.transpose(p["w"], (2, 3, 1, 0)).astype(jnp.bfloat16),
        window_strides=(1, 1), padding=[(k // 2, k // 2)] * 2,
        dimension_numbers=("NHWC", "HWIO", "NHWC"),
        preferred_element_type=jnp.float32)
    mean = jnp.mean(y, axis=(0, 1, 2), keepdims=True)
    var = jnp.mean(jnp.square(y - mean), axis=(0, 1, 2), keepdims=True)
    y = (y - mean) * jax.lax.rsqrt(var + BN_EPS)
    y = y * p["gamma"] + p["beta"]
    y = y * jax.nn.sigmoid(y)
    if residual is not None:
        y = y + residual
    return y


def _ref_c3(params, x_nchw, shortcut=True):
    x = jnp.transpose(x_nchw, (0, 2, 3, 1))
    out1 = _ref_conv_block(x, params["cv1"], 1)
    for bp in params["m"]:
        hmid = _ref_conv_block(out1, bp["cv1"], 1)
        out1 = _ref_conv_block(hmid, bp["cv2"], 3,
                               residual=out1 if shortcut else None)
    out2 = _ref_conv_block(x, params["cv2"], 1)
    out = _ref_conv_block(jnp.concatenate([out1, out2], axis=-1), params["cv3"], 1)
    return jnp.transpose(out, (0, 3, 1, 2))


if __name__ == "__main__":
    key = jax.random.PRNGKey(0)
    kx, kparams = jax.random.split(key)

    # C3(c1=4, c2=8, n=1, shortcut=True); input x: NCHW [2, 4, 16, 16]
    c1, c2 = 4, 8
    x = jax.random.normal(kx, (2, c1, 16, 16), jnp.float32)
    params = init_c3(kparams, c1, c2, n=1)

    fwd = jax.jit(functools.partial(c3_forward, shortcut=True, tm=512))
    out = jax.block_until_ready(fwd(params, x))
    assert out.shape == (2, c2, 16, 16), out.shape

    ref = _ref_c3(params, x, shortcut=True)
    err_max = float(jnp.max(jnp.abs(out - ref)))
    rel_l2 = float(jnp.linalg.norm(out - ref) / jnp.linalg.norm(ref))
    # bf16 MXU operands / bf16 intermediates vs. the reference's fp32 BN path:
    # bound loosely on the max, tightly on the aggregate.
    assert err_max < 1e-1 and rel_l2 < 2e-2, (err_max, rel_l2)
    print("KERNEL_OK")
</pallas_src>

<mosaic_0001>
module attributes {stable_mosaic.version = 11 : i64} {
  func.func @kernel(%arg0: i32, %arg1: memref<512x128xbf16, #tpu.memory_space<vmem>>, %arg2: memref<128x256xbf16, #tpu.memory_space<vmem>>, %arg3: memref<512x256xbf16, #tpu.memory_space<vmem>>, %arg4: memref<2x256xf32, #tpu.memory_space<vmem>>) attributes {dimension_semantics = [#tpu.dimension_semantics<parallel>], iteration_bounds = array<i64: 1>, scalar_prefetch = 0 : i64, scratch_operands = 0 : i64, tpu.core_type = #tpu.core_type<tc>, window_params = [{transform_indices = @transform_0, window_bounds = array<i64: 512, 128>}, {pipeline_mode = #tpu.pipeline_mode<synchronous>, transform_indices = @transform_1, window_bounds = array<i64: 128, 256>}, {transform_indices = @transform_2, window_bounds = array<i64: 512, 256>}, {transform_indices = @transform_3, window_bounds = array<i64: 2, 256>}]} {
    %c0 = arith.constant 0 : index
    %c0_0 = arith.constant 0 : index
    %0 = vector.load %arg1[%c0, %c0_0] : memref<512x128xbf16, #tpu.memory_space<vmem>>, vector<512x128xbf16>
    %c0_1 = arith.constant 0 : index
    %c0_2 = arith.constant 0 : index
    %1 = vector.load %arg2[%c0_1, %c0_2] : memref<128x256xbf16, #tpu.memory_space<vmem>>, vector<128x256xbf16>
    %cst = arith.constant dense<0.000000e+00> : vector<512x256xf32>
    %2 = tpu.matmul %0, %1, %cst {dimension_numbers = #tpu.dot_dimension_numbers<[1], [0], [0], [1], [0, 0, 1, 1], [], []>} : vector<512x128xbf16>, vector<128x256xbf16>, vector<512x256xf32> -> vector<512x256xf32>
    %3 = arith.truncf %2 : vector<512x256xf32> to vector<512x256xbf16>
    %c0_3 = arith.constant 0 : index
    %c0_4 = arith.constant 0 : index
    %4 = vector.load %arg3[%c0_3, %c0_4] : memref<512x256xbf16, #tpu.memory_space<vmem>>, vector<512x256xbf16>
    tpu.vector_store %arg3[%c0_3, %c0_4], %3 {strides = array<i32>} : memref<512x256xbf16, #tpu.memory_space<vmem>>, vector<512x256xbf16>,
    %cst_5 = arith.constant dense<0.000000e+00> : vector<256xf32>
    %5 = vector.multi_reduction <add>, %2, %cst_5 [0] : vector<512x256xf32> to vector<256xf32>
    %6 = vector.shape_cast %5 : vector<256xf32> to vector<1x256xf32>
    %7 = arith.mulf %2, %2 : vector<512x256xf32>
    %cst_6 = arith.constant dense<0.000000e+00> : vector<256xf32>
    %8 = vector.multi_reduction <add>, %7, %cst_6 [0] : vector<512x256xf32> to vector<256xf32>
    %9 = vector.shape_cast %8 : vector<256xf32> to vector<1x256xf32>
    %10 = tpu.concatenate %6, %9 in 0 : vector<1x256xf32>, vector<1x256xf32> -> vector<2x256xf32>
    %c0_7 = arith.constant 0 : index
    %c0_8 = arith.constant 0 : index
    %11 = vector.load %arg4[%c0_7, %c0_8] : memref<2x256xf32, #tpu.memory_space<vmem>>, vector<2x256xf32>
    tpu.vector_store %arg4[%c0_7, %c0_8], %10 {strides = array<i32>} : memref<2x256xf32, #tpu.memory_space<vmem>>, vector<2x256xf32>,
    return
  }
  func.func @transform_0(%arg0: i32) -> (i32, i32) {
    %c0_i32 = arith.constant 0 : i32
    %c0_i32_0 = arith.constant 0 : i32
    return %arg0, %c0_i32 : i32, i32
  }
  func.func @transform_1(%arg0: i32) -> (i32, i32) {
    %c0_i32 = arith.constant 0 : i32
    %c0_i32_0 = arith.constant 0 : i32
    %c0_i32_1 = arith.constant 0 : i32
    return %c0_i32, %c0_i32_0 : i32, i32
  }
  func.func @transform_2(%arg0: i32) -> (i32, i32) {
    %c0_i32 = arith.constant 0 : i32
    %c0_i32_0 = arith.constant 0 : i32
    return %arg0, %c0_i32 : i32, i32
  }
  func.func @transform_3(%arg0: i32) -> (i32, i32) {
    %c0_i32 = arith.constant 0 : i32
    %c0_i32_0 = arith.constant 0 : i32
    return %c0_i32, %arg0 : i32, i32
  }
}

module attributes {stable_mosaic.version = 11 : i64} {
  func.func @kernel(%arg0: i32, %arg1: memref<512x128xbf16, #tpu.memory_space<vmem>>, %arg2: memref<1x128xf32, #tpu.memory_space<vmem>>, %arg3: memref<1x128xf32, #tpu.memory_space<vmem>>, %arg4: memref<128x128xbf16, #tpu.memory_space<vmem>>, %arg5: memref<512x128xbf16, #tpu.memory_space<vmem>>, %arg6: memref<2x128xf32, #tpu.memory_space<vmem>>) attributes {dimension_semantics = [#tpu.dimension_semantics<parallel>], iteration_bounds = array<i64: 1>, scalar_prefetch = 0 : i64, scratch_operands = 0 : i64, tpu.core_type = #tpu.core_type<tc>, window_params = [{transform_indices = @transform_0, window_bounds = array<i64: 512, 128>}, {pipeline_mode = #tpu.pipeline_mode<synchronous>, transform_indices = @transform_1, window_bounds = array<i64: 1, 128>}, {pipeline_mode = #tpu.pipeline_mode<synchronous>, transform_indices = @transform_2, window_bounds = array<i64: 1, 128>}, {pipeline_mode = #tpu.pipeline_mode<synchronous>, transform_indices = @transform_3, window_bounds = array<i64: 128, 128>}, {transform_indices = @transform_4, window_bounds = array<i64: 512, 128>}, {transform_indices = @transform_5, window_bounds = array<i64: 2, 128>}]} {
    %c0 = arith.constant 0 : index
    %c0_0 = arith.constant 0 : index
    %0 = vector.load %arg1[%c0, %c0_0] : memref<512x128xbf16, #tpu.memory_space<vmem>>, vector<512x128xbf16>
    %1 = arith.extf %0 : vector<512x128xbf16> to vector<512x128xf32>
    %c0_1 = arith.constant 0 : index
    %c0_2 = arith.constant 0 : index
    %2 = vector.load %arg2[%c0_1, %c0_2] : memref<1x128xf32, #tpu.memory_space<vmem>>, vector<1x128xf32>
    %3 = vector.broadcast %2 : vector<1x128xf32> to vector<512x128xf32>
    %4 = arith.mulf %1, %3 : vector<512x128xf32>
    %c0_3 = arith.constant 0 : index
    %c0_4 = arith.constant 0 : index
    %5 = vector.load %arg3[%c0_3, %c0_4] : memref<1x128xf32, #tpu.memory_space<vmem>>, vector<1x128xf32>
    %6 = vector.broadcast %5 : vector<1x128xf32> to vector<512x128xf32>
    %7 = arith.addf %4, %6 : vector<512x128xf32>
    %8 = arith.negf %7 : vector<512x128xf32>
    %9 = math.exp %8 : vector<512x128xf32>
    %cst = arith.constant 1.000000e+00 : f32
    %10 = vector.broadcast %cst : f32 to vector<512x128xf32>
    %11 = arith.addf %10, %9 : vector<512x128xf32>
    %12 = arith.divf %10, %11 : vector<512x128xf32>
    %13 = arith.mulf %7, %12 : vector<512x128xf32>
    %14 = arith.truncf %13 : vector<512x128xf32> to vector<512x128xbf16>
    %c0_5 = arith.constant 0 : index
    %c0_6 = arith.constant 0 : index
    %15 = vector.load %arg4[%c0_5, %c0_6] : memref<128x128xbf16, #tpu.memory_space<vmem>>, vector<128x128xbf16>
    %cst_7 = arith.constant dense<0.000000e+00> : vector<512x128xf32>
    %16 = tpu.matmul %14, %15, %cst_7 {dimension_numbers = #tpu.dot_dimension_numbers<[1], [0], [0], [1], [0, 0, 1, 1], [], []>} : vector<512x128xbf16>, vector<128x128xbf16>, vector<512x128xf32> -> vector<512x128xf32>
    %17 = arith.truncf %16 : vector<512x128xf32> to vector<512x128xbf16>
    %c0_8 = arith.constant 0 : index
    %c0_9 = arith.constant 0 : index
    %18 = vector.load %arg5[%c0_8, %c0_9] : memref<512x128xbf16, #tpu.memory_space<vmem>>, vector<512x128xbf16>
    tpu.vector_store %arg5[%c0_8, %c0_9], %17 {strides = array<i32>} : memref<512x128xbf16, #tpu.memory_space<vmem>>, vector<512x128xbf16>,
    %cst_10 = arith.constant dense<0.000000e+00> : vector<128xf32>
    %19 = vector.multi_reduction <add>, %16, %cst_10 [0] : vector<512x128xf32> to vector<128xf32>
    %20 = vector.shape_cast %19 : vector<128xf32> to vector<1x128xf32>
    %21 = arith.mulf %16, %16 : vector<512x128xf32>
    %cst_11 = arith.constant dense<0.000000e+00> : vector<128xf32>
    %22 = vector.multi_reduction <add>, %21, %cst_11 [0] : vector<512x128xf32> to vector<128xf32>
    %23 = vector.shape_cast %22 : vector<128xf32> to vector<1x128xf32>
    %24 = tpu.concatenate %20, %23 in 0 : vector<1x128xf32>, vector<1x128xf32> -> vector<2x128xf32>
    %c0_12 = arith.constant 0 : index
    %c0_13 = arith.constant 0 : index
    %25 = vector.load %arg6[%c0_12, %c0_13] : memref<2x128xf32, #tpu.memory_space<vmem>>, vector<2x128xf32>
    tpu.vector_store %arg6[%c0_12, %c0_13], %24 {strides = array<i32>} : memref<2x128xf32, #tpu.memory_space<vmem>>, vector<2x128xf32>,
    return
  }
  func.func @transform_0(%arg0: i32) -> (i32, i32) {
    %c0_i32 = arith.constant 0 : i32
    %c0_i32_0 = arith.constant 0 : i32
    return %arg0, %c0_i32 : i32, i32
  }
  func.func @transform_1(%arg0: i32) -> (i32, i32) {
    %c0_i32 = arith.constant 0 : i32
    %c0_i32_0 = arith.constant 0 : i32
    %c0_i32_1 = arith.constant 0 : i32
    return %c0_i32, %c0_i32_0 : i32, i32
  }
  func.func @transform_2(%arg0: i32) -> (i32, i32) {
    %c0_i32 = arith.constant 0 : i32
    %c0_i32_0 = arith.constant 0 : i32
    %c0_i32_1 = arith.constant 0 : i32
    return %c0_i32, %c0_i32_0 : i32, i32
  }
  func.func @transform_3(%arg0: i32) -> (i32, i32) {
    %c0_i32 = arith.constant 0 : i32
    %c0_i32_0 = arith.constant 0 : i32
    %c0_i32_1 = arith.constant 0 : i32
    return %c0_i32, %c0_i32_0 : i32, i32
  }
  func.func @transform_4(%arg0: i32) -> (i32, i32) {
    %c0_i32 = arith.constant 0 : i32
    %c0_i32_0 = arith.constant 0 : i32
    return %arg0, %c0_i32 : i32, i32
  }
  func.func @transform_5(%arg0: i32) -> (i32, i32) {
    %c0_i32 = arith.constant 0 : i32
    %c0_i32_0 = arith.constant 0 : i32
    return %c0_i32, %arg0 : i32, i32
  }
}

module attributes {stable_mosaic.version = 11 : i64} {
  func.func @kernel(%arg0: i32, %arg1: memref<512x128xbf16, #tpu.memory_space<vmem>>, %arg2: memref<128x128xbf16, #tpu.memory_space<vmem>>, %arg3: memref<512x128xbf16, #tpu.memory_space<vmem>>, %arg4: memref<2x128xf32, #tpu.memory_space<vmem>>) attributes {dimension_semantics = [#tpu.dimension_semantics<parallel>], iteration_bounds = array<i64: 1>, scalar_prefetch = 0 : i64, scratch_operands = 0 : i64, tpu.core_type = #tpu.core_type<tc>, window_params = [{transform_indices = @transform_0, window_bounds = array<i64: 512, 128>}, {pipeline_mode = #tpu.pipeline_mode<synchronous>, transform_indices = @transform_1, window_bounds = array<i64: 128, 128>}, {transform_indices = @transform_2, window_bounds = array<i64: 512, 128>}, {transform_indices = @transform_3, window_bounds = array<i64: 2, 128>}]} {
    %c0 = arith.constant 0 : index
    %c0_0 = arith.constant 0 : index
    %0 = vector.load %arg1[%c0, %c0_0] : memref<512x128xbf16, #tpu.memory_space<vmem>>, vector<512x128xbf16>
    %c0_1 = arith.constant 0 : index
    %c0_2 = arith.constant 0 : index
    %1 = vector.load %arg2[%c0_1, %c0_2] : memref<128x128xbf16, #tpu.memory_space<vmem>>, vector<128x128xbf16>
    %cst = arith.constant dense<0.000000e+00> : vector<512x128xf32>
    %2 = tpu.matmul %0, %1, %cst {dimension_numbers = #tpu.dot_dimension_numbers<[1], [0], [0], [1], [0, 0, 1, 1], [], []>} : vector<512x128xbf16>, vector<128x128xbf16>, vector<512x128xf32> -> vector<512x128xf32>
    %3 = arith.truncf %2 : vector<512x128xf32> to vector<512x128xbf16>
    %c0_3 = arith.constant 0 : index
    %c0_4 = arith.constant 0 : index
    %4 = vector.load %arg3[%c0_3, %c0_4] : memref<512x128xbf16, #tpu.memory_space<vmem>>, vector<512x128xbf16>
    tpu.vector_store %arg3[%c0_3, %c0_4], %3 {strides = array<i32>} : memref<512x128xbf16, #tpu.memory_space<vmem>>, vector<512x128xbf16>,
    %cst_5 = arith.constant dense<0.000000e+00> : vector<128xf32>
    %5 = vector.multi_reduction <add>, %2, %cst_5 [0] : vector<512x128xf32> to vector<128xf32>
    %6 = vector.shape_cast %5 : vector<128xf32> to vector<1x128xf32>
    %7 = arith.mulf %2, %2 : vector<512x128xf32>
    %cst_6 = arith.constant dense<0.000000e+00> : vector<128xf32>
    %8 = vector.multi_reduction <add>, %7, %cst_6 [0] : vector<512x128xf32> to vector<128xf32>
    %9 = vector.shape_cast %8 : vector<128xf32> to vector<1x128xf32>
    %10 = tpu.concatenate %6, %9 in 0 : vector<1x128xf32>, vector<1x128xf32> -> vector<2x128xf32>
    %c0_7 = arith.constant 0 : index
    %c0_8 = arith.constant 0 : index
    %11 = vector.load %arg4[%c0_7, %c0_8] : memref<2x128xf32, #tpu.memory_space<vmem>>, vector<2x128xf32>
    tpu.vector_store %arg4[%c0_7, %c0_8], %10 {strides = array<i32>} : memref<2x128xf32, #tpu.memory_space<vmem>>, vector<2x128xf32>,
    return
  }
  func.func @transform_0(%arg0: i32) -> (i32, i32) {
    %c0_i32 = arith.constant 0 : i32
    %c0_i32_0 = arith.constant 0 : i32
    return %arg0, %c0_i32 : i32, i32
  }
  func.func @transform_1(%arg0: i32) -> (i32, i32) {
    %c0_i32 = arith.constant 0 : i32
    %c0_i32_0 = arith.constant 0 : i32
    %c0_i32_1 = arith.constant 0 : i32
    return %c0_i32, %c0_i32_0 : i32, i32
  }
  func.func @transform_2(%arg0: i32) -> (i32, i32) {
    %c0_i32 = arith.constant 0 : i32
    %c0_i32_0 = arith.constant 0 : i32
    return %arg0, %c0_i32 : i32, i32
  }
  func.func @transform_3(%arg0: i32) -> (i32, i32) {
    %c0_i32 = arith.constant 0 : i32
    %c0_i32_0 = arith.constant 0 : i32
    return %c0_i32, %arg0 : i32, i32
  }
}

module attributes {stable_mosaic.version = 11 : i64} {
  func.func @kernel(%arg0: i32, %arg1: memref<512x128xbf16, #tpu.memory_space<vmem>>, %arg2: memref<1x128xf32, #tpu.memory_space<vmem>>, %arg3: memref<1x128xf32, #tpu.memory_space<vmem>>, %arg4: memref<512x128xbf16, #tpu.memory_space<vmem>>, %arg5: memref<1x128xf32, #tpu.memory_space<vmem>>, %arg6: memref<1x128xf32, #tpu.memory_space<vmem>>, %arg7: memref<128x128xbf16, #tpu.memory_space<vmem>>, %arg8: memref<512x128xbf16, #tpu.memory_space<vmem>>, %arg9: memref<1x128xf32, #tpu.memory_space<vmem>>, %arg10: memref<1x128xf32, #tpu.memory_space<vmem>>, %arg11: memref<128x128xbf16, #tpu.memory_space<vmem>>, %arg12: memref<512x128xbf16, #tpu.memory_space<vmem>>, %arg13: memref<2x128xf32, #tpu.memory_space<vmem>>) attributes {dimension_semantics = [#tpu.dimension_semantics<parallel>], iteration_bounds = array<i64: 1>, scalar_prefetch = 0 : i64, scratch_operands = 0 : i64, tpu.core_type = #tpu.core_type<tc>, window_params = [{transform_indices = @transform_0, window_bounds = array<i64: 512, 128>}, {pipeline_mode = #tpu.pipeline_mode<synchronous>, transform_indices = @transform_1, window_bounds = array<i64: 1, 128>}, {pipeline_mode = #tpu.pipeline_mode<synchronous>, transform_indices = @transform_2, window_bounds = array<i64: 1, 128>}, {transform_indices = @transform_3, window_bounds = array<i64: 512, 128>}, {pipeline_mode = #tpu.pipeline_mode<synchronous>, transform_indices = @transform_4, window_bounds = array<i64: 1, 128>}, {pipeline_mode = #tpu.pipeline_mode<synchronous>, transform_indices = @transform_5, window_bounds = array<i64: 1, 128>}, {pipeline_mode = #tpu.pipeline_mode<synchronous>, transform_indices = @transform_6, window_bounds = array<i64: 128, 128>}, {transform_indices = @transform_7, window_bounds = array<i64: 512, 128>}, {pipeline_mode = #tpu.pipeline_mode<synchronous>, transform_indices = @transform_8, window_bounds = array<i64: 1, 128>}, {pipeline_mode = #tpu.pipeline_mode<synchronous>, transform_indices = @transform_9, window_bounds = array<i64: 1, 128>}, {pipeline_mode = #tpu.pipeline_mode<synchronous>, transform_indices = @transform_10, window_bounds = array<i64: 128, 128>}, {transform_indices = @transform_11, window_bounds = array<i64: 512, 128>}, {transform_indices = @transform_12, window_bounds = array<i64: 2, 128>}]} {
    %c0 = arith.constant 0 : index
    %c0_0 = arith.constant 0 : index
    %0 = vector.load %arg1[%c0, %c0_0] : memref<512x128xbf16, #tpu.memory_space<vmem>>, vector<512x128xbf16>
    %1 = arith.extf %0 : vector<512x128xbf16> to vector<512x128xf32>
    %c0_1 = arith.constant 0 : index
    %c0_2 = arith.constant 0 : index
    %2 = vector.load %arg2[%c0_1, %c0_2] : memref<1x128xf32, #tpu.memory_space<vmem>>, vector<1x128xf32>
    %3 = vector.broadcast %2 : vector<1x128xf32> to vector<512x128xf32>
    %4 = arith.mulf %1, %3 : vector<512x128xf32>
    %c0_3 = arith.constant 0 : index
    %c0_4 = arith.constant 0 : index
    %5 = vector.load %arg3[%c0_3, %c0_4] : memref<1x128xf32, #tpu.memory_space<vmem>>, vector<1x128xf32>
    %6 = vector.broadcast %5 : vector<1x128xf32> to vector<512x128xf32>
    %7 = arith.addf %4, %6 : vector<512x128xf32>
    %8 = arith.negf %7 : vector<512x128xf32>
    %9 = math.exp %8 : vector<512x128xf32>
    %cst = arith.constant 1.000000e+00 : f32
    %10 = vector.broadcast %cst : f32 to vector<512x128xf32>
    %11 = arith.addf %10, %9 : vector<512x128xf32>
    %12 = arith.divf %10, %11 : vector<512x128xf32>
    %13 = arith.mulf %7, %12 : vector<512x128xf32>
    %c0_5 = arith.constant 0 : index
    %c0_6 = arith.constant 0 : index
    %14 = vector.load %arg4[%c0_5, %c0_6] : memref<512x128xbf16, #tpu.memory_space<vmem>>, vector<512x128xbf16>
    %15 = arith.extf %14 : vector<512x128xbf16> to vector<512x128xf32>
    %c0_7 = arith.constant 0 : index
    %c0_8 = arith.constant 0 : index
    %16 = vector.load %arg5[%c0_7, %c0_8] : memref<1x128xf32, #tpu.memory_space<vmem>>, vector<1x128xf32>
    %17 = vector.broadcast %16 : vector<1x128xf32> to vector<512x128xf32>
    %18 = arith.mulf %15, %17 : vector<512x128xf32>
    %c0_9 = arith.constant 0 : index
    %c0_10 = arith.constant 0 : index
    %19 = vector.load %arg6[%c0_9, %c0_10] : memref<1x128xf32, #tpu.memory_space<vmem>>, vector<1x128xf32>
    %20 = vector.broadcast %19 : vector<1x128xf32> to vector<512x128xf32>
    %21 = arith.addf %18, %20 : vector<512x128xf32>
    %22 = arith.negf %21 : vector<512x128xf32>
    %23 = math.exp %22 : vector<512x128xf32>
    %cst_11 = arith.constant 1.000000e+00 : f32
    %24 = vector.broadcast %cst_11 : f32 to vector<512x128xf32>
    %25 = arith.addf %24, %23 : vector<512x128xf32>
    %26 = arith.divf %24, %25 : vector<512x128xf32>
    %27 = arith.mulf %21, %26 : vector<512x128xf32>
    %28 = arith.addf %13, %27 : vector<512x128xf32>
    %29 = arith.truncf %28 : vector<512x128xf32> to vector<512x128xbf16>
    %c0_12 = arith.constant 0 : index
    %c0_13 = arith.constant 0 : index
    %30 = vector.load %arg7[%c0_12, %c0_13] : memref<128x128xbf16, #tpu.memory_space<vmem>>, vector<128x128xbf16>
    %cst_14 = arith.constant dense<0.000000e+00> : vector<512x128xf32>
    %31 = tpu.matmul %29, %30, %cst_14 {dimension_numbers = #tpu.dot_dimension_numbers<[1], [0], [0], [1], [0, 0, 1, 1], [], []>} : vector<512x128xbf16>, vector<128x128xbf16>, vector<512x128xf32> -> vector<512x128xf32>
    %c0_15 = arith.constant 0 : index
    %c0_16 = arith.constant 0 : index
    %32 = vector.load %arg8[%c0_15, %c0_16] : memref<512x128xbf16, #tpu.memory_space<vmem>>, vector<512x128xbf16>
    %33 = arith.extf %32 : vector<512x128xbf16> to vector<512x128xf32>
    %c0_17 = arith.constant 0 : index
    %c0_18 = arith.constant 0 : index
    %34 = vector.load %arg9[%c0_17, %c0_18] : memref<1x128xf32, #tpu.memory_space<vmem>>, vector<1x128xf32>
    %35 = vector.broadcast %34 : vector<1x128xf32> to vector<512x128xf32>
    %36 = arith.mulf %33, %35 : vector<512x128xf32>
    %c0_19 = arith.constant 0 : index
    %c0_20 = arith.constant 0 : index
    %37 = vector.load %arg10[%c0_19, %c0_20] : memref<1x128xf32, #tpu.memory_space<vmem>>, vector<1x128xf32>
    %38 = vector.broadcast %37 : vector<1x128xf32> to vector<512x128xf32>
    %39 = arith.addf %36, %38 : vector<512x128xf32>
    %40 = arith.negf %39 : vector<512x128xf32>
    %41 = math.exp %40 : vector<512x128xf32>
    %cst_21 = arith.constant 1.000000e+00 : f32
    %42 = vector.broadcast %cst_21 : f32 to vector<512x128xf32>
    %43 = arith.addf %42, %41 : vector<512x128xf32>
    %44 = arith.divf %42, %43 : vector<512x128xf32>
    %45 = arith.mulf %39, %44 : vector<512x128xf32>
    %46 = arith.truncf %45 : vector<512x128xf32> to vector<512x128xbf16>
    %c0_22 = arith.constant 0 : index
    %c0_23 = arith.constant 0 : index
    %47 = vector.load %arg11[%c0_22, %c0_23] : memref<128x128xbf16, #tpu.memory_space<vmem>>, vector<128x128xbf16>
    %cst_24 = arith.constant dense<0.000000e+00> : vector<512x128xf32>
    %48 = tpu.matmul %46, %47, %cst_24 {dimension_numbers = #tpu.dot_dimension_numbers<[1], [0], [0], [1], [0, 0, 1, 1], [], []>} : vector<512x128xbf16>, vector<128x128xbf16>, vector<512x128xf32> -> vector<512x128xf32>
    %49 = arith.addf %31, %48 : vector<512x128xf32>
    %50 = arith.truncf %49 : vector<512x128xf32> to vector<512x128xbf16>
    %c0_25 = arith.constant 0 : index
    %c0_26 = arith.constant 0 : index
    %51 = vector.load %arg12[%c0_25, %c0_26] : memref<512x128xbf16, #tpu.memory_space<vmem>>, vector<512x128xbf16>
    tpu.vector_store %arg12[%c0_25, %c0_26], %50 {strides = array<i32>} : memref<512x128xbf16, #tpu.memory_space<vmem>>, vector<512x128xbf16>,
    %cst_27 = arith.constant dense<0.000000e+00> : vector<128xf32>
    %52 = vector.multi_reduction <add>, %49, %cst_27 [0] : vector<512x128xf32> to vector<128xf32>
    %53 = vector.shape_cast %52 : vector<128xf32> to vector<1x128xf32>
    %54 = arith.mulf %49, %49 : vector<512x128xf32>
    %cst_28 = arith.constant dense<0.000000e+00> : vector<128xf32>
    %55 = vector.multi_reduction <add>, %54, %cst_28 [0] : vector<512x128xf32> to vector<128xf32>
    %56 = vector.shape_cast %55 : vector<128xf32> to vector<1x128xf32>
    %57 = tpu.concatenate %53, %56 in 0 : vector<1x128xf32>, vector<1x128xf32> -> vector<2x128xf32>
    %c0_29 = arith.constant 0 : index
    %c0_30 = arith.constant 0 : index
    %58 = vector.load %arg13[%c0_29, %c0_30] : memref<2x128xf32, #tpu.memory_space<vmem>>, vector<2x128xf32>
    tpu.vector_store %arg13[%c0_29, %c0_30], %57 {strides = array<i32>} : memref<2x128xf32, #tpu.memory_space<vmem>>, vector<2x128xf32>,
    return
  }
  func.func @transform_0(%arg0: i32) -> (i32, i32) {
    %c0_i32 = arith.constant 0 : i32
    %c0_i32_0 = arith.constant 0 : i32
    return %arg0, %c0_i32 : i32, i32
  }
  func.func @transform_1(%arg0: i32) -> (i32, i32) {
    %c0_i32 = arith.constant 0 : i32
    %c0_i32_0 = arith.constant 0 : i32
    %c0_i32_1 = arith.constant 0 : i32
    return %c0_i32, %c0_i32_0 : i32, i32
  }
  func.func @transform_2(%arg0: i32) -> (i32, i32) {
    %c0_i32 = arith.constant 0 : i32
    %c0_i32_0 = arith.constant 0 : i32
    %c0_i32_1 = arith.constant 0 : i32
    return %c0_i32, %c0_i32_0 : i32, i32
  }
  func.func @transform_3(%arg0: i32) -> (i32, i32) {
    %c0_i32 = arith.constant 0 : i32
    %c0_i32_0 = arith.constant 0 : i32
    return %arg0, %c0_i32 : i32, i32
  }
  func.func @transform_4(%arg0: i32) -> (i32, i32) {
    %c0_i32 = arith.constant 0 : i32
    %c0_i32_0 = arith.constant 0 : i32
    %c0_i32_1 = arith.constant 0 : i32
    return %c0_i32, %c0_i32_0 : i32, i32
  }
  func.func @transform_5(%arg0: i32) -> (i32, i32) {
    %c0_i32 = arith.constant 0 : i32
    %c0_i32_0 = arith.constant 0 : i32
    %c0_i32_1 = arith.constant 0 : i32
    return %c0_i32, %c0_i32_0 : i32, i32
  }
  func.func @transform_6(%arg0: i32) -> (i32, i32) {
    %c0_i32 = arith.constant 0 : i32
    %c0_i32_0 = arith.constant 0 : i32
    %c0_i32_1 = arith.constant 0 : i32
    return %c0_i32, %c0_i32_0 : i32, i32
  }
  func.func @transform_7(%arg0: i32) -> (i32, i32) {
    %c1_i32 = arith.constant 1 : i32
    %c0_i32 = arith.constant 0 : i32
    return %arg0, %c1_i32 : i32, i32
  }
  func.func @transform_8(%arg0: i32) -> (i32, i32) {
    %c0_i32 = arith.constant 0 : i32
    %c0_i32_0 = arith.constant 0 : i32
    %c0_i32_1 = arith.constant 0 : i32
    return %c0_i32, %c0_i32_0 : i32, i32
  }
  func.func @transform_9(%arg0: i32) -> (i32, i32) {
    %c0_i32 = arith.constant 0 : i32
    %c0_i32_0 = arith.constant 0 : i32
    %c0_i32_1 = arith.constant 0 : i32
    return %c0_i32, %c0_i32_0 : i32, i32
  }
  func.func @transform_10(%arg0: i32) -> (i32, i32) {
    %c0_i32 = arith.constant 0 : i32
    %c0_i32_0 = arith.constant 0 : i32
    %c0_i32_1 = arith.constant 0 : i32
    return %c0_i32, %c0_i32_0 : i32, i32
  }
  func.func @transform_11(%arg0: i32) -> (i32, i32) {
    %c0_i32 = arith.constant 0 : i32
    %c0_i32_0 = arith.constant 0 : i32
    return %arg0, %c0_i32 : i32, i32
  }
  func.func @transform_12(%arg0: i32) -> (i32, i32) {
    %c0_i32 = arith.constant 0 : i32
    %c0_i32_0 = arith.constant 0 : i32
    return %c0_i32, %arg0 : i32, i32
  }
}

module attributes {stable_mosaic.version = 11 : i64} {
  func.func @kernel(%arg0: i32, %arg1: memref<512x128xbf16, #tpu.memory_space<vmem>>, %arg2: memref<1x128xf32, #tpu.memory_space<vmem>>, %arg3: memref<1x128xf32, #tpu.memory_space<vmem>>, %arg4: memref<512x128xf32, #tpu.memory_space<vmem>>) attributes {dimension_semantics = [#tpu.dimension_semantics<parallel>], iteration_bounds = array<i64: 1>, scalar_prefetch = 0 : i64, scratch_operands = 0 : i64, tpu.core_type = #tpu.core_type<tc>, window_params = [{transform_indices = @transform_0, window_bounds = array<i64: 512, 128>}, {pipeline_mode = #tpu.pipeline_mode<synchronous>, transform_indices = @transform_1, window_bounds = array<i64: 1, 128>}, {pipeline_mode = #tpu.pipeline_mode<synchronous>, transform_indices = @transform_2, window_bounds = array<i64: 1, 128>}, {transform_indices = @transform_3, window_bounds = array<i64: 512, 128>}]} {
    %c0 = arith.constant 0 : index
    %c0_0 = arith.constant 0 : index
    %0 = vector.load %arg1[%c0, %c0_0] : memref<512x128xbf16, #tpu.memory_space<vmem>>, vector<512x128xbf16>
    %1 = arith.extf %0 : vector<512x128xbf16> to vector<512x128xf32>
    %c0_1 = arith.constant 0 : index
    %c0_2 = arith.constant 0 : index
    %2 = vector.load %arg2[%c0_1, %c0_2] : memref<1x128xf32, #tpu.memory_space<vmem>>, vector<1x128xf32>
    %3 = vector.broadcast %2 : vector<1x128xf32> to vector<512x128xf32>
    %4 = arith.mulf %1, %3 : vector<512x128xf32>
    %c0_3 = arith.constant 0 : index
    %c0_4 = arith.constant 0 : index
    %5 = vector.load %arg3[%c0_3, %c0_4] : memref<1x128xf32, #tpu.memory_space<vmem>>, vector<1x128xf32>
    %6 = vector.broadcast %5 : vector<1x128xf32> to vector<512x128xf32>
    %7 = arith.addf %4, %6 : vector<512x128xf32>
    %8 = arith.negf %7 : vector<512x128xf32>
    %9 = math.exp %8 : vector<512x128xf32>
    %cst = arith.constant 1.000000e+00 : f32
    %10 = vector.broadcast %cst : f32 to vector<512x128xf32>
    %11 = arith.addf %10, %9 : vector<512x128xf32>
    %12 = arith.divf %10, %11 : vector<512x128xf32>
    %13 = arith.mulf %7, %12 : vector<512x128xf32>
    %c0_5 = arith.constant 0 : index
    %c0_6 = arith.constant 0 : index
    %14 = vector.load %arg4[%c0_5, %c0_6] : memref<512x128xf32, #tpu.memory_space<vmem>>, vector<512x128xf32>
    tpu.vector_store %arg4[%c0_5, %c0_6], %13 {strides = array<i32>} : memref<512x128xf32, #tpu.memory_space<vmem>>, vector<512x128xf32>,
    return
  }
  func.func @transform_0(%arg0: i32) -> (i32, i32) {
    %c0_i32 = arith.constant 0 : i32
    %c0_i32_0 = arith.constant 0 : i32
    return %arg0, %c0_i32 : i32, i32
  }
  func.func @transform_1(%arg0: i32) -> (i32, i32) {
    %c0_i32 = arith.constant 0 : i32
    %c0_i32_0 = arith.constant 0 : i32
    %c0_i32_1 = arith.constant 0 : i32
    return %c0_i32, %c0_i32_0 : i32, i32
  }
  func.func @transform_2(%arg0: i32) -> (i32, i32) {
    %c0_i32 = arith.constant 0 : i32
    %c0_i32_0 = arith.constant 0 : i32
    %c0_i32_1 = arith.constant 0 : i32
    return %c0_i32, %c0_i32_0 : i32, i32
  }
  func.func @transform_3(%arg0: i32) -> (i32, i32) {
    %c0_i32 = arith.constant 0 : i32
    %c0_i32_0 = arith.constant 0 : i32
    return %arg0, %c0_i32 : i32, i32
  }
}

</mosaic_0001>

<bundles_post_ra>
// kernel: c3_forward.5
= control target key start
LH: loop header
LB: loop body
LE: loop exit
PB: predicated region body
PF: predicated region fallthrough
CT: control target
= control target key end

     0   :  { %v1844_v1 = vmov 0   ;;  %vm1571_vm0 = vcmask 1040384   ;;  %s2620_s1 = inlined_call_operand.vmem [shape: bf16[128,256], index: 1, kind: input, shape index: {}]   ;;  %s2621_s0 = inlined_call_operand.vmem [shape: bf16[512,128], index: 0, kind: input, shape index: {}]   ;;  %s2622_s2 = inlined_call_operand.vmem [shape: bf16[512,256], index: 2, kind: output, shape index: {0}]   ;;  %s2623_s3 = inlined_call_operand.vmem [shape: f32[2,256], index: 3, kind: output, shape index: {1}]  }
   0x1   :  { %v1788_v0 = vld [vmem:[%s2620_s1 + $0x4] ss:$8 sps:$4 sm:$0xff]   ;;  %398 = vmatprep.mubr.bf16.mxu0 %v1844_v1  ;;  %558 = vmatprep.mubr.bf16.mxu1 %v1844_v1  ;;  %v1790_v2 = vld [vmem:[%s2620_s1] ss:$8 sps:$4 sm:$0xff]   ;;  %v1791_v3 = vld [vmem:[%s2620_s1 + $0x14] ss:$8 sps:$4 sm:$0xff]  }
   0x2   :  { %366 = vmatprep.subr.bf16.mxu0 %v1788_v0  ;;  %1771 = vmatprep.subr.bf16.mxu1 %v1788_v0  ;;  %v1793_v4 = vld [vmem:[%s2620_s1 + $0x10] ss:$8 sps:$4 sm:$0xff]   ;;  %v1794_v5 = vld [vmem:[%s2620_s1 + $0x24] ss:$8 sps:$4 sm:$0xff]   ;;  %v1796_v6 = vld [vmem:[%s2620_s1 + $0x20] ss:$8 sps:$4 sm:$0xff]  }
   0x3   :  { %367 = vmatpush1.bf16.msra.mxu0 %v1790_v2  ;;  %1779 = vmatpush1.bf16.msra.mxu1 %v1790_v2  ;;  %v1797_v7 = vld [vmem:[%s2620_s1 + $0x34] ss:$8 sps:$4 sm:$0xff]   ;;  %v1799_v8 = vld [vmem:[%s2620_s1 + $0x30] ss:$8 sps:$4 sm:$0xff]   ;;  %v1800_v9 = vld [vmem:[%s2620_s1 + $0x44] ss:$8 sps:$4 sm:$0xff]  }
   0x4   :  { %368 = vmatprep.subr.bf16.mxu0 %v1791_v3  ;;  %1772 = vmatprep.subr.bf16.mxu1 %v1791_v3  ;;  %v1802_v10 = vld [vmem:[%s2620_s1 + $0x40] ss:$8 sps:$4 sm:$0xff]   ;;  %v1803_v11 = vld [vmem:[%s2620_s1 + $0x54] ss:$8 sps:$4 sm:$0xff]   ;;  %v1805_v12 = vld [vmem:[%s2620_s1 + $0x50] ss:$8 sps:$4 sm:$0xff]  }
   0x5   :  { %v1806_v13 = vld [vmem:[%s2620_s1 + $0x64] ss:$8 sps:$4 sm:$0xff]   ;;  %v1808_v14 = vld [vmem:[%s2620_s1 + $0x60] ss:$8 sps:$4 sm:$0xff]   ;;  %v1809_v15 = vld [vmem:[%s2620_s1 + $0x74] ss:$8 sps:$4 sm:$0xff]  }
   0x6   :  { %v1811_v16 = vld [vmem:[%s2620_s1 + $0x70] ss:$8 sps:$4 sm:$0xff]   ;;  %v1812_v17 = vld [vmem:[%s2621_s0] sm:$0xff]   ;;  %v1813_v19 = vld [vmem:[%s2621_s0 + $0x8] sm:$0xff]  }
   0x7   :  { %369 = vmatpush1.bf16.msra.mxu0 %v1793_v4  ;;  %1780 = vmatpush1.bf16.msra.mxu1 %v1793_v4  ;;  %v1820_v18 = vld [vmem:[%s2621_s0 + $0x80] sm:$0xff]   ;;  %v1822_v20 = vld [vmem:[%s2621_s0 + $0x88] sm:$0xff]   ;;  %v1814_v21 = vld [vmem:[%s2621_s0 + $0x10] sm:$0xff]  }
   0x8   :  { %370 = vmatprep.subr.bf16.mxu0 %v1794_v5  ;;  %1773 = vmatprep.subr.bf16.mxu1 %v1794_v5  ;;  %v1824_v22 = vld [vmem:[%s2621_s0 + $0x90] sm:$0xff]   ;;  %v1815_v23 = vld [vmem:[%s2621_s0 + $0x18] sm:$0xff]   ;;  %v1816_v25 = vld [vmem:[%s2621_s0 + $0x20] sm:$0xff]  }
   0x9   :  { %v1826_v24 = vld [vmem:[%s2621_s0 + $0x98] sm:$0xff]   ;;  %v1828_v26 = vld [vmem:[%s2621_s0 + $0xa0] sm:$0xff]   ;;  %v1817_v27 = vld [vmem:[%s2621_s0 + $0x28] sm:$0xff]  }
   0xa   :  { %v1830_v28 = vld [vmem:[%s2621_s0 + $0xa8] sm:$0xff]   ;;  %v1818_v29 = vld [vmem:[%s2621_s0 + $0x30] sm:$0xff]   ;;  %v1819_v31 = vld [vmem:[%s2621_s0 + $0x38] sm:$0xff]  }
   0xb   :  { %371 = vmatpush1.bf16.msra.mxu0 %v1796_v6  ;;  %1781 = vmatpush1.bf16.msra.mxu1 %v1796_v6  ;;  %v1832_v30 = vld [vmem:[%s2621_s0 + $0xb0] sm:$0xff]   ;;  %v1834_v32 = vld [vmem:[%s2621_s0 + $0xb8] sm:$0xff]   ;;  %v1821_v33 = vld [vmem:[%s2621_s0 + $0x40] sm:$0xff]  }
   0xc   :  { %372 = vmatprep.subr.bf16.mxu0 %v1797_v7  ;;  %1774 = vmatprep.subr.bf16.mxu1 %v1797_v7  ;;  %v1836_v34 = vld [vmem:[%s2621_s0 + $0xc0] sm:$0xff]   ;;  %v1823_v35 = vld [vmem:[%s2621_s0 + $0x48] sm:$0xff]   ;;  %v1825_v37 = vld [vmem:[%s2621_s0 + $0x50] sm:$0xff]  }
   0xd   :  { %v1837_v36 = vld [vmem:[%s2621_s0 + $0xc8] sm:$0xff]   ;;  %v1838_v38 = vld [vmem:[%s2621_s0 + $0xd0] sm:$0xff]   ;;  %v1827_v39 = vld [vmem:[%s2621_s0 + $0x58] sm:$0xff]  }
   0xe   :  { %v1839_v40 = vld [vmem:[%s2621_s0 + $0xd8] sm:$0xff]   ;;  %v1829_v41 = vld [vmem:[%s2621_s0 + $0x60] sm:$0xff]   ;;  %v1831_v43 = vld [vmem:[%s2621_s0 + $0x68] sm:$0xff]  }
   0xf   :  { %373 = vmatpush1.bf16.msra.mxu0 %v1799_v8  ;;  %1782 = vmatpush1.bf16.msra.mxu1 %v1799_v8  ;;  %v1840_v42 = vld [vmem:[%s2621_s0 + $0xe0] sm:$0xff]   ;;  %v1841_v44 = vld [vmem:[%s2621_s0 + $0xe8] sm:$0xff]   ;;  %v1833_v45 = vld [vmem:[%s2621_s0 + $0x70] sm:$0xff]  }
  0x10   :  { %374 = vmatprep.subr.bf16.mxu0 %v1800_v9  ;;  %1775 = vmatprep.subr.bf16.mxu1 %v1800_v9  ;;  %v1842_v46 = vld [vmem:[%s2621_s0 + $0xf0] sm:$0xff]   ;;  %v1835_v47 = vld [vmem:[%s2621_s0 + $0x78] sm:$0xff]  }
  0x11   :  { %v1843_v48 = vld [vmem:[%s2621_s0 + $0xf8] sm:$0xff]  }
  0x13   :  { %375 = vmatpush1.bf16.msra.mxu0 %v1802_v10  ;;  %1783 = vmatpush1.bf16.msra.mxu1 %v1802_v10 }
  0x14   :  { %376 = vmatprep.subr.bf16.mxu0 %v1803_v11  ;;  %1776 = vmatprep.subr.bf16.mxu1 %v1803_v11 }
  0x17   :  { %377 = vmatpush1.bf16.msra.mxu0 %v1805_v12  ;;  %1784 = vmatpush1.bf16.msra.mxu1 %v1805_v12 }
  0x18   :  { %378 = vmatprep.subr.bf16.mxu0 %v1806_v13  ;;  %1777 = vmatprep.subr.bf16.mxu1 %v1806_v13 }
  0x1b   :  { %379 = vmatpush1.bf16.msra.mxu0 %v1808_v14  ;;  %1785 = vmatpush1.bf16.msra.mxu1 %v1808_v14 }
  0x1c   :  { %380 = vmatprep.subr.bf16.mxu0 %v1809_v15  ;;  %1778 = vmatprep.subr.bf16.mxu1 %v1809_v15 }
  0x1f   :  { %381 = vmatpush1.bf16.msra.mxu0 %v1811_v16  ;;  %1786 = vmatpush1.bf16.msra.mxu1 %v1811_v16 }
  0x22   :  { %399 = vmatmul.mubr.bf16.vlgmr.msra.gmra.mrb[0].mxu0 %v1812_v17  ;;  %559 = vmatmul.mubr.bf16.vlgmr.msra.gmra.mrb[0].mxu1 %v1820_v18 }
  0x23   :  { %408 = vmatprep.mubr.bf16.mxu0 %v1844_v1  ;;  %568 = vmatprep.mubr.bf16.mxu1 %v1844_v1 }
  0x2a   :  { %409 = vmatmul.mubr.bf16.gmra.mrb[4].mxu0 %v1813_v19  ;;  %569 = vmatmul.mubr.bf16.gmra.mrb[4].mxu1 %v1822_v20 }
  0x2b   :  { %418 = vmatprep.mubr.bf16.mxu0 %v1844_v1  ;;  %578 = vmatprep.mubr.bf16.mxu1 %v1844_v1 }
  0x32   :  { %419 = vmatmul.mubr.bf16.gmra.mrb[8].mxu0 %v1814_v21  ;;  %579 = vmatmul.mubr.bf16.gmra.mrb[8].mxu1 %v1824_v22 }
  0x33   :  { %428 = vmatprep.mubr.bf16.mxu0 %v1844_v1  ;;  %588 = vmatprep.mubr.bf16.mxu1 %v1844_v1 }
  0x3a   :  { %429 = vmatmul.mubr.bf16.gmra.mrb[12].mxu0 %v1815_v23  ;;  %589 = vmatmul.mubr.bf16.gmra.mrb[12].mxu1 %v1826_v24 }
  0x3b   :  { %438 = vmatprep.mubr.bf16.mxu0 %v1844_v1  ;;  %598 = vmatprep.mubr.bf16.mxu1 %v1844_v1 }
  0x42   :  { %439 = vmatmul.mubr.bf16.gmra.mrb[16].mxu0 %v1816_v25  ;;  %599 = vmatmul.mubr.bf16.gmra.mrb[16].mxu1 %v1828_v26 }
  0x43   :  { %448 = vmatprep.mubr.bf16.mxu0 %v1844_v1  ;;  %608 = vmatprep.mubr.bf16.mxu1 %v1844_v1 }
  0x4a   :  { %449 = vmatmul.mubr.bf16.gmra.mrb[20].mxu0 %v1817_v27  ;;  %609 = vmatmul.mubr.bf16.gmra.mrb[20].mxu1 %v1830_v28 }
  0x4b   :  { %458 = vmatprep.mubr.bf16.mxu0 %v1844_v1  ;;  %618 = vmatprep.mubr.bf16.mxu1 %v1844_v1 }
  0x52   :  { %459 = vmatmul.mubr.bf16.gmra.mrb[24].mxu0 %v1818_v29  ;;  %619 = vmatmul.mubr.bf16.gmra.mrb[24].mxu1 %v1832_v30 }
  0x53   :  { %468 = vmatprep.mubr.bf16.mxu0 %v1844_v1  ;;  %628 = vmatprep.mubr.bf16.mxu1 %v1844_v1 }
  0x5a   :  { %469 = vmatmul.mubr.bf16.gmra.mrb[28].mxu0 %v1819_v31  ;;  %629 = vmatmul.mubr.bf16.gmra.mrb[28].mxu1 %v1834_v32 }
  0x5b   :  { %478 = vmatprep.mubr.bf16.mxu0 %v1844_v1  ;;  %638 = vmatprep.mubr.bf16.mxu1 %v1844_v1 }
  0x62   :  { %479 = vmatmul.mubr.bf16.gmra.mrb[32].mxu0 %v1821_v33  ;;  %639 = vmatmul.mubr.bf16.gmra.mrb[32].mxu1 %v1836_v34 }
  0x63   :  { %488 = vmatprep.mubr.bf16.mxu0 %v1844_v1  ;;  %648 = vmatprep.mubr.bf16.mxu1 %v1844_v1 }
  0x6a   :  { %489 = vmatmul.mubr.bf16.gmra.mrb[36].mxu0 %v1823_v35  ;;  %649 = vmatmul.mubr.bf16.gmra.mrb[36].mxu1 %v1837_v36 }
  0x6b   :  { %498 = vmatprep.mubr.bf16.mxu0 %v1844_v1  ;;  %658 = vmatprep.mubr.bf16.mxu1 %v1844_v1 }
  0x72   :  { %499 = vmatmul.mubr.bf16.gmra.mrb[40].mxu0 %v1825_v37  ;;  %659 = vmatmul.mubr.bf16.gmra.mrb[40].mxu1 %v1838_v38 }
  0x73   :  { %508 = vmatprep.mubr.bf16.mxu0 %v1844_v1  ;;  %668 = vmatprep.mubr.bf16.mxu1 %v1844_v1 }
  0x7a   :  { %509 = vmatmul.mubr.bf16.gmra.mrb[44].mxu0 %v1827_v39  ;;  %669 = vmatmul.mubr.bf16.gmra.mrb[44].mxu1 %v1839_v40 }
  0x7b   :  { %518 = vmatprep.mubr.bf16.mxu0 %v1844_v1  ;;  %678 = vmatprep.mubr.bf16.mxu1 %v1844_v1 }
  0x82   :  { %519 = vmatmul.mubr.bf16.gmra.mrb[48].mxu0 %v1829_v41  ;;  %679 = vmatmul.mubr.bf16.gmra.mrb[48].mxu1 %v1840_v42 }
  0x83   :  { %528 = vmatprep.mubr.bf16.mxu0 %v1844_v1  ;;  %688 = vmatprep.mubr.bf16.mxu1 %v1844_v1 }
  0x8a   :  { %529 = vmatmul.mubr.bf16.gmra.mrb[52].mxu0 %v1831_v43  ;;  %689 = vmatmul.mubr.bf16.gmra.mrb[52].mxu1 %v1841_v44 }
  0x8b   :  { %538 = vmatprep.mubr.bf16.mxu0 %v1844_v1  ;;  %698 = vmatprep.mubr.bf16.mxu1 %v1844_v1 }
  0x92   :  { %539 = vmatmul.mubr.bf16.gmra.mrb[56].mxu0 %v1833_v45  ;;  %699 = vmatmul.mubr.bf16.gmra.mrb[56].mxu1 %v1842_v46 }
  0x93   :  { %548 = vmatprep.mubr.bf16.mxu0 %v1844_v1  ;;  %708 = vmatprep.mubr.bf16.mxu1 %v1844_v1 }
  0x9a   :  { %549 = vmatmul.mubr.bf16.gmra.mrb[60].mxu0 %v1835_v47  ;;  %709 = vmatmul.mubr.bf16.gmra.mrb[60].mxu1 %v1843_v48 }
  0xf5   :  { %v400_v49 = vpop.f32.mrb[0].mxu0  ;;  %v2041_v50 = vpop.f32.mrb[0].mxu1 }
  0xf6   :  { %v402_v51 = vpop.f32.mrb[1].mxu0  ;;  %v2043_v52 = vpop.f32.mrb[1].mxu1  ;;  %v1305_v57 = vmul.f32 %v400_v49, %v400_v49 }
  0xf7   :  { %v1707_v53 = vpack.c.bf16 %v402_v51, %v400_v49  ;;  %v404_v54 = vpop.f32.mrb[2].mxu0  ;;  %v1739_v55 = vpack.c.bf16 %v2043_v52, %v2041_v50  ;;  %v2047_v56 = vpop.f32.mrb[2].mxu1  ;;  %v1306_v58 = vmul.f32 %v402_v51, %v402_v51 }
  0xf8   :  { %v1167_v59 = vadd.f32 %v404_v54, %v400_v49  ;;  %v1307_v60 = vmul.f32 %v404_v54, %v404_v54  ;;  %v406_v61 = vpop.f32.mrb[3].mxu0  ;;  %v2049_v62 = vpop.f32.mrb[3].mxu1 }
  0xf9   :  { %1103 = vst [vmem:[%s2622_s2] sm:$0xff] %v1707_v53  ;;  %v1708_v63 = vpack.c.bf16 %v406_v61, %v404_v54  ;;  %v1236_v0 = vadd.f32 %v406_v61, %v402_v51  ;;  %v1308_v1 = vmul.f32 %v406_v61, %v406_v61  ;;  %1135 = vst [vmem:[%s2622_s2 + $0x100] sm:$0xff] %v1739_v55 }
  0xfa   :  { %v1740_v2 = vpack.c.bf16 %v2049_v62, %v2047_v56  ;;  %v1433_v3 = vadd.f32 %v1307_v60, %v1305_v57 }
  0xfb   :  { %1104 = vst [vmem:[%s2622_s2 + $0x8] sm:$0xff] %v1708_v63  ;;  %v1502_v4 = vadd.f32 %v1308_v1, %v1306_v58 }
  0xfc   :  { %1136 = vst [vmem:[%s2622_s2 + $0x108] sm:$0xff] %v1740_v2 }
  0xfd   :  { %v410_v5 = vpop.f32.mrb[4].mxu0  ;;  %v2065_v6 = vpop.f32.mrb[4].mxu1 }
  0xfe   :  { %v1168_v7 = vadd.f32 %v1167_v59, %v410_v5  ;;  %v1309_v8 = vmul.f32 %v410_v5, %v410_v5  ;;  %v412_v9 = vpop.f32.mrb[5].mxu0  ;;  %v2067_v10 = vpop.f32.mrb[5].mxu1 }
  0xff   :  { %v1709_v11 = vpack.c.bf16 %v412_v9, %v410_v5  ;;  %v1237_v12 = vadd.f32 %v1236_v0, %v412_v9  ;;  %v1310_v13 = vmul.f32 %v412_v9, %v412_v9  ;;  %v414_v14 = vpop.f32.mrb[6].mxu0  ;;  %v1741_v15 = vpack.c.bf16 %v2067_v10, %v2065_v6  ;;  %v2071_v16 = vpop.f32.mrb[6].mxu1 }
 0x100   :  { %v1434_v17 = vadd.f32 %v1433_v3, %v1309_v8  ;;  %v1169_v18 = vadd.f32 %v1168_v7, %v414_v14  ;;  %v1311_v19 = vmul.f32 %v414_v14, %v414_v14  ;;  %v416_v20 = vpop.f32.mrb[7].mxu0  ;;  %v2073_v21 = vpop.f32.mrb[7].mxu1 }
 0x101   :  { %1105 = vst [vmem:[%s2622_s2 + $0x10] sm:$0xff] %v1709_v11  ;;  %v1503_v22 = vadd.f32 %v1502_v4, %v1310_v13  ;;  %v1710_v23 = vpack.c.bf16 %v416_v20, %v414_v14  ;;  %v1238_v24 = vadd.f32 %v1237_v12, %v416_v20  ;;  %v1312_v25 = vmul.f32 %v416_v20, %v416_v20 }
 0x102   :  { %1137 = vst [vmem:[%s2622_s2 + $0x110] sm:$0xff] %v1741_v15  ;;  %v1435_v26 = vadd.f32 %v1434_v17, %v1311_v19  ;;  %v1742_v27 = vpack.c.bf16 %v2073_v21, %v2071_v16 }
 0x103   :  { %1106 = vst [vmem:[%s2622_s2 + $0x18] sm:$0xff] %v1710_v23  ;;  %v1504_v28 = vadd.f32 %v1503_v22, %v1312_v25 }
 0x104   :  { %1138 = vst [vmem:[%s2622_s2 + $0x118] sm:$0xff] %v1742_v27 }
 0x105   :  { %v420_v29 = vpop.f32.mrb[8].mxu0  ;;  %v2089_v30 = vpop.f32.mrb[8].mxu1 }
 0x106   :  { %v1170_v31 = vadd.f32 %v1169_v18, %v420_v29  ;;  %v1313_v32 = vmul.f32 %v420_v29, %v420_v29  ;;  %v422_v33 = vpop.f32.mrb[9].mxu0  ;;  %v2091_v34 = vpop.f32.mrb[9].mxu1 }
 0x107   :  { %v1711_v35 = vpack.c.bf16 %v422_v33, %v420_v29  ;;  %v1239_v36 = vadd.f32 %v1238_v24, %v422_v33  ;;  %v1314_v37 = vmul.f32 %v422_v33, %v422_v33  ;;  %v424_v38 = vpop.f32.mrb[10].mxu0  ;;  %v1743_v39 = vpack.c.bf16 %v2091_v34, %v2089_v30  ;;  %v2095_v40 = vpop.f32.mrb[10].mxu1 }
 0x108   :  { %v1436_v41 = vadd.f32 %v1435_v26, %v1313_v32  ;;  %v1171_v42 = vadd.f32 %v1170_v31, %v424_v38  ;;  %v1315_v43 = vmul.f32 %v424_v38, %v424_v38  ;;  %v426_v44 = vpop.f32.mrb[11].mxu0  ;;  %v2097_v45 = vpop.f32.mrb[11].mxu1 }
 0x109   :  { %1107 = vst [vmem:[%s2622_s2 + $0x20] sm:$0xff] %v1711_v35  ;;  %v1505_v46 = vadd.f32 %v1504_v28, %v1314_v37  ;;  %v1712_v47 = vpack.c.bf16 %v426_v44, %v424_v38  ;;  %v1240_v48 = vadd.f32 %v1239_v36, %v426_v44  ;;  %v1316_v49 = vmul.f32 %v426_v44, %v426_v44 }
 0x10a   :  { %1139 = vst [vmem:[%s2622_s2 + $0x120] sm:$0xff] %v1743_v39  ;;  %v1437_v51 = vadd.f32 %v1436_v41, %v1315_v43  ;;  %v1744_v53 = vpack.c.bf16 %v2097_v45, %v2095_v40 }
 0x10b   :  { %1108 = vst [vmem:[%s2622_s2 + $0x28] sm:$0xff] %v1712_v47  ;;  %v1506_v54 = vadd.f32 %v1505_v46, %v1316_v49 }
 0x10c   :  { %1140 = vst [vmem:[%s2622_s2 + $0x128] sm:$0xff] %v1744_v53 }
 0x10d   :  { %v430_v55 = vpop.f32.mrb[12].mxu0  ;;  %v2113_v57 = vpop.f32.mrb[12].mxu1 }
 0x10e   :  { %v1172_v58 = vadd.f32 %v1171_v42, %v430_v55  ;;  %v1317_v59 = vmul.f32 %v430_v55, %v430_v55  ;;  %v432_v60 = vpop.f32.mrb[13].mxu0  ;;  %v2115_v61 = vpop.f32.mrb[13].mxu1 }
 0x10f   :  { %v1713_v63 = vpack.c.bf16 %v432_v60, %v430_v55  ;;  %v1241_v0 = vadd.f32 %v1240_v48, %v432_v60  ;;  %v1318_v1 = vmul.f32 %v432_v60, %v432_v60  ;;  %v434_v2 = vpop.f32.mrb[14].mxu0  ;;  %v1745_v3 = vpack.c.bf16 %v2115_v61, %v2113_v57  ;;  %v2119_v4 = vpop.f32.mrb[14].mxu1 }
 0x110   :  { %v1438_v5 = vadd.f32 %v1437_v51, %v1317_v59  ;;  %v1173_v7 = vadd.f32 %v1172_v58, %v434_v2  ;;  %v1319_v8 = vmul.f32 %v434_v2, %v434_v2  ;;  %v436_v9 = vpop.f32.mrb[15].mxu0  ;;  %v2121_v11 = vpop.f32.mrb[15].mxu1 }
 0x111   :  { %1109 = vst [vmem:[%s2622_s2 + $0x30] sm:$0xff] %v1713_v63  ;;  %v1507_v12 = vadd.f32 %v1506_v54, %v1318_v1  ;;  %v1714_v13 = vpack.c.bf16 %v436_v9, %v434_v2  ;;  %v1242_v14 = vadd.f32 %v1241_v0, %v436_v9  ;;  %v1320_v15 = vmul.f32 %v436_v9, %v436_v9 }
 0x112   :  { %1141 = vst [vmem:[%s2622_s2 + $0x130] sm:$0xff] %v1745_v3  ;;  %v1439_v17 = vadd.f32 %v1438_v5, %v1319_v8  ;;  %v1746_v18 = vpack.c.bf16 %v2121_v11, %v2119_v4 }
 0x113   :  { %1110 = vst [vmem:[%s2622_s2 + $0x38] sm:$0xff] %v1714_v13  ;;  %v1508_v19 = vadd.f32 %v1507_v12, %v1320_v15 }
 0x114   :  { %1142 = vst [vmem:[%s2622_s2 + $0x138] sm:$0xff] %v1746_v18 }
 0x115   :  { %v440_v20 = vpop.f32.mrb[16].mxu0  ;;  %v2137_v22 = vpop.f32.mrb[16].mxu1 }
 0x116   :  { %v1174_v23 = vadd.f32 %v1173_v7, %v440_v20  ;;  %v1321_v24 = vmul.f32 %v440_v20, %v440_v20  ;;  %v442_v25 = vpop.f32.mrb[17].mxu0  ;;  %v2139_v26 = vpop.f32.mrb[17].mxu1 }
 0x117   :  { %v1715_v27 = vpack.c.bf16 %v442_v25, %v440_v20  ;;  %v1243_v28 = vadd.f32 %v1242_v14, %v442_v25  ;;  %v1322_v29 = vmul.f32 %v442_v25, %v442_v25  ;;  %v444_v31 = vpop.f32.mrb[18].mxu0  ;;  %v1747_v32 = vpack.c.bf16 %v2139_v26, %v2137_v22  ;;  %v2143_v33 = vpop.f32.mrb[18].mxu1 }
 0x118   :  { %v1440_v35 = vadd.f32 %v1439_v17, %v1321_v24  ;;  %v1175_v36 = vadd.f32 %v1174_v23, %v444_v31  ;;  %v1323_v37 = vmul.f32 %v444_v31, %v444_v31  ;;  %v446_v38 = vpop.f32.mrb[19].mxu0  ;;  %v2145_v39 = vpop.f32.mrb[19].mxu1 }
 0x119   :  { %1111 = vst [vmem:[%s2622_s2 + $0x40] sm:$0xff] %v1715_v27  ;;  %v1509_v41 = vadd.f32 %v1508_v19, %v1322_v29  ;;  %v1716_v42 = vpack.c.bf16 %v446_v38, %v444_v31  ;;  %v1244_v43 = vadd.f32 %v1243_v28, %v446_v38  ;;  %v1324_v44 = vmul.f32 %v446_v38, %v446_v38 }
 0x11a   :  { %1143 = vst [vmem:[%s2622_s2 + $0x140] sm:$0xff] %v1747_v32  ;;  %v1441_v46 = vadd.f32 %v1440_v35, %v1323_v37  ;;  %v1748_v47 = vpack.c.bf16 %v2145_v39, %v2143_v33 }
 0x11b   :  { %1112 = vst [vmem:[%s2622_s2 + $0x48] sm:$0xff] %v1716_v42  ;;  %v1510_v48 = vadd.f32 %v1509_v41, %v1324_v44 }
 0x11c   :  { %1144 = vst [vmem:[%s2622_s2 + $0x148] sm:$0xff] %v1748_v47 }
 0x11d   :  { %v450_v49 = vpop.f32.mrb[20].mxu0  ;;  %v2161_v51 = vpop.f32.mrb[20].mxu1 }
 0x11e   :  { %v1176_v53 = vadd.f32 %v1175_v36, %v450_v49  ;;  %v1325_v54 = vmul.f32 %v450_v49, %v450_v49  ;;  %v452_v55 = vpop.f32.mrb[21].mxu0  ;;  %v2163_v58 = vpop.f32.mrb[21].mxu1 }
 0x11f   :  { %v1717_v59 = vpack.c.bf16 %v452_v55, %v450_v49  ;;  %v1245_v60 = vadd.f32 %v1244_v43, %v452_v55  ;;  %v1326_v63 = vmul.f32 %v452_v55, %v452_v55  ;;  %v454_v0 = vpop.f32.mrb[22].mxu0  ;;  %v1749_v1 = vpack.c.bf16 %v2163_v58, %v2161_v51  ;;  %v2167_v2 = vpop.f32.mrb[22].mxu1 }
 0x120   :  { %v1442_v3 = vadd.f32 %v1441_v46, %v1325_v54  ;;  %v1177_v5 = vadd.f32 %v1176_v53, %v454_v0  ;;  %v1327_v7 = vmul.f32 %v454_v0, %v454_v0  ;;  %v456_v8 = vpop.f32.mrb[23].mxu0  ;;  %v2169_v9 = vpop.f32.mrb[23].mxu1 }
 0x121   :  { %1113 = vst [vmem:[%s2622_s2 + $0x50] sm:$0xff] %v1717_v59  ;;  %v1511_v12 = vadd.f32 %v1510_v48, %v1326_v63  ;;  %v1718_v13 = vpack.c.bf16 %v456_v8, %v454_v0  ;;  %v1246_v14 = vadd.f32 %v1245_v60, %v456_v8  ;;  %v1328_v15 = vmul.f32 %v456_v8, %v456_v8 }
 0x122   :  { %1145 = vst [vmem:[%s2622_s2 + $0x150] sm:$0xff] %v1749_v1  ;;  %v1443_v17 = vadd.f32 %v1442_v3, %v1327_v7  ;;  %v1750_v18 = vpack.c.bf16 %v2169_v9, %v2167_v2 }
 0x123   :  { %1114 = vst [vmem:[%s2622_s2 + $0x58] sm:$0xff] %v1718_v13  ;;  %v1512_v19 = vadd.f32 %v1511_v12, %v1328_v15 }
 0x124   :  { %1146 = vst [vmem:[%s2622_s2 + $0x158] sm:$0xff] %v1750_v18 }
 0x125   :  { %v460_v20 = vpop.f32.mrb[24].mxu0  ;;  %v2185_v23 = vpop.f32.mrb[24].mxu1 }
 0x126   :  { %v1178_v24 = vadd.f32 %v1177_v5, %v460_v20  ;;  %v1329_v25 = vmul.f32 %v460_v20, %v460_v20  ;;  %v462_v27 = vpop.f32.mrb[25].mxu0  ;;  %v2187_v28 = vpop.f32.mrb[25].mxu1 }
 0x127   :  { %v1719_v29 = vpack.c.bf16 %v462_v27, %v460_v20  ;;  %v1247_v31 = vadd.f32 %v1246_v14, %v462_v27  ;;  %v1330_v32 = vmul.f32 %v462_v27, %v462_v27  ;;  %v464_v35 = vpop.f32.mrb[26].mxu0  ;;  %v1751_v36 = vpack.c.bf16 %v2187_v28, %v2185_v23  ;;  %v2191_v37 = vpop.f32.mrb[26].mxu1 }
 0x128   :  { %v1444_v38 = vadd.f32 %v1443_v17, %v1329_v25  ;;  %v1179_v41 = vadd.f32 %v1178_v24, %v464_v35  ;;  %v1331_v42 = vmul.f32 %v464_v35, %v464_v35  ;;  %v466_v43 = vpop.f32.mrb[27].mxu0  ;;  %v2193_v44 = vpop.f32.mrb[27].mxu1 }
 0x129   :  { %1115 = vst [vmem:[%s2622_s2 + $0x60] sm:$0xff] %v1719_v29  ;;  %v1513_v46 = vadd.f32 %v1512_v19, %v1330_v32  ;;  %v1720_v47 = vpack.c.bf16 %v466_v43, %v464_v35  ;;  %v1248_v48 = vadd.f32 %v1247_v31, %v466_v43  ;;  %v1332_v49 = vmul.f32 %v466_v43, %v466_v43 }
 0x12a   :  { %1147 = vst [vmem:[%s2622_s2 + $0x160] sm:$0xff] %v1751_v36  ;;  %v1445_v53 = vadd.f32 %v1444_v38, %v1331_v42  ;;  %v1752_v54 = vpack.c.bf16 %v2193_v44, %v2191_v37 }
 0x12b   :  { %1116 = vst [vmem:[%s2622_s2 + $0x68] sm:$0xff] %v1720_v47  ;;  %v1514_v55 = vadd.f32 %v1513_v46, %v1332_v49 }
 0x12c   :  { %1148 = vst [vmem:[%s2622_s2 + $0x168] sm:$0xff] %v1752_v54 }
 0x12d   :  { %v470_v59 = vpop.f32.mrb[28].mxu0  ;;  %v2209_v60 = vpop.f32.mrb[28].mxu1 }
 0x12e   :  { %v1180_v63 = vadd.f32 %v1179_v41, %v470_v59  ;;  %v1333_v0 = vmul.f32 %v470_v59, %v470_v59  ;;  %v472_v1 = vpop.f32.mrb[29].mxu0  ;;  %v2211_v3 = vpop.f32.mrb[29].mxu1 }
 0x12f   :  { %v1721_v5 = vpack.c.bf16 %v472_v1, %v470_v59  ;;  %v1249_v7 = vadd.f32 %v1248_v48, %v472_v1  ;;  %v1334_v8 = vmul.f32 %v472_v1, %v472_v1  ;;  %v474_v12 = vpop.f32.mrb[30].mxu0  ;;  %v1753_v13 = vpack.c.bf16 %v2211_v3, %v2209_v60  ;;  %v2215_v14 = vpop.f32.mrb[30].mxu1 }
 0x130   :  { %v1446_v15 = vadd.f32 %v1445_v53, %v1333_v0  ;;  %v1181_v17 = vadd.f32 %v1180_v63, %v474_v12  ;;  %v1335_v18 = vmul.f32 %v474_v12, %v474_v12  ;;  %v476_v19 = vpop.f32.mrb[31].mxu0  ;;  %v2217_v20 = vpop.f32.mrb[31].mxu1 }
 0x131   :  { %1117 = vst [vmem:[%s2622_s2 + $0x70] sm:$0xff] %v1721_v5  ;;  %v1515_v24 = vadd.f32 %v1514_v55, %v1334_v8  ;;  %v1722_v25 = vpack.c.bf16 %v476_v19, %v474_v12  ;;  %v1250_v27 = vadd.f32 %v1249_v7, %v476_v19  ;;  %v1336_v29 = vmul.f32 %v476_v19, %v476_v19 }
 0x132   :  { %1149 = vst [vmem:[%s2622_s2 + $0x170] sm:$0xff] %v1753_v13  ;;  %v1447_v31 = vadd.f32 %v1446_v15, %v1335_v18  ;;  %v1754_v32 = vpack.c.bf16 %v2217_v20, %v2215_v14 }
 0x133   :  { %1118 = vst [vmem:[%s2622_s2 + $0x78] sm:$0xff] %v1722_v25  ;;  %v1516_v35 = vadd.f32 %v1515_v24, %v1336_v29 }
 0x134   :  { %1150 = vst [vmem:[%s2622_s2 + $0x178] sm:$0xff] %v1754_v32 }
 0x135   :  { %v480_v36 = vpop.f32.mrb[32].mxu0  ;;  %v2233_v38 = vpop.f32.mrb[32].mxu1 }
 0x136   :  { %v1182_v41 = vadd.f32 %v1181_v17, %v480_v36  ;;  %v1337_v42 = vmul.f32 %v480_v36, %v480_v36  ;;  %v482_v43 = vpop.f32.mrb[33].mxu0  ;;  %v2235_v46 = vpop.f32.mrb[33].mxu1 }
 0x137   :  { %v1723_v47 = vpack.c.bf16 %v482_v43, %v480_v36  ;;  %v1251_v48 = vadd.f32 %v1250_v27, %v482_v43  ;;  %v1338_v49 = vmul.f32 %v482_v43, %v482_v43  ;;  %v484_v53 = vpop.f32.mrb[34].mxu0  ;;  %v1755_v54 = vpack.c.bf16 %v2235_v46, %v2233_v38  ;;  %v2239_v55 = vpop.f32.mrb[34].mxu1 }
 0x138   :  { %v1448_v59 = vadd.f32 %v1447_v31, %v1337_v42  ;;  %v1183_v63 = vadd.f32 %v1182_v41, %v484_v53  ;;  %v1339_v0 = vmul.f32 %v484_v53, %v484_v53  ;;  %v486_v1 = vpop.f32.mrb[35].mxu0  ;;  %v2241_v5 = vpop.f32.mrb[35].mxu1 }
 0x139   :  { %1119 = vst [vmem:[%s2622_s2 + $0x80] sm:$0xff] %v1723_v47  ;;  %v1517_v7 = vadd.f32 %v1516_v35, %v1338_v49  ;;  %v1724_v8 = vpack.c.bf16 %v486_v1, %v484_v53  ;;  %v1252_v12 = vadd.f32 %v1251_v48, %v486_v1  ;;  %v1340_v13 = vmul.f32 %v486_v1, %v486_v1 }
 0x13a   :  { %1151 = vst [vmem:[%s2622_s2 + $0x180] sm:$0xff] %v1755_v54  ;;  %v1449_v15 = vadd.f32 %v1448_v59, %v1339_v0  ;;  %v1756_v17 = vpack.c.bf16 %v2241_v5, %v2239_v55 }
 0x13b   :  { %1120 = vst [vmem:[%s2622_s2 + $0x88] sm:$0xff] %v1724_v8  ;;  %v1518_v18 = vadd.f32 %v1517_v7, %v1340_v13 }
 0x13c   :  { %1152 = vst [vmem:[%s2622_s2 + $0x188] sm:$0xff] %v1756_v17 }
 0x13d   :  { %v490_v19 = vpop.f32.mrb[36].mxu0  ;;  %v2257_v24 = vpop.f32.mrb[36].mxu1 }
 0x13e   :  { %v1184_v25 = vadd.f32 %v1183_v63, %v490_v19  ;;  %v1341_v27 = vmul.f32 %v490_v19, %v490_v19  ;;  %v492_v29 = vpop.f32.mrb[37].mxu0  ;;  %v2259_v31 = vpop.f32.mrb[37].mxu1 }
 0x13f   :  { %v1725_v32 = vpack.c.bf16 %v492_v29, %v490_v19  ;;  %v1253_v35 = vadd.f32 %v1252_v12, %v492_v29  ;;  %v1342_v36 = vmul.f32 %v492_v29, %v492_v29  ;;  %v494_v41 = vpop.f32.mrb[38].mxu0  ;;  %v1757_v42 = vpack.c.bf16 %v2259_v31, %v2257_v24  ;;  %v2263_v43 = vpop.f32.mrb[38].mxu1 }
 0x140   :  { %v1450_v47 = vadd.f32 %v1449_v15, %v1341_v27  ;;  %v1185_v48 = vadd.f32 %v1184_v25, %v494_v41  ;;  %v1343_v49 = vmul.f32 %v494_v41, %v494_v41  ;;  %v496_v53 = vpop.f32.mrb[39].mxu0  ;;  %v2265_v54 = vpop.f32.mrb[39].mxu1 }
 0x141   :  { %1121 = vst [vmem:[%s2622_s2 + $0x90] sm:$0xff] %v1725_v32  ;;  %v1519_v59 = vadd.f32 %v1518_v18, %v1342_v36  ;;  %v1726_v63 = vpack.c.bf16 %v496_v53, %v494_v41  ;;  %v1254_v0 = vadd.f32 %v1253_v35, %v496_v53  ;;  %v1344_v1 = vmul.f32 %v496_v53, %v496_v53 }
 0x142   :  { %1153 = vst [vmem:[%s2622_s2 + $0x190] sm:$0xff] %v1757_v42  ;;  %v1451_v7 = vadd.f32 %v1450_v47, %v1343_v49  ;;  %v1758_v8 = vpack.c.bf16 %v2265_v54, %v2263_v43 }
 0x143   :  { %1122 = vst [vmem:[%s2622_s2 + $0x98] sm:$0xff] %v1726_v63  ;;  %v1520_v12 = vadd.f32 %v1519_v59, %v1344_v1 }
 0x144   :  { %1154 = vst [vmem:[%s2622_s2 + $0x198] sm:$0xff] %v1758_v8 }
 0x145   :  { %v500_v13 = vpop.f32.mrb[40].mxu0  ;;  %v2281_v15 = vpop.f32.mrb[40].mxu1 }
 0x146   :  { %v1186_v17 = vadd.f32 %v1185_v48, %v500_v13  ;;  %v1345_v18 = vmul.f32 %v500_v13, %v500_v13  ;;  %v502_v19 = vpop.f32.mrb[41].mxu0  ;;  %v2283_v25 = vpop.f32.mrb[41].mxu1 }
 0x147   :  { %v1727_v27 = vpack.c.bf16 %v502_v19, %v500_v13  ;;  %v1255_v29 = vadd.f32 %v1254_v0, %v502_v19  ;;  %v1346_v32 = vmul.f32 %v502_v19, %v502_v19  ;;  %v504_v35 = vpop.f32.mrb[42].mxu0  ;;  %v1759_v36 = vpack.c.bf16 %v2283_v25, %v2281_v15  ;;  %v2287_v41 = vpop.f32.mrb[42].mxu1 }
 0x148   :  { %v1452_v42 = vadd.f32 %v1451_v7, %v1345_v18  ;;  %v1187_v47 = vadd.f32 %v1186_v17, %v504_v35  ;;  %v1347_v49 = vmul.f32 %v504_v35, %v504_v35  ;;  %v506_v53 = vpop.f32.mrb[43].mxu0  ;;  %v2289_v59 = vpop.f32.mrb[43].mxu1 }
 0x149   :  { %2660 = vst [vmem:[#allocation2_spill] sm:$0xff] %v2289_v59  ;;  %1123 = vst [vmem:[%s2622_s2 + $0xa0] sm:$0xff] %v1727_v27  ;;  %v1521_v48 = vadd.f32 %v1520_v12, %v1346_v32  ;;  %v1728_v63 = vpack.c.bf16 %v506_v53, %v504_v35  ;;  %v1256_v0 = vadd.f32 %v1255_v29, %v506_v53 }
 0x14a   :  { %v1348_v1 = vmul.f32 %v506_v53, %v506_v53  ;;  %1155 = vst [vmem:[%s2622_s2 + $0x1a0] sm:$0xff] %v1759_v36  ;;  %v1453_v8 = vadd.f32 %v1452_v42, %v1347_v49  ;;  %v1760_v7 = vpack.c.bf16 %v2289_v59, %v2287_v41 }
 0x14b   :  { %1124 = vst [vmem:[%s2622_s2 + $0xa8] sm:$0xff] %v1728_v63 }
 0x14c   :  { %v1522_v13 = vadd.f32 %v1521_v48, %v1348_v1  ;;  %1156 = vst [vmem:[%s2622_s2 + $0x1a8] sm:$0xff] %v1760_v7 }
 0x14d   :  { %v510_v12 = vpop.f32.mrb[44].mxu0  ;;  %v2305_v17 = vpop.f32.mrb[44].mxu1 }
 0x14e   :  { %2661 = vst [vmem:[#allocation3_spill] sm:$0xff] %v2305_v17  ;;  %v1188_v18 = vadd.f32 %v1187_v47, %v510_v12  ;;  %v1349_v19 = vmul.f32 %v510_v12, %v510_v12  ;;  %v512_v27 = vpop.f32.mrb[45].mxu0  ;;  %v2307_v29 = vpop.f32.mrb[45].mxu1 }
 0x14f   :  { %2662 = vst [vmem:[#allocation4_spill] sm:$0xff] %v2307_v29  ;;  %v1729_v32 = vpack.c.bf16 %v512_v27, %v510_v12  ;;  %v1257_v35 = vadd.f32 %v1256_v0, %v512_v27  ;;  %v1350_v36 = vmul.f32 %v512_v27, %v512_v27  ;;  %v514_v42 = vpop.f32.mrb[46].mxu0  ;;  %v1761_v49 = vpack.c.bf16 %v2307_v29, %v2305_v17  ;;  %v2311_v53 = vpop.f32.mrb[46].mxu1 }
 0x150   :  { %2663 = vst [vmem:[#allocation5_spill] sm:$0xff] %v2311_v53  ;;  %v1454_v48 = vadd.f32 %v1453_v8, %v1349_v19  ;;  %v1189_v63 = vadd.f32 %v1188_v18, %v514_v42  ;;  %v1351_v1 = vmul.f32 %v514_v42, %v514_v42  ;;  %v516_v7 = vpop.f32.mrb[47].mxu0  ;;  %v2313_v59 = vpop.f32.mrb[47].mxu1 }
 0x151   :  { %2664 = vst [vmem:[#allocation6_spill] sm:$0xff] %v2313_v59  ;;  %1125 = vst [vmem:[%s2622_s2 + $0xb0] sm:$0xff] %v1729_v32  ;;  %v1523_v47 = vadd.f32 %v1522_v13, %v1350_v36  ;;  %v1730_v12 = vpack.c.bf16 %v516_v7, %v514_v42  ;;  %v1258_v0 = vadd.f32 %v1257_v35, %v516_v7 }
 0x152   :  { %v1352_v27 = vmul.f32 %v516_v7, %v516_v7  ;;  %1157 = vst [vmem:[%s2622_s2 + $0x1b0] sm:$0xff] %v1761_v49  ;;  %v1455_v29 = vadd.f32 %v1454_v48, %v1351_v1  ;;  %v1762_v8 = vpack.c.bf16 %v2313_v59, %v2311_v53 }
 0x153   :  { %1126 = vst [vmem:[%s2622_s2 + $0xb8] sm:$0xff] %v1730_v12 }
 0x154   :  { %v1524_v18 = vadd.f32 %v1523_v47, %v1352_v27  ;;  %1158 = vst [vmem:[%s2622_s2 + $0x1b8] sm:$0xff] %v1762_v8 }
 0x155   :  { %v520_v13 = vpop.f32.mrb[48].mxu0  ;;  %v2329_v19 = vpop.f32.mrb[48].mxu1 }
 0x156   :  { %2665 = vst [vmem:[#allocation7_spill] sm:$0xff] %v2329_v19  ;;  %v1190_v32 = vadd.f32 %v1189_v63, %v520_v13  ;;  %v1353_v35 = vmul.f32 %v520_v13, %v520_v13  ;;  %v522_v36 = vpop.f32.mrb[49].mxu0  ;;  %v2331_v42 = vpop.f32.mrb[49].mxu1 }
 0x157   :  { %2666 = vst [vmem:[#allocation8_spill] sm:$0xff] %v2331_v42  ;;  %v1731_v49 = vpack.c.bf16 %v522_v36, %v520_v13  ;;  %v1259_v48 = vadd.f32 %v1258_v0, %v522_v36  ;;  %v1354_v1 = vmul.f32 %v522_v36, %v522_v36  ;;  %v524_v7 = vpop.f32.mrb[50].mxu0  ;;  %v1763_v12 = vpack.c.bf16 %v2331_v42, %v2329_v19  ;;  %v2335_v47 = vpop.f32.mrb[50].mxu1 }
 0x158   :  { %2667 = vst [vmem:[#allocation9_spill] sm:$0xff] %v2335_v47  ;;  %v1456_v27 = vadd.f32 %v1455_v29, %v1353_v35  ;;  %v1191_v59 = vadd.f32 %v1190_v32, %v524_v7  ;;  %v1355_v8 = vmul.f32 %v524_v7, %v524_v7  ;;  %v526_v53 = vpop.f32.mrb[51].mxu0  ;;  %v2337_v17 = vpop.f32.mrb[51].mxu1 }
 0x159   :  { %2668 = vst [vmem:[#allocation10_spill] sm:$0xff] %v2337_v17  ;;  %1127 = vst [vmem:[%s2622_s2 + $0xc0] sm:$0xff] %v1731_v49  ;;  %v1525_v63 = vadd.f32 %v1524_v18, %v1354_v1  ;;  %v1732_v13 = vpack.c.bf16 %v526_v53, %v524_v7  ;;  %v1260_v0 = vadd.f32 %v1259_v48, %v526_v53 }
 0x15a   :  { %v1356_v36 = vmul.f32 %v526_v53, %v526_v53  ;;  %1159 = vst [vmem:[%s2622_s2 + $0x1c0] sm:$0xff] %v1763_v12  ;;  %v1457_v42 = vadd.f32 %v1456_v27, %v1355_v8  ;;  %v1764_v29 = vpack.c.bf16 %v2337_v17, %v2335_v47 }
 0x15b   :  { %1128 = vst [vmem:[%s2622_s2 + $0xc8] sm:$0xff] %v1732_v13 }
 0x15c   :  { %v1526_v32 = vadd.f32 %v1525_v63, %v1356_v36  ;;  %1160 = vst [vmem:[%s2622_s2 + $0x1c8] sm:$0xff] %v1764_v29 }
 0x15d   :  { %v530_v18 = vpop.f32.mrb[52].mxu0  ;;  %v2353_v35 = vpop.f32.mrb[52].mxu1 }
 0x15e   :  { %2669 = vst [vmem:[#allocation11_spill] sm:$0xff] %v2353_v35  ;;  %v1192_v53 = vadd.f32 %v1191_v59, %v530_v18  ;;  %v1357_v49 = vmul.f32 %v530_v18, %v530_v18  ;;  %v532_v48 = vpop.f32.mrb[53].mxu0  ;;  %v2355_v1 = vpop.f32.mrb[53].mxu1 }
 0x15f   :  { %2670 = vst [vmem:[#allocation12_spill] sm:$0xff] %v2355_v1  ;;  %v1733_v7 = vpack.c.bf16 %v532_v48, %v530_v18  ;;  %v1261_v12 = vadd.f32 %v1260_v0, %v532_v48  ;;  %v1358_v27 = vmul.f32 %v532_v48, %v532_v48  ;;  %v534_v8 = vpop.f32.mrb[54].mxu0  ;;  %v1765_v13 = vpack.c.bf16 %v2355_v1, %v2353_v35  ;;  %v2359_v63 = vpop.f32.mrb[54].mxu1 }
 0x160   :  { %2671 = vst [vmem:[#allocation13_spill] sm:$0xff] %v2359_v63  ;;  %v1458_v36 = vadd.f32 %v1457_v42, %v1357_v49  ;;  %v1193_v17 = vadd.f32 %v1192_v53, %v534_v8  ;;  %v1359_v29 = vmul.f32 %v534_v8, %v534_v8  ;;  %v536_v47 = vpop.f32.mrb[55].mxu0  ;;  %v2361_v19 = vpop.f32.mrb[55].mxu1 }
 0x161   :  { %2672 = vst [vmem:[#allocation14_spill] sm:$0xff] %v2361_v19  ;;  %1129 = vst [vmem:[%s2622_s2 + $0xd0] sm:$0xff] %v1733_v7  ;;  %v1527_v59 = vadd.f32 %v1526_v32, %v1358_v27  ;;  %v1734_v18 = vpack.c.bf16 %v536_v47, %v534_v8  ;;  %v1262_v0 = vadd.f32 %v1261_v12, %v536_v47 }
 0x162   :  { %v1360_v48 = vmul.f32 %v536_v47, %v536_v47  ;;  %1161 = vst [vmem:[%s2622_s2 + $0x1d0] sm:$0xff] %v1765_v13  ;;  %v1459_v1 = vadd.f32 %v1458_v36, %v1359_v29  ;;  %v1766_v42 = vpack.c.bf16 %v2361_v19, %v2359_v63 }
 0x163   :  { %1130 = vst [vmem:[%s2622_s2 + $0xd8] sm:$0xff] %v1734_v18 }
 0x164   :  { %v1528_v53 = vadd.f32 %v1527_v59, %v1360_v48  ;;  %1162 = vst [vmem:[%s2622_s2 + $0x1d8] sm:$0xff] %v1766_v42 }
 0x165   :  { %v540_v32 = vpop.f32.mrb[56].mxu0  ;;  %v2377_v49 = vpop.f32.mrb[56].mxu1 }
 0x166   :  { %2673 = vst [vmem:[#allocation15_spill] sm:$0xff] %v2377_v49  ;;  %v1194_v47 = vadd.f32 %v1193_v17, %v540_v32  ;;  %v1361_v7 = vmul.f32 %v540_v32, %v540_v32  ;;  %v542_v12 = vpop.f32.mrb[57].mxu0  ;;  %v2379_v27 = vpop.f32.mrb[57].mxu1 }
 0x167   :  { %2674 = vst [vmem:[#allocation16_spill] sm:$0xff] %v2379_v27  ;;  %v1735_v8 = vpack.c.bf16 %v542_v12, %v540_v32  ;;  %v1263_v13 = vadd.f32 %v1262_v0, %v542_v12  ;;  %v1362_v36 = vmul.f32 %v542_v12, %v542_v12  ;;  %v544_v29 = vpop.f32.mrb[58].mxu0  ;;  %v1767_v18 = vpack.c.bf16 %v2379_v27, %v2377_v49  ;;  %v2383_v59 = vpop.f32.mrb[58].mxu1 }
 0x168   :  { %2675 = vst [vmem:[#allocation17_spill] sm:$0xff] %v2383_v59  ;;  %v1460_v48 = vadd.f32 %v1459_v1, %v1361_v7  ;;  %v1195_v19 = vadd.f32 %v1194_v47, %v544_v29  ;;  %v1363_v42 = vmul.f32 %v544_v29, %v544_v29  ;;  %v546_v63 = vpop.f32.mrb[59].mxu0  ;;  %v2385_v35 = vpop.f32.mrb[59].mxu1 }
 0x169   :  { %2676 = vst [vmem:[#allocation18_spill] sm:$0xff] %v2385_v35  ;;  %1131 = vst [vmem:[%s2622_s2 + $0xe0] sm:$0xff] %v1735_v8  ;;  %v1529_v17 = vadd.f32 %v1528_v53, %v1362_v36  ;;  %v1736_v32 = vpack.c.bf16 %v546_v63, %v544_v29  ;;  %v1264_v0 = vadd.f32 %v1263_v13, %v546_v63 }
 0x16a   :  { %v1364_v12 = vmul.f32 %v546_v63, %v546_v63  ;;  %1163 = vst [vmem:[%s2622_s2 + $0x1e0] sm:$0xff] %v1767_v18  ;;  %v1461_v27 = vadd.f32 %v1460_v48, %v1363_v42  ;;  %v1768_v1 = vpack.c.bf16 %v2385_v35, %v2383_v59 }
 0x16b   :  { %1132 = vst [vmem:[%s2622_s2 + $0xe8] sm:$0xff] %v1736_v32 }
 0x16c   :  { %v1530_v47 = vadd.f32 %v1529_v17, %v1364_v12  ;;  %1164 = vst [vmem:[%s2622_s2 + $0x1e8] sm:$0xff] %v1768_v1 }
 0x16d   :  { %v550_v53 = vpop.f32.mrb[60].mxu0  ;;  %v2401_v7 = vpop.f32.mrb[60].mxu1 }
 0x16e   :  { %v1196_v63 = vadd.f32 %v1195_v19, %v550_v53  ;;  %v1365_v8 = vmul.f32 %v550_v53, %v550_v53  ;;  %v552_v13 = vpop.f32.mrb[61].mxu0  ;;  %v2403_v36 = vpop.f32.mrb[61].mxu1 }
 0x16f   :  { %2677 = vst [vmem:[#allocation19_spill] sm:$0xff] %v2403_v36  ;;  %v1737_v29 = vpack.c.bf16 %v552_v13, %v550_v53  ;;  %v1265_v18 = vadd.f32 %v1264_v0, %v552_v13  ;;  %v1366_v48 = vmul.f32 %v552_v13, %v552_v13  ;;  %v554_v42 = vpop.f32.mrb[62].mxu0  ;;  %v1769_v32 = vpack.c.bf16 %v2403_v36, %v2401_v7  ;;  %v2407_v17 = vpop.f32.mrb[62].mxu1 }
 0x170   :  { %v1462_v12 = vadd.f32 %v1461_v27, %v1365_v8  ;;  %v1197_v35 = vadd.f32 %v1196_v63, %v554_v42  ;;  %v1367_v1 = vmul.f32 %v554_v42, %v554_v42  ;;  %v556_v59 = vpop.f32.mrb[63].mxu0  ;;  %v2409_v49 = vpop.f32.mrb[63].mxu1  ;;  %v1369_v27 = vmul.f32 %v2041_v50, %v2041_v50 }
 0x171   :  { %1133 = vst [vmem:[%s2622_s2 + $0xf0] sm:$0xff] %v1737_v29  ;;  %v1531_v19 = vadd.f32 %v1530_v47, %v1366_v48  ;;  %v1738_v53 = vpack.c.bf16 %v556_v59, %v554_v42  ;;  %v1266_v0 = vadd.f32 %v1265_v18, %v556_v59  ;;  %v1368_v13 = vmul.f32 %v556_v59, %v556_v59 }
 0x172   :  { %1165 = vst [vmem:[%s2622_s2 + $0x1f0] sm:$0xff] %v1769_v32  ;;  %v1198_v63 = vadd.f32 %v1197_v35, %v2041_v50  ;;  %v1463_v8 = vadd.f32 %v1462_v12, %v1367_v1  ;;  %v1770_v36 = vpack.c.bf16 %v2409_v49, %v2407_v17  ;;  %v1370_v29 = vmul.f32 %v2043_v52, %v2043_v52 }
 0x173   :  { %1134 = vst [vmem:[%s2622_s2 + $0xf8] sm:$0xff] %v1738_v53  ;;  %v1267_v59 = vadd.f32 %v1266_v0, %v2043_v52  ;;  %v1532_v47 = vadd.f32 %v1531_v19, %v1368_v13  ;;  %v1371_v18 = vmul.f32 %v2047_v56, %v2047_v56  ;;  %v1372_v35 = vmul.f32 %v2049_v62, %v2049_v62 }
 0x174   :  { %v1199_v48 = vadd.f32 %v1198_v63, %v2047_v56  ;;  %v1464_v50 = vadd.f32 %v1463_v8, %v1369_v27  ;;  %1166 = vst [vmem:[%s2622_s2 + $0x1f8] sm:$0xff] %v1770_v36  ;;  %v1373_v52 = vmul.f32 %v2065_v6, %v2065_v6  ;;  %v1374_v56 = vmul.f32 %v2067_v10, %v2067_v10 }
 0x175   :  { %v1268_v42 = vadd.f32 %v1267_v59, %v2049_v62  ;;  %v1533_v32 = vadd.f32 %v1532_v47, %v1370_v29  ;;  %v1375_v36 = vmul.f32 %v2071_v16, %v2071_v16  ;;  %v1376_v62 = vmul.f32 %v2073_v21, %v2073_v21 }
 0x176   :  { %v1200_v12 = vadd.f32 %v1199_v48, %v2065_v6  ;;  %v1465_v1 = vadd.f32 %v1464_v50, %v1371_v18  ;;  %v1377_v6 = vmul.f32 %v2089_v30, %v2089_v30 }
 0x177   :  { %v1269_v19 = vadd.f32 %v1268_v42, %v2067_v10  ;;  %v1534_v53 = vadd.f32 %v1533_v32, %v1372_v35  ;;  %v1378_v10 = vmul.f32 %v2091_v34, %v2091_v34 }
 0x178   :  { %v1201_v0 = vadd.f32 %v1200_v12, %v2071_v16  ;;  %v1466_v13 = vadd.f32 %v1465_v1, %v1373_v52  ;;  %v1379_v16 = vmul.f32 %v2095_v40, %v2095_v40 }
 0x179   :  { %v1270_v27 = vadd.f32 %v1269_v19, %v2073_v21  ;;  %v1535_v63 = vadd.f32 %v1534_v53, %v1374_v56  ;;  %v1380_v21 = vmul.f32 %v2097_v45, %v2097_v45 }
 0x17a   :  { %v1202_v8 = vadd.f32 %v1201_v0, %v2089_v30  ;;  %v1467_v29 = vadd.f32 %v1466_v13, %v1375_v36  ;;  %v1381_v30 = vmul.f32 %v2113_v57, %v2113_v57 }
 0x17b   :  { %v1271_v59 = vadd.f32 %v1270_v27, %v2091_v34  ;;  %v1536_v47 = vadd.f32 %v1535_v63, %v1376_v62  ;;  %v1382_v34 = vmul.f32 %v2115_v61, %v2115_v61 }
 0x17c   :  { %v1203_v18 = vadd.f32 %v1202_v8, %v2095_v40  ;;  %v1468_v48 = vadd.f32 %v1467_v29, %v1377_v6  ;;  %v1383_v40 = vmul.f32 %v2119_v4, %v2119_v4 }
 0x17d   :  { %v1272_v50 = vadd.f32 %v1271_v59, %v2097_v45  ;;  %v1537_v35 = vadd.f32 %v1536_v47, %v1378_v10  ;;  %v1384_v45 = vmul.f32 %v2121_v11, %v2121_v11 }
 0x17e   :  { %v1204_v42 = vadd.f32 %v1203_v18, %v2113_v57  ;;  %v1469_v32 = vadd.f32 %v1468_v48, %v1379_v16  ;;  %v1385_v57 = vmul.f32 %v2137_v22, %v2137_v22 }
 0x17f   :  { %v1273_v52 = vadd.f32 %v1272_v50, %v2115_v61  ;;  %v1538_v12 = vadd.f32 %v1537_v35, %v1380_v21  ;;  %v1386_v61 = vmul.f32 %v2139_v26, %v2139_v26 }
 0x180   :  { %v1205_v1 = vadd.f32 %v1204_v42, %v2119_v4  ;;  %v1470_v56 = vadd.f32 %v1469_v32, %v1381_v30  ;;  %v1387_v4 = vmul.f32 %v2143_v33, %v2143_v33 }
 0x181   :  { %v1274_v19 = vadd.f32 %v1273_v52, %v2121_v11  ;;  %v1539_v53 = vadd.f32 %v1538_v12, %v1382_v34  ;;  %v1388_v11 = vmul.f32 %v2145_v39, %v2145_v39 }
 0x182   :  { %v1471_v36 = vadd.f32 %v1470_v56, %v1383_v40  ;;  %v1206_v0 = vadd.f32 %v1205_v1, %v2137_v22  ;;  %v1389_v22 = vmul.f32 %v2161_v51, %v2161_v51 }
 0x183   :  { %v1540_v13 = vadd.f32 %v1539_v53, %v1384_v45  ;;  %v1275_v62 = vadd.f32 %v1274_v19, %v2139_v26  ;;  %v1390_v26 = vmul.f32 %v2163_v58, %v2163_v58 }
 0x184   :  { %v1207_v27 = vadd.f32 %v1206_v0, %v2143_v33  ;;  %v1472_v63 = vadd.f32 %v1471_v36, %v1385_v57  ;;  %v1391_v33 = vmul.f32 %v2167_v2, %v2167_v2  ;;  %v1401_v0 = vmul.f32 %v2233_v38, %v2233_v38 }
 0x185   :  { %v1276_v6 = vadd.f32 %v1275_v62, %v2145_v39  ;;  %v1541_v8 = vadd.f32 %v1540_v13, %v1386_v61  ;;  %v1392_v39 = vmul.f32 %v2169_v9, %v2169_v9  ;;  %v1402_v13 = vmul.f32 %v2235_v46, %v2235_v46 }
 0x186   :  { %v1208_v29 = vadd.f32 %v1207_v27, %v2161_v51  ;;  %v1473_v10 = vadd.f32 %v1472_v63, %v1387_v4  ;;  %v1393_v51 = vmul.f32 %v2185_v23, %v2185_v23  ;;  %v1403_v27 = vmul.f32 %v2239_v55, %v2239_v55 }
 0x187   :  { %v1277_v59 = vadd.f32 %v1276_v6, %v2163_v58  ;;  %v1542_v47 = vadd.f32 %v1541_v8, %v1388_v11  ;;  %v1394_v58 = vmul.f32 %v2187_v28, %v2187_v28  ;;  %v1404_v11 = vmul.f32 %v2241_v5, %v2241_v5 }
 0x188   :  { %v1209_v16 = vadd.f32 %v1208_v29, %v2167_v2  ;;  %v1474_v18 = vadd.f32 %v1473_v10, %v1389_v22  ;;  %v1395_v2 = vmul.f32 %v2191_v37, %v2191_v37  ;;  %v1405_v8 = vmul.f32 %v2257_v24, %v2257_v24 }
 0x189   :  { %v1278_v48 = vadd.f32 %v1277_v59, %v2169_v9  ;;  %v1543_v21 = vadd.f32 %v1542_v47, %v1390_v26  ;;  %v1396_v9 = vmul.f32 %v2193_v44, %v2193_v44  ;;  %v1406_v29 = vmul.f32 %v2259_v31, %v2259_v31 }
 0x18a   :  { %v1210_v50 = vadd.f32 %v1209_v16, %v2185_v23  ;;  %v1475_v35 = vadd.f32 %v1474_v18, %v1391_v33  ;;  %v1397_v23 = vmul.f32 %v2209_v60, %v2209_v60  ;;  %v1407_v26 = vmul.f32 %v2263_v43, %v2263_v43 }
 0x18b   :  { %v1279_v30 = vadd.f32 %v1278_v48, %v2187_v28  ;;  %v1544_v42 = vadd.f32 %v1543_v21, %v1392_v39  ;;  %v1398_v28 = vmul.f32 %v2211_v3, %v2211_v3  ;;  %v1408_v47 = vmul.f32 %v2265_v54, %v2265_v54 }
 0x18c   :  { %v1211_v32 = vadd.f32 %v1210_v50, %v2191_v37  ;;  %v1476_v34 = vadd.f32 %v1475_v35, %v1393_v51  ;;  %v1399_v37 = vmul.f32 %v2215_v14, %v2215_v14  ;;  %v1409_v16 = vmul.f32 %v2281_v15, %v2281_v15 }
 0x18d   :  { %v1280_v52 = vadd.f32 %v1279_v30, %v2193_v44  ;;  %v1545_v12 = vadd.f32 %v1544_v42, %v1394_v58  ;;  %v1400_v44 = vmul.f32 %v2217_v20, %v2217_v20  ;;  %v1410_v39 = vmul.f32 %v2283_v25, %v2283_v25 }
 0x18e   :  { %v1212_v40 = vadd.f32 %v1211_v32, %v2209_v60  ;;  %v1477_v1 = vadd.f32 %v1476_v34, %v1395_v2  ;;  %v1411_v21 = vmul.f32 %v2287_v41, %v2287_v41 }
 0x18f   :  { %v1281_v56 = vadd.f32 %v1280_v52, %v2211_v3  ;;  %v1546_v45 = vadd.f32 %v1545_v12, %v1396_v9 }
 0x190   :  { %v1213_v19 = vadd.f32 %v1212_v40, %v2215_v14  ;;  %v1478_v53 = vadd.f32 %v1477_v1, %v1397_v23  ;;  %v2682_v40 = vld [vmem:[#allocation6_spill] sm:$0xff] }
 0x191   :  { %v1282_v57 = vadd.f32 %v1281_v56, %v2217_v20  ;;  %v1547_v36 = vadd.f32 %v1546_v45, %v1398_v28  ;;  %v1416_v28 = vmul.f32 %v2682_v40, %v2682_v40  ;;  %v2683_v45 = vld [vmem:[#allocation7_spill] sm:$0xff] }
 0x192   :  { %v1214_v60 = vadd.f32 %v1213_v19, %v2233_v38  ;;  %v1479_v61 = vadd.f32 %v1478_v53, %v1399_v37  ;;  %v1417_v19 = vmul.f32 %v2683_v45, %v2683_v45 }
 0x193   :  { %v1283_v3 = vadd.f32 %v1282_v57, %v2235_v46  ;;  %v1548_v62 = vadd.f32 %v1547_v36, %v1400_v44  ;;  %v2684_v44 = vld [vmem:[#allocation8_spill] sm:$0xff] }
 0x194   :  { %v1480_v14 = vadd.f32 %v1479_v61, %v1401_v0  ;;  %v1215_v4 = vadd.f32 %v1214_v60, %v2239_v55  ;;  %v1418_v36 = vmul.f32 %v2684_v44, %v2684_v44  ;;  %v2685_v0 = vld [vmem:[#allocation9_spill] sm:$0xff] }
 0x195   :  { %v1549_v20 = vadd.f32 %v1548_v62, %v1402_v13  ;;  %v1284_v63 = vadd.f32 %v1283_v3, %v2241_v5  ;;  %v1419_v3 = vmul.f32 %v2685_v0, %v2685_v0  ;;  %v2686_v62 = vld [vmem:[#allocation10_spill] sm:$0xff] }
 0x196   :  { %v1481_v38 = vadd.f32 %v1480_v14, %v1403_v27  ;;  %v1216_v6 = vadd.f32 %v1215_v4, %v2257_v24  ;;  %v1420_v4 = vmul.f32 %v2686_v62, %v2686_v62 }
 0x197   :  { %v1550_v46 = vadd.f32 %v1549_v20, %v1404_v11  ;;  %v1285_v22 = vadd.f32 %v1284_v63, %v2259_v31  ;;  %v2687_v20 = vld [vmem:[#allocation11_spill] sm:$0xff] }
 0x198   :  { %v1482_v10 = vadd.f32 %v1481_v38, %v1405_v8  ;;  %v1217_v55 = vadd.f32 %v1216_v6, %v2263_v43  ;;  %v1421_v11 = vmul.f32 %v2687_v20, %v2687_v20  ;;  %v2688_v6 = vld [vmem:[#allocation12_spill] sm:$0xff] }
 0x199   :  { %v1551_v59 = vadd.f32 %v1550_v46, %v1406_v29  ;;  %v1286_v5 = vadd.f32 %v1285_v22, %v2265_v54  ;;  %v2678_v54 = vld [vmem:[#allocation2_spill] sm:$0xff]  ;;  %v1422_v46 = vmul.f32 %v2688_v6, %v2688_v6  ;;  %v2689_v29 = vld [vmem:[#allocation13_spill] sm:$0xff] }
 0x19a   :  { %v1483_v33 = vadd.f32 %v1482_v10, %v1407_v26  ;;  %v1218_v24 = vadd.f32 %v1217_v55, %v2281_v15  ;;  %v1412_v35 = vmul.f32 %v2678_v54, %v2678_v54  ;;  %v2679_v15 = vld [vmem:[#allocation3_spill] sm:$0xff]  ;;  %v1423_v55 = vmul.f32 %v2689_v29, %v2689_v29 }
 0x19b   :  { %v1552_v18 = vadd.f32 %v1551_v59, %v1408_v47  ;;  %v1287_v31 = vadd.f32 %v1286_v5, %v2283_v25  ;;  %v1413_v42 = vmul.f32 %v2679_v15, %v2679_v15  ;;  %v2680_v25 = vld [vmem:[#allocation4_spill] sm:$0xff]  ;;  %v2690_v59 = vld [vmem:[#allocation14_spill] sm:$0xff] }
 0x19c   :  { %v1484_v48 = vadd.f32 %v1483_v33, %v1409_v16  ;;  %v1219_v43 = vadd.f32 %v1218_v24, %v2287_v41  ;;  %v1414_v34 = vmul.f32 %v2680_v25, %v2680_v25  ;;  %v2681_v41 = vld [vmem:[#allocation5_spill] sm:$0xff]  ;;  %v1424_v47 = vmul.f32 %v2690_v59, %v2690_v59  ;;  %v2691_v24 = vld [vmem:[#allocation15_spill] sm:$0xff] }
 0x19d   :  { %v1553_v51 = vadd.f32 %v1552_v18, %v1410_v39  ;;  %v1288_v50 = vadd.f32 %v1287_v31, %v2678_v54  ;;  %v1415_v12 = vmul.f32 %v2681_v41, %v2681_v41  ;;  %v1425_v18 = vmul.f32 %v2691_v24, %v2691_v24  ;;  %v2692_v39 = vld [vmem:[#allocation16_spill] sm:$0xff] }
 0x19e   :  { %v1485_v58 = vadd.f32 %v1484_v48, %v1411_v21  ;;  %v1220_v30 = vadd.f32 %v1219_v43, %v2679_v15  ;;  %v1426_v43 = vmul.f32 %v2692_v39, %v2692_v39  ;;  %v2694_v15 = vld [vmem:[#allocation18_spill] sm:$0xff] }
 0x19f   :  { %v1554_v2 = vadd.f32 %v1553_v51, %v1412_v35  ;;  %v1289_v32 = vadd.f32 %v1288_v50, %v2680_v25  ;;  %v2693_v51 = vld [vmem:[#allocation17_spill] sm:$0xff]  ;;  %v1429_v35 = vmul.f32 %v2401_v7, %v2401_v7 }
 0x1a0   :  { %v1486_v9 = vadd.f32 %v1485_v58, %v1413_v42  ;;  %v1221_v52 = vadd.f32 %v1220_v30, %v2681_v41  ;;  %v1427_v50 = vmul.f32 %v2693_v51, %v2693_v51  ;;  %v1428_v42 = vmul.f32 %v2694_v15, %v2694_v15 }
 0x1a1   :  { %v1555_v23 = vadd.f32 %v1554_v2, %v1414_v34  ;;  %v1290_v1 = vadd.f32 %v1289_v32, %v2682_v40  ;;  %v2695_v2 = vld [vmem:[#allocation19_spill] sm:$0xff] }
 0x1a2   :  { %v1487_v56 = vadd.f32 %v1486_v9, %v1415_v12  ;;  %v1222_v37 = vadd.f32 %v1221_v52, %v2683_v45  ;;  %v1430_v25 = vmul.f32 %v2695_v2, %v2695_v2 }
 0x1a3   :  { %v1556_v53 = vadd.f32 %v1555_v23, %v1416_v28  ;;  %v1291_v57 = vadd.f32 %v1290_v1, %v2684_v44  ;;  %v1431_v23 = vmul.f32 %v2407_v17, %v2407_v17  ;;  %v1432_v28 = vmul.f32 %v2409_v49, %v2409_v49 }
 0x1a4   :  { %v1488_v60 = vadd.f32 %v1487_v56, %v1417_v19  ;;  %v1223_v61 = vadd.f32 %v1222_v37, %v2685_v0 }
 0x1a5   :  { %v1557_v13 = vadd.f32 %v1556_v53, %v1418_v36  ;;  %v1292_v14 = vadd.f32 %v1291_v57, %v2686_v62 }
 0x1a6   :  { %v1489_v27 = vadd.f32 %v1488_v60, %v1419_v3  ;;  %v1224_v63 = vadd.f32 %v1223_v61, %v2687_v20 }
 0x1a7   :  { %v1558_v38 = vadd.f32 %v1557_v13, %v1420_v4  ;;  %v1293_v8 = vadd.f32 %v1292_v14, %v2688_v6 }
 0x1a8   :  { %v1490_v22 = vadd.f32 %v1489_v27, %v1421_v11  ;;  %v1225_v10 = vadd.f32 %v1224_v63, %v2689_v29 }
 0x1a9   :  { %v1559_v26 = vadd.f32 %v1558_v38, %v1422_v46  ;;  %v1294_v5 = vadd.f32 %v1293_v8, %v2690_v59 }
 0x1aa   :  { %v1491_v33 = vadd.f32 %v1490_v22, %v1423_v55  ;;  %v1226_v16 = vadd.f32 %v1225_v10, %v2691_v24 }
 0x1ab   :  { %v1560_v31 = vadd.f32 %v1559_v26, %v1424_v47  ;;  %v1295_v48 = vadd.f32 %v1294_v5, %v2692_v39 }
 0x1ac   :  { %v1492_v21 = vadd.f32 %v1491_v33, %v1425_v18  ;;  %v1227_v54 = vadd.f32 %v1226_v16, %v2693_v51 }
 0x1ad   :  { %v1561_v58 = vadd.f32 %v1560_v31, %v1426_v43  ;;  %v1296_v30 = vadd.f32 %v1295_v48, %v2694_v15 }
 0x1ae   :  { %v1493_v32 = vadd.f32 %v1492_v21, %v1427_v50  ;;  %v1228_v34 = vadd.f32 %v1227_v54, %v2401_v7 }
 0x1af   :  { %v1562_v9 = vadd.f32 %v1561_v58, %v1428_v42  ;;  %v1297_v41 = vadd.f32 %v1296_v30, %v2695_v2 }
 0x1b0   :  { %v1494_v52 = vadd.f32 %v1493_v32, %v1429_v35  ;;  %v1229_v12 = vadd.f32 %v1228_v34, %v2407_v17 }
 0x1b1   :  { %v1563_v40 = vadd.f32 %v1562_v9, %v1430_v25  ;;  %v1298_v1 = vadd.f32 %v1297_v41, %v2409_v49 }
 0x1b2   :  { %v1230_v56 = vrot.slane %v1229_v12, 4  ;;  %v1495_v45 = vadd.f32 %v1494_v52, %v1431_v23 }
 0x1b3   :  { %v1299_v37 = vrot.slane %v1298_v1, 4  ;;  %v1564_v19 = vadd.f32 %v1563_v40, %v1432_v28 }
 0x1b4   :  { %v1231_v7 = vadd.f32 %v1230_v56, %v1229_v12  ;;  %v1496_v53 = vrot.slane %v1495_v45, 4 }
 0x1b5   :  { %v1300_v44 = vadd.f32 %v1299_v37, %v1298_v1  ;;  %v1565_v57 = vrot.slane %v1564_v19, 4 }
 0x1b6   :  { %v1232_v36 = vrot.slane %v1231_v7, 2  ;;  %v1497_v60 = vadd.f32 %v1496_v53, %v1495_v45 }
 0x1b7   :  { %v1301_v0 = vrot.slane %v1300_v44, 2  ;;  %v1566_v61 = vadd.f32 %v1565_v57, %v1564_v19 }
 0x1b8   :  { %v1233_v3 = vadd.f32 %v1232_v36, %v1231_v7  ;;  %v1498_v17 = vrot.slane %v1497_v60, 2 }
 0x1b9   :  { %v1302_v13 = vadd.f32 %v1301_v0, %v1300_v44  ;;  %v1567_v62 = vrot.slane %v1566_v61, 2 }
 0x1ba   :  { %v1234_v14 = vrot.slane %v1233_v3, 1  ;;  %v1499_v4 = vadd.f32 %v1498_v17, %v1497_v60 }
 0x1bb   :  { %v1303_v27 = vrot.slane %v1302_v13, 1  ;;  %v1568_v49 = vadd.f32 %v1567_v62, %v1566_v61 }
 0x1bc   :  { %v1500_v20 = vrot.slane %v1499_v4, 1  ;;  %v1235_v11 = vadd.f32 %v1234_v14, %v1233_v3 }
 0x1bd   :  { %v1569_v63 = vrot.slane %v1568_v49, 1  ;;  %v1304_v6 = vadd.f32 %v1303_v27, %v1302_v13 }
 0x1be   :  { %v1501_v38 = vadd.f32 %v1500_v20, %v1499_v4 }
 0x1bf   :  { %v1570_v8 = vadd.f32 %v1569_v63, %v1568_v49 }
 0x1c0   :  { %v1572_v46 = vsel %vm1571_vm0, %v1235_v11, %v1501_v38 }
 0x1c1   :  { %v1573_v22 = vsel %vm1571_vm0, %v1304_v6, %v1570_v8 }
 0x1c2   :  { %v1576_v29 = vcombine.low %v1572_v46, %v1573_v22 }
 0x1c4   :  { %1706 = vst.sshfl [vmem:[%s2623_s3] sm:$0x33 pattern:$0x76325410] %v1576_v29 }

// kernel: c3_forward.6
= control target key start
LH: loop header
LB: loop body
LE: loop exit
PB: predicated region body
PF: predicated region fallthrough
CT: control target
= control target key end

     0   :  { %vm1938_vm0 = vcmask 1040384   ;;  %s3721_s0 = inlined_call_operand.vmem [shape: bf16[512,256], index: 0, kind: input, shape index: {}]   ;;  %s3722_s1 = inlined_call_operand.vmem [shape: f32[1,128], index: 1, kind: input, shape index: {}]   ;;  %s3723_s2 = inlined_call_operand.vmem [shape: f32[1,128], index: 2, kind: input, shape index: {}]   ;;  %s3724_s3 = inlined_call_operand.vmem [shape: bf16[128,128], index: 3, kind: input, shape index: {}]   ;;  %s3725_s4 = inlined_call_operand.vmem [shape: bf16[512,128], index: 4, kind: output, shape index: {0}]   ;;  %s3726_s5 = inlined_call_operand.vmem [shape: f32[2,128], index: 5, kind: output, shape index: {1}]  }
   0x1   :  { %v2641_v0 = vld [vmem:[%s3724_s3] sm:$0xff]   ;;  %v2642_v1 = vld [vmem:[%s3724_s3 + $0x8] sm:$0xff]   ;;  %v2643_v2 = vld [vmem:[%s3724_s3 + $0x10] sm:$0xff]  }
   0x2   :  { %2545 = vmatprep.subr.bf16.mxu0 %v2641_v0  ;;  %2625 = vmatprep.subr.bf16.mxu1 %v2641_v0  ;;  %v2644_v3 = vld [vmem:[%s3724_s3 + $0x18] sm:$0xff]   ;;  %v28_v4 = vld [vmem:[%s3721_s0] sm:$0xf]  ;;  %v30_v5 = vld [vmem:[%s3721_s0 + $0x8] sm:$0xf] }
   0x3   :  { %2546 = vmatpush3.bf16.msra.mxu0 %v2641_v0  ;;  %2633 = vmatpush3.bf16.msra.mxu1 %v2641_v0  ;;  %29 = vst [vmem:[#allocation2] sm:$0xf] %v28_v4  ;;  %31 = vst [vmem:[#allocation2 + $0x4] sm:$0xf] %v30_v5  ;;  %v32_v6 = vld [vmem:[%s3721_s0 + $0x10] sm:$0xf] }
   0x4   :  { %2547 = vmatprep.subr.bf16.mxu0 %v2642_v1  ;;  %2626 = vmatprep.subr.bf16.mxu1 %v2642_v1  ;;  %v34_v7 = vld [vmem:[%s3721_s0 + $0x18] sm:$0xf]  ;;  %v2964_v8 = vld [vmem:[%s3724_s3 + $0x20] sm:$0xff]   ;;  %33 = vst [vmem:[#allocation2 + $0x8] sm:$0xf] %v32_v6  ;;  %v3005_v21 = vld [vmem:[%s3724_s3 + $0x28] sm:$0xff]  }
   0x5   :  { %35 = vst [vmem:[#allocation2 + $0xc] sm:$0xf] %v34_v7  ;;  %v36_v9 = vld [vmem:[%s3721_s0 + $0x20] sm:$0xf]  ;;  %v38_v10 = vld [vmem:[%s3721_s0 + $0x28] sm:$0xf] }
   0x6   :  { %v40_v11 = vld [vmem:[%s3721_s0 + $0x30] sm:$0xf]  ;;  %37 = vst [vmem:[#allocation2 + $0x10] sm:$0xf] %v36_v9  ;;  %39 = vst [vmem:[#allocation2 + $0x14] sm:$0xf] %v38_v10 }
   0x7   :  { %2548 = vmatpush3.bf16.msra.mxu0 %v2642_v1  ;;  %2634 = vmatpush3.bf16.msra.mxu1 %v2642_v1  ;;  %41 = vst [vmem:[#allocation2 + $0x18] sm:$0xf] %v40_v11  ;;  %v42_v12 = vld [vmem:[%s3721_s0 + $0x38] sm:$0xf]  ;;  %v44_v13 = vld [vmem:[%s3721_s0 + $0x40] sm:$0xf] }
   0x8   :  { %2549 = vmatprep.subr.bf16.mxu0 %v2643_v2  ;;  %2627 = vmatprep.subr.bf16.mxu1 %v2643_v2  ;;  %v46_v14 = vld [vmem:[%s3721_s0 + $0x48] sm:$0xf]  ;;  %43 = vst [vmem:[#allocation2 + $0x1c] sm:$0xf] %v42_v12  ;;  %45 = vst [vmem:[#allocation2 + $0x20] sm:$0xf] %v44_v13 }
   0x9   :  { %47 = vst [vmem:[#allocation2 + $0x24] sm:$0xf] %v46_v14  ;;  %v48_v15 = vld [vmem:[%s3721_s0 + $0x50] sm:$0xf]  ;;  %v50_v16 = vld [vmem:[%s3721_s0 + $0x58] sm:$0xf] }
   0xa   :  { %v52_v17 = vld [vmem:[%s3721_s0 + $0x60] sm:$0xf]  ;;  %49 = vst [vmem:[#allocation2 + $0x28] sm:$0xf] %v48_v15  ;;  %51 = vst [vmem:[#allocation2 + $0x2c] sm:$0xf] %v50_v16 }
   0xb   :  { %2550 = vmatpush3.bf16.msra.mxu0 %v2643_v2  ;;  %2635 = vmatpush3.bf16.msra.mxu1 %v2643_v2  ;;  %53 = vst [vmem:[#allocation2 + $0x30] sm:$0xf] %v52_v17  ;;  %v54_v18 = vld [vmem:[%s3721_s0 + $0x68] sm:$0xf]  ;;  %v56_v19 = vld [vmem:[%s3721_s0 + $0x70] sm:$0xf] }
   0xc   :  { %2551 = vmatprep.subr.bf16.mxu0 %v2644_v3  ;;  %2628 = vmatprep.subr.bf16.mxu1 %v2644_v3  ;;  %v58_v20 = vld [vmem:[%s3721_s0 + $0x78] sm:$0xf]  ;;  %v3010_v22 = vld [vmem:[%s3722_s1] ss:$0 sm:$0xff]  ;;  %55 = vst [vmem:[#allocation2 + $0x34] sm:$0xf] %v54_v18 }
   0xd   :  { %57 = vst [vmem:[#allocation2 + $0x38] sm:$0xf] %v56_v19  ;;  %59 = vst [vmem:[#allocation2 + $0x3c] sm:$0xf] %v58_v20  ;;  %v60_v23 = vld [vmem:[%s3721_s0 + $0x80] sm:$0xf] }
   0xe   :  { %v62_v24 = vld [vmem:[%s3721_s0 + $0x88] sm:$0xf]  ;;  %v64_v25 = vld [vmem:[%s3721_s0 + $0x90] sm:$0xf]  ;;  %61 = vst [vmem:[#allocation2 + $0x40] sm:$0xf] %v60_v23 }
   0xf   :  { %2552 = vmatpush3.bf16.msra.mxu0 %v2644_v3  ;;  %63 = vst [vmem:[#allocation2 + $0x44] sm:$0xf] %v62_v24  ;;  %65 = vst [vmem:[#allocation2 + $0x48] sm:$0xf] %v64_v25  ;;  %v66_v26 = vld [vmem:[%s3721_s0 + $0x98] sm:$0xf]  ;;  %2636 = vmatpush3.bf16.msra.mxu1 %v2644_v3 }
  0x10   :  { %v68_v27 = vld [vmem:[%s3721_s0 + $0xa0] sm:$0xf]  ;;  %v70_v28 = vld [vmem:[%s3721_s0 + $0xa8] sm:$0xf]  ;;  %2553 = vmatprep.subr.bf16.mxu0 %v2964_v8  ;;  %67 = vst [vmem:[#allocation2 + $0x4c] sm:$0xf] %v66_v26  ;;  %2629 = vmatprep.subr.bf16.mxu1 %v2964_v8 }
  0x11   :  { %v2156_v29 = vld [vmem:[#allocation2] sm:$0xff]   ;;  %69 = vst [vmem:[#allocation2 + $0x50] sm:$0xf] %v68_v27  ;;  %71 = vst [vmem:[#allocation2 + $0x54] sm:$0xf] %v70_v28  ;;  %v2443_v35 = vld [vmem:[#allocation2 + $0x8] sm:$0xff]  }
  0x12   :  { %v3034_v30 = vld [vmem:[%s3723_s2] ss:$0 sm:$0xff]  ;;  %v72_v31 = vld [vmem:[%s3721_s0 + $0xb0] sm:$0xf]  ;;  %v74_v32 = vld [vmem:[%s3721_s0 + $0xb8] sm:$0xf]  ;;  %v2157_v33 = vunpack.c.l.bf16 %v2156_v29  ;;  %v2158_v34 = vunpack.c.h.bf16 %v2156_v29  ;;  %v2161_v38 = vunpack.c.l.bf16 %v2443_v35  ;;  %v2162_v39 = vunpack.c.h.bf16 %v2443_v35 }
  0x13   :  { %73 = vst [vmem:[#allocation2 + $0x58] sm:$0xf] %v72_v31  ;;  %75 = vst [vmem:[#allocation2 + $0x5c] sm:$0xf] %v74_v32  ;;  %v76_v36 = vld [vmem:[%s3721_s0 + $0xc0] sm:$0xf]  ;;  %2554 = vmatpush3.bf16.msra.mxu0 %v2964_v8  ;;  %2637 = vmatpush3.bf16.msra.mxu1 %v2964_v8 }
  0x14   :  { %v78_v37 = vld [vmem:[%s3721_s0 + $0xc8] sm:$0xf]  ;;  %v2444_v40 = vld [vmem:[#allocation2 + $0x10] sm:$0xff]   ;;  %77 = vst [vmem:[#allocation2 + $0x60] sm:$0xf] %v76_v36  ;;  %v448_v43 = vmul.f32 %v2157_v33, %v3010_v22  ;;  %v449_v44 = vmul.f32 %v2158_v34, %v3010_v22  ;;  %v2445_v47 = vld [vmem:[#allocation2 + $0x18] sm:$0xff]   ;;  %2555 = vmatprep.subr.bf16.mxu0 %v3005_v21  ;;  %v450_v50 = vmul.f32 %v2161_v38, %v3010_v22 }
  0x15   :  { %79 = vst [vmem:[#allocation2 + $0x64] sm:$0xf] %v78_v37  ;;  %v80_v41 = vld [vmem:[%s3721_s0 + $0xd0] sm:$0xf]  ;;  %v82_v42 = vld [vmem:[%s3721_s0 + $0xd8] sm:$0xf]  ;;  %v2165_v45 = vunpack.c.l.bf16 %v2444_v40  ;;  %v2166_v46 = vunpack.c.h.bf16 %v2444_v40  ;;  %v451_v51 = vmul.f32 %v2162_v39, %v3010_v22  ;;  %v2169_v52 = vunpack.c.l.bf16 %v2445_v47  ;;  %2630 = vmatprep.subr.bf16.mxu1 %v3005_v21 }
  0x16   :  { %81 = vst [vmem:[#allocation2 + $0x68] sm:$0xf] %v80_v41  ;;  %83 = vst [vmem:[#allocation2 + $0x6c] sm:$0xf] %v82_v42  ;;  %v84_v48 = vld [vmem:[%s3721_s0 + $0xe0] sm:$0xf]  ;;  %v2170_v53 = vunpack.c.h.bf16 %v2445_v47  ;;  %v3076_v56 = vadd.f32 %v3034_v30, %v448_v43  ;;  %v3079_v57 = vadd.f32 %v3034_v30, %v449_v44  ;;  %v3087_v61 = vadd.f32 %v3034_v30, %v450_v50 }
  0x17   :  { %v2647_v49 = vld [vmem:[%s3724_s3 + $0x30] sm:$0xff]   ;;  %85 = vst [vmem:[#allocation2 + $0x70] sm:$0xf] %v84_v48  ;;  %v86_v54 = vld [vmem:[%s3721_s0 + $0xe8] sm:$0xf]  ;;  %v452_v58 = vmul.f32 %v2165_v45, %v3010_v22  ;;  %v453_v59 = vmul.f32 %v2166_v46, %v3010_v22  ;;  %v3090_v62 = vadd.f32 %v3034_v30, %v451_v51  ;;  %v454_v63 = vmul.f32 %v2169_v52, %v3010_v22  ;;  %v2446_v1 = vld [vmem:[#allocation2 + $0x20] sm:$0xff]  }
  0x18   :  { %v88_v55 = vld [vmem:[%s3721_s0 + $0xf0] sm:$0xf]  ;;  %87 = vst [vmem:[#allocation2 + $0x74] sm:$0xf] %v86_v54  ;;  %v90_v60 = vld [vmem:[%s3721_s0 + $0xf8] sm:$0xf]  ;;  %v455_v0 = vmul.f32 %v2170_v53, %v3010_v22  ;;  %2556 = vmatpush3.bf16.msra.mxu0 %v3005_v21  ;;  %2638 = vmatpush3.bf16.msra.mxu1 %v3005_v21  ;;  %v2173_v16 = vunpack.c.l.bf16 %v2446_v1  ;;  %v2174_v20 = vunpack.c.h.bf16 %v2446_v1 }
  0x19   :  { %89 = vst [vmem:[#allocation2 + $0x78] sm:$0xf] %v88_v55  ;;  %91 = vst [vmem:[#allocation2 + $0x7c] sm:$0xf] %v90_v60  ;;  %v92_v2 = vld [vmem:[%s3721_s0 + $0x100] sm:$0xf]  ;;  %v3104_v6 = vadd.f32 %v3034_v30, %v452_v58  ;;  %v3107_v7 = vadd.f32 %v3034_v30, %v453_v59  ;;  %2557 = vmatprep.subr.bf16.mxu0 %v2647_v49  ;;  %v3116_v11 = vadd.f32 %v3034_v30, %v454_v63 }
  0x1a   :  { %v94_v3 = vld [vmem:[%s3721_s0 + $0x108] sm:$0xf]  ;;  %v1955_v4 = vmul.f32 -1.442695, %v3076_v56  ;;  %v1956_v5 = vmul.f32 -1.442695, %v3079_v57  ;;  %v3119_v12 = vadd.f32 %v3034_v30, %v455_v0  ;;  %2631 = vmatprep.subr.bf16.mxu1 %v2647_v49  ;;  %v456_v21 = vmul.f32 %v2173_v16, %v3010_v22 }
  0x1b   :  { %93 = vst [vmem:[#allocation2 + $0x80] sm:$0xf] %v92_v2  ;;  %95 = vst [vmem:[#allocation2 + $0x84] sm:$0xf] %v94_v3  ;;  %v2648_v8 = vld [vmem:[%s3724_s3 + $0x38] sm:$0xff]   ;;  %v2447_v13 = vld [vmem:[#allocation2 + $0x28] sm:$0xff]   ;;  %v457_v28 = vmul.f32 %v2174_v20, %v3010_v22 }
  0x1c   :  { %v1957_v9 = vmul.f32 -1.442695, %v3087_v61  ;;  %v1958_v10 = vmul.f32 -1.442695, %v3090_v62  ;;  %2649 = vpow2.f32 %v1955_v4  ;;  %v1959_v14 = vmul.f32 -1.442695, %v3104_v6  ;;  %2558 = vmatpush3.bf16.msra.mxu0 %v2647_v49  ;;  %2639 = vmatpush3.bf16.msra.mxu1 %v2647_v49 }
  0x1d   :  { %v1960_v15 = vmul.f32 -1.442695, %v3107_v7  ;;  %v2448_v17 = vld [vmem:[#allocation2 + $0x30] sm:$0xff]   ;;  %2651 = vpow2.f32 %v1956_v5  ;;  %v1961_v18 = vmul.f32 -1.442695, %v3116_v11  ;;  %v2177_v23 = vunpack.c.l.bf16 %v2447_v13  ;;  %2559 = vmatprep.subr.bf16.mxu0 %v2648_v8  ;;  %2632 = vmatprep.subr.bf16.mxu1 %v2648_v8  ;;  %v2449_v37 = vld [vmem:[#allocation2 + $0x38] sm:$0xff]  }
  0x1e   :  { %v1962_v19 = vmul.f32 -1.442695, %v3119_v12  ;;  %2653 = vpow2.f32 %v1957_v9  ;;  %v2178_v24 = vunpack.c.h.bf16 %v2447_v13  ;;  %v96_v25 = vld [vmem:[%s3721_s0 + $0x110] sm:$0xf]  ;;  %v98_v26 = vld [vmem:[%s3721_s0 + $0x118] sm:$0xf]  ;;  %v2181_v29 = vunpack.c.l.bf16 %v2448_v17 }
  0x1f   :  { %v100_v27 = vld [vmem:[%s3721_s0 + $0x120] sm:$0xf]  ;;  %2655 = vpow2.f32 %v1958_v10  ;;  %v2182_v31 = vunpack.c.h.bf16 %v2448_v17  ;;  %97 = vst [vmem:[#allocation2 + $0x88] sm:$0xf] %v96_v25  ;;  %99 = vst [vmem:[#allocation2 + $0x8c] sm:$0xf] %v98_v26  ;;  %v3143_v34 = vadd.f32 %v3034_v30, %v456_v21  ;;  %v458_v35 = vmul.f32 %v2177_v23, %v3010_v22 }
  0x20   :  { %101 = vst [vmem:[#allocation2 + $0x90] sm:$0xf] %v100_v27  ;;  %v102_v32 = vld [vmem:[%s3721_s0 + $0x128] sm:$0xf]  ;;  %v104_v33 = vld [vmem:[%s3721_s0 + $0x130] sm:$0xf]  ;;  %2657 = vpow2.f32 %v1959_v14  ;;  %v459_v36 = vmul.f32 %v2178_v24, %v3010_v22  ;;  %v3154_v40 = vadd.f32 %v3034_v30, %v457_v28  ;;  %v460_v41 = vmul.f32 %v2181_v29, %v3010_v22  ;;  %2560 = vmatpush3.bf16.msra.mxu0 %v2648_v8 }
  0x21   :  { %103 = vst [vmem:[#allocation2 + $0x94] sm:$0xf] %v102_v32  ;;  %105 = vst [vmem:[#allocation2 + $0x98] sm:$0xf] %v104_v33  ;;  %v106_v38 = vld [vmem:[%s3721_s0 + $0x138] sm:$0xf]  ;;  %2659 = vpow2.f32 %v1960_v15  ;;  %v461_v42 = vmul.f32 %v2182_v31, %v3010_v22  ;;  %v3168_v47 = vadd.f32 %v3034_v30, %v458_v35  ;;  %2640 = vmatpush3.bf16.msra.mxu1 %v2648_v8  ;;  %v2185_v63 = vunpack.c.l.bf16 %v2449_v37 }
  0x22   :  { %v108_v39 = vld [vmem:[%s3721_s0 + $0x140] sm:$0xf]  ;;  %107 = vst [vmem:[#allocation2 + $0x9c] sm:$0xf] %v106_v38  ;;  %v110_v44 = vld [vmem:[%s3721_s0 + $0x148] sm:$0xf]  ;;  %2661 = vpow2.f32 %v1961_v18  ;;  %v3171_v48 = vadd.f32 %v3034_v30, %v459_v36  ;;  %v3183_v53 = vadd.f32 %v3034_v30, %v460_v41  ;;  %v2186_v3 = vunpack.c.h.bf16 %v2449_v37 }
  0x23   :  { %v3158_v43 = vld [vmem:[#allocation2 + $0x40] sm:$0xff]   ;;  %109 = vst [vmem:[#allocation2 + $0xa0] sm:$0xf] %v108_v39  ;;  %v112_v45 = vld [vmem:[%s3721_s0 + $0x150] sm:$0xf]  ;;  %v3173_v49 = vld [vmem:[#allocation2 + $0x48] sm:$0xff]   ;;  %2663 = vpow2.f32 %v1962_v19  ;;  %v3186_v54 = vadd.f32 %v3034_v30, %v461_v42  ;;  %v462_v8 = vmul.f32 %v2185_v63, %v3010_v22 }
  0x24   :  { %v1963_v46 = vmul.f32 -1.442695, %v3143_v34  ;;  %111 = vst [vmem:[#allocation2 + $0xa4] sm:$0xf] %v110_v44  ;;  %113 = vst [vmem:[#allocation2 + $0xa8] sm:$0xf] %v112_v45  ;;  %v2189_v9 = vunpack.c.l.bf16 %v3158_v43  ;;  %v2190_v10 = vunpack.c.h.bf16 %v3158_v43  ;;  %v463_v17 = vmul.f32 %v2186_v3, %v3010_v22 }
  0x25   :  { %v114_v50 = vld [vmem:[%s3721_s0 + $0x158] sm:$0xf]  ;;  %v116_v51 = vld [vmem:[%s3721_s0 + $0x160] sm:$0xf]  ;;  %v1964_v52 = vmul.f32 -1.442695, %v3154_v40  ;;  %v2193_v18 = vunpack.c.l.bf16 %v3173_v49  ;;  %v3224_v24 = vadd.f32 %v3034_v30, %v462_v8 }
  0x26   :  { %115 = vst [vmem:[#allocation2 + $0xac] sm:$0xf] %v114_v50  ;;  %117 = vst [vmem:[#allocation2 + $0xb0] sm:$0xf] %v116_v51  ;;  %v118_v55 = vld [vmem:[%s3721_s0 + $0x168] sm:$0xf]  ;;  %2665 = vpow2.f32 %v1963_v46  ;;  %v2650_v5 = vpop.eup %2649  ;;  %v464_v25 = vmul.f32 %v2189_v9, %v3010_v22  ;;  %v3234_v31 = vadd.f32 %v3034_v30, %v463_v17  ;;  %v465_v32 = vmul.f32 %v2190_v10, %v3010_v22 }
  0x27   :  { %v120_v58 = vld [vmem:[%s3721_s0 + $0x170] sm:$0xf]  ;;  %v1965_v59 = vmul.f32 -1.442695, %v3168_v47  ;;  %v1966_v60 = vmul.f32 -1.442695, %v3171_v48  ;;  %2667 = vpow2.f32 %v1964_v52  ;;  %v2652_v15 = vpop.eup %2651 }
  0x28   :  { %119 = vst [vmem:[#allocation2 + $0xb4] sm:$0xf] %v118_v55  ;;  %121 = vst [vmem:[#allocation2 + $0xb8] sm:$0xf] %v120_v58  ;;  %v122_v0 = vld [vmem:[%s3721_s0 + $0x178] sm:$0xf]  ;;  %v2654_v21 = vpop.eup %2653  ;;  %v3247_v39 = vadd.f32 %v3034_v30, %v464_v25  ;;  %v3256_v45 = vadd.f32 %v3034_v30, %v465_v32  ;;  %v2194_v58 = vunpack.c.h.bf16 %v3173_v49 }
  0x29   :  { %v1967_v1 = vmul.f32 -1.442695, %v3183_v53  ;;  %v3201_v2 = vmul.f32 -1.442695, %v3186_v54  ;;  %123 = vst [vmem:[#allocation2 + $0xbc] sm:$0xf] %v122_v0  ;;  %2669 = vpow2.f32 %v1965_v59  ;;  %v2656_v28 = vpop.eup %2655 }
  0x2a   :  { %v124_v4 = vld [vmem:[%s3721_s0 + $0x180] sm:$0xf]  ;;  %v126_v13 = vld [vmem:[%s3721_s0 + $0x188] sm:$0xf]  ;;  %v128_v14 = vld [vmem:[%s3721_s0 + $0x190] sm:$0xf]  ;;  %2671 = vpow2.f32 %v1966_v60  ;;  %v2658_v36 = vpop.eup %2657 }
  0x2b   :  { %125 = vst [vmem:[#allocation2 + $0xc0] sm:$0xf] %v124_v4  ;;  %v775_v16 = vadd.f32 1.0, %v2650_v5  ;;  %127 = vst [vmem:[#allocation2 + $0xc4] sm:$0xf] %v126_v13  ;;  %v776_v23 = vadd.f32 1.0, %v2652_v15  ;;  %2673 = vpow2.f32 %v1967_v1  ;;  %v2660_v42 = vpop.eup %2659  ;;  %v466_v1 = vmul.f32 %v2193_v18, %v3010_v22 }
  0x2c   :  { %129 = vst [vmem:[#allocation2 + $0xc8] sm:$0xf] %v128_v14  ;;  %v130_v19 = vld [vmem:[%s3721_s0 + $0x198] sm:$0xf]  ;;  %v132_v20 = vld [vmem:[%s3721_s0 + $0x1a0] sm:$0xf]  ;;  %v2662_v51 = vpop.eup %2661  ;;  %v467_v5 = vmul.f32 %v2194_v58, %v3010_v22 }
  0x2d   :  { %131 = vst [vmem:[#allocation2 + $0xcc] sm:$0xf] %v130_v19  ;;  %133 = vst [vmem:[#allocation2 + $0xd0] sm:$0xf] %v132_v20  ;;  %v134_v26 = vld [vmem:[%s3721_s0 + $0x1a8] sm:$0xf]  ;;  %2675 = vrcp.f32 %v775_v16  ;;  %v2664_v60 = vpop.eup %2663  ;;  %v3283_v15 = vadd.f32 %v3034_v30, %v466_v1 }
  0x2e   :  { %v136_v27 = vld [vmem:[%s3721_s0 + $0x1b0] sm:$0xf]  ;;  %v777_v29 = vadd.f32 1.0, %v2654_v21  ;;  %135 = vst [vmem:[#allocation2 + $0xd4] sm:$0xf] %v134_v26  ;;  %2677 = vrcp.f32 %v776_v23  ;;  %v778_v37 = vadd.f32 1.0, %v2656_v28  ;;  %v3289_v20 = vadd.f32 %v3034_v30, %v467_v5 }
  0x2f   :  { %137 = vst [vmem:[#allocation2 + $0xd8] sm:$0xf] %v136_v27  ;;  %v138_v33 = vld [vmem:[%s3721_s0 + $0x1b8] sm:$0xf]  ;;  %v140_v35 = vld [vmem:[%s3721_s0 + $0x1c0] sm:$0xf] }
  0x30   :  { %v3244_v38 = vmul.f32 -1.442695, %v3224_v24  ;;  %139 = vst [vmem:[#allocation2 + $0xdc] sm:$0xf] %v138_v33  ;;  %141 = vst [vmem:[#allocation2 + $0xe0] sm:$0xf] %v140_v35  ;;  %2679 = vrcp.f32 %v777_v29  ;;  %v2666_v4 = vpop.eup %2665 }
  0x31   :  { %v142_v41 = vld [vmem:[%s3721_s0 + $0x1c8] sm:$0xf]  ;;  %v779_v43 = vadd.f32 1.0, %v2658_v36  ;;  %v3253_v44 = vmul.f32 -1.442695, %v3234_v31  ;;  %v2452_v46 = vld [vmem:[#allocation2 + $0x50] sm:$0xff]   ;;  %2681 = vrcp.f32 %v778_v37  ;;  %v2668_v13 = vpop.eup %2667 }
  0x32   :  { %143 = vst [vmem:[#allocation2 + $0xe4] sm:$0xf] %v142_v41  ;;  %v144_v50 = vld [vmem:[%s3721_s0 + $0x1d0] sm:$0xf]  ;;  %v780_v52 = vadd.f32 1.0, %v2660_v42  ;;  %v781_v63 = vadd.f32 1.0, %v2662_v51  ;;  %v2197_v8 = vunpack.c.l.bf16 %v2452_v46  ;;  %v2198_v16 = vunpack.c.h.bf16 %v2452_v46 }
  0x33   :  { %v3262_v55 = vmul.f32 -1.442695, %v3247_v39  ;;  %145 = vst [vmem:[#allocation2 + $0xe8] sm:$0xf] %v144_v50  ;;  %v146_v59 = vld [vmem:[%s3721_s0 + $0x1d8] sm:$0xf]  ;;  %2683 = vrcp.f32 %v779_v43  ;;  %v2670_v18 = vpop.eup %2669 }
  0x34   :  { %v3269_v0 = vmul.f32 -1.442695, %v3256_v45  ;;  %147 = vst [vmem:[#allocation2 + $0xec] sm:$0xf] %v146_v59  ;;  %v148_v3 = vld [vmem:[%s3721_s0 + $0x1e0] sm:$0xf]  ;;  %2685 = vrcp.f32 %v780_v52  ;;  %v468_v21 = vmul.f32 %v2197_v8, %v3010_v22  ;;  %v2672_v25 = vpop.eup %2671  ;;  %v469_v28 = vmul.f32 %v2198_v16, %v3010_v22 }
  0x35   :  { %v782_v49 = vadd.f32 1.0, %v2664_v60  ;;  %149 = vst [vmem:[#allocation2 + $0xf0] sm:$0xf] %v148_v3  ;;  %v150_v9 = vld [vmem:[%s3721_s0 + $0x1e8] sm:$0xf]  ;;  %2687 = vrcp.f32 %v781_v63  ;;  %v783_v14 = vadd.f32 1.0, %v2666_v4  ;;  %v2674_v29 = vpop.eup %2673 }
  0x36   :  { %v152_v10 = vld [vmem:[%s3721_s0 + $0x1f0] sm:$0xf]  ;;  %151 = vst [vmem:[#allocation2 + $0xf4] sm:$0xf] %v150_v9  ;;  %v154_v17 = vld [vmem:[%s3721_s0 + $0x1f8] sm:$0xf]  ;;  %v3296_v35 = vadd.f32 %v3034_v30, %v468_v21  ;;  %v3299_v41 = vadd.f32 %v3034_v30, %v469_v28 }
  0x37   :  { %153 = vst [vmem:[#allocation2 + $0xf8] sm:$0xf] %v152_v10  ;;  %2689 = vrcp.f32 %v782_v49  ;;  %v784_v19 = vadd.f32 1.0, %v2668_v13  ;;  %v2453_v23 = vld [vmem:[#allocation2 + $0x58] sm:$0xff]   ;;  %155 = vst [vmem:[#allocation2 + $0xfc] sm:$0xf] %v154_v17  ;;  %v2676_v36 = vpop.eup %2675 }
  0x38   :  { %2691 = vrcp.f32 %v783_v14  ;;  %v785_v26 = vadd.f32 1.0, %v2670_v18  ;;  %v1973_v27 = vmul.f32 -1.442695, %v3283_v15  ;;  %v786_v32 = vadd.f32 1.0, %v2672_v25  ;;  %v2454_v43 = vld [vmem:[#allocation2 + $0x60] sm:$0xff]   ;;  %v2678_v46 = vpop.eup %2677 }
  0x39   :  { %2693 = vrcp.f32 %v784_v19  ;;  %v1974_v33 = vmul.f32 -1.442695, %v3289_v20  ;;  %v787_v37 = vadd.f32 1.0, %v2674_v29  ;;  %v2201_v42 = vunpack.c.l.bf16 %v2453_v23 }
  0x3a   :  { %2695 = vrcp.f32 %v785_v26  ;;  %v967_v50 = vmul.f32 %v2676_v36, %v3076_v56  ;;  %v1975_v51 = vmul.f32 -1.442695, %v3296_v35  ;;  %v2202_v52 = vunpack.c.h.bf16 %v2453_v23  ;;  %v2680_v58 = vpop.eup %2679  ;;  %v2456_v36 = vld [vmem:[#allocation2 + $0x70] sm:$0xff]  }
  0x3b   :  { %2697 = vrcp.f32 %v786_v32  ;;  %v968_v59 = vmul.f32 %v2678_v46, %v3079_v57  ;;  %v1976_v60 = vmul.f32 -1.442695, %v3299_v41  ;;  %v470_v63 = vmul.f32 %v2201_v42, %v3010_v22  ;;  %v2682_v1 = vpop.eup %2681 }
  0x3c   :  { %2699 = vpow2.f32 %v3201_v2  ;;  %v969_v3 = vmul.f32 %v2680_v58, %v3087_v61  ;;  %v471_v4 = vmul.f32 %v2202_v52, %v3010_v22  ;;  %v2205_v56 = vunpack.c.l.bf16 %v2454_v43 }
  0x3d   :  { %2701 = vrcp.f32 %v787_v37  ;;  %v2684_v49 = vpop.eup %2683  ;;  %v1031_v5 = vpack.c.bf16 %v968_v59, %v967_v50  ;;  %v970_v8 = vmul.f32 %v2682_v1, %v3090_v62  ;;  %v3312_v57 = vadd.f32 %v3034_v30, %v470_v63 }
  0x3e   :  { %2703 = vpow2.f32 %v3244_v38  ;;  %v2686_v2 = vpop.eup %2685  ;;  %v971_v9 = vmul.f32 %v2684_v49, %v3104_v6  ;;  %v3317_v61 = vadd.f32 %v3034_v30, %v471_v4  ;;  %v2206_v10 = vunpack.c.h.bf16 %v2454_v43  ;;  %v2455_v38 = vld [vmem:[#allocation2 + $0x68] sm:$0xff]  }
  0x3f   :  { %2705 = vpow2.f32 %v3253_v44  ;;  %v2688_v13 = vpop.eup %2687  ;;  %2561 = vmatprep.mubr.bf16.mxu0 %v1031_v5  ;;  %v1032_v14 = vpack.c.bf16 %v970_v8, %v969_v3  ;;  %v972_v16 = vmul.f32 %v2686_v2, %v3107_v7  ;;  %v1977_v62 = vmul.f32 -1.442695, %v3312_v57 }
  0x40   :  { %2707 = vpow2.f32 %v3262_v55  ;;  %v973_v18 = vmul.f32 %v2688_v13, %v3116_v11  ;;  %v1978_v6 = vmul.f32 -1.442695, %v3317_v61  ;;  %v472_v44 = vmul.f32 %v2205_v56, %v3010_v22 }
  0x41   :  { %v2690_v17 = vpop.eup %2689  ;;  %2709 = vpow2.f32 %v3269_v0  ;;  %2562 = vmatmul.mubr.bf16.vlgmr.msra.gmra.mrb[0].mxu0 %v1032_v14  ;;  %v1033_v21 = vpack.c.bf16 %v972_v16, %v971_v9  ;;  %v473_v7 = vmul.f32 %v2206_v10, %v3010_v22  ;;  %v2209_v0 = vunpack.c.l.bf16 %v2455_v38 }
  0x42   :  { %v2692_v19 = vpop.eup %2691  ;;  %v974_v23 = vmul.f32 %v2690_v17, %v3119_v12  ;;  %2711 = vpow2.f32 %v1973_v27  ;;  %v3330_v11 = vadd.f32 %v3034_v30, %v472_v44  ;;  %v2214_v49 = vunpack.c.h.bf16 %v2456_v36  ;;  %v2458_v44 = vld [vmem:[#allocation2 + $0x80] sm:$0xff]  }
  0x43   :  { %v2694_v55 = vpop.eup %2693  ;;  %v975_v25 = vmul.f32 %v2692_v19, %v3143_v34  ;;  %2713 = vpow2.f32 %v1974_v33  ;;  %2565 = vmatprep.mubr.bf16.mxu0 %v1033_v21  ;;  %v3334_v32 = vadd.f32 %v3034_v30, %v473_v7  ;;  %v2210_v33 = vunpack.c.h.bf16 %v2455_v38 }
  0x44   :  { %v2696_v26 = vpop.eup %2695  ;;  %v1034_v28 = vpack.c.bf16 %v974_v23, %v973_v18  ;;  %v976_v29 = vmul.f32 %v2694_v55, %v3154_v40  ;;  %2715 = vpow2.f32 %v1975_v51  ;;  %v1979_v34 = vmul.f32 -1.442695, %v3330_v11 }
  0x45   :  { %v2698_v12 = vpop.eup %2697  ;;  %v3337_v27 = vmul.f32 %v2696_v26, %v3168_v47  ;;  %2717 = vpow2.f32 %v1976_v60  ;;  %v1980_v40 = vmul.f32 -1.442695, %v3334_v32  ;;  %v474_v51 = vmul.f32 %v2209_v0, %v3010_v22 }
  0x46   :  { %v2700_v37 = vpop.eup %2699  ;;  %v1035_v42 = vpack.c.bf16 %v976_v29, %v975_v25  ;;  %v3341_v43 = vmul.f32 %v2698_v12, %v3171_v48  ;;  %2719 = vpow2.f32 %v1977_v62  ;;  %v475_v47 = vmul.f32 %v2210_v33, %v3010_v22 }
  0x47   :  { %v2702_v46 = vpop.eup %2701  ;;  %v788_v50 = vadd.f32 1.0, %v2700_v37  ;;  %2721 = vpow2.f32 %v1978_v6  ;;  %v2213_v48 = vunpack.c.l.bf16 %v2456_v36  ;;  %v3352_v1 = vadd.f32 %v3034_v30, %v474_v51 }
  0x48   :  { %v2704_v52 = vpop.eup %2703  ;;  %v1036_v58 = vpack.c.bf16 %v3341_v43, %v3337_v27  ;;  %v3349_v59 = vmul.f32 %v2702_v46, %v3183_v53  ;;  %2723 = vpow2.f32 %v1979_v34  ;;  %v3355_v3 = vadd.f32 %v3034_v30, %v475_v47  ;;  %v2457_v53 = vld [vmem:[#allocation2 + $0x78] sm:$0xff]  }
  0x49   :  { %v2706_v60 = vpop.eup %2705  ;;  %2725 = vrcp.f32 %v788_v50  ;;  %v789_v63 = vadd.f32 1.0, %v2704_v52  ;;  %2566 = vmatmul.mubr.bf16.gmra.mrb[4].mxu0 %v1034_v28  ;;  %v476_v5 = vmul.f32 %v2213_v48, %v3010_v22  ;;  %v1981_v9 = vmul.f32 -1.442695, %v3352_v1  ;;  %v2459_v50 = vld [vmem:[#allocation2 + $0x88] sm:$0xff]  }
  0x4a   :  { %v2708_v4 = vpop.eup %2707  ;;  %v790_v56 = vadd.f32 1.0, %v2706_v60  ;;  %2727 = vpow2.f32 %v1980_v40  ;;  %2569 = vmatprep.mubr.bf16.mxu0 %v1035_v42  ;;  %v3360_v10 = vmul.f32 -1.442695, %v3355_v3  ;;  %v477_v16 = vmul.f32 %v2214_v49, %v3010_v22 }
  0x4b   :  { %v2710_v8 = vpop.eup %2709  ;;  %2729 = vrcp.f32 %v789_v63  ;;  %v791_v2 = vadd.f32 1.0, %v2708_v4  ;;  %v3364_v62 = vadd.f32 %v3034_v30, %v476_v5  ;;  %v2217_v18 = vunpack.c.l.bf16 %v2457_v53 }
  0x4c   :  { %v2712_v13 = vpop.eup %2711  ;;  %2731 = vrcp.f32 %v790_v56  ;;  %v792_v14 = vadd.f32 1.0, %v2710_v8  ;;  %v2218_v6 = vunpack.c.h.bf16 %v2457_v53  ;;  %v3367_v23 = vadd.f32 %v3034_v30, %v477_v16 }
  0x4d   :  { %v2714_v38 = vpop.eup %2713  ;;  %2733 = vrcp.f32 %v791_v2  ;;  %v793_v17 = vadd.f32 1.0, %v2712_v13  ;;  %v1983_v7 = vmul.f32 -1.442695, %v3364_v62  ;;  %v478_v0 = vmul.f32 %v2217_v18, %v3010_v22  ;;  %v2460_v18 = vld [vmem:[#allocation2 + $0x90] sm:$0xff]  }
  0x4e   :  { %v2716_v19 = vpop.eup %2715  ;;  %2735 = vrcp.f32 %v792_v14  ;;  %v794_v21 = vadd.f32 1.0, %v2714_v38  ;;  %v479_v26 = vmul.f32 %v2218_v6, %v3010_v22  ;;  %v1984_v12 = vmul.f32 -1.442695, %v3367_v23 }
  0x4f   :  { %v2718_v55 = vpop.eup %2717  ;;  %2737 = vrcp.f32 %v793_v17  ;;  %v795_v25 = vadd.f32 1.0, %v2716_v19  ;;  %v2221_v27 = vunpack.c.l.bf16 %v2458_v44  ;;  %v3374_v36 = vadd.f32 %v3034_v30, %v478_v0 }
  0x50   :  { %v2720_v28 = vpop.eup %2719  ;;  %2739 = vrcp.f32 %v794_v21  ;;  %v796_v29 = vadd.f32 1.0, %v2718_v55  ;;  %v3377_v37 = vadd.f32 %v3034_v30, %v479_v26  ;;  %v2222_v40 = vunpack.c.h.bf16 %v2458_v44 }
  0x51   :  { %v2722_v34 = vpop.eup %2721  ;;  %2741 = vrcp.f32 %v795_v25  ;;  %v797_v33 = vadd.f32 1.0, %v2720_v28  ;;  %2570 = vmatmul.mubr.bf16.gmra.mrb[8].mxu0 %v1036_v58  ;;  %v480_v46 = vmul.f32 %v2221_v27, %v3010_v22  ;;  %v1985_v52 = vmul.f32 -1.442695, %v3374_v36 }
  0x52   :  { %v2724_v42 = vpop.eup %2723  ;;  %2743 = vrcp.f32 %v796_v29  ;;  %v798_v43 = vadd.f32 1.0, %v2722_v34  ;;  %v1986_v48 = vmul.f32 -1.442695, %v3377_v37  ;;  %v481_v4 = vmul.f32 %v2222_v40, %v3010_v22 }
  0x53   :  { %v2726_v51 = vpop.eup %2725  ;;  %2745 = vrcp.f32 %v797_v33  ;;  %v799_v47 = vadd.f32 1.0, %v2724_v42  ;;  %v3385_v58 = vadd.f32 %v3034_v30, %v480_v46  ;;  %v2225_v5 = vunpack.c.l.bf16 %v2459_v50 }
  0x54   :  { %v2728_v60 = vpop.eup %2727  ;;  %v980_v63 = vmul.f32 %v2726_v51, %v3186_v54  ;;  %2747 = vrcp.f32 %v798_v43  ;;  %v2226_v53 = vunpack.c.h.bf16 %v2459_v50  ;;  %v3390_v14 = vadd.f32 %v3034_v30, %v481_v4 }
  0x55   :  { %v2730_v56 = vpop.eup %2729  ;;  %v800_v49 = vadd.f32 1.0, %v2728_v60  ;;  %2749 = vrcp.f32 %v799_v47  ;;  %v1987_v38 = vmul.f32 -1.442695, %v3385_v58  ;;  %v482_v17 = vmul.f32 %v2225_v5, %v3010_v22 }
  0x56   :  { %v2732_v8 = vpop.eup %2731  ;;  %v1037_v2 = vpack.c.bf16 %v980_v63, %v3349_v59  ;;  %v981_v13 = vmul.f32 %v2730_v56, %v3224_v24  ;;  %2751 = vpow2.f32 %v1981_v9  ;;  %v1988_v24 = vmul.f32 -1.442695, %v3390_v14 }
  0x57   :  { %v2734_v54 = vpop.eup %2733  ;;  %v982_v16 = vmul.f32 %v2732_v8, %v3234_v31  ;;  %2753 = vrcp.f32 %v800_v49  ;;  %v483_v59 = vmul.f32 %v2226_v53, %v3010_v22  ;;  %v3401_v21 = vadd.f32 %v3034_v30, %v482_v17 }
  0x58   :  { %v2736_v6 = vpop.eup %2735  ;;  %2573 = vmatprep.mubr.bf16.mxu0 %v1037_v2  ;;  %v983_v44 = vmul.f32 %v2734_v54, %v3247_v39  ;;  %2755 = vpow2.f32 %v3360_v10  ;;  %v2229_v10 = vunpack.c.l.bf16 %v2460_v18 }
  0x59   :  { %v2738_v9 = vpop.eup %2737  ;;  %v1038_v19 = vpack.c.bf16 %v982_v16, %v981_v13  ;;  %v984_v31 = vmul.f32 %v2736_v6, %v3256_v45  ;;  %2757 = vpow2.f32 %v1983_v7  ;;  %v3405_v39 = vadd.f32 %v3034_v30, %v483_v59  ;;  %v2461_v7 = vld [vmem:[#allocation2 + $0x98] sm:$0xff]  }
  0x5a   :  { %v2740_v55 = vpop.eup %2739  ;;  %v985_v25 = vmul.f32 %v2738_v9, %v3283_v15  ;;  %2759 = vpow2.f32 %v1984_v12  ;;  %v1989_v45 = vmul.f32 -1.442695, %v3401_v21  ;;  %v2230_v12 = vunpack.c.h.bf16 %v2460_v18 }
  0x5b   :  { %v2742_v0 = vpop.eup %2741  ;;  %2574 = vmatmul.mubr.bf16.gmra.mrb[12].mxu0 %v1038_v19  ;;  %v1039_v26 = vpack.c.bf16 %v984_v31, %v983_v44  ;;  %v986_v28 = vmul.f32 %v2740_v55, %v3289_v20  ;;  %2761 = vpow2.f32 %v1985_v52  ;;  %v1990_v15 = vmul.f32 -1.442695, %v3405_v39 }
  0x5c   :  { %v2744_v29 = vpop.eup %2743  ;;  %v987_v27 = vmul.f32 %v2742_v0, %v3296_v35  ;;  %2763 = vpow2.f32 %v1986_v48  ;;  %v484_v43 = vmul.f32 %v2229_v10, %v3010_v22  ;;  %v485_v46 = vmul.f32 %v2230_v12, %v3010_v22 }
  0x5d   :  { %v2746_v34 = vpop.eup %2745  ;;  %2577 = vmatprep.mubr.bf16.mxu0 %v1039_v26  ;;  %v1040_v33 = vpack.c.bf16 %v986_v28, %v985_v25  ;;  %v988_v42 = vmul.f32 %v2744_v29, %v3299_v41  ;;  %2765 = vpow2.f32 %v1987_v38  ;;  %v2233_v35 = vunpack.c.l.bf16 %v2461_v7  ;;  %v2462_v41 = vld [vmem:[#allocation2 + $0xa0] sm:$0xff]  }
  0x5e   :  { %v2748_v20 = vpop.eup %2747  ;;  %v3414_v40 = vmul.f32 %v2746_v34, %v3312_v57  ;;  %2767 = vpow2.f32 %v1988_v24  ;;  %v3421_v52 = vadd.f32 %v3034_v30, %v484_v43  ;;  %v3427_v57 = vadd.f32 %v3034_v30, %v485_v46  ;;  %v2463_v24 = vld [vmem:[#allocation2 + $0xa8] sm:$0xff]   ;;  %v2464_v34 = vld [vmem:[#allocation2 + $0xb0] sm:$0xff]   ;;  %v3459_v43 = vld [vmem:[%s3722_s1] ss:$0 sm:$0xff] }
  0x5f   :  { %v2750_v50 = vpop.eup %2749  ;;  %v1041_v51 = vpack.c.bf16 %v988_v42, %v987_v27  ;;  %v3418_v47 = vmul.f32 %v2748_v20, %v3317_v61  ;;  %2769 = vpow2.f32 %v1989_v45  ;;  %v2234_v63 = vunpack.c.h.bf16 %v2461_v7 }
  0x60   :  { %v2752_v48 = vpop.eup %2751  ;;  %v3424_v60 = vmul.f32 %v2750_v50, %v3330_v11  ;;  %2771 = vpow2.f32 %v1990_v15  ;;  %v1991_v49 = vmul.f32 -1.442695, %v3421_v52  ;;  %v486_v5 = vmul.f32 %v2233_v35, %v3010_v22 }
  0x61   :  { %v2754_v4 = vpop.eup %2753  ;;  %v1042_v56 = vpack.c.bf16 %v3418_v47, %v3414_v40  ;;  %v801_v61 = vadd.f32 1.0, %v2752_v48  ;;  %v3435_v11 = vmul.f32 -1.442695, %v3427_v57  ;;  %v487_v2 = vmul.f32 %v2234_v63, %v3010_v22  ;;  %v2465_v40 = vld [vmem:[#allocation2 + $0xb8] sm:$0xff]   ;;  %v3467_v47 = vld [vmem:[%s3723_s2] ss:$0 sm:$0xff] }
  0x62   :  { %v2756_v53 = vpop.eup %2755  ;;  %v992_v8 = vmul.f32 %v2754_v4, %v3334_v32  ;;  %v2237_v13 = vunpack.c.l.bf16 %v2462_v41  ;;  %v3439_v38 = vadd.f32 %v3034_v30, %v486_v5  ;;  %v2238_v17 = vunpack.c.h.bf16 %v2462_v41 }
  0x63   :  { %v2758_v54 = vpop.eup %2757  ;;  %2578 = vmatmul.mubr.bf16.gmra.mrb[16].mxu0 %v1040_v33  ;;  %v802_v16 = vadd.f32 1.0, %v2756_v53  ;;  %2773 = vrcp.f32 %v801_v61  ;;  %v3443_v32 = vadd.f32 %v3034_v30, %v487_v2  ;;  %v2241_v7 = vunpack.c.l.bf16 %v2463_v24 }
  0x64   :  { %v2760_v18 = vpop.eup %2759  ;;  %2581 = vmatprep.mubr.bf16.mxu0 %v1041_v51  ;;  %v1043_v6 = vpack.c.bf16 %v992_v8, %v3424_v60  ;;  %v803_v44 = vadd.f32 1.0, %v2758_v54  ;;  %2775 = vpow2.f32 %v1991_v49  ;;  %v1993_v19 = vmul.f32 -1.442695, %v3439_v38 }
  0x65   :  { %v2762_v59 = vpop.eup %2761  ;;  %2777 = vrcp.f32 %v802_v16  ;;  %v804_v9 = vadd.f32 1.0, %v2760_v18  ;;  %v488_v31 = vmul.f32 %v2237_v13, %v3010_v22  ;;  %v1994_v10 = vmul.f32 -1.442695, %v3443_v32 }
  0x66   :  { %v2764_v55 = vpop.eup %2763  ;;  %2779 = vrcp.f32 %v803_v44  ;;  %v805_v25 = vadd.f32 1.0, %v2762_v59  ;;  %v489_v0 = vmul.f32 %v2238_v17, %v3010_v22  ;;  %v2242_v12 = vunpack.c.h.bf16 %v2463_v24 }
  0x67   :  { %v2766_v26 = vpop.eup %2765  ;;  %2781 = vrcp.f32 %v804_v9  ;;  %v806_v28 = vadd.f32 1.0, %v2764_v55  ;;  %v3450_v45 = vadd.f32 %v3034_v30, %v488_v31  ;;  %v490_v20 = vmul.f32 %v3459_v43, %v2241_v7  ;;  %v2466_v31 = vld [vmem:[#allocation2 + $0xc0] sm:$0xff]  }
  0x68   :  { %v2768_v29 = vpop.eup %2767  ;;  %2783 = vrcp.f32 %v805_v25  ;;  %v807_v27 = vadd.f32 1.0, %v2766_v26  ;;  %v3453_v15 = vadd.f32 %v3034_v30, %v489_v0  ;;  %v491_v50 = vmul.f32 %v3459_v43, %v2242_v12 }
  0x69   :  { %v2770_v33 = vpop.eup %2769  ;;  %2785 = vrcp.f32 %v806_v28  ;;  %v808_v42 = vadd.f32 1.0, %v2768_v29  ;;  %v1995_v22 = vmul.f32 -1.442695, %v3450_v45  ;;  %v3470_v41 = vadd.f32 %v3467_v47, %v490_v20 }
  0x6a   :  { %v2772_v46 = vpop.eup %2771  ;;  %2787 = vrcp.f32 %v807_v27  ;;  %v809_v35 = vadd.f32 1.0, %v2770_v33  ;;  %v1996_v30 = vmul.f32 -1.442695, %v3453_v15  ;;  %v2245_v48 = vunpack.c.l.bf16 %v2464_v34 }
  0x6b   :  { %2582 = vmatmul.mubr.bf16.gmra.mrb[20].mxu0 %v1042_v56  ;;  %2789 = vrcp.f32 %v808_v42  ;;  %v810_v51 = vadd.f32 1.0, %v2772_v46  ;;  %v3473_v60 = vadd.f32 %v3467_v47, %v491_v50  ;;  %v2246_v63 = vunpack.c.h.bf16 %v2464_v34 }
  0x6c   :  { %2585 = vmatprep.mubr.bf16.mxu0 %v1043_v6  ;;  %2791 = vrcp.f32 %v809_v35  ;;  %v2249_v4 = vunpack.c.l.bf16 %v2465_v40  ;;  %v1997_v56 = vmul.f32 -1.442695, %v3470_v41  ;;  %v492_v49 = vmul.f32 %v3459_v43, %v2245_v48 }
  0x6d   :  { %v2774_v61 = vpop.eup %2773  ;;  %2793 = vrcp.f32 %v810_v51  ;;  %v2250_v5 = vunpack.c.h.bf16 %v2465_v40  ;;  %v1998_v2 = vmul.f32 -1.442695, %v3473_v60  ;;  %v493_v13 = vmul.f32 %v3459_v43, %v2246_v63 }
  0x6e   :  { %v2776_v53 = vpop.eup %2775  ;;  %v993_v8 = vmul.f32 %v2774_v61, %v3352_v1  ;;  %2795 = vpow2.f32 %v3435_v11  ;;  %v3482_v17 = vadd.f32 %v3467_v47, %v492_v49  ;;  %v494_v18 = vmul.f32 %v3459_v43, %v2249_v4 }
  0x6f   :  { %v2778_v54 = vpop.eup %2777  ;;  %v811_v16 = vadd.f32 1.0, %v2776_v53  ;;  %2797 = vpow2.f32 %v1993_v19  ;;  %v3487_v1 = vadd.f32 %v3467_v47, %v493_v13  ;;  %v495_v11 = vmul.f32 %v3459_v43, %v2250_v5 }
  0x70   :  { %v2780_v6 = vpop.eup %2779  ;;  %v994_v44 = vmul.f32 %v2778_v54, %v3355_v3  ;;  %2799 = vpow2.f32 %v1994_v10  ;;  %v1999_v9 = vmul.f32 -1.442695, %v3482_v17  ;;  %v3493_v19 = vadd.f32 %v3467_v47, %v494_v18 }
  0x71   :  { %v2782_v24 = vpop.eup %2781  ;;  %v995_v59 = vmul.f32 %v2780_v6, %v3364_v62  ;;  %2801 = vrcp.f32 %v811_v16  ;;  %v2000_v10 = vmul.f32 -1.442695, %v3487_v1  ;;  %v3499_v62 = vadd.f32 %v3467_v47, %v495_v11 }
  0x72   :  { %v2784_v55 = vpop.eup %2783  ;;  %v1044_v25 = vpack.c.bf16 %v994_v44, %v993_v8  ;;  %v996_v3 = vmul.f32 %v2782_v24, %v3367_v23  ;;  %2803 = vpow2.f32 %v1995_v22  ;;  %v2001_v28 = vmul.f32 -1.442695, %v3493_v19  ;;  %v2467_v23 = vld [vmem:[#allocation2 + $0xc8] sm:$0xff]  }
  0x73   :  { %v2786_v0 = vpop.eup %2785  ;;  %v997_v26 = vmul.f32 %v2784_v55, %v3374_v36  ;;  %2805 = vpow2.f32 %v1996_v30  ;;  %v2253_v12 = vunpack.c.l.bf16 %v2466_v31  ;;  %v2002_v36 = vmul.f32 -1.442695, %v3499_v62  ;;  %v2469_v55 = vld [vmem:[#allocation2 + $0xd8] sm:$0xff]  }
  0x74   :  { %v2788_v7 = vpop.eup %2787  ;;  %2586 = vmatmul.mubr.bf16.gmra.mrb[24].mxu0 %v1044_v25  ;;  %v1045_v29 = vpack.c.bf16 %v996_v3, %v995_v59  ;;  %v998_v27 = vmul.f32 %v2786_v0, %v3377_v37  ;;  %2807 = vpow2.f32 %v1997_v56  ;;  %v2254_v42 = vunpack.c.h.bf16 %v2466_v31 }
  0x75   :  { %v2790_v34 = vpop.eup %2789  ;;  %v999_v33 = vmul.f32 %v2788_v7, %v3385_v58  ;;  %2809 = vpow2.f32 %v1998_v2  ;;  %v496_v46 = vmul.f32 %v3459_v43, %v2253_v12  ;;  %v2257_v50 = vunpack.c.l.bf16 %v2467_v23 }
  0x76   :  { %v2792_v22 = vpop.eup %2791  ;;  %2589 = vmatprep.mubr.bf16.mxu0 %v1045_v29  ;;  %v1046_v20 = vpack.c.bf16 %v998_v27, %v997_v26  ;;  %v1000_v40 = vmul.f32 %v2790_v34, %v3390_v14  ;;  %2811 = vpow2.f32 %v1999_v9  ;;  %v497_v30 = vmul.f32 %v3459_v43, %v2254_v42 }
  0x77   :  { %v2794_v35 = vpop.eup %2793  ;;  %v1001_v37 = vmul.f32 %v2792_v22, %v3401_v21  ;;  %2813 = vpow2.f32 %v2000_v10  ;;  %v3511_v63 = vadd.f32 %v3467_v47, %v496_v46  ;;  %v2258_v56 = vunpack.c.h.bf16 %v2467_v23  ;;  %v2468_v21 = vld [vmem:[#allocation2 + $0xd0] sm:$0xff]   ;;  %v2470_v22 = vld [vmem:[#allocation2 + $0xe0] sm:$0xff]  }
  0x78   :  { %v2796_v58 = vpop.eup %2795  ;;  %v1047_v51 = vpack.c.bf16 %v1000_v40, %v999_v33  ;;  %v1002_v48 = vmul.f32 %v2794_v35, %v3405_v39  ;;  %2815 = vpow2.f32 %v2001_v28  ;;  %v3514_v61 = vadd.f32 %v3467_v47, %v497_v30 }
  0x79   :  { %v2798_v4 = vpop.eup %2797  ;;  %v812_v14 = vadd.f32 1.0, %v2796_v58  ;;  %2817 = vpow2.f32 %v2002_v36  ;;  %v2003_v8 = vmul.f32 -1.442695, %v3511_v63  ;;  %v498_v39 = vmul.f32 %v3459_v43, %v2257_v50 }
  0x7a   :  { %v2800_v49 = vpop.eup %2799  ;;  %2593 = vmatprep.mubr.bf16.mxu1 %v1047_v51  ;;  %v1048_v5 = vpack.c.bf16 %v1002_v48, %v1001_v37  ;;  %v813_v53 = vadd.f32 1.0, %v2798_v4  ;;  %v3519_v54 = vmul.f32 -1.442695, %v3514_v61  ;;  %v499_v16 = vmul.f32 %v3459_v43, %v2258_v56  ;;  %v2471_v37 = vld [vmem:[#allocation2 + $0xe8] sm:$0xff]  }
  0x7b   :  { %v2802_v2 = vpop.eup %2801  ;;  %2819 = vrcp.f32 %v812_v14  ;;  %v814_v13 = vadd.f32 1.0, %v2800_v49  ;;  %v3526_v44 = vadd.f32 %v3467_v47, %v498_v39  ;;  %v2261_v11 = vunpack.c.l.bf16 %v2468_v21 }
  0x7c   :  { %v2804_v18 = vpop.eup %2803  ;;  %2590 = vmatmul.mubr.bf16.gmra.mrb[28].mxu0 %v1046_v20  ;;  %2594 = vmatmul.mubr.bf16.vlgmr.msra.gmra.mrb[0].mxu1 %v1048_v5  ;;  %v3523_v6 = vmul.f32 %v2802_v2, %v3421_v52  ;;  %2821 = vrcp.f32 %v813_v53  ;;  %v3529_v9 = vadd.f32 %v3467_v47, %v499_v16  ;;  %v2262_v31 = vunpack.c.h.bf16 %v2468_v21 }
  0x7d   :  { %v2806_v24 = vpop.eup %2805  ;;  %2823 = vrcp.f32 %v814_v13  ;;  %v815_v59 = vadd.f32 1.0, %v2804_v18  ;;  %v2005_v10 = vmul.f32 -1.442695, %v3526_v44  ;;  %v500_v52 = vmul.f32 %v3459_v43, %v2261_v11 }
  0x7e   :  { %v2808_v25 = vpop.eup %2807  ;;  %v816_v3 = vadd.f32 1.0, %v2806_v24  ;;  %2825 = vpow2.f32 %v2003_v8  ;;  %v2006_v28 = vmul.f32 -1.442695, %v3529_v9  ;;  %v501_v7 = vmul.f32 %v3459_v43, %v2262_v31 }
  0x7f   :  { %v2810_v0 = vpop.eup %2809  ;;  %2827 = vrcp.f32 %v815_v59  ;;  %v817_v26 = vadd.f32 1.0, %v2808_v25  ;;  %v3536_v12 = vadd.f32 %v3467_v47, %v500_v52  ;;  %v2265_v23 = vunpack.c.l.bf16 %v2469_v55 }
  0x80   :  { %v2812_v29 = vpop.eup %2811  ;;  %2829 = vrcp.f32 %v816_v3  ;;  %v818_v27 = vadd.f32 1.0, %v2810_v0  ;;  %v3539_v36 = vadd.f32 %v3467_v47, %v501_v7  ;;  %v2266_v42 = vunpack.c.h.bf16 %v2469_v55  ;;  %v2472_v3 = vld [vmem:[#allocation2 + $0xf0] sm:$0xff]  }
  0x81   :  { %v2814_v34 = vpop.eup %2813  ;;  %2831 = vrcp.f32 %v817_v26  ;;  %v819_v33 = vadd.f32 1.0, %v2812_v29  ;;  %v2007_v46 = vmul.f32 -1.442695, %v3536_v12  ;;  %v502_v35 = vmul.f32 %v3459_v43, %v2265_v23 }
  0x82   :  { %v2816_v20 = vpop.eup %2815  ;;  %2833 = vrcp.f32 %v818_v27  ;;  %v820_v40 = vadd.f32 1.0, %v2814_v34  ;;  %v2008_v58 = vmul.f32 -1.442695, %v3539_v36  ;;  %v503_v51 = vmul.f32 %v3459_v43, %v2266_v42 }
  0x83   :  { %v2818_v30 = vpop.eup %2817  ;;  %2835 = vrcp.f32 %v819_v33  ;;  %v821_v50 = vadd.f32 1.0, %v2816_v20  ;;  %v3546_v4 = vadd.f32 %v3467_v47, %v502_v35  ;;  %v2269_v14 = vunpack.c.l.bf16 %v2470_v22 }
  0x84   :  { %2837 = vrcp.f32 %v820_v40  ;;  %v822_v48 = vadd.f32 1.0, %v2818_v30  ;;  %v3549_v21 = vadd.f32 %v3467_v47, %v503_v51  ;;  %v2270_v49 = vunpack.c.h.bf16 %v2470_v22 }
  0x85   :  { %v2820_v56 = vpop.eup %2819  ;;  %2839 = vrcp.f32 %v821_v50  ;;  %v2273_v5 = vunpack.c.l.bf16 %v2471_v37  ;;  %v2009_v39 = vmul.f32 -1.442695, %v3546_v4  ;;  %v504_v2 = vmul.f32 %v3459_v43, %v2269_v14 }
  0x86   :  { %v2822_v53 = vpop.eup %2821  ;;  %v1004_v8 = vmul.f32 %v2820_v56, %v3427_v57  ;;  %2841 = vrcp.f32 %v822_v48  ;;  %v2010_v18 = vmul.f32 -1.442695, %v3549_v21  ;;  %v505_v11 = vmul.f32 %v3459_v43, %v2270_v49 }
  0x87   :  { %v2824_v13 = vpop.eup %2823  ;;  %v1005_v16 = vmul.f32 %v2822_v53, %v3439_v38  ;;  %2843 = vpow2.f32 %v3519_v54  ;;  %v3561_v57 = vadd.f32 %v3467_v47, %v504_v2  ;;  %v2274_v54 = vunpack.c.h.bf16 %v2471_v37 }
  0x88   :  { %v2826_v24 = vpop.eup %2825  ;;  %v1049_v59 = vpack.c.bf16 %v1004_v8, %v3523_v6  ;;  %v1006_v31 = vmul.f32 %v2824_v13, %v3443_v32  ;;  %2845 = vpow2.f32 %v2005_v10  ;;  %v3564_v38 = vadd.f32 %v3467_v47, %v505_v11 }
  0x89   :  { %v2828_v55 = vpop.eup %2827  ;;  %v823_v25 = vadd.f32 1.0, %v2826_v24  ;;  %2847 = vpow2.f32 %v2006_v28  ;;  %v2011_v32 = vmul.f32 -1.442695, %v3561_v57  ;;  %v506_v28 = vmul.f32 %v3459_v43, %v2273_v5 }
  0x8a   :  { %v2830_v52 = vpop.eup %2829  ;;  %2597 = vmatprep.mubr.bf16.mxu1 %v1049_v59  ;;  %v1050_v0 = vpack.c.bf16 %v1006_v31, %v1005_v16  ;;  %v1007_v26 = vmul.f32 %v2828_v55, %v3450_v45  ;;  %2849 = vpow2.f32 %v2007_v46  ;;  %v2012_v7 = vmul.f32 -1.442695, %v3564_v38 }
  0x8b   :  { %v2832_v6 = vpop.eup %2831  ;;  %v1008_v10 = vmul.f32 %v2830_v52, %v3453_v15  ;;  %2851 = vrcp.f32 %v823_v25  ;;  %v507_v23 = vmul.f32 %v3459_v43, %v2274_v54  ;;  %v2277_v34 = vunpack.c.l.bf16 %v2472_v3 }
  0x8c   :  { %v2834_v29 = vpop.eup %2833  ;;  %2598 = vmatmul.mubr.bf16.gmra.mrb[4].mxu1 %v1050_v0  ;;  %v1009_v27 = vmul.f32 %v2832_v6, %v3470_v41  ;;  %2853 = vpow2.f32 %v2008_v58  ;;  %v3575_v15 = vadd.f32 %v3467_v47, %v506_v28  ;;  %v2278_v37 = vunpack.c.h.bf16 %v2472_v3 }
  0x8d   :  { %v2836_v45 = vpop.eup %2835  ;;  %v1051_v33 = vpack.c.bf16 %v1008_v10, %v1007_v26  ;;  %v1010_v42 = vmul.f32 %v2834_v29, %v3473_v60  ;;  %2855 = vpow2.f32 %v2009_v39  ;;  %v3579_v40 = vadd.f32 %v3467_v47, %v507_v23  ;;  %v2473_v60 = vld [vmem:[#allocation2 + $0xf8] sm:$0xff]  }
  0x8e   :  { %v2838_v22 = vpop.eup %2837  ;;  %v1011_v20 = vmul.f32 %v2836_v45, %v3482_v17  ;;  %2857 = vpow2.f32 %v2010_v18  ;;  %v2013_v35 = vmul.f32 -1.442695, %v3575_v15  ;;  %v508_v17 = vmul.f32 %v3459_v43, %v2277_v34 }
  0x8f   :  { %v2840_v41 = vpop.eup %2839  ;;  %2601 = vmatprep.mubr.bf16.mxu1 %v1051_v33  ;;  %v1012_v46 = vmul.f32 %v2838_v22, %v3487_v1  ;;  %2859 = vpow2.f32 %v2011_v32  ;;  %v1052_v50 = vpack.c.bf16 %v1010_v42, %v1009_v27  ;;  %v2014_v58 = vmul.f32 -1.442695, %v3579_v40 }
  0x90   :  { %v2842_v30 = vpop.eup %2841  ;;  %2861 = vpow2.f32 %v2012_v7  ;;  %v3586_v1 = vadd.f32 %v3467_v47, %v508_v17  ;;  %v2281_v49 = vunpack.c.l.bf16 %v2473_v60  ;;  %v1013_v53 = vmul.f32 %v2840_v41, %v3493_v19 }
  0x91   :  { %v2844_v51 = vpop.eup %2843  ;;  %v1053_v48 = vpack.c.bf16 %v1012_v46, %v1011_v20  ;;  %2863 = vpow2.f32 %v2013_v35  ;;  %v1014_v8 = vmul.f32 %v2842_v30, %v3499_v62  ;;  %v2282_v2 = vunpack.c.h.bf16 %v2473_v60 }
  0x92   :  { %v2846_v14 = vpop.eup %2845  ;;  %v824_v56 = vadd.f32 1.0, %v2844_v51  ;;  %2865 = vpow2.f32 %v2014_v58  ;;  %v509_v18 = vmul.f32 %v3459_v43, %v2278_v37  ;;  %v2015_v11 = vmul.f32 -1.442695, %v3586_v1 }
  0x93   :  { %v2848_v5 = vpop.eup %2847  ;;  %v825_v39 = vadd.f32 1.0, %v2846_v14  ;;  %v510_v31 = vmul.f32 %v3459_v43, %v2281_v49  ;;  %v511_v19 = vmul.f32 %v3459_v43, %v2282_v2  ;;  %v1054_v3 = vpack.c.bf16 %v1014_v8, %v1013_v53 }
  0x94   :  { %v2850_v13 = vpop.eup %2849  ;;  %2602 = vmatmul.mubr.bf16.gmra.mrb[8].mxu1 %v1052_v50  ;;  %2867 = vrcp.f32 %v824_v56  ;;  %v826_v16 = vadd.f32 1.0, %v2848_v5  ;;  %v3595_v0 = vadd.f32 %v3467_v47, %v509_v18 }
  0x95   :  { %v2852_v24 = vpop.eup %2851  ;;  %2605 = vmatprep.mubr.bf16.mxu1 %v1053_v48  ;;  %2869 = vrcp.f32 %v825_v39  ;;  %v827_v59 = vadd.f32 1.0, %v2850_v13  ;;  %v3598_v6 = vadd.f32 %v3467_v47, %v510_v31  ;;  %v3601_v43 = vadd.f32 %v3467_v47, %v511_v19 }
  0x96   :  { %v2854_v55 = vpop.eup %2853  ;;  %2871 = vrcp.f32 %v826_v16  ;;  %v2016_v34 = vmul.f32 -1.442695, %v3595_v0  ;;  %v1015_v45 = vmul.f32 %v2852_v24, %v3511_v63 }
  0x97   :  { %v2856_v62 = vpop.eup %2855  ;;  %v828_v25 = vadd.f32 1.0, %v2854_v55  ;;  %2873 = vrcp.f32 %v827_v59  ;;  %v2017_v42 = vmul.f32 -1.442695, %v3598_v6  ;;  %v2018_v47 = vmul.f32 -1.442695, %v3601_v43 }
  0x98   :  { %v2858_v54 = vpop.eup %2857  ;;  %v829_v52 = vadd.f32 1.0, %v2856_v62  ;;  %2875 = vpow2.f32 %v2015_v11 }
  0x99   :  { %v2860_v26 = vpop.eup %2859  ;;  %2877 = vrcp.f32 %v828_v25  ;;  %v830_v32 = vadd.f32 1.0, %v2858_v54 }
  0x9a   :  { %v2862_v10 = vpop.eup %2861  ;;  %2879 = vrcp.f32 %v829_v52  ;;  %v831_v7 = vadd.f32 1.0, %v2860_v26 }
  0x9b   :  { %v2864_v28 = vpop.eup %2863  ;;  %2881 = vrcp.f32 %v830_v32  ;;  %v832_v29 = vadd.f32 1.0, %v2862_v10 }
  0x9c   :  { %v2866_v27 = vpop.eup %2865  ;;  %2606 = vmatmul.mubr.bf16.gmra.mrb[12].mxu1 %v1054_v3  ;;  %2883 = vrcp.f32 %v831_v7  ;;  %v833_v23 = vadd.f32 1.0, %v2864_v28 }
  0x9d   :  { %2885 = vrcp.f32 %v832_v29  ;;  %v834_v33 = vadd.f32 1.0, %v2866_v27 }
  0x9e   :  { %v2868_v22 = vpop.eup %2867  ;;  %2887 = vrcp.f32 %v833_v23 }
  0x9f   :  { %v2870_v20 = vpop.eup %2869  ;;  %v1016_v41 = vmul.f32 %v2868_v22, %v3514_v61  ;;  %2889 = vrcp.f32 %v834_v33 }
  0xa0   :  { %v2872_v46 = vpop.eup %2871  ;;  %v1017_v35 = vmul.f32 %v2870_v20, %v3526_v44  ;;  %2891 = vpow2.f32 %v2016_v34 }
  0xa1   :  { %v2874_v37 = vpop.eup %2873  ;;  %v1055_v60 = vpack.c.bf16 %v1016_v41, %v1015_v45  ;;  %v1018_v63 = vmul.f32 %v2872_v46, %v3529_v9  ;;  %2893 = vpow2.f32 %v2017_v42 }
  0xa2   :  { %v2876_v30 = vpop.eup %2875  ;;  %v1019_v50 = vmul.f32 %v2874_v37, %v3536_v12  ;;  %2895 = vpow2.f32 %v2018_v47 }
  0xa3   :  { %v2878_v58 = vpop.eup %2877  ;;  %2609 = vmatprep.mubr.bf16.mxu1 %v1055_v60  ;;  %v1056_v17 = vpack.c.bf16 %v1018_v63, %v1017_v35  ;;  %v835_v14 = vadd.f32 1.0, %v2876_v30 }
  0xa4   :  { %v2880_v51 = vpop.eup %2879  ;;  %v1020_v61 = vmul.f32 %v2878_v58, %v3539_v36 }
  0xa5   :  { %v2882_v48 = vpop.eup %2881  ;;  %2610 = vmatmul.mubr.bf16.gmra.mrb[16].mxu1 %v1056_v17  ;;  %v1021_v44 = vmul.f32 %v2880_v51, %v3546_v4  ;;  %2897 = vrcp.f32 %v835_v14 }
  0xa6   :  { %v2884_v56 = vpop.eup %2883  ;;  %v1057_v49 = vpack.c.bf16 %v1020_v61, %v1019_v50  ;;  %v1022_v9 = vmul.f32 %v2882_v48, %v3549_v21 }
  0xa7   :  { %v2886_v5 = vpop.eup %2885  ;;  %v1023_v53 = vmul.f32 %v2884_v56, %v3561_v57 }
  0xa8   :  { %v2888_v12 = vpop.eup %2887  ;;  %2613 = vmatprep.mubr.bf16.mxu1 %v1057_v49  ;;  %v1024_v8 = vmul.f32 %v2886_v5, %v3564_v38  ;;  %v1058_v2 = vpack.c.bf16 %v1022_v9, %v1021_v44 }
  0xa9   :  { %v2890_v39 = vpop.eup %2889  ;;  %v1025_v24 = vmul.f32 %v2888_v12, %v3575_v15 }
  0xaa   :  { %v2892_v36 = vpop.eup %2891  ;;  %v1059_v13 = vpack.c.bf16 %v1024_v8, %v1023_v53  ;;  %v1026_v21 = vmul.f32 %v2890_v39, %v3579_v40 }
  0xab   :  { %v2894_v16 = vpop.eup %2893  ;;  %v836_v18 = vadd.f32 1.0, %v2892_v36 }
  0xac   :  { %v2896_v4 = vpop.eup %2895  ;;  %v837_v11 = vadd.f32 1.0, %v2894_v16  ;;  %v1060_v38 = vpack.c.bf16 %v1026_v21, %v1025_v24 }
  0xad   :  { %2614 = vmatmul.mubr.bf16.gmra.mrb[20].mxu1 %v1058_v2  ;;  %2899 = vrcp.f32 %v836_v18  ;;  %v838_v57 = vadd.f32 1.0, %v2896_v4 }
  0xae   :  { %2617 = vmatprep.mubr.bf16.mxu1 %v1059_v13  ;;  %2901 = vrcp.f32 %v837_v11 }
  0xaf   :  { %2903 = vrcp.f32 %v838_v57  ;;  %v2898_v59 = vpop.eup %2897 }
  0xb0   :  { %v1027_v31 = vmul.f32 %v2898_v59, %v3586_v1 }
  0xb5   :  { %2618 = vmatmul.mubr.bf16.gmra.mrb[24].mxu1 %v1060_v38 }
  0xb7   :  { %v2900_v55 = vpop.eup %2899 }
  0xb8   :  { %v2902_v19 = vpop.eup %2901  ;;  %v1028_v62 = vmul.f32 %v2900_v55, %v3595_v0 }
  0xb9   :  { %v2904_v25 = vpop.eup %2903  ;;  %v1029_v54 = vmul.f32 %v2902_v19, %v3598_v6 }
  0xba   :  { %v1061_v15 = vpack.c.bf16 %v1028_v62, %v1027_v31  ;;  %v1030_v40 = vmul.f32 %v2904_v25, %v3601_v43 }
  0xbc   :  { %2621 = vmatprep.mubr.bf16.mxu1 %v1061_v15  ;;  %v1062_v3 = vpack.c.bf16 %v1030_v40, %v1029_v54 }
  0xbe   :  { %2622 = vmatmul.mubr.bf16.gmra.mrb[28].mxu1 %v1062_v3 }
 0x114   :  { %v2563_v52 = vpop.f32.mrb[0].mxu0 }
 0x115   :  { %v1161_v26 = vpop.f32.mrb[1].mxu0  ;;  %v1807_v0 = vmul.f32 %v2563_v52, %v2563_v52 }
 0x116   :  { %v2564_v32 = vpop.f32.mrb[2].mxu0  ;;  %v1805_v28 = vmul.f32 %v1161_v26, %v1161_v26 }
 0x117   :  { %v2291_v10 = vpack.c.bf16 %v2564_v32, %v2563_v52  ;;  %v1164_v7 = vpop.f32.mrb[3].mxu0  ;;  %v1808_v23 = vmul.f32 %v2564_v32, %v2564_v32 }
 0x118   :  { %v2286_v1 = vpack.c.bf16 %v1164_v7, %v1161_v26  ;;  %v1736_v29 = vadd.f32 %v1164_v7, %v1161_v26  ;;  %v1806_v27 = vmul.f32 %v1164_v7, %v1164_v7 }
 0x119   :  { %2474 = vst [vmem:[%s3725_s4 + $0x8] sm:$0xff] %v2291_v10  }
 0x11a   :  { %2287 = vst [vmem:[%s3725_s4] sm:$0xff] %v2286_v1   ;;  %v1737_v6 = vadd.f32 %v2563_v52, %v1736_v29  ;;  %v1869_v43 = vadd.f32 %v1806_v27, %v1805_v28 }
 0x11c   :  { %v1870_v34 = vadd.f32 %v1869_v43, %v1807_v0  ;;  %v2567_v45 = vpop.f32.mrb[4].mxu0  ;;  %v1738_v33 = vadd.f32 %v2564_v32, %v1737_v6 }
 0x11d   :  { %v1177_v42 = vpop.f32.mrb[5].mxu0  ;;  %v1811_v50 = vmul.f32 %v2567_v45, %v2567_v45 }
 0x11e   :  { %v1739_v22 = vadd.f32 %v1738_v33, %v1177_v42  ;;  %v1809_v47 = vmul.f32 %v1177_v42, %v1177_v42  ;;  %v1871_v20 = vadd.f32 %v1870_v34, %v1808_v23  ;;  %v2568_v41 = vpop.f32.mrb[6].mxu0 }
 0x11f   :  { %v2301_v46 = vpack.c.bf16 %v2568_v41, %v2567_v45  ;;  %v1180_v35 = vpop.f32.mrb[7].mxu0  ;;  %v1812_v51 = vmul.f32 %v2568_v41, %v2568_v41 }
 0x120   :  { %v1872_v37 = vadd.f32 %v1871_v20, %v1809_v47  ;;  %v2296_v60 = vpack.c.bf16 %v1180_v35, %v1177_v42  ;;  %v1740_v63 = vadd.f32 %v1739_v22, %v1180_v35  ;;  %v1810_v30 = vmul.f32 %v1180_v35, %v1180_v35 }
 0x121   :  { %2476 = vst [vmem:[%s3725_s4 + $0x18] sm:$0xff] %v2301_v46  }
 0x122   :  { %2475 = vst [vmem:[%s3725_s4 + $0x10] sm:$0xff] %v2296_v60   ;;  %v1741_v58 = vadd.f32 %v2567_v45, %v1740_v63  ;;  %v1873_v17 = vadd.f32 %v1872_v37, %v1810_v30 }
 0x124   :  { %v1874_v61 = vadd.f32 %v1873_v17, %v1811_v50  ;;  %v2571_v48 = vpop.f32.mrb[8].mxu0  ;;  %v1742_v44 = vadd.f32 %v2568_v41, %v1741_v58 }
 0x125   :  { %v1193_v14 = vpop.f32.mrb[9].mxu0  ;;  %v1815_v13 = vmul.f32 %v2571_v48, %v2571_v48 }
 0x126   :  { %v1743_v56 = vadd.f32 %v1742_v44, %v1193_v14  ;;  %v1813_v49 = vmul.f32 %v1193_v14, %v1193_v14  ;;  %v1875_v9 = vadd.f32 %v1874_v61, %v1812_v51  ;;  %v2572_v5 = vpop.f32.mrb[10].mxu0 }
 0x127   :  { %v2311_v53 = vpack.c.bf16 %v2572_v5, %v2571_v48  ;;  %v1196_v12 = vpop.f32.mrb[11].mxu0  ;;  %v1816_v4 = vmul.f32 %v2572_v5, %v2572_v5 }
 0x128   :  { %v1876_v8 = vadd.f32 %v1875_v9, %v1813_v49  ;;  %v2306_v39 = vpack.c.bf16 %v1196_v12, %v1193_v14  ;;  %v1744_v2 = vadd.f32 %v1743_v56, %v1196_v12  ;;  %v1814_v36 = vmul.f32 %v1196_v12, %v1196_v12 }
 0x129   :  { %2478 = vst [vmem:[%s3725_s4 + $0x28] sm:$0xff] %v2311_v53  }
 0x12a   :  { %2477 = vst [vmem:[%s3725_s4 + $0x20] sm:$0xff] %v2306_v39   ;;  %v1745_v16 = vadd.f32 %v2571_v48, %v1744_v2  ;;  %v1877_v18 = vadd.f32 %v1876_v8, %v1814_v36 }
 0x12c   :  { %v1878_v11 = vadd.f32 %v1877_v18, %v1815_v13  ;;  %v1746_v24 = vadd.f32 %v2572_v5, %v1745_v16 }
 0x12e   :  { %v2575_v21 = vpop.f32.mrb[12].mxu0  ;;  %v1879_v38 = vadd.f32 %v1878_v11, %v1816_v4 }
 0x12f   :  { %v1209_v57 = vpop.f32.mrb[13].mxu0  ;;  %v1819_v3 = vmul.f32 %v2575_v21, %v2575_v21 }
 0x130   :  { %v1747_v59 = vadd.f32 %v1746_v24, %v1209_v57  ;;  %v1817_v31 = vmul.f32 %v1209_v57, %v1209_v57  ;;  %v2576_v55 = vpop.f32.mrb[14].mxu0 }
 0x131   :  { %v2321_v19 = vpack.c.bf16 %v2576_v55, %v2575_v21  ;;  %v1212_v62 = vpop.f32.mrb[15].mxu0  ;;  %v1820_v32 = vmul.f32 %v2576_v55, %v2576_v55 }
 0x132   :  { %v1880_v25 = vadd.f32 %v1879_v38, %v1817_v31  ;;  %v2316_v54 = vpack.c.bf16 %v1212_v62, %v1209_v57  ;;  %v1748_v15 = vadd.f32 %v1747_v59, %v1212_v62  ;;  %v1818_v40 = vmul.f32 %v1212_v62, %v1212_v62 }
 0x133   :  { %2480 = vst [vmem:[%s3725_s4 + $0x38] sm:$0xff] %v2321_v19  }
 0x134   :  { %2479 = vst [vmem:[%s3725_s4 + $0x30] sm:$0xff] %v2316_v54   ;;  %v1749_v52 = vadd.f32 %v2575_v21, %v1748_v15  ;;  %v1881_v26 = vadd.f32 %v1880_v25, %v1818_v40 }
 0x136   :  { %v1882_v10 = vadd.f32 %v1881_v26, %v1819_v3  ;;  %v2579_v7 = vpop.f32.mrb[16].mxu0  ;;  %v1750_v28 = vadd.f32 %v2576_v55, %v1749_v52 }
 0x137   :  { %v1225_v1 = vpop.f32.mrb[17].mxu0  ;;  %v1823_v22 = vmul.f32 %v2579_v7, %v2579_v7 }
 0x138   :  { %v1751_v29 = vadd.f32 %v1750_v28, %v1225_v1  ;;  %v1821_v27 = vmul.f32 %v1225_v1, %v1225_v1  ;;  %v1883_v0 = vadd.f32 %v1882_v10, %v1820_v32  ;;  %v2580_v6 = vpop.f32.mrb[18].mxu0 }
 0x139   :  { %v2331_v43 = vpack.c.bf16 %v2580_v6, %v2579_v7  ;;  %v1228_v23 = vpop.f32.mrb[19].mxu0  ;;  %v1824_v41 = vmul.f32 %v2580_v6, %v2580_v6 }
 0x13a   :  { %v1884_v34 = vadd.f32 %v1883_v0, %v1821_v27  ;;  %v2326_v45 = vpack.c.bf16 %v1228_v23, %v1225_v1  ;;  %v1752_v33 = vadd.f32 %v1751_v29, %v1228_v23  ;;  %v1822_v42 = vmul.f32 %v1228_v23, %v1228_v23 }
 0x13b   :  { %2482 = vst [vmem:[%s3725_s4 + $0x48] sm:$0xff] %v2331_v43  }
 0x13c   :  { %2481 = vst [vmem:[%s3725_s4 + $0x40] sm:$0xff] %v2326_v45   ;;  %v1753_v47 = vadd.f32 %v2579_v7, %v1752_v33  ;;  %v1885_v20 = vadd.f32 %v1884_v34, %v1822_v42 }
 0x13e   :  { %v1886_v46 = vadd.f32 %v1885_v20, %v1823_v22  ;;  %v2583_v35 = vpop.f32.mrb[20].mxu0  ;;  %v1754_v37 = vadd.f32 %v2580_v6, %v1753_v47 }
 0x13f   :  { %v1241_v60 = vpop.f32.mrb[21].mxu0  ;;  %v1827_v56 = vmul.f32 %v2583_v35, %v2583_v35 }
 0x140   :  { %v1755_v63 = vadd.f32 %v1754_v37, %v1241_v60  ;;  %v1825_v30 = vmul.f32 %v1241_v60, %v1241_v60  ;;  %v1887_v50 = vadd.f32 %v1886_v46, %v1824_v41  ;;  %v2584_v58 = vpop.f32.mrb[22].mxu0 }
 0x141   :  { %v2341_v17 = vpack.c.bf16 %v2584_v58, %v2583_v35  ;;  %v1244_v51 = vpop.f32.mrb[23].mxu0  ;;  %v1828_v5 = vmul.f32 %v2584_v58, %v2584_v58 }
 0x142   :  { %v1888_v61 = vadd.f32 %v1887_v50, %v1825_v30  ;;  %v2336_v48 = vpack.c.bf16 %v1244_v51, %v1241_v60  ;;  %v1756_v44 = vadd.f32 %v1755_v63, %v1244_v51  ;;  %v1826_v14 = vmul.f32 %v1244_v51, %v1244_v51 }
 0x143   :  { %2484 = vst [vmem:[%s3725_s4 + $0x58] sm:$0xff] %v2341_v17  }
 0x144   :  { %2483 = vst [vmem:[%s3725_s4 + $0x50] sm:$0xff] %v2336_v48   ;;  %v1757_v49 = vadd.f32 %v2583_v35, %v1756_v44  ;;  %v1889_v9 = vadd.f32 %v1888_v61, %v1826_v14 }
 0x146   :  { %v1890_v53 = vadd.f32 %v1889_v9, %v1827_v56  ;;  %v1758_v12 = vadd.f32 %v2584_v58, %v1757_v49 }
 0x147   :  { %v2587_v8 = vpop.f32.mrb[24].mxu0 }
 0x148   :  { %v1257_v39 = vpop.f32.mrb[25].mxu0  ;;  %v1891_v2 = vadd.f32 %v1890_v53, %v1828_v5  ;;  %v1831_v38 = vmul.f32 %v2587_v8, %v2587_v8 }
 0x149   :  { %v1759_v36 = vadd.f32 %v1758_v12, %v1257_v39  ;;  %v1829_v13 = vmul.f32 %v1257_v39, %v1257_v39  ;;  %v2588_v16 = vpop.f32.mrb[26].mxu0 }
 0x14a   :  { %v2351_v18 = vpack.c.bf16 %v2588_v16, %v2587_v8  ;;  %v1260_v4 = vpop.f32.mrb[27].mxu0  ;;  %v1832_v55 = vmul.f32 %v2588_v16, %v2588_v16 }
 0x14b   :  { %v1892_v11 = vadd.f32 %v1891_v2, %v1829_v13  ;;  %v2346_v24 = vpack.c.bf16 %v1260_v4, %v1257_v39  ;;  %v1760_v21 = vadd.f32 %v1759_v36, %v1260_v4  ;;  %v1830_v57 = vmul.f32 %v1260_v4, %v1260_v4 }
 0x14c   :  { %2486 = vst [vmem:[%s3725_s4 + $0x68] sm:$0xff] %v2351_v18  }
 0x14d   :  { %2485 = vst [vmem:[%s3725_s4 + $0x60] sm:$0xff] %v2346_v24   ;;  %v1761_v59 = vadd.f32 %v2587_v8, %v1760_v21  ;;  %v1893_v31 = vadd.f32 %v1892_v11, %v1830_v57 }
 0x14f   :  { %v1894_v19 = vadd.f32 %v1893_v31, %v1831_v38  ;;  %v2591_v62 = vpop.f32.mrb[28].mxu0  ;;  %v1762_v25 = vadd.f32 %v2588_v16, %v1761_v59  ;;  %v2595_v54 = vpop.f32.mrb[0].mxu1 }
 0x150   :  { %v1273_v15 = vpop.f32.mrb[29].mxu0  ;;  %v1289_v40 = vpop.f32.mrb[1].mxu1  ;;  %v1835_v34 = vmul.f32 %v2591_v62, %v2591_v62  ;;  %v1839_v63 = vmul.f32 %v2595_v54, %v2595_v54 }
 0x151   :  { %v1763_v3 = vadd.f32 %v1762_v25, %v1273_v15  ;;  %v1833_v52 = vmul.f32 %v1273_v15, %v1273_v15  ;;  %v1895_v26 = vadd.f32 %v1894_v19, %v1832_v55  ;;  %v2592_v32 = vpop.f32.mrb[30].mxu0  ;;  %v2596_v10 = vpop.f32.mrb[2].mxu1  ;;  %v1837_v20 = vmul.f32 %v1289_v40, %v1289_v40 }
 0x152   :  { %v2361_v7 = vpack.c.bf16 %v2592_v32, %v2591_v62  ;;  %v1276_v28 = vpop.f32.mrb[31].mxu0  ;;  %v2371_v1 = vpack.c.bf16 %v2596_v10, %v2595_v54  ;;  %v1292_v29 = vpop.f32.mrb[3].mxu1  ;;  %v1836_v42 = vmul.f32 %v2592_v32, %v2592_v32  ;;  %v1840_v58 = vmul.f32 %v2596_v10, %v2596_v10 }
 0x153   :  { %v1896_v27 = vadd.f32 %v1895_v26, %v1833_v52  ;;  %v2356_v0 = vpack.c.bf16 %v1276_v28, %v1273_v15  ;;  %v1764_v6 = vadd.f32 %v1763_v3, %v1276_v28  ;;  %v1834_v43 = vmul.f32 %v1276_v28, %v1276_v28 }
 0x154   :  { %2488 = vst [vmem:[%s3725_s4 + $0x78] sm:$0xff] %v2361_v7   ;;  %2490 = vst [vmem:[%s3725_s4 + $0x88] sm:$0xff] %v2371_v1   ;;  %v2366_v23 = vpack.c.bf16 %v1292_v29, %v1289_v40  ;;  %v1838_v60 = vmul.f32 %v1292_v29, %v1292_v29 }
 0x155   :  { %2487 = vst [vmem:[%s3725_s4 + $0x70] sm:$0xff] %v2356_v0   ;;  %v1765_v45 = vadd.f32 %v2591_v62, %v1764_v6  ;;  %v1897_v33 = vadd.f32 %v1896_v27, %v1834_v43 }
 0x156   :  { %2489 = vst [vmem:[%s3725_s4 + $0x80] sm:$0xff] %v2366_v23  }
 0x157   :  { %v1898_v22 = vadd.f32 %v1897_v33, %v1835_v34  ;;  %v1766_v47 = vadd.f32 %v2592_v32, %v1765_v45 }
 0x159   :  { %v1767_v41 = vadd.f32 %v1766_v47, %v1289_v40  ;;  %v1899_v46 = vadd.f32 %v1898_v22, %v1836_v42 }
 0x15b   :  { %v1900_v35 = vadd.f32 %v1899_v46, %v1837_v20  ;;  %v1768_v37 = vadd.f32 %v1767_v41, %v1292_v29 }
 0x15d   :  { %v1769_v30 = vadd.f32 %v2595_v54, %v1768_v37  ;;  %v1901_v50 = vadd.f32 %v1900_v35, %v1838_v60 }
 0x15f   :  { %v1902_v17 = vadd.f32 %v1901_v50, %v1839_v63  ;;  %v2599_v51 = vpop.f32.mrb[4].mxu1  ;;  %v1770_v61 = vadd.f32 %v2596_v10, %v1769_v30 }
 0x160   :  { %v1305_v48 = vpop.f32.mrb[5].mxu1  ;;  %v1843_v2 = vmul.f32 %v2599_v51, %v2599_v51 }
 0x161   :  { %v1771_v44 = vadd.f32 %v1770_v61, %v1305_v48  ;;  %v1841_v14 = vmul.f32 %v1305_v48, %v1305_v48  ;;  %v1903_v56 = vadd.f32 %v1902_v17, %v1840_v58  ;;  %v2600_v49 = vpop.f32.mrb[6].mxu1 }
 0x162   :  { %v2381_v9 = vpack.c.bf16 %v2600_v49, %v2599_v51  ;;  %v1308_v5 = vpop.f32.mrb[7].mxu1  ;;  %v1844_v16 = vmul.f32 %v2600_v49, %v2600_v49 }
 0x163   :  { %v1904_v53 = vadd.f32 %v1903_v56, %v1841_v14  ;;  %v2376_v12 = vpack.c.bf16 %v1308_v5, %v1305_v48  ;;  %v1772_v8 = vadd.f32 %v1771_v44, %v1308_v5  ;;  %v1842_v39 = vmul.f32 %v1308_v5, %v1308_v5 }
 0x164   :  { %2492 = vst [vmem:[%s3725_s4 + $0x98] sm:$0xff] %v2381_v9  }
 0x165   :  { %2491 = vst [vmem:[%s3725_s4 + $0x90] sm:$0xff] %v2376_v12   ;;  %v1773_v36 = vadd.f32 %v2599_v51, %v1772_v8  ;;  %v1905_v13 = vadd.f32 %v1904_v53, %v1842_v39 }
 0x167   :  { %v1906_v18 = vadd.f32 %v1905_v13, %v1843_v2  ;;  %v2603_v4 = vpop.f32.mrb[8].mxu1  ;;  %v1774_v11 = vadd.f32 %v2600_v49, %v1773_v36 }
 0x168   :  { %v1321_v24 = vpop.f32.mrb[9].mxu1  ;;  %v1847_v15 = vmul.f32 %v2603_v4, %v2603_v4 }
 0x169   :  { %v1775_v21 = vadd.f32 %v1774_v11, %v1321_v24  ;;  %v1845_v57 = vmul.f32 %v1321_v24, %v1321_v24  ;;  %v1907_v38 = vadd.f32 %v1906_v18, %v1844_v16  ;;  %v2604_v59 = vpop.f32.mrb[10].mxu1 }
 0x16a   :  { %v2391_v31 = vpack.c.bf16 %v2604_v59, %v2603_v4  ;;  %v1324_v55 = vpop.f32.mrb[11].mxu1  ;;  %v1848_v52 = vmul.f32 %v2604_v59, %v2604_v59 }
 0x16b   :  { %v1908_v19 = vadd.f32 %v1907_v38, %v1845_v57  ;;  %v2386_v62 = vpack.c.bf16 %v1324_v55, %v1321_v24  ;;  %v1776_v25 = vadd.f32 %v1775_v21, %v1324_v55  ;;  %v1846_v54 = vmul.f32 %v1324_v55, %v1324_v55 }
 0x16c   :  { %2494 = vst [vmem:[%s3725_s4 + $0xa8] sm:$0xff] %v2391_v31  }
 0x16d   :  { %2493 = vst [vmem:[%s3725_s4 + $0xa0] sm:$0xff] %v2386_v62   ;;  %v1777_v40 = vadd.f32 %v2603_v4, %v1776_v25  ;;  %v1909_v3 = vadd.f32 %v1908_v19, %v1846_v54 }
 0x16f   :  { %v1910_v26 = vadd.f32 %v1909_v3, %v1847_v15  ;;  %v2607_v32 = vpop.f32.mrb[12].mxu1  ;;  %v1778_v10 = vadd.f32 %v2604_v59, %v1777_v40 }
 0x170   :  { %v1337_v7 = vpop.f32.mrb[13].mxu1  ;;  %v1851_v33 = vmul.f32 %v2607_v32, %v2607_v32 }
 0x171   :  { %v1779_v28 = vadd.f32 %v1778_v10, %v1337_v7  ;;  %v1849_v1 = vmul.f32 %v1337_v7, %v1337_v7  ;;  %v1911_v29 = vadd.f32 %v1910_v26, %v1848_v52  ;;  %v2608_v27 = vpop.f32.mrb[14].mxu1 }
 0x172   :  { %v2401_v0 = vpack.c.bf16 %v2608_v27, %v2607_v32  ;;  %v1340_v6 = vpop.f32.mrb[15].mxu1  ;;  %v1852_v47 = vmul.f32 %v2608_v27, %v2608_v27 }
 0x173   :  { %v1912_v43 = vadd.f32 %v1911_v29, %v1849_v1  ;;  %v2396_v23 = vpack.c.bf16 %v1340_v6, %v1337_v7  ;;  %v1780_v34 = vadd.f32 %v1779_v28, %v1340_v6  ;;  %v1850_v45 = vmul.f32 %v1340_v6, %v1340_v6 }
 0x174   :  { %2496 = vst [vmem:[%s3725_s4 + $0xb8] sm:$0xff] %v2401_v0  }
 0x175   :  { %2495 = vst [vmem:[%s3725_s4 + $0xb0] sm:$0xff] %v2396_v23   ;;  %v1781_v42 = vadd.f32 %v2607_v32, %v1780_v34  ;;  %v1913_v22 = vadd.f32 %v1912_v43, %v1850_v45 }
 0x177   :  { %v1914_v20 = vadd.f32 %v1913_v22, %v1851_v33  ;;  %v1782_v41 = vadd.f32 %v2608_v27, %v1781_v42 }
 0x178   :  { %v2611_v46 = vpop.f32.mrb[16].mxu1 }
 0x179   :  { %v1353_v35 = vpop.f32.mrb[17].mxu1  ;;  %v1915_v37 = vadd.f32 %v1914_v20, %v1852_v47  ;;  %v1855_v44 = vmul.f32 %v2611_v46, %v2611_v46 }
 0x17a   :  { %v1783_v60 = vadd.f32 %v1782_v41, %v1353_v35  ;;  %v1853_v63 = vmul.f32 %v1353_v35, %v1353_v35  ;;  %v2612_v30 = vpop.f32.mrb[18].mxu1 }
 0x17b   :  { %v2411_v50 = vpack.c.bf16 %v2612_v30, %v2611_v46  ;;  %v1356_v58 = vpop.f32.mrb[19].mxu1  ;;  %v1856_v49 = vmul.f32 %v2612_v30, %v2612_v30 }
 0x17c   :  { %v1916_v17 = vadd.f32 %v1915_v37, %v1853_v63  ;;  %v2406_v51 = vpack.c.bf16 %v1356_v58, %v1353_v35  ;;  %v1784_v61 = vadd.f32 %v1783_v60, %v1356_v58  ;;  %v1854_v48 = vmul.f32 %v1356_v58, %v1356_v58 }
 0x17d   :  { %2498 = vst [vmem:[%s3725_s4 + $0xc8] sm:$0xff] %v2411_v50  }
 0x17e   :  { %2497 = vst [vmem:[%s3725_s4 + $0xc0] sm:$0xff] %v2406_v51   ;;  %v1785_v14 = vadd.f32 %v2611_v46, %v1784_v61  ;;  %v1917_v56 = vadd.f32 %v1916_v17, %v1854_v48 }
 0x180   :  { %v1918_v9 = vadd.f32 %v1917_v56, %v1855_v44  ;;  %v2615_v5 = vpop.f32.mrb[20].mxu1  ;;  %v1786_v53 = vadd.f32 %v2612_v30, %v1785_v14 }
 0x181   :  { %v1369_v12 = vpop.f32.mrb[21].mxu1  ;;  %v1859_v21 = vmul.f32 %v2615_v5, %v2615_v5 }
 0x182   :  { %v1787_v8 = vadd.f32 %v1786_v53, %v1369_v12  ;;  %v1857_v39 = vmul.f32 %v1369_v12, %v1369_v12  ;;  %v1919_v2 = vadd.f32 %v1918_v9, %v1856_v49  ;;  %v2616_v36 = vpop.f32.mrb[22].mxu1 }
 0x183   :  { %v2421_v13 = vpack.c.bf16 %v2616_v36, %v2615_v5  ;;  %v1372_v16 = vpop.f32.mrb[23].mxu1  ;;  %v1860_v59 = vmul.f32 %v2616_v36, %v2616_v36 }
 0x184   :  { %v1920_v18 = vadd.f32 %v1919_v2, %v1857_v39  ;;  %v2416_v4 = vpack.c.bf16 %v1372_v16, %v1369_v12  ;;  %v1788_v11 = vadd.f32 %v1787_v8, %v1372_v16  ;;  %v1858_v24 = vmul.f32 %v1372_v16, %v1372_v16 }
 0x185   :  { %2500 = vst [vmem:[%s3725_s4 + $0xd8] sm:$0xff] %v2421_v13  }
 0x186   :  { %2499 = vst [vmem:[%s3725_s4 + $0xd0] sm:$0xff] %v2416_v4   ;;  %v1789_v57 = vadd.f32 %v2615_v5, %v1788_v11  ;;  %v1921_v38 = vadd.f32 %v1920_v18, %v1858_v24 }
 0x188   :  { %v1922_v31 = vadd.f32 %v1921_v38, %v1859_v21  ;;  %v2619_v55 = vpop.f32.mrb[24].mxu1  ;;  %v1790_v19 = vadd.f32 %v2616_v36, %v1789_v57 }
 0x189   :  { %v1385_v62 = vpop.f32.mrb[25].mxu1  ;;  %v1863_v28 = vmul.f32 %v2619_v55, %v2619_v55 }
 0x18a   :  { %v1791_v25 = vadd.f32 %v1790_v19, %v1385_v62  ;;  %v1861_v54 = vmul.f32 %v1385_v62, %v1385_v62  ;;  %v1923_v15 = vadd.f32 %v1922_v31, %v1860_v59  ;;  %v2620_v40 = vpop.f32.mrb[26].mxu1 }
 0x18b   :  { %v2431_v3 = vpack.c.bf16 %v2620_v40, %v2619_v55  ;;  %v1388_v52 = vpop.f32.mrb[27].mxu1  ;;  %v1864_v27 = vmul.f32 %v2620_v40, %v2620_v40 }
 0x18c   :  { %v1924_v26 = vadd.f32 %v1923_v15, %v1861_v54  ;;  %v2426_v32 = vpack.c.bf16 %v1388_v52, %v1385_v62  ;;  %v1792_v10 = vadd.f32 %v1791_v25, %v1388_v52  ;;  %v1862_v7 = vmul.f32 %v1388_v52, %v1388_v52 }
 0x18d   :  { %2502 = vst [vmem:[%s3725_s4 + $0xe8] sm:$0xff] %v2431_v3  }
 0x18e   :  { %2501 = vst [vmem:[%s3725_s4 + $0xe0] sm:$0xff] %v2426_v32   ;;  %v1793_v1 = vadd.f32 %v2619_v55, %v1792_v10  ;;  %v1925_v29 = vadd.f32 %v1924_v26, %v1862_v7 }
 0x190   :  { %v1926_v0 = vadd.f32 %v1925_v29, %v1863_v28  ;;  %v1794_v6 = vadd.f32 %v2620_v40, %v1793_v1 }
 0x191   :  { %v2623_v43 = vpop.f32.mrb[28].mxu1 }
 0x192   :  { %v1401_v23 = vpop.f32.mrb[29].mxu1  ;;  %v1927_v34 = vadd.f32 %v1926_v0, %v1864_v27  ;;  %v1867_v37 = vmul.f32 %v2623_v43, %v2623_v43 }
 0x193   :  { %v1795_v45 = vadd.f32 %v1794_v6, %v1401_v23  ;;  %v1865_v33 = vmul.f32 %v1401_v23, %v1401_v23  ;;  %v2624_v42 = vpop.f32.mrb[30].mxu1 }
 0x194   :  { %v2441_v22 = vpack.c.bf16 %v2624_v42, %v2623_v43  ;;  %v1404_v47 = vpop.f32.mrb[31].mxu1  ;;  %v1868_v30 = vmul.f32 %v2624_v42, %v2624_v42 }
 0x195   :  { %v1928_v20 = vadd.f32 %v1927_v34, %v1865_v33  ;;  %v2436_v41 = vpack.c.bf16 %v1404_v47, %v1401_v23  ;;  %v1796_v46 = vadd.f32 %v1795_v45, %v1404_v47  ;;  %v1866_v35 = vmul.f32 %v1404_v47, %v1404_v47 }
 0x196   :  { %2504 = vst [vmem:[%s3725_s4 + $0xf8] sm:$0xff] %v2441_v22  }
 0x197   :  { %2503 = vst [vmem:[%s3725_s4 + $0xf0] sm:$0xff] %v2436_v41   ;;  %v1797_v60 = vadd.f32 %v2623_v43, %v1796_v46  ;;  %v1929_v63 = vadd.f32 %v1928_v20, %v1866_v35 }
 0x199   :  { %v1798_v50 = vadd.f32 %v2624_v42, %v1797_v60  ;;  %v1930_v58 = vadd.f32 %v1929_v63, %v1867_v37 }
 0x19b   :  { %v1799_v17 = vrot.slane %v1798_v50, 4  ;;  %v1931_v51 = vadd.f32 %v1930_v58, %v1868_v30 }
 0x19d   :  { %v1800_v61 = vadd.f32 %v1799_v17, %v1798_v50  ;;  %v1932_v48 = vrot.slane %v1931_v51, 4 }
 0x19f   :  { %v1801_v44 = vrot.slane %v1800_v61, 2  ;;  %v1933_v14 = vadd.f32 %v1932_v48, %v1931_v51 }
 0x1a1   :  { %v1802_v56 = vadd.f32 %v1801_v44, %v1800_v61  ;;  %v1934_v49 = vrot.slane %v1933_v14, 2 }
 0x1a3   :  { %v1803_v9 = vrot.slane %v1802_v56, 1  ;;  %v1935_v5 = vadd.f32 %v1934_v49, %v1933_v14 }
 0x1a5   :  { %v1936_v53 = vrot.slane %v1935_v5, 1  ;;  %v1804_v12 = vadd.f32 %v1803_v9, %v1802_v56 }
 0x1a7   :  { %v1937_v8 = vadd.f32 %v1936_v53, %v1935_v5 }
 0x1a9   :  { %v1939_v39 = vsel %vm1938_vm0, %v1804_v12, %v1937_v8 }
 0x1aa   :  { %1940 = vst [vmem:[%s3726_s5] sm:$0x3] %v1939_v39 }

// kernel: c3_forward.7
= control target key start
LH: loop header
LB: loop body
LE: loop exit
PB: predicated region body
PF: predicated region fallthrough
CT: control target
= control target key end

     0   :  { %vm1145_vm0 = vcmask 1040384   ;;  %s2122_s1 = inlined_call_operand.vmem [shape: bf16[128,128], index: 1, kind: input, shape index: {}]   ;;  %s2123_s0 = inlined_call_operand.vmem [shape: bf16[512,128], index: 0, kind: input, shape index: {}]   ;;  %s2124_s2 = inlined_call_operand.vmem [shape: bf16[512,128], index: 2, kind: output, shape index: {0}]   ;;  %s2125_s3 = inlined_call_operand.vmem [shape: f32[2,128], index: 3, kind: output, shape index: {1}]  }
   0x1   :  { %v1651_v0 = vld [vmem:[%s2122_s1] sm:$0xff]   ;;  %v1652_v1 = vld [vmem:[%s2122_s1 + $0x8] sm:$0xff]   ;;  %v1653_v2 = vld [vmem:[%s2122_s1 + $0x10] sm:$0xff]  }
   0x2   :  { %1555 = vmatprep.subr.bf16.mxu0 %v1651_v0  ;;  %1635 = vmatprep.subr.bf16.mxu1 %v1651_v0  ;;  %v1654_v3 = vld [vmem:[%s2122_s1 + $0x18] sm:$0xff]   ;;  %v1659_v4 = vld [vmem:[%s2123_s0] sm:$0xff]   ;;  %v1656_v6 = vld [vmem:[%s2122_s1 + $0x28] sm:$0xff]  }
   0x3   :  { %1556 = vmatpush3.bf16.msra.mxu0 %v1651_v0  ;;  %1643 = vmatpush3.bf16.msra.mxu1 %v1651_v0  ;;  %v1655_v5 = vld [vmem:[%s2122_s1 + $0x20] sm:$0xff]   ;;  %v1657_v7 = vld [vmem:[%s2122_s1 + $0x30] sm:$0xff]   ;;  %v1658_v8 = vld [vmem:[%s2122_s1 + $0x38] sm:$0xff]  }
   0x4   :  { %1557 = vmatprep.subr.bf16.mxu0 %v1652_v1  ;;  %1636 = vmatprep.subr.bf16.mxu1 %v1652_v1  ;;  %v1675_v9 = vld [vmem:[%s2123_s0 + $0x80] sm:$0xff]   ;;  %v1660_v10 = vld [vmem:[%s2123_s0 + $0x8] sm:$0xff]   ;;  %v1661_v11 = vld [vmem:[%s2123_s0 + $0x10] sm:$0xff]  }
   0x5   :  { %1571 = vmatprep.mubr.bf16.mxu0 %v1659_v4  ;;  %1603 = vmatprep.mubr.bf16.mxu1 %v1675_v9  ;;  %v1676_v12 = vld [vmem:[%s2123_s0 + $0x88] sm:$0xff]   ;;  %v1677_v13 = vld [vmem:[%s2123_s0 + $0x90] sm:$0xff]   ;;  %v1662_v14 = vld [vmem:[%s2123_s0 + $0x18] sm:$0xff]  }
   0x6   :  { %v1663_v15 = vld [vmem:[%s2123_s0 + $0x20] sm:$0xff]   ;;  %v1678_v16 = vld [vmem:[%s2123_s0 + $0x98] sm:$0xff]   ;;  %v1664_v18 = vld [vmem:[%s2123_s0 + $0x28] sm:$0xff]  }
   0x7   :  { %1558 = vmatpush3.bf16.msra.mxu0 %v1652_v1  ;;  %1644 = vmatpush3.bf16.msra.mxu1 %v1652_v1  ;;  %v1679_v17 = vld [vmem:[%s2123_s0 + $0xa0] sm:$0xff]   ;;  %v1680_v19 = vld [vmem:[%s2123_s0 + $0xa8] sm:$0xff]   ;;  %v1665_v20 = vld [vmem:[%s2123_s0 + $0x30] sm:$0xff]  }
   0x8   :  { %1559 = vmatprep.subr.bf16.mxu0 %v1653_v2  ;;  %1637 = vmatprep.subr.bf16.mxu1 %v1653_v2  ;;  %v1681_v21 = vld [vmem:[%s2123_s0 + $0xb0] sm:$0xff]   ;;  %v1666_v22 = vld [vmem:[%s2123_s0 + $0x38] sm:$0xff]   ;;  %v1667_v24 = vld [vmem:[%s2123_s0 + $0x40] sm:$0xff]  }
   0x9   :  { %v1682_v23 = vld [vmem:[%s2123_s0 + $0xb8] sm:$0xff]   ;;  %v1683_v25 = vld [vmem:[%s2123_s0 + $0xc0] sm:$0xff]   ;;  %v1668_v26 = vld [vmem:[%s2123_s0 + $0x48] sm:$0xff]  }
   0xa   :  { %v1684_v27 = vld [vmem:[%s2123_s0 + $0xc8] sm:$0xff]   ;;  %v1669_v28 = vld [vmem:[%s2123_s0 + $0x50] sm:$0xff]   ;;  %v1670_v30 = vld [vmem:[%s2123_s0 + $0x58] sm:$0xff]  }
   0xb   :  { %1560 = vmatpush3.bf16.msra.mxu0 %v1653_v2  ;;  %1645 = vmatpush3.bf16.msra.mxu1 %v1653_v2  ;;  %v1685_v29 = vld [vmem:[%s2123_s0 + $0xd0] sm:$0xff]   ;;  %v1686_v31 = vld [vmem:[%s2123_s0 + $0xd8] sm:$0xff]   ;;  %v1671_v32 = vld [vmem:[%s2123_s0 + $0x60] sm:$0xff]  }
   0xc   :  { %1561 = vmatprep.subr.bf16.mxu0 %v1654_v3  ;;  %1638 = vmatprep.subr.bf16.mxu1 %v1654_v3  ;;  %v1687_v33 = vld [vmem:[%s2123_s0 + $0xe0] sm:$0xff]   ;;  %v1672_v34 = vld [vmem:[%s2123_s0 + $0x68] sm:$0xff]   ;;  %v1673_v36 = vld [vmem:[%s2123_s0 + $0x70] sm:$0xff]  }
   0xd   :  { %v1688_v35 = vld [vmem:[%s2123_s0 + $0xe8] sm:$0xff]   ;;  %v1689_v37 = vld [vmem:[%s2123_s0 + $0xf0] sm:$0xff]   ;;  %v1674_v38 = vld [vmem:[%s2123_s0 + $0x78] sm:$0xff]  }
   0xe   :  { %v1690_v39 = vld [vmem:[%s2123_s0 + $0xf8] sm:$0xff]  }
   0xf   :  { %1562 = vmatpush3.bf16.msra.mxu0 %v1654_v3  ;;  %1646 = vmatpush3.bf16.msra.mxu1 %v1654_v3 }
  0x10   :  { %1563 = vmatprep.subr.bf16.mxu0 %v1655_v5  ;;  %1639 = vmatprep.subr.bf16.mxu1 %v1655_v5 }
  0x13   :  { %1564 = vmatpush3.bf16.msra.mxu0 %v1655_v5  ;;  %1647 = vmatpush3.bf16.msra.mxu1 %v1655_v5 }
  0x14   :  { %1565 = vmatprep.subr.bf16.mxu0 %v1656_v6  ;;  %1640 = vmatprep.subr.bf16.mxu1 %v1656_v6 }
  0x17   :  { %1566 = vmatpush3.bf16.msra.mxu0 %v1656_v6  ;;  %1648 = vmatpush3.bf16.msra.mxu1 %v1656_v6 }
  0x18   :  { %1567 = vmatprep.subr.bf16.mxu0 %v1657_v7  ;;  %1641 = vmatprep.subr.bf16.mxu1 %v1657_v7 }
  0x1b   :  { %1568 = vmatpush3.bf16.msra.mxu0 %v1657_v7  ;;  %1649 = vmatpush3.bf16.msra.mxu1 %v1657_v7 }
  0x1c   :  { %1569 = vmatprep.subr.bf16.mxu0 %v1658_v8  ;;  %1642 = vmatprep.subr.bf16.mxu1 %v1658_v8 }
  0x1f   :  { %1570 = vmatpush3.bf16.msra.mxu0 %v1658_v8  ;;  %1650 = vmatpush3.bf16.msra.mxu1 %v1658_v8 }
  0x22   :  { %1572 = vmatmul.mubr.bf16.vlgmr.msra.gmra.mrb[0].mxu0 %v1660_v10  ;;  %1604 = vmatmul.mubr.bf16.vlgmr.msra.gmra.mrb[0].mxu1 %v1676_v12 }
  0x23   :  { %1575 = vmatprep.mubr.bf16.mxu0 %v1661_v11  ;;  %1607 = vmatprep.mubr.bf16.mxu1 %v1677_v13 }
  0x2a   :  { %1576 = vmatmul.mubr.bf16.gmra.mrb[4].mxu0 %v1662_v14  ;;  %1608 = vmatmul.mubr.bf16.gmra.mrb[4].mxu1 %v1678_v16 }
  0x2b   :  { %1579 = vmatprep.mubr.bf16.mxu0 %v1663_v15  ;;  %1611 = vmatprep.mubr.bf16.mxu1 %v1679_v17 }
  0x32   :  { %1580 = vmatmul.mubr.bf16.gmra.mrb[8].mxu0 %v1664_v18  ;;  %1612 = vmatmul.mubr.bf16.gmra.mrb[8].mxu1 %v1680_v19 }
  0x33   :  { %1583 = vmatprep.mubr.bf16.mxu0 %v1665_v20  ;;  %1615 = vmatprep.mubr.bf16.mxu1 %v1681_v21 }
  0x3a   :  { %1584 = vmatmul.mubr.bf16.gmra.mrb[12].mxu0 %v1666_v22  ;;  %1616 = vmatmul.mubr.bf16.gmra.mrb[12].mxu1 %v1682_v23 }
  0x3b   :  { %1587 = vmatprep.mubr.bf16.mxu0 %v1667_v24  ;;  %1619 = vmatprep.mubr.bf16.mxu1 %v1683_v25 }
  0x42   :  { %1588 = vmatmul.mubr.bf16.gmra.mrb[16].mxu0 %v1668_v26  ;;  %1620 = vmatmul.mubr.bf16.gmra.mrb[16].mxu1 %v1684_v27 }
  0x43   :  { %1591 = vmatprep.mubr.bf16.mxu0 %v1669_v28  ;;  %1623 = vmatprep.mubr.bf16.mxu1 %v1685_v29 }
  0x4a   :  { %1592 = vmatmul.mubr.bf16.gmra.mrb[20].mxu0 %v1670_v30  ;;  %1624 = vmatmul.mubr.bf16.gmra.mrb[20].mxu1 %v1686_v31 }
  0x4b   :  { %1595 = vmatprep.mubr.bf16.mxu0 %v1671_v32  ;;  %1627 = vmatprep.mubr.bf16.mxu1 %v1687_v33 }
  0x52   :  { %1596 = vmatmul.mubr.bf16.gmra.mrb[24].mxu0 %v1672_v34  ;;  %1628 = vmatmul.mubr.bf16.gmra.mrb[24].mxu1 %v1688_v35 }
  0x53   :  { %1599 = vmatprep.mubr.bf16.mxu0 %v1673_v36  ;;  %1631 = vmatprep.mubr.bf16.mxu1 %v1689_v37 }
  0x5a   :  { %1600 = vmatmul.mubr.bf16.gmra.mrb[28].mxu0 %v1674_v38  ;;  %1632 = vmatmul.mubr.bf16.gmra.mrb[28].mxu1 %v1690_v39 }
  0xf5   :  { %v1573_v40 = vpop.f32.mrb[0].mxu0  ;;  %v1831_v41 = vpop.f32.mrb[0].mxu1 }
  0xf6   :  { %v368_v42 = vpop.f32.mrb[1].mxu0  ;;  %v1833_v43 = vpop.f32.mrb[1].mxu1  ;;  %v1014_v55 = vmul.f32 %v1573_v40, %v1573_v40 }
  0xf7   :  { %v1574_v44 = vpop.f32.mrb[2].mxu0  ;;  %v1835_v45 = vpop.f32.mrb[2].mxu1  ;;  %v1012_v46 = vmul.f32 %v368_v42, %v368_v42 }
  0xf8   :  { %v1332_v47 = vpack.c.bf16 %v1574_v44, %v1573_v40  ;;  %v371_v48 = vpop.f32.mrb[3].mxu0  ;;  %v1412_v49 = vpack.c.bf16 %v1835_v45, %v1831_v41  ;;  %v1839_v50 = vpop.f32.mrb[3].mxu1  ;;  %v1015_v58 = vmul.f32 %v1574_v44, %v1574_v44 }
  0xf9   :  { %v1327_v51 = vpack.c.bf16 %v371_v48, %v368_v42  ;;  %v943_v52 = vadd.f32 %v371_v48, %v368_v42  ;;  %v1013_v53 = vmul.f32 %v371_v48, %v371_v48  ;;  %v1407_v54 = vpack.c.bf16 %v1839_v50, %v1833_v43 }
  0xfa   :  { %1484 = vst [vmem:[%s2124_s2 + $0x8] sm:$0xff] %v1332_v47   ;;  %1500 = vst [vmem:[%s2124_s2 + $0x88] sm:$0xff] %v1412_v49  }
  0xfb   :  { %1328 = vst [vmem:[%s2124_s2] sm:$0xff] %v1327_v51   ;;  %v944_v56 = vadd.f32 %v1573_v40, %v943_v52  ;;  %v1076_v57 = vadd.f32 %v1013_v53, %v1012_v46  ;;  %1499 = vst [vmem:[%s2124_s2 + $0x80] sm:$0xff] %v1407_v54  }
  0xfd   :  { %v1077_v59 = vadd.f32 %v1076_v57, %v1014_v55  ;;  %v1577_v60 = vpop.f32.mrb[4].mxu0  ;;  %v945_v61 = vadd.f32 %v1574_v44, %v944_v56  ;;  %v1855_v62 = vpop.f32.mrb[4].mxu1 }
  0xfe   :  { %v384_v63 = vpop.f32.mrb[5].mxu0  ;;  %v1857_v0 = vpop.f32.mrb[5].mxu1  ;;  %v1018_v15 = vmul.f32 %v1577_v60, %v1577_v60 }
  0xff   :  { %v946_v1 = vadd.f32 %v945_v61, %v384_v63  ;;  %v1016_v2 = vmul.f32 %v384_v63, %v384_v63  ;;  %v1078_v3 = vadd.f32 %v1077_v59, %v1015_v58  ;;  %v1578_v4 = vpop.f32.mrb[6].mxu0  ;;  %v1859_v5 = vpop.f32.mrb[6].mxu1 }
 0x100   :  { %v1342_v6 = vpack.c.bf16 %v1578_v4, %v1577_v60  ;;  %v387_v7 = vpop.f32.mrb[7].mxu0  ;;  %v1422_v8 = vpack.c.bf16 %v1859_v5, %v1855_v62  ;;  %v1863_v9 = vpop.f32.mrb[7].mxu1  ;;  %v1019_v18 = vmul.f32 %v1578_v4, %v1578_v4 }
 0x101   :  { %v1079_v10 = vadd.f32 %v1078_v3, %v1016_v2  ;;  %v1337_v11 = vpack.c.bf16 %v387_v7, %v384_v63  ;;  %v947_v12 = vadd.f32 %v946_v1, %v387_v7  ;;  %v1017_v13 = vmul.f32 %v387_v7, %v387_v7 }
 0x102   :  { %1486 = vst [vmem:[%s2124_s2 + $0x18] sm:$0xff] %v1342_v6   ;;  %1502 = vst [vmem:[%s2124_s2 + $0x98] sm:$0xff] %v1422_v8   ;;  %v1417_v14 = vpack.c.bf16 %v1863_v9, %v1857_v0 }
 0x103   :  { %1485 = vst [vmem:[%s2124_s2 + $0x10] sm:$0xff] %v1337_v11   ;;  %v948_v16 = vadd.f32 %v1577_v60, %v947_v12  ;;  %v1080_v17 = vadd.f32 %v1079_v10, %v1017_v13 }
 0x104   :  { %1501 = vst [vmem:[%s2124_s2 + $0x90] sm:$0xff] %v1417_v14  }
 0x105   :  { %v1081_v19 = vadd.f32 %v1080_v17, %v1018_v15  ;;  %v1581_v20 = vpop.f32.mrb[8].mxu0  ;;  %v949_v21 = vadd.f32 %v1578_v4, %v948_v16  ;;  %v1879_v22 = vpop.f32.mrb[8].mxu1 }
 0x106   :  { %v400_v23 = vpop.f32.mrb[9].mxu0  ;;  %v1881_v24 = vpop.f32.mrb[9].mxu1  ;;  %v1022_v39 = vmul.f32 %v1581_v20, %v1581_v20 }
 0x107   :  { %v950_v25 = vadd.f32 %v949_v21, %v400_v23  ;;  %v1020_v26 = vmul.f32 %v400_v23, %v400_v23  ;;  %v1082_v27 = vadd.f32 %v1081_v19, %v1019_v18  ;;  %v1582_v28 = vpop.f32.mrb[10].mxu0  ;;  %v1883_v29 = vpop.f32.mrb[10].mxu1 }
 0x108   :  { %v1352_v30 = vpack.c.bf16 %v1582_v28, %v1581_v20  ;;  %v403_v31 = vpop.f32.mrb[11].mxu0  ;;  %v1432_v32 = vpack.c.bf16 %v1883_v29, %v1879_v22  ;;  %v1887_v33 = vpop.f32.mrb[11].mxu1  ;;  %v1023_v44 = vmul.f32 %v1582_v28, %v1582_v28 }
 0x109   :  { %v1083_v34 = vadd.f32 %v1082_v27, %v1020_v26  ;;  %v1347_v35 = vpack.c.bf16 %v403_v31, %v400_v23  ;;  %v951_v36 = vadd.f32 %v950_v25, %v403_v31  ;;  %v1021_v37 = vmul.f32 %v403_v31, %v403_v31 }
 0x10a   :  { %1488 = vst [vmem:[%s2124_s2 + $0x28] sm:$0xff] %v1352_v30   ;;  %1504 = vst [vmem:[%s2124_s2 + $0xa8] sm:$0xff] %v1432_v32   ;;  %v1427_v38 = vpack.c.bf16 %v1887_v33, %v1881_v24 }
 0x10b   :  { %1487 = vst [vmem:[%s2124_s2 + $0x20] sm:$0xff] %v1347_v35   ;;  %v952_v40 = vadd.f32 %v1581_v20, %v951_v36  ;;  %v1084_v42 = vadd.f32 %v1083_v34, %v1021_v37 }
 0x10c   :  { %1503 = vst [vmem:[%s2124_s2 + $0xa0] sm:$0xff] %v1427_v38  }
 0x10d   :  { %v1085_v46 = vadd.f32 %v1084_v42, %v1022_v39  ;;  %v1585_v47 = vpop.f32.mrb[12].mxu0  ;;  %v953_v48 = vadd.f32 %v1582_v28, %v952_v40  ;;  %v1903_v49 = vpop.f32.mrb[12].mxu1 }
 0x10e   :  { %v416_v51 = vpop.f32.mrb[13].mxu0  ;;  %v1905_v52 = vpop.f32.mrb[13].mxu1  ;;  %v1026_v6 = vmul.f32 %v1585_v47, %v1585_v47 }
 0x10f   :  { %v954_v53 = vadd.f32 %v953_v48, %v416_v51  ;;  %v1024_v54 = vmul.f32 %v416_v51, %v416_v51  ;;  %v1086_v55 = vadd.f32 %v1085_v46, %v1023_v44  ;;  %v1586_v56 = vpop.f32.mrb[14].mxu0  ;;  %v1907_v57 = vpop.f32.mrb[14].mxu1 }
 0x110   :  { %v1362_v58 = vpack.c.bf16 %v1586_v56, %v1585_v47  ;;  %v419_v59 = vpop.f32.mrb[15].mxu0  ;;  %v1442_v60 = vpack.c.bf16 %v1907_v57, %v1903_v49  ;;  %v1911_v61 = vpop.f32.mrb[15].mxu1  ;;  %v1027_v10 = vmul.f32 %v1586_v56, %v1586_v56 }
 0x111   :  { %v1087_v63 = vadd.f32 %v1086_v55, %v1024_v54  ;;  %v1357_v1 = vpack.c.bf16 %v419_v59, %v416_v51  ;;  %v955_v2 = vadd.f32 %v954_v53, %v419_v59  ;;  %v1025_v3 = vmul.f32 %v419_v59, %v419_v59 }
 0x112   :  { %1490 = vst [vmem:[%s2124_s2 + $0x38] sm:$0xff] %v1362_v58   ;;  %1506 = vst [vmem:[%s2124_s2 + $0xb8] sm:$0xff] %v1442_v60   ;;  %v1437_v4 = vpack.c.bf16 %v1911_v61, %v1905_v52 }
 0x113   :  { %1489 = vst [vmem:[%s2124_s2 + $0x30] sm:$0xff] %v1357_v1   ;;  %v956_v7 = vadd.f32 %v1585_v47, %v955_v2  ;;  %v1088_v8 = vadd.f32 %v1087_v63, %v1025_v3 }
 0x114   :  { %1505 = vst [vmem:[%s2124_s2 + $0xb0] sm:$0xff] %v1437_v4  }
 0x115   :  { %v1089_v11 = vadd.f32 %v1088_v8, %v1026_v6  ;;  %v1589_v12 = vpop.f32.mrb[16].mxu0  ;;  %v957_v13 = vadd.f32 %v1586_v56, %v956_v7  ;;  %v1927_v14 = vpop.f32.mrb[16].mxu1 }
 0x116   :  { %v432_v15 = vpop.f32.mrb[17].mxu0  ;;  %v1929_v16 = vpop.f32.mrb[17].mxu1  ;;  %v1030_v35 = vmul.f32 %v1589_v12, %v1589_v12 }
 0x117   :  { %v958_v17 = vadd.f32 %v957_v13, %v432_v15  ;;  %v1028_v18 = vmul.f32 %v432_v15, %v432_v15  ;;  %v1090_v19 = vadd.f32 %v1089_v11, %v1027_v10  ;;  %v1590_v20 = vpop.f32.mrb[18].mxu0  ;;  %v1931_v21 = vpop.f32.mrb[18].mxu1 }
 0x118   :  { %v1372_v23 = vpack.c.bf16 %v1590_v20, %v1589_v12  ;;  %v435_v25 = vpop.f32.mrb[19].mxu0  ;;  %v1452_v26 = vpack.c.bf16 %v1931_v21, %v1927_v14  ;;  %v1935_v27 = vpop.f32.mrb[19].mxu1  ;;  %v1031_v38 = vmul.f32 %v1590_v20, %v1590_v20 }
 0x119   :  { %v1091_v28 = vadd.f32 %v1090_v19, %v1028_v18  ;;  %v1367_v30 = vpack.c.bf16 %v435_v25, %v432_v15  ;;  %v959_v31 = vadd.f32 %v958_v17, %v435_v25  ;;  %v1029_v32 = vmul.f32 %v435_v25, %v435_v25 }
 0x11a   :  { %1492 = vst [vmem:[%s2124_s2 + $0x48] sm:$0xff] %v1372_v23   ;;  %1508 = vst [vmem:[%s2124_s2 + $0xc8] sm:$0xff] %v1452_v26   ;;  %v1447_v34 = vpack.c.bf16 %v1935_v27, %v1929_v16 }
 0x11b   :  { %1491 = vst [vmem:[%s2124_s2 + $0x40] sm:$0xff] %v1367_v30   ;;  %v960_v36 = vadd.f32 %v1589_v12, %v959_v31  ;;  %v1092_v37 = vadd.f32 %v1091_v28, %v1029_v32 }
 0x11c   :  { %1507 = vst [vmem:[%s2124_s2 + $0xc0] sm:$0xff] %v1447_v34  }
 0x11d   :  { %v1093_v39 = vadd.f32 %v1092_v37, %v1030_v35  ;;  %v1593_v40 = vpop.f32.mrb[20].mxu0  ;;  %v961_v42 = vadd.f32 %v1590_v20, %v960_v36  ;;  %v1951_v44 = vpop.f32.mrb[20].mxu1 }
 0x11e   :  { %v448_v46 = vpop.f32.mrb[21].mxu0  ;;  %v1953_v47 = vpop.f32.mrb[21].mxu1  ;;  %v1034_v6 = vmul.f32 %v1593_v40, %v1593_v40 }
 0x11f   :  { %v962_v48 = vadd.f32 %v961_v42, %v448_v46  ;;  %v1032_v51 = vmul.f32 %v448_v46, %v448_v46  ;;  %v1094_v53 = vadd.f32 %v1093_v39, %v1031_v38  ;;  %v1594_v54 = vpop.f32.mrb[22].mxu0  ;;  %v1955_v55 = vpop.f32.mrb[22].mxu1 }
 0x120   :  { %v1382_v56 = vpack.c.bf16 %v1594_v54, %v1593_v40  ;;  %v451_v58 = vpop.f32.mrb[23].mxu0  ;;  %v1462_v59 = vpack.c.bf16 %v1955_v55, %v1951_v44  ;;  %v1959_v60 = vpop.f32.mrb[23].mxu1  ;;  %v1035_v10 = vmul.f32 %v1594_v54, %v1594_v54 }
 0x121   :  { %v1095_v63 = vadd.f32 %v1094_v53, %v1032_v51  ;;  %v1377_v1 = vpack.c.bf16 %v451_v58, %v448_v46  ;;  %v963_v2 = vadd.f32 %v962_v48, %v451_v58  ;;  %v1033_v3 = vmul.f32 %v451_v58, %v451_v58 }
 0x122   :  { %1494 = vst [vmem:[%s2124_s2 + $0x58] sm:$0xff] %v1382_v56   ;;  %1510 = vst [vmem:[%s2124_s2 + $0xd8] sm:$0xff] %v1462_v59   ;;  %v1457_v4 = vpack.c.bf16 %v1959_v60, %v1953_v47 }
 0x123   :  { %1493 = vst [vmem:[%s2124_s2 + $0x50] sm:$0xff] %v1377_v1   ;;  %v964_v7 = vadd.f32 %v1593_v40, %v963_v2  ;;  %v1096_v8 = vadd.f32 %v1095_v63, %v1033_v3 }
 0x124   :  { %1509 = vst [vmem:[%s2124_s2 + $0xd0] sm:$0xff] %v1457_v4  }
 0x125   :  { %v1097_v11 = vadd.f32 %v1096_v8, %v1034_v6  ;;  %v1597_v12 = vpop.f32.mrb[24].mxu0  ;;  %v965_v13 = vadd.f32 %v1594_v54, %v964_v7  ;;  %v1975_v15 = vpop.f32.mrb[24].mxu1 }
 0x126   :  { %v464_v17 = vpop.f32.mrb[25].mxu0  ;;  %v1977_v18 = vpop.f32.mrb[25].mxu1  ;;  %v1038_v39 = vmul.f32 %v1597_v12, %v1597_v12 }
 0x127   :  { %v966_v19 = vadd.f32 %v965_v13, %v464_v17  ;;  %v1036_v20 = vmul.f32 %v464_v17, %v464_v17  ;;  %v1098_v23 = vadd.f32 %v1097_v11, %v1035_v10  ;;  %v1598_v25 = vpop.f32.mrb[26].mxu0  ;;  %v1979_v26 = vpop.f32.mrb[26].mxu1 }
 0x128   :  { %v1392_v28 = vpack.c.bf16 %v1598_v25, %v1597_v12  ;;  %v467_v30 = vpop.f32.mrb[27].mxu0  ;;  %v1472_v31 = vpack.c.bf16 %v1979_v26, %v1975_v15  ;;  %v1983_v32 = vpop.f32.mrb[27].mxu1  ;;  %v1039_v46 = vmul.f32 %v1598_v25, %v1598_v25 }
 0x129   :  { %v1099_v34 = vadd.f32 %v1098_v23, %v1036_v20  ;;  %v1387_v35 = vpack.c.bf16 %v467_v30, %v464_v17  ;;  %v967_v36 = vadd.f32 %v966_v19, %v467_v30  ;;  %v1037_v37 = vmul.f32 %v467_v30, %v467_v30 }
 0x12a   :  { %1496 = vst [vmem:[%s2124_s2 + $0x68] sm:$0xff] %v1392_v28   ;;  %1512 = vst [vmem:[%s2124_s2 + $0xe8] sm:$0xff] %v1472_v31   ;;  %v1467_v38 = vpack.c.bf16 %v1983_v32, %v1977_v18  ;;  %v1044_v31 = vmul.f32 %v1833_v43, %v1833_v43 }
 0x12b   :  { %1495 = vst [vmem:[%s2124_s2 + $0x60] sm:$0xff] %v1387_v35   ;;  %v968_v40 = vadd.f32 %v1597_v12, %v967_v36  ;;  %v1100_v42 = vadd.f32 %v1099_v34, %v1037_v37 }
 0x12c   :  { %1511 = vst [vmem:[%s2124_s2 + $0xe0] sm:$0xff] %v1467_v38   ;;  %v1045_v38 = vmul.f32 %v1839_v50, %v1839_v50 }
 0x12d   :  { %v1101_v48 = vadd.f32 %v1100_v42, %v1038_v39  ;;  %v1601_v51 = vpop.f32.mrb[28].mxu0  ;;  %v969_v53 = vadd.f32 %v1598_v25, %v968_v40  ;;  %v1999_v54 = vpop.f32.mrb[28].mxu1  ;;  %v1046_v39 = vmul.f32 %v1831_v41, %v1831_v41 }
 0x12e   :  { %v480_v56 = vpop.f32.mrb[29].mxu0  ;;  %v2001_v58 = vpop.f32.mrb[29].mxu1  ;;  %v1042_v19 = vmul.f32 %v1601_v51, %v1601_v51 }
 0x12f   :  { %v970_v59 = vadd.f32 %v969_v53, %v480_v56  ;;  %v1040_v63 = vmul.f32 %v480_v56, %v480_v56  ;;  %v1102_v1 = vadd.f32 %v1101_v48, %v1039_v46  ;;  %v1602_v2 = vpop.f32.mrb[30].mxu0  ;;  %v2003_v3 = vpop.f32.mrb[30].mxu1  ;;  %v1047_v46 = vmul.f32 %v1835_v45, %v1835_v45 }
 0x130   :  { %v1402_v4 = vpack.c.bf16 %v1602_v2, %v1601_v51  ;;  %v483_v6 = vpop.f32.mrb[31].mxu0  ;;  %v1482_v7 = vpack.c.bf16 %v2003_v3, %v1999_v54  ;;  %v2007_v8 = vpop.f32.mrb[31].mxu1  ;;  %v1043_v25 = vmul.f32 %v1602_v2, %v1602_v2 }
 0x131   :  { %v1103_v10 = vadd.f32 %v1102_v1, %v1040_v63  ;;  %v1397_v11 = vpack.c.bf16 %v483_v6, %v480_v56  ;;  %v971_v12 = vadd.f32 %v970_v59, %v483_v6  ;;  %v1041_v13 = vmul.f32 %v483_v6, %v483_v6 }
 0x132   :  { %1498 = vst [vmem:[%s2124_s2 + $0x78] sm:$0xff] %v1402_v4   ;;  %1514 = vst [vmem:[%s2124_s2 + $0xf8] sm:$0xff] %v1482_v7   ;;  %v1477_v17 = vpack.c.bf16 %v2007_v8, %v2001_v58  ;;  %v1049_v63 = vmul.f32 %v1863_v9, %v1863_v9 }
 0x133   :  { %1497 = vst [vmem:[%s2124_s2 + $0x70] sm:$0xff] %v1397_v11   ;;  %v972_v20 = vadd.f32 %v1601_v51, %v971_v12  ;;  %v1104_v23 = vadd.f32 %v1103_v10, %v1041_v13  ;;  %v1053_v12 = vmul.f32 %v1887_v33, %v1887_v33 }
 0x134   :  { %1513 = vst [vmem:[%s2124_s2 + $0xf0] sm:$0xff] %v1477_v17  }
 0x135   :  { %v1105_v28 = vadd.f32 %v1104_v23, %v1042_v19  ;;  %v973_v30 = vadd.f32 %v1602_v2, %v972_v20 }
 0x137   :  { %v974_v34 = vadd.f32 %v973_v30, %v1833_v43  ;;  %v1106_v35 = vadd.f32 %v1105_v28, %v1043_v25  ;;  %v1048_v43 = vmul.f32 %v1857_v0, %v1857_v0  ;;  %v1057_v30 = vmul.f32 %v1911_v61, %v1911_v61 }
 0x139   :  { %v1107_v36 = vadd.f32 %v1106_v35, %v1044_v31  ;;  %v975_v37 = vadd.f32 %v974_v34, %v1839_v50 }
 0x13b   :  { %v976_v40 = vadd.f32 %v1831_v41, %v975_v37  ;;  %v1108_v42 = vadd.f32 %v1107_v36, %v1045_v38  ;;  %v1050_v41 = vmul.f32 %v1855_v62, %v1855_v62 }
 0x13d   :  { %v1109_v48 = vadd.f32 %v1108_v42, %v1046_v39  ;;  %v977_v51 = vadd.f32 %v1835_v45, %v976_v40  ;;  %v1051_v45 = vmul.f32 %v1859_v5, %v1859_v5  ;;  %v1061_v40 = vmul.f32 %v1935_v27, %v1935_v27 }
 0x13f   :  { %v978_v53 = vadd.f32 %v977_v51, %v1857_v0  ;;  %v1110_v56 = vadd.f32 %v1109_v48, %v1047_v46  ;;  %v1052_v0 = vmul.f32 %v1881_v24, %v1881_v24 }
 0x141   :  { %v1111_v59 = vadd.f32 %v1110_v56, %v1048_v43  ;;  %v979_v50 = vadd.f32 %v978_v53, %v1863_v9 }
 0x143   :  { %v980_v1 = vadd.f32 %v1855_v62, %v979_v50  ;;  %v1112_v2 = vadd.f32 %v1111_v59, %v1049_v63  ;;  %v1054_v62 = vmul.f32 %v1879_v22, %v1879_v22  ;;  %v1065_v59 = vmul.f32 %v1959_v60, %v1959_v60 }
 0x145   :  { %v1113_v4 = vadd.f32 %v1112_v2, %v1050_v41  ;;  %v981_v6 = vadd.f32 %v1859_v5, %v980_v1  ;;  %v1055_v5 = vmul.f32 %v1883_v29, %v1883_v29 }
 0x147   :  { %v982_v7 = vadd.f32 %v981_v6, %v1881_v24  ;;  %v1114_v10 = vadd.f32 %v1113_v4, %v1051_v45  ;;  %v1056_v24 = vmul.f32 %v1905_v52, %v1905_v52  ;;  %v1069_v6 = vmul.f32 %v1983_v32, %v1983_v32 }
 0x149   :  { %v1115_v11 = vadd.f32 %v1114_v10, %v1052_v0  ;;  %v983_v9 = vadd.f32 %v982_v7, %v1887_v33 }
 0x14b   :  { %v984_v13 = vadd.f32 %v1879_v22, %v983_v9  ;;  %v1116_v17 = vadd.f32 %v1115_v11, %v1053_v12  ;;  %v1058_v22 = vmul.f32 %v1903_v49, %v1903_v49 }
 0x14d   :  { %v1117_v19 = vadd.f32 %v1116_v17, %v1054_v62  ;;  %v985_v20 = vadd.f32 %v1883_v29, %v984_v13  ;;  %v1059_v29 = vmul.f32 %v1907_v57, %v1907_v57  ;;  %v1073_v13 = vmul.f32 %v2007_v8, %v2007_v8 }
 0x14f   :  { %v986_v23 = vadd.f32 %v985_v20, %v1905_v52  ;;  %v1118_v25 = vadd.f32 %v1117_v19, %v1055_v5  ;;  %v1060_v52 = vmul.f32 %v1929_v16, %v1929_v16 }
 0x151   :  { %v1119_v28 = vadd.f32 %v1118_v25, %v1056_v24  ;;  %v987_v33 = vadd.f32 %v986_v23, %v1911_v61 }
 0x153   :  { %v988_v31 = vadd.f32 %v1903_v49, %v987_v33  ;;  %v1120_v34 = vadd.f32 %v1119_v28, %v1057_v30  ;;  %v1062_v49 = vmul.f32 %v1927_v14, %v1927_v14 }
 0x155   :  { %v1121_v35 = vadd.f32 %v1120_v34, %v1058_v22  ;;  %v989_v36 = vadd.f32 %v1907_v57, %v988_v31  ;;  %v1063_v57 = vmul.f32 %v1931_v21, %v1931_v21 }
 0x157   :  { %v990_v37 = vadd.f32 %v989_v36, %v1929_v16  ;;  %v1122_v38 = vadd.f32 %v1121_v35, %v1059_v29  ;;  %v1064_v16 = vmul.f32 %v1953_v47, %v1953_v47 }
 0x159   :  { %v1123_v39 = vadd.f32 %v1122_v38, %v1060_v52  ;;  %v991_v61 = vadd.f32 %v990_v37, %v1935_v27 }
 0x15b   :  { %v992_v42 = vadd.f32 %v1927_v14, %v991_v61  ;;  %v1124_v46 = vadd.f32 %v1123_v39, %v1061_v40  ;;  %v1066_v14 = vmul.f32 %v1951_v44, %v1951_v44 }
 0x15d   :  { %v1125_v48 = vadd.f32 %v1124_v46, %v1062_v49  ;;  %v993_v51 = vadd.f32 %v1931_v21, %v992_v42  ;;  %v1067_v21 = vmul.f32 %v1955_v55, %v1955_v55 }
 0x15f   :  { %v994_v43 = vadd.f32 %v993_v51, %v1953_v47  ;;  %v1126_v53 = vadd.f32 %v1125_v48, %v1063_v57  ;;  %v1068_v47 = vmul.f32 %v1977_v18, %v1977_v18 }
 0x161   :  { %v1127_v56 = vadd.f32 %v1126_v53, %v1064_v16  ;;  %v995_v27 = vadd.f32 %v994_v43, %v1959_v60 }
 0x163   :  { %v996_v50 = vadd.f32 %v1951_v44, %v995_v27  ;;  %v1128_v63 = vadd.f32 %v1127_v56, %v1065_v59  ;;  %v1070_v44 = vmul.f32 %v1975_v15, %v1975_v15 }
 0x165   :  { %v1129_v41 = vadd.f32 %v1128_v63, %v1066_v14  ;;  %v997_v1 = vadd.f32 %v1955_v55, %v996_v50  ;;  %v1071_v55 = vmul.f32 %v1979_v26, %v1979_v26 }
 0x167   :  { %v998_v2 = vadd.f32 %v997_v1, %v1977_v18  ;;  %v1130_v45 = vadd.f32 %v1129_v41, %v1067_v21  ;;  %v1072_v18 = vmul.f32 %v2001_v58, %v2001_v58 }
 0x169   :  { %v1131_v4 = vadd.f32 %v1130_v45, %v1068_v47  ;;  %v999_v60 = vadd.f32 %v998_v2, %v1983_v32 }
 0x16b   :  { %v1000_v0 = vadd.f32 %v1975_v15, %v999_v60  ;;  %v1132_v7 = vadd.f32 %v1131_v4, %v1069_v6  ;;  %v1074_v15 = vmul.f32 %v1999_v54, %v1999_v54 }
 0x16d   :  { %v1133_v10 = vadd.f32 %v1132_v7, %v1070_v44  ;;  %v1001_v11 = vadd.f32 %v1979_v26, %v1000_v0  ;;  %v1075_v26 = vmul.f32 %v2003_v3, %v2003_v3 }
 0x16f   :  { %v1002_v9 = vadd.f32 %v1001_v11, %v2001_v58  ;;  %v1134_v12 = vadd.f32 %v1133_v10, %v1071_v55 }
 0x171   :  { %v1135_v62 = vadd.f32 %v1134_v12, %v1072_v18  ;;  %v1003_v32 = vadd.f32 %v1002_v9, %v2007_v8 }
 0x173   :  { %v1004_v17 = vadd.f32 %v1999_v54, %v1003_v32  ;;  %v1136_v5 = vadd.f32 %v1135_v62, %v1073_v13 }
 0x175   :  { %v1005_v19 = vadd.f32 %v2003_v3, %v1004_v17  ;;  %v1137_v20 = vadd.f32 %v1136_v5, %v1074_v15 }
 0x177   :  { %v1006_v58 = vrot.slane %v1005_v19, 4  ;;  %v1138_v24 = vadd.f32 %v1137_v20, %v1075_v26 }
 0x179   :  { %v1007_v23 = vadd.f32 %v1006_v58, %v1005_v19  ;;  %v1139_v25 = vrot.slane %v1138_v24, 4 }
 0x17b   :  { %v1008_v28 = vrot.slane %v1007_v23, 2  ;;  %v1140_v33 = vadd.f32 %v1139_v25, %v1138_v24 }
 0x17d   :  { %v1009_v30 = vadd.f32 %v1008_v28, %v1007_v23  ;;  %v1141_v8 = vrot.slane %v1140_v33, 2 }
 0x17f   :  { %v1010_v22 = vrot.slane %v1009_v30, 1  ;;  %v1142_v31 = vadd.f32 %v1141_v8, %v1140_v33 }
 0x181   :  { %v1143_v34 = vrot.slane %v1142_v31, 1  ;;  %v1011_v54 = vadd.f32 %v1010_v22, %v1009_v30 }
 0x183   :  { %v1144_v29 = vadd.f32 %v1143_v34, %v1142_v31 }
 0x185   :  { %v1146_v35 = vsel %vm1145_vm0, %v1011_v54, %v1144_v29 }
 0x186   :  { %1147 = vst [vmem:[%s2125_s3] sm:$0x3] %v1146_v35 }

// kernel: c3_forward.9
= control target key start
LH: loop header
LB: loop body
LE: loop exit
PB: predicated region body
PF: predicated region fallthrough
CT: control target
= control target key end

     0   :  { %s2049_s0 = inlined_call_operand.vmem [shape: bf16[512,128], index: 0, kind: input, shape index: {}]   ;;  %s2050_s1 = inlined_call_operand.vmem [shape: f32[1,128], index: 1, kind: input, shape index: {}]   ;;  %s2051_s2 = inlined_call_operand.vmem [shape: f32[1,128], index: 2, kind: input, shape index: {}]   ;;  %s2052_s3 = inlined_call_operand.vmem [shape: f32[512,128], index: 3, kind: output, shape index: {}]  }
   0x1   :  { %v867_v0 = vld [vmem:[%s2049_s0] sm:$0xff]   ;;  %v994_v4 = vld [vmem:[%s2049_s0 + $0x8] sm:$0xff]   ;;  %v995_v5 = vld [vmem:[%s2049_s0 + $0x10] sm:$0xff]  }
   0x2   :  { %v1309_v1 = vld [vmem:[%s2050_s1] ss:$0 sm:$0xff]  ;;  %v868_v2 = vunpack.c.l.bf16 %v867_v0  ;;  %v869_v3 = vunpack.c.h.bf16 %v867_v0  ;;  %v996_v6 = vld [vmem:[%s2049_s0 + $0x18] sm:$0xff]   ;;  %v872_v8 = vunpack.c.l.bf16 %v994_v4  ;;  %v873_v9 = vunpack.c.h.bf16 %v994_v4  ;;  %v998_v33 = vld [vmem:[%s2049_s0 + $0x28] sm:$0xff]  }
   0x3   :  { %v1323_v7 = vld [vmem:[%s2051_s2] ss:$0 sm:$0xff]  ;;  %v876_v10 = vunpack.c.l.bf16 %v995_v5  ;;  %v877_v11 = vunpack.c.h.bf16 %v995_v5  ;;  %v880_v14 = vunpack.c.l.bf16 %v996_v6  ;;  %v881_v15 = vunpack.c.h.bf16 %v996_v6  ;;  %v999_v34 = vld [vmem:[%s2049_s0 + $0x30] sm:$0xff]   ;;  %v1000_v54 = vld [vmem:[%s2049_s0 + $0x38] sm:$0xff]  }
   0x4   :  { %v149_v12 = vmul.f32 %v868_v2, %v1309_v1  ;;  %v150_v13 = vmul.f32 %v869_v3, %v1309_v1  ;;  %v151_v16 = vmul.f32 %v872_v8, %v1309_v1  ;;  %v152_v17 = vmul.f32 %v873_v9, %v1309_v1  ;;  %v997_v24 = vld [vmem:[%s2049_s0 + $0x20] sm:$0xff]   ;;  %v1002_v2 = vld [vmem:[%s2049_s0 + $0x48] sm:$0xff]  }
   0x5   :  { %v153_v18 = vmul.f32 %v876_v10, %v1309_v1  ;;  %v154_v19 = vmul.f32 %v877_v11, %v1309_v1  ;;  %v155_v22 = vmul.f32 %v880_v14, %v1309_v1  ;;  %v156_v23 = vmul.f32 %v881_v15, %v1309_v1  ;;  %v1001_v61 = vld [vmem:[%s2049_s0 + $0x40] sm:$0xff]  }
   0x6   :  { %v1332_v20 = vadd.f32 %v1323_v7, %v149_v12  ;;  %v1335_v21 = vadd.f32 %v1323_v7, %v150_v13  ;;  %v1343_v25 = vadd.f32 %v1323_v7, %v151_v16  ;;  %v1346_v26 = vadd.f32 %v1323_v7, %v152_v17 }
   0x7   :  { %v1349_v27 = vadd.f32 %v1323_v7, %v153_v18  ;;  %v1352_v28 = vadd.f32 %v1323_v7, %v154_v19  ;;  %v1357_v31 = vadd.f32 %v1323_v7, %v155_v22  ;;  %v1360_v32 = vadd.f32 %v1323_v7, %v156_v23 }
   0x8   :  { %v802_v29 = vmul.f32 -1.442695, %v1332_v20  ;;  %v803_v30 = vmul.f32 -1.442695, %v1335_v21  ;;  %v804_v35 = vmul.f32 -1.442695, %v1343_v25  ;;  %v884_v38 = vunpack.c.l.bf16 %v997_v24 }
   0x9   :  { %v805_v36 = vmul.f32 -1.442695, %v1346_v26  ;;  %v806_v37 = vmul.f32 -1.442695, %v1349_v27  ;;  %v807_v39 = vmul.f32 -1.442695, %v1352_v28  ;;  %v885_v43 = vunpack.c.h.bf16 %v997_v24 }
   0xa   :  { %1025 = vpow2.f32 %v802_v29  ;;  %v808_v40 = vmul.f32 -1.442695, %v1357_v31  ;;  %v809_v41 = vmul.f32 -1.442695, %v1360_v32  ;;  %v157_v42 = vmul.f32 %v884_v38, %v1309_v1 }
   0xb   :  { %1027 = vpow2.f32 %v803_v30  ;;  %v888_v44 = vunpack.c.l.bf16 %v998_v33  ;;  %v889_v45 = vunpack.c.h.bf16 %v998_v33  ;;  %v892_v46 = vunpack.c.l.bf16 %v999_v34 }
   0xc   :  { %1029 = vpow2.f32 %v804_v35  ;;  %v893_v47 = vunpack.c.h.bf16 %v999_v34  ;;  %v1376_v48 = vadd.f32 %v1323_v7, %v157_v42  ;;  %v158_v49 = vmul.f32 %v885_v43, %v1309_v1  ;;  %v1003_v42 = vld [vmem:[%s2049_s0 + $0x50] sm:$0xff]  }
   0xd   :  { %1031 = vpow2.f32 %v805_v36  ;;  %v159_v50 = vmul.f32 %v888_v44, %v1309_v1  ;;  %v160_v51 = vmul.f32 %v889_v45, %v1309_v1  ;;  %v161_v52 = vmul.f32 %v892_v46, %v1309_v1 }
   0xe   :  { %1033 = vpow2.f32 %v806_v37  ;;  %v162_v53 = vmul.f32 %v893_v47, %v1309_v1  ;;  %v810_v55 = vmul.f32 -1.442695, %v1376_v48  ;;  %v1388_v56 = vadd.f32 %v1323_v7, %v158_v49 }
   0xf   :  { %1035 = vpow2.f32 %v807_v39  ;;  %v1391_v57 = vadd.f32 %v1323_v7, %v159_v50  ;;  %v1394_v58 = vadd.f32 %v1323_v7, %v160_v51  ;;  %v1397_v59 = vadd.f32 %v1323_v7, %v161_v52 }
  0x10   :  { %1037 = vpow2.f32 %v808_v40  ;;  %v1400_v60 = vadd.f32 %v1323_v7, %v162_v53  ;;  %v811_v62 = vmul.f32 -1.442695, %v1388_v56  ;;  %v896_v0 = vunpack.c.l.bf16 %v1000_v54 }
  0x11   :  { %1039 = vpow2.f32 %v809_v41  ;;  %v812_v63 = vmul.f32 -1.442695, %v1391_v57  ;;  %v813_v3 = vmul.f32 -1.442695, %v1394_v58  ;;  %v814_v4 = vmul.f32 -1.442695, %v1397_v59 }
  0x12   :  { %1041 = vpow2.f32 %v810_v55  ;;  %v1413_v5 = vmul.f32 -1.442695, %v1400_v60  ;;  %v163_v6 = vmul.f32 %v896_v0, %v1309_v1  ;;  %v897_v8 = vunpack.c.h.bf16 %v1000_v54 }
  0x13   :  { %1043 = vpow2.f32 %v811_v62  ;;  %v900_v9 = vunpack.c.l.bf16 %v1001_v61  ;;  %v901_v11 = vunpack.c.h.bf16 %v1001_v61  ;;  %v904_v12 = vunpack.c.l.bf16 %v1002_v2  ;;  %v1004_v61 = vld [vmem:[%s2049_s0 + $0x58] sm:$0xff]  }
  0x14   :  { %v1026_v10 = vpop.eup %1025  ;;  %1045 = vpow2.f32 %v812_v63  ;;  %v905_v13 = vunpack.c.h.bf16 %v1002_v2  ;;  %v1417_v16 = vadd.f32 %v1323_v7, %v163_v6  ;;  %v164_v17 = vmul.f32 %v897_v8, %v1309_v1 }
  0x15   :  { %v1028_v14 = vpop.eup %1027  ;;  %v476_v15 = vadd.f32 1.0, %v1026_v10  ;;  %1047 = vpow2.f32 %v813_v3  ;;  %v165_v22 = vmul.f32 %v900_v9, %v1309_v1  ;;  %v166_v23 = vmul.f32 %v901_v11, %v1309_v1 }
  0x16   :  { %v1030_v18 = vpop.eup %1029  ;;  %v477_v19 = vadd.f32 1.0, %v1028_v14  ;;  %1049 = vpow2.f32 %v814_v4  ;;  %v1423_v30 = vmul.f32 -1.442695, %v1417_v16  ;;  %v1426_v33 = vadd.f32 %v1323_v7, %v164_v17 }
  0x17   :  { %v1032_v24 = vpop.eup %1031  ;;  %1051 = vrcp.f32 %v476_v15  ;;  %v478_v29 = vadd.f32 1.0, %v1030_v18  ;;  %v1429_v36 = vadd.f32 %v1323_v7, %v165_v22  ;;  %v1432_v37 = vadd.f32 %v1323_v7, %v166_v23 }
  0x18   :  { %v1034_v34 = vpop.eup %1033  ;;  %1053 = vrcp.f32 %v477_v19  ;;  %v479_v35 = vadd.f32 1.0, %v1032_v24  ;;  %v1435_v40 = vmul.f32 -1.442695, %v1426_v33  ;;  %v167_v41 = vmul.f32 %v904_v12, %v1309_v1  ;;  %v1005_v24 = vld [vmem:[%s2049_s0 + $0x60] sm:$0xff]  }
  0x19   :  { %v1036_v38 = vpop.eup %1035  ;;  %1055 = vrcp.f32 %v478_v29  ;;  %v480_v39 = vadd.f32 1.0, %v1034_v34  ;;  %v1442_v45 = vmul.f32 -1.442695, %v1429_v36  ;;  %v1445_v46 = vmul.f32 -1.442695, %v1432_v37 }
  0x1a   :  { %v1038_v43 = vpop.eup %1037  ;;  %1057 = vrcp.f32 %v479_v35  ;;  %v481_v44 = vadd.f32 1.0, %v1036_v38  ;;  %v1448_v50 = vadd.f32 %v1323_v7, %v167_v41  ;;  %v168_v51 = vmul.f32 %v905_v13, %v1309_v1 }
  0x1b   :  { %v1040_v47 = vpop.eup %1039  ;;  %1059 = vrcp.f32 %v480_v39  ;;  %v482_v49 = vadd.f32 1.0, %v1038_v43  ;;  %v908_v54 = vunpack.c.l.bf16 %v1003_v42  ;;  %v909_v55 = vunpack.c.h.bf16 %v1003_v42 }
  0x1c   :  { %v1042_v52 = vpop.eup %1041  ;;  %1061 = vrcp.f32 %v481_v44  ;;  %v483_v53 = vadd.f32 1.0, %v1040_v47  ;;  %v1455_v0 = vmul.f32 -1.442695, %v1448_v50  ;;  %v1458_v2 = vadd.f32 %v1323_v7, %v168_v51 }
  0x1d   :  { %v1044_v62 = vpop.eup %1043  ;;  %1063 = vrcp.f32 %v482_v49  ;;  %v484_v63 = vadd.f32 1.0, %v1042_v52  ;;  %v169_v6 = vmul.f32 %v908_v54, %v1309_v1  ;;  %v170_v8 = vmul.f32 %v909_v55, %v1309_v1 }
  0x1e   :  { %v1046_v3 = vpop.eup %1045  ;;  %1065 = vrcp.f32 %v483_v53  ;;  %v485_v4 = vadd.f32 1.0, %v1044_v62  ;;  %v1463_v11 = vmul.f32 -1.442695, %v1458_v2  ;;  %v912_v12 = vunpack.c.l.bf16 %v1004_v61 }
  0x1f   :  { %v1048_v9 = vpop.eup %1047  ;;  %1067 = vrcp.f32 %v484_v63  ;;  %v486_v10 = vadd.f32 1.0, %v1046_v3  ;;  %v1466_v15 = vadd.f32 %v1323_v7, %v169_v6  ;;  %v1469_v17 = vadd.f32 %v1323_v7, %v170_v8 }
  0x20   :  { %v1050_v13 = vpop.eup %1049  ;;  %1069 = vrcp.f32 %v485_v4  ;;  %v487_v14 = vadd.f32 1.0, %v1048_v9  ;;  %v171_v22 = vmul.f32 %v912_v12, %v1309_v1  ;;  %v913_v23 = vunpack.c.h.bf16 %v1004_v61 }
  0x21   :  { %v1052_v18 = vpop.eup %1051  ;;  %1071 = vrcp.f32 %v486_v10  ;;  %v488_v19 = vadd.f32 1.0, %v1050_v13  ;;  %v822_v35 = vmul.f32 -1.442695, %v1466_v15  ;;  %v823_v38 = vmul.f32 -1.442695, %v1469_v17 }
  0x22   :  { %v1054_v29 = vpop.eup %1053  ;;  %v668_v34 = vmul.f32 %v1052_v18, %v1332_v20  ;;  %1073 = vrcp.f32 %v487_v14  ;;  %v1480_v42 = vadd.f32 %v1323_v7, %v171_v22  ;;  %v172_v43 = vmul.f32 %v913_v23, %v1309_v1 }
  0x23   :  { %v1056_v39 = vpop.eup %1055  ;;  %v669_v41 = vmul.f32 %v1054_v29, %v1335_v21  ;;  %1075 = vrcp.f32 %v488_v19  ;;  %v916_v47 = vunpack.c.l.bf16 %v1005_v24  ;;  %v917_v49 = vunpack.c.h.bf16 %v1005_v24  ;;  %v1006_v21 = vld [vmem:[%s2049_s0 + $0x68] sm:$0xff]  }
  0x24   :  { %v1058_v44 = vpop.eup %1057  ;;  %732 = vst [vmem:[%s2052_s3] sm:$0xff] %v668_v34  ;;  %v670_v20 = vmul.f32 %v1056_v39, %v1343_v25  ;;  %1077 = vpow2.f32 %v1413_v5  ;;  %v824_v53 = vmul.f32 -1.442695, %v1480_v42  ;;  %v1498_v25 = vadd.f32 %v1323_v7, %v172_v43 }
  0x25   :  { %v1060_v51 = vpop.eup %1059  ;;  %733 = vst [vmem:[%s2052_s3 + $0x8] sm:$0xff] %v669_v41  ;;  %v671_v52 = vmul.f32 %v1058_v44, %v1346_v26  ;;  %1079 = vpow2.f32 %v1423_v30  ;;  %v173_v55 = vmul.f32 %v916_v47, %v1309_v1  ;;  %v174_v26 = vmul.f32 %v917_v49, %v1309_v1 }
  0x26   :  { %v1062_v5 = vpop.eup %1061  ;;  %734 = vst [vmem:[%s2052_s3 + $0x10] sm:$0xff] %v670_v20  ;;  %v672_v54 = vmul.f32 %v1060_v51, %v1349_v27  ;;  %1081 = vpow2.f32 %v1435_v40  ;;  %v825_v62 = vmul.f32 -1.442695, %v1498_v25  ;;  %v920_v63 = vunpack.c.l.bf16 %v1006_v21 }
  0x27   :  { %v1064_v61 = vpop.eup %1063  ;;  %735 = vst [vmem:[%s2052_s3 + $0x18] sm:$0xff] %v671_v52  ;;  %v673_v30 = vmul.f32 %v1062_v5, %v1352_v28  ;;  %1083 = vpow2.f32 %v1442_v45  ;;  %v1519_v40 = vadd.f32 %v1323_v7, %v173_v55  ;;  %v1522_v4 = vadd.f32 %v1323_v7, %v174_v26 }
  0x28   :  { %v1066_v3 = vpop.eup %1065  ;;  %736 = vst [vmem:[%s2052_s3 + $0x20] sm:$0xff] %v672_v54  ;;  %v674_v27 = vmul.f32 %v1064_v61, %v1357_v31  ;;  %1085 = vpow2.f32 %v1445_v46  ;;  %v175_v6 = vmul.f32 %v920_v63, %v1309_v1  ;;  %v921_v31 = vunpack.c.h.bf16 %v1006_v21  ;;  %v1007_v46 = vld [vmem:[%s2049_s0 + $0x70] sm:$0xff]  }
  0x29   :  { %v1068_v28 = vpop.eup %1067  ;;  %737 = vst [vmem:[%s2052_s3 + $0x28] sm:$0xff] %v673_v30  ;;  %v675_v45 = vmul.f32 %v1066_v3, %v1360_v32  ;;  %1087 = vpow2.f32 %v1455_v0  ;;  %v826_v32 = vmul.f32 -1.442695, %v1519_v40  ;;  %v827_v0 = vmul.f32 -1.442695, %v1522_v4 }
  0x2a   :  { %v1070_v8 = vpop.eup %1069  ;;  %738 = vst [vmem:[%s2052_s3 + $0x30] sm:$0xff] %v674_v27  ;;  %v676_v9 = vmul.f32 %v1068_v28, %v1376_v48  ;;  %1089 = vpow2.f32 %v1463_v11  ;;  %v1545_v13 = vadd.f32 %v1323_v7, %v175_v6  ;;  %v176_v14 = vmul.f32 %v921_v31, %v1309_v1  ;;  %v1010_v6 = vld [vmem:[%s2049_s0 + $0x88] sm:$0xff]  }
  0x2b   :  { %v1072_v10 = vpop.eup %1071  ;;  %739 = vst [vmem:[%s2052_s3 + $0x38] sm:$0xff] %v675_v45  ;;  %v677_v12 = vmul.f32 %v1070_v8, %v1388_v56  ;;  %1091 = vpow2.f32 %v822_v35  ;;  %v924_v18 = vunpack.c.l.bf16 %v1007_v46  ;;  %v925_v19 = vunpack.c.h.bf16 %v1007_v46  ;;  %v1008_v56 = vld [vmem:[%s2049_s0 + $0x78] sm:$0xff]  }
  0x2c   :  { %v1074_v48 = vpop.eup %1073  ;;  %740 = vst [vmem:[%s2052_s3 + $0x40] sm:$0xff] %v676_v9  ;;  %v678_v11 = vmul.f32 %v1072_v10, %v1391_v57  ;;  %1093 = vpow2.f32 %v823_v38  ;;  %v1560_v24 = vmul.f32 -1.442695, %v1545_v13  ;;  %v1563_v57 = vadd.f32 %v1323_v7, %v176_v14 }
  0x2d   :  { %v1076_v22 = vpop.eup %1075  ;;  %741 = vst [vmem:[%s2052_s3 + $0x48] sm:$0xff] %v677_v12  ;;  %v679_v23 = vmul.f32 %v1074_v48, %v1394_v58  ;;  %1095 = vpow2.f32 %v824_v53  ;;  %v177_v35 = vmul.f32 %v924_v18, %v1309_v1  ;;  %v178_v38 = vmul.f32 %v925_v19, %v1309_v1  ;;  %v1009_v53 = vld [vmem:[%s2049_s0 + $0x80] sm:$0xff]  }
  0x2e   :  { %v1078_v29 = vpop.eup %1077  ;;  %742 = vst [vmem:[%s2052_s3 + $0x50] sm:$0xff] %v678_v11  ;;  %v680_v34 = vmul.f32 %v1076_v22, %v1397_v59  ;;  %1097 = vpow2.f32 %v825_v62  ;;  %v1575_v41 = vmul.f32 -1.442695, %v1563_v57  ;;  %v928_v43 = vunpack.c.l.bf16 %v1008_v56 }
  0x2f   :  { %v1080_v58 = vpop.eup %1079  ;;  %743 = vst [vmem:[%s2052_s3 + $0x58] sm:$0xff] %v679_v23  ;;  %v489_v39 = vadd.f32 1.0, %v1078_v29  ;;  %1099 = vpow2.f32 %v826_v32  ;;  %v1581_v20 = vadd.f32 %v1323_v7, %v177_v35  ;;  %v1584_v47 = vadd.f32 %v1323_v7, %v178_v38 }
  0x30   :  { %v1082_v44 = vpop.eup %1081  ;;  %744 = vst [vmem:[%s2052_s3 + $0x60] sm:$0xff] %v680_v34  ;;  %v490_v59 = vadd.f32 1.0, %v1080_v58  ;;  %1101 = vpow2.f32 %v827_v0  ;;  %v179_v51 = vmul.f32 %v928_v43, %v1309_v1  ;;  %v929_v52 = vunpack.c.h.bf16 %v1008_v56  ;;  %v1011_v58 = vld [vmem:[%s2049_s0 + $0x90] sm:$0xff]  }
  0x31   :  { %v1084_v49 = vpop.eup %1083  ;;  %1103 = vrcp.f32 %v489_v39  ;;  %v491_v21 = vadd.f32 1.0, %v1082_v44  ;;  %v1591_v55 = vmul.f32 -1.442695, %v1581_v20  ;;  %v1594_v26 = vmul.f32 -1.442695, %v1584_v47 }
  0x32   :  { %v1086_v5 = vpop.eup %1085  ;;  %1105 = vrcp.f32 %v490_v59  ;;  %v492_v54 = vadd.f32 1.0, %v1084_v49  ;;  %v1597_v62 = vadd.f32 %v1323_v7, %v179_v51  ;;  %v180_v63 = vmul.f32 %v929_v52, %v1309_v1 }
  0x33   :  { %v1088_v61 = vpop.eup %1087  ;;  %1107 = vrcp.f32 %v491_v21  ;;  %v493_v30 = vadd.f32 1.0, %v1086_v5  ;;  %v932_v28 = vunpack.c.l.bf16 %v1009_v53  ;;  %v933_v45 = vunpack.c.h.bf16 %v1009_v53 }
  0x34   :  { %v1090_v3 = vpop.eup %1089  ;;  %1109 = vrcp.f32 %v492_v54  ;;  %v494_v27 = vadd.f32 1.0, %v1088_v61  ;;  %v1604_v8 = vmul.f32 -1.442695, %v1597_v62  ;;  %v1607_v9 = vadd.f32 %v1323_v7, %v180_v63 }
  0x35   :  { %v1092_v31 = vpop.eup %1091  ;;  %1111 = vrcp.f32 %v493_v30  ;;  %v495_v46 = vadd.f32 1.0, %v1090_v3  ;;  %v181_v10 = vmul.f32 %v932_v28, %v1309_v1  ;;  %v182_v12 = vmul.f32 %v933_v45, %v1309_v1  ;;  %v1012_v30 = vld [vmem:[%s2049_s0 + $0x98] sm:$0xff]  }
  0x36   :  { %v1094_v32 = vpop.eup %1093  ;;  %1113 = vrcp.f32 %v494_v27  ;;  %v496_v0 = vadd.f32 1.0, %v1092_v31  ;;  %v1612_v11 = vmul.f32 -1.442695, %v1607_v9  ;;  %v936_v18 = vunpack.c.l.bf16 %v1010_v6 }
  0x37   :  { %v1096_v14 = vpop.eup %1095  ;;  %1115 = vrcp.f32 %v495_v46  ;;  %v497_v48 = vadd.f32 1.0, %v1094_v32  ;;  %v1615_v22 = vadd.f32 %v1323_v7, %v181_v10  ;;  %v1618_v23 = vadd.f32 %v1323_v7, %v182_v12 }
  0x38   :  { %v1098_v19 = vpop.eup %1097  ;;  %1117 = vrcp.f32 %v496_v0  ;;  %v498_v56 = vadd.f32 1.0, %v1096_v14  ;;  %v183_v35 = vmul.f32 %v936_v18, %v1309_v1  ;;  %v937_v38 = vunpack.c.h.bf16 %v1010_v6 }
  0x39   :  { %v1100_v29 = vpop.eup %1099  ;;  %1119 = vrcp.f32 %v497_v48  ;;  %v499_v34 = vadd.f32 1.0, %v1098_v19  ;;  %v834_v44 = vmul.f32 -1.442695, %v1615_v22  ;;  %v1626_v59 = vmul.f32 -1.442695, %v1618_v23 }
  0x3a   :  { %v1102_v39 = vpop.eup %1101  ;;  %1121 = vrcp.f32 %v498_v56  ;;  %v500_v43 = vadd.f32 1.0, %v1100_v29  ;;  %v1629_v51 = vadd.f32 %v1323_v7, %v183_v35  ;;  %v184_v52 = vmul.f32 %v937_v38, %v1309_v1 }
  0x3b   :  { %v1104_v49 = vpop.eup %1103  ;;  %1123 = vrcp.f32 %v499_v34  ;;  %v501_v21 = vadd.f32 1.0, %v1102_v39  ;;  %v940_v54 = vunpack.c.l.bf16 %v1011_v58  ;;  %v941_v61 = vunpack.c.h.bf16 %v1011_v58 }
  0x3c   :  { %v1106_v53 = vpop.eup %1105  ;;  %v681_v5 = vmul.f32 %v1104_v49, %v1400_v60  ;;  %1125 = vrcp.f32 %v500_v43  ;;  %v836_v27 = vmul.f32 -1.442695, %v1629_v51  ;;  %v1639_v28 = vadd.f32 %v1323_v7, %v184_v52 }
  0x3d   :  { %v1108_v63 = vpop.eup %1107  ;;  %v682_v3 = vmul.f32 %v1106_v53, %v1417_v16  ;;  %1127 = vrcp.f32 %v501_v21  ;;  %v185_v6 = vmul.f32 %v940_v54, %v1309_v1  ;;  %v186_v31 = vmul.f32 %v941_v61, %v1309_v1 }
  0x3e   :  { %v1110_v45 = vpop.eup %1109  ;;  %745 = vst [vmem:[%s2052_s3 + $0x68] sm:$0xff] %v681_v5  ;;  %v683_v60 = vmul.f32 %v1108_v63, %v1426_v33  ;;  %1129 = vpow2.f32 %v1560_v24  ;;  %v837_v32 = vmul.f32 -1.442695, %v1639_v28  ;;  %v944_v0 = vunpack.c.l.bf16 %v1012_v30 }
  0x3f   :  { %v1112_v16 = vpop.eup %1111  ;;  %746 = vst [vmem:[%s2052_s3 + $0x70] sm:$0xff] %v682_v3  ;;  %v684_v46 = vmul.f32 %v1110_v45, %v1429_v36  ;;  %1131 = vpow2.f32 %v1575_v41  ;;  %v1660_v24 = vadd.f32 %v1323_v7, %v185_v6  ;;  %v1663_v12 = vadd.f32 %v1323_v7, %v186_v31 }
  0x40   :  { %v1114_v10 = vpop.eup %1113  ;;  %747 = vst [vmem:[%s2052_s3 + $0x78] sm:$0xff] %v683_v60  ;;  %v685_v33 = vmul.f32 %v1112_v16, %v1432_v37  ;;  %1133 = vpow2.f32 %v1591_v55  ;;  %v187_v14 = vmul.f32 %v944_v0, %v1309_v1  ;;  %v945_v37 = vunpack.c.h.bf16 %v1012_v30  ;;  %v1013_v55 = vld [vmem:[%s2049_s0 + $0xa0] sm:$0xff]  }
  0x41   :  { %v1116_v36 = vpop.eup %1115  ;;  %748 = vst [vmem:[%s2052_s3 + $0x80] sm:$0xff] %v684_v46  ;;  %v686_v41 = vmul.f32 %v1114_v10, %v1448_v50  ;;  %1135 = vpow2.f32 %v1594_v26  ;;  %v838_v50 = vmul.f32 -1.442695, %v1660_v24  ;;  %v839_v26 = vmul.f32 -1.442695, %v1663_v12 }
  0x42   :  { %v1118_v48 = vpop.eup %1117  ;;  %749 = vst [vmem:[%s2052_s3 + $0x88] sm:$0xff] %v685_v33  ;;  %v687_v18 = vmul.f32 %v1116_v36, %v1458_v2  ;;  %1137 = vpow2.f32 %v1604_v8  ;;  %v1687_v29 = vadd.f32 %v1323_v7, %v187_v14  ;;  %v188_v2 = vmul.f32 %v945_v37, %v1309_v1  ;;  %v1016_v36 = vld [vmem:[%s2049_s0 + $0xb8] sm:$0xff]  }
  0x43   :  { %v1120_v19 = vpop.eup %1119  ;;  %750 = vst [vmem:[%s2052_s3 + $0x90] sm:$0xff] %v686_v41  ;;  %v688_v56 = vmul.f32 %v1118_v48, %v1466_v15  ;;  %1139 = vpow2.f32 %v1612_v11  ;;  %v948_v35 = vunpack.c.l.bf16 %v1013_v55  ;;  %v949_v38 = vunpack.c.h.bf16 %v1013_v55  ;;  %v1014_v15 = vld [vmem:[%s2049_s0 + $0xa8] sm:$0xff]  }
  0x44   :  { %v1122_v34 = vpop.eup %1121  ;;  %751 = vst [vmem:[%s2052_s3 + $0x98] sm:$0xff] %v687_v18  ;;  %v689_v8 = vmul.f32 %v1120_v19, %v1469_v17  ;;  %1141 = vpow2.f32 %v834_v44  ;;  %v840_v39 = vmul.f32 -1.442695, %v1687_v29  ;;  %v1704_v17 = vadd.f32 %v1323_v7, %v188_v2 }
  0x45   :  { %v1124_v11 = vpop.eup %1123  ;;  %752 = vst [vmem:[%s2052_s3 + $0xa0] sm:$0xff] %v688_v56  ;;  %v690_v58 = vmul.f32 %v1122_v34, %v1480_v42  ;;  %1143 = vpow2.f32 %v1626_v59  ;;  %v189_v49 = vmul.f32 %v948_v35, %v1309_v1  ;;  %v190_v21 = vmul.f32 %v949_v38, %v1309_v1 }
  0x46   :  { %v1126_v43 = vpop.eup %1125  ;;  %753 = vst [vmem:[%s2052_s3 + $0xa8] sm:$0xff] %v689_v8  ;;  %v691_v44 = vmul.f32 %v1124_v11, %v1498_v25  ;;  %1145 = vpow2.f32 %v836_v27  ;;  %v952_v52 = vunpack.c.l.bf16 %v1014_v15  ;;  %v953_v63 = vunpack.c.h.bf16 %v1014_v15 }
  0x47   :  { %v1128_v42 = vpop.eup %1127  ;;  %754 = vst [vmem:[%s2052_s3 + $0xb0] sm:$0xff] %v690_v58  ;;  %v692_v59 = vmul.f32 %v1126_v43, %v1519_v40  ;;  %1147 = vpow2.f32 %v837_v32  ;;  %v1721_v5 = vadd.f32 %v1323_v7, %v189_v49  ;;  %v1724_v54 = vadd.f32 %v1323_v7, %v190_v21 }
  0x48   :  { %v1130_v53 = vpop.eup %1129  ;;  %755 = vst [vmem:[%s2052_s3 + $0xb8] sm:$0xff] %v691_v44  ;;  %v693_v25 = vmul.f32 %v1128_v42, %v1522_v4  ;;  %1149 = vpow2.f32 %v838_v50  ;;  %v191_v30 = vmul.f32 %v952_v52, %v1309_v1  ;;  %v1015_v4 = vld [vmem:[%s2049_s0 + $0xb0] sm:$0xff]   ;;  %v1737_v45 = vmul.f32 -1.442695, %v1704_v17  ;;  %v1017_v44 = vld [vmem:[%s2049_s0 + $0xc0] sm:$0xff]  }
  0x49   :  { %v1132_v61 = vpop.eup %1131  ;;  %756 = vst [vmem:[%s2052_s3 + $0xc0] sm:$0xff] %v692_v59  ;;  %v502_v40 = vadd.f32 1.0, %v1130_v53  ;;  %1151 = vpow2.f32 %v839_v26  ;;  %v1740_v60 = vmul.f32 -1.442695, %v1721_v5  ;;  %v192_v46 = vmul.f32 %v953_v63, %v1309_v1 }
  0x4a   :  { %v1134_v3 = vpop.eup %1133  ;;  %757 = vst [vmem:[%s2052_s3 + $0xc8] sm:$0xff] %v693_v25  ;;  %v503_v27 = vadd.f32 1.0, %v1132_v61  ;;  %1153 = vpow2.f32 %v840_v39  ;;  %v1743_v16 = vadd.f32 %v1323_v7, %v191_v30  ;;  %v956_v10 = vunpack.c.l.bf16 %v1015_v4 }
  0x4b   :  { %v1136_v6 = vpop.eup %1135  ;;  %1155 = vrcp.f32 %v502_v40  ;;  %v504_v31 = vadd.f32 1.0, %v1134_v3  ;;  %v957_v33 = vunpack.c.h.bf16 %v1015_v4  ;;  %v1750_v37 = vmul.f32 -1.442695, %v1724_v54  ;;  %v1018_v3 = vld [vmem:[%s2049_s0 + $0xc8] sm:$0xff]  }
  0x4c   :  { %v1138_v32 = vpop.eup %1137  ;;  %1157 = vrcp.f32 %v503_v27  ;;  %v505_v0 = vadd.f32 1.0, %v1136_v6  ;;  %v1753_v55 = vadd.f32 %v1323_v7, %v192_v46  ;;  %v193_v50 = vmul.f32 %v956_v10, %v1309_v1 }
  0x4d   :  { %v1140_v41 = vpop.eup %1139  ;;  %1159 = vrcp.f32 %v504_v31  ;;  %v506_v14 = vadd.f32 1.0, %v1138_v32  ;;  %v194_v26 = vmul.f32 %v957_v33, %v1309_v1  ;;  %v1758_v2 = vmul.f32 -1.442695, %v1743_v16 }
  0x4e   :  { %v1142_v48 = vpop.eup %1141  ;;  %1161 = vrcp.f32 %v505_v0  ;;  %v507_v18 = vadd.f32 1.0, %v1140_v41  ;;  %v960_v34 = vunpack.c.l.bf16 %v1016_v36  ;;  %v1761_v38 = vadd.f32 %v1323_v7, %v193_v50 }
  0x4f   :  { %v1144_v19 = vpop.eup %1143  ;;  %1163 = vrcp.f32 %v506_v14  ;;  %v508_v56 = vadd.f32 1.0, %v1142_v48  ;;  %v1764_v15 = vadd.f32 %v1323_v7, %v194_v26  ;;  %v961_v43 = vunpack.c.h.bf16 %v1016_v36 }
  0x50   :  { %v1146_v8 = vpop.eup %1145  ;;  %1165 = vrcp.f32 %v507_v18  ;;  %v509_v35 = vadd.f32 1.0, %v1144_v19  ;;  %v195_v39 = vmul.f32 %v960_v34, %v1309_v1  ;;  %v845_v42 = vmul.f32 -1.442695, %v1753_v55 }
  0x51   :  { %v1148_v11 = vpop.eup %1147  ;;  %1167 = vrcp.f32 %v508_v56  ;;  %v510_v58 = vadd.f32 1.0, %v1146_v8  ;;  %v846_v59 = vmul.f32 -1.442695, %v1761_v38  ;;  %v196_v61 = vmul.f32 %v961_v43, %v1309_v1 }
  0x52   :  { %v1150_v49 = vpop.eup %1149  ;;  %1169 = vrcp.f32 %v509_v35  ;;  %v511_v21 = vadd.f32 1.0, %v1148_v11  ;;  %v1773_v25 = vadd.f32 %v1323_v7, %v195_v39  ;;  %v964_v63 = vunpack.c.l.bf16 %v1017_v44 }
  0x53   :  { %v1152_v52 = vpop.eup %1151  ;;  %1171 = vrcp.f32 %v510_v58  ;;  %v512_v53 = vadd.f32 1.0, %v1150_v49  ;;  %v965_v4 = vunpack.c.h.bf16 %v1017_v44  ;;  %v847_v31 = vmul.f32 -1.442695, %v1764_v15 }
  0x54   :  { %v1154_v40 = vpop.eup %1153  ;;  %1173 = vrcp.f32 %v511_v21  ;;  %v513_v30 = vadd.f32 1.0, %v1152_v52  ;;  %v1781_v46 = vadd.f32 %v1323_v7, %v196_v61  ;;  %v197_v10 = vmul.f32 %v964_v63, %v1309_v1 }
  0x55   :  { %v1156_v27 = vpop.eup %1155  ;;  %1175 = vrcp.f32 %v512_v53  ;;  %v514_v6 = vadd.f32 1.0, %v1154_v40  ;;  %v198_v33 = vmul.f32 %v965_v4, %v1309_v1  ;;  %v848_v14 = vmul.f32 -1.442695, %v1773_v25 }
  0x56   :  { %v1158_v32 = vpop.eup %1157  ;;  %v694_v0 = vmul.f32 %v1156_v27, %v1545_v13  ;;  %1177 = vrcp.f32 %v513_v30  ;;  %v968_v48 = vunpack.c.l.bf16 %v1018_v3  ;;  %v1794_v13 = vadd.f32 %v1323_v7, %v197_v10 }
  0x57   :  { %v1160_v36 = vpop.eup %1159  ;;  %v695_v41 = vmul.f32 %v1158_v32, %v1563_v57  ;;  %1179 = vrcp.f32 %v514_v6  ;;  %v1797_v26 = vadd.f32 %v1323_v7, %v198_v33  ;;  %v1869_v6 = vld [vmem:[%s2050_s1] ss:$0 sm:$0xff] }
  0x58   :  { %v1162_v18 = vpop.eup %1161  ;;  %758 = vst [vmem:[%s2052_s3 + $0xd0] sm:$0xff] %v694_v0  ;;  %v696_v50 = vmul.f32 %v1160_v36, %v1581_v20  ;;  %1181 = vpow2.f32 %v1737_v45  ;;  %v199_v56 = vmul.f32 %v968_v48, %v1309_v1  ;;  %v969_v20 = vunpack.c.h.bf16 %v1018_v3  ;;  %v1019_v45 = vld [vmem:[%s2049_s0 + $0xd0] sm:$0xff]   ;;  %v1021_v3 = vld [vmem:[%s2049_s0 + $0xe0] sm:$0xff]   ;;  %v1022_v48 = vld [vmem:[%s2049_s0 + $0xe8] sm:$0xff]  }
  0x59   :  { %v1164_v57 = vpop.eup %1163  ;;  %759 = vst [vmem:[%s2052_s3 + $0xd8] sm:$0xff] %v695_v41  ;;  %v697_v19 = vmul.f32 %v1162_v18, %v1584_v47  ;;  %1183 = vpow2.f32 %v1740_v60  ;;  %v849_v47 = vmul.f32 -1.442695, %v1781_v46  ;;  %v850_v60 = vmul.f32 -1.442695, %v1794_v13 }
  0x5a   :  { %v1166_v34 = vpop.eup %1165  ;;  %760 = vst [vmem:[%s2052_s3 + $0xe0] sm:$0xff] %v696_v50  ;;  %v698_v8 = vmul.f32 %v1164_v57, %v1597_v62  ;;  %1185 = vpow2.f32 %v1750_v37  ;;  %v1821_v58 = vadd.f32 %v1323_v7, %v199_v56  ;;  %v200_v62 = vmul.f32 %v969_v20, %v1309_v1  ;;  %v1878_v0 = vld [vmem:[%s2051_s2] ss:$0 sm:$0xff] }
  0x5b   :  { %v1168_v35 = vpop.eup %1167  ;;  %761 = vst [vmem:[%s2052_s3 + $0xe8] sm:$0xff] %v697_v19  ;;  %v699_v11 = vmul.f32 %v1166_v34, %v1607_v9  ;;  %1187 = vpow2.f32 %v1758_v2  ;;  %v972_v43 = vunpack.c.l.bf16 %v1019_v45  ;;  %v973_v44 = vunpack.c.h.bf16 %v1019_v45  ;;  %v1020_v9 = vld [vmem:[%s2049_s0 + $0xd8] sm:$0xff]  }
  0x5c   :  { %v1170_v39 = vpop.eup %1169  ;;  %762 = vst [vmem:[%s2052_s3 + $0xf0] sm:$0xff] %v698_v8  ;;  %v700_v37 = vmul.f32 %v1168_v35, %v1615_v22  ;;  %1189 = vpow2.f32 %v845_v42  ;;  %v851_v21 = vmul.f32 -1.442695, %v1797_v26  ;;  %v1837_v52 = vadd.f32 %v1323_v7, %v200_v62 }
  0x5d   :  { %v1172_v2 = vpop.eup %1171  ;;  %763 = vst [vmem:[%s2052_s3 + $0xf8] sm:$0xff] %v699_v11  ;;  %v701_v49 = vmul.f32 %v1170_v39, %v1618_v23  ;;  %1191 = vpow2.f32 %v846_v59  ;;  %v852_v53 = vmul.f32 -1.442695, %v1821_v58  ;;  %v201_v61 = vmul.f32 %v972_v43, %v1309_v1 }
  0x5e   :  { %v1174_v22 = vpop.eup %1173  ;;  %764 = vst [vmem:[%s2052_s3 + $0x100] sm:$0xff] %v700_v37  ;;  %v702_v42 = vmul.f32 %v1172_v2, %v1629_v51  ;;  %1193 = vpow2.f32 %v847_v31  ;;  %v202_v23 = vmul.f32 %v973_v44, %v1309_v1  ;;  %v976_v59 = vunpack.c.l.bf16 %v1020_v9  ;;  %v1023_v2 = vld [vmem:[%s2049_s0 + $0xf0] sm:$0xff]  }
  0x5f   :  { %v1176_v40 = vpop.eup %1175  ;;  %765 = vst [vmem:[%s2052_s3 + $0x108] sm:$0xff] %v701_v49  ;;  %v703_v7 = vmul.f32 %v1174_v22, %v1639_v28  ;;  %1195 = vpow2.f32 %v848_v14  ;;  %v853_v63 = vmul.f32 -1.442695, %v1837_v52  ;;  %v977_v1 = vunpack.c.h.bf16 %v1020_v9 }
  0x60   :  { %v1178_v30 = vpop.eup %1177  ;;  %766 = vst [vmem:[%s2052_s3 + $0x110] sm:$0xff] %v702_v42  ;;  %v704_v51 = vmul.f32 %v1176_v40, %v1660_v24  ;;  %1197 = vpow2.f32 %v849_v47  ;;  %v1884_v10 = vadd.f32 %v1878_v0, %v202_v23  ;;  %v980_v14 = vunpack.c.l.bf16 %v1021_v3 }
  0x61   :  { %v1180_v4 = vpop.eup %1179  ;;  %767 = vst [vmem:[%s2052_s3 + $0x118] sm:$0xff] %v703_v7  ;;  %v705_v28 = vmul.f32 %v1178_v30, %v1663_v12  ;;  %1199 = vpow2.f32 %v850_v60  ;;  %v203_v12 = vmul.f32 %v1869_v6, %v976_v59  ;;  %v204_v41 = vmul.f32 %v1869_v6, %v977_v1 }
  0x62   :  { %v1182_v27 = vpop.eup %1181  ;;  %768 = vst [vmem:[%s2052_s3 + $0x120] sm:$0xff] %v704_v51  ;;  %v706_v24 = vmul.f32 %v1180_v4, %v1687_v29  ;;  %1201 = vpow2.f32 %v851_v21  ;;  %v1881_v29 = vadd.f32 %v1878_v0, %v201_v61  ;;  %v981_v57 = vunpack.c.h.bf16 %v1021_v3 }
  0x63   :  { %v1184_v31 = vpop.eup %1183  ;;  %769 = vst [vmem:[%s2052_s3 + $0x128] sm:$0xff] %v705_v28  ;;  %v515_v32 = vadd.f32 1.0, %v1182_v27  ;;  %1203 = vpow2.f32 %v852_v53  ;;  %v1894_v20 = vadd.f32 %v1878_v0, %v203_v12  ;;  %v205_v45 = vmul.f32 %v1869_v6, %v980_v14 }
  0x64   :  { %v1186_v33 = vpop.eup %1185  ;;  %770 = vst [vmem:[%s2052_s3 + $0x130] sm:$0xff] %v706_v24  ;;  %v516_v36 = vadd.f32 1.0, %v1184_v31  ;;  %1205 = vpow2.f32 %v853_v63  ;;  %v854_v47 = vmul.f32 -1.442695, %v1881_v29  ;;  %v984_v60 = vunpack.c.l.bf16 %v1022_v48  ;;  %v1024_v63 = vld [vmem:[%s2049_s0 + $0xf8] sm:$0xff]  }
  0x65   :  { %v1188_v18 = vpop.eup %1187  ;;  %1207 = vrcp.f32 %v515_v32  ;;  %v517_v50 = vadd.f32 1.0, %v1186_v33  ;;  %v855_v62 = vmul.f32 -1.442695, %v1884_v10  ;;  %v1900_v39 = vadd.f32 %v1878_v0, %v204_v41 }
  0x66   :  { %v1190_v19 = vpop.eup %1189  ;;  %1209 = vrcp.f32 %v516_v36  ;;  %v518_v56 = vadd.f32 1.0, %v1188_v18  ;;  %v206_v44 = vmul.f32 %v1869_v6, %v981_v57  ;;  %v985_v9 = vunpack.c.h.bf16 %v1022_v48 }
  0x67   :  { %v1192_v34 = vpop.eup %1191  ;;  %1211 = vrcp.f32 %v517_v50  ;;  %v519_v8 = vadd.f32 1.0, %v1190_v19  ;;  %v856_v22 = vmul.f32 -1.442695, %v1894_v20  ;;  %v1908_v42 = vadd.f32 %v1878_v0, %v205_v45 }
  0x68   :  { %v1194_v35 = vpop.eup %1193  ;;  %1213 = vrcp.f32 %v518_v56  ;;  %v520_v11 = vadd.f32 1.0, %v1192_v34  ;;  %v207_v40 = vmul.f32 %v1869_v6, %v984_v60  ;;  %v208_v7 = vmul.f32 %v1869_v6, %v985_v9 }
  0x69   :  { %v1196_v37 = vpop.eup %1195  ;;  %1215 = vrcp.f32 %v519_v8  ;;  %v521_v43 = vadd.f32 1.0, %v1194_v35  ;;  %v988_v30 = vunpack.c.l.bf16 %v1023_v2  ;;  %v989_v51 = vunpack.c.h.bf16 %v1023_v2 }
  0x6a   :  { %v1198_v49 = vpop.eup %1197  ;;  %1217 = vrcp.f32 %v520_v11  ;;  %v522_v21 = vadd.f32 1.0, %v1196_v37  ;;  %v857_v1 = vmul.f32 -1.442695, %v1900_v39  ;;  %v1917_v3 = vadd.f32 %v1878_v0, %v206_v44 }
  0x6b   :  { %v1200_v53 = vpop.eup %1199  ;;  %1219 = vrcp.f32 %v521_v43  ;;  %v523_v61 = vadd.f32 1.0, %v1198_v49  ;;  %v858_v12 = vmul.f32 -1.442695, %v1908_v42  ;;  %v209_v31 = vmul.f32 %v1869_v6, %v988_v30 }
  0x6c   :  { %v1202_v23 = vpop.eup %1201  ;;  %1221 = vrcp.f32 %v522_v21  ;;  %v524_v59 = vadd.f32 1.0, %v1200_v53  ;;  %v210_v36 = vmul.f32 %v1869_v6, %v989_v51  ;;  %v992_v41 = vunpack.c.l.bf16 %v1024_v63 }
  0x6d   :  { %v1204_v4 = vpop.eup %1203  ;;  %1223 = vrcp.f32 %v523_v61  ;;  %v525_v28 = vadd.f32 1.0, %v1202_v23  ;;  %v1924_v18 = vadd.f32 %v1878_v0, %v207_v40  ;;  %v1927_v50 = vadd.f32 %v1878_v0, %v208_v7 }
  0x6e   :  { %v1206_v27 = vpop.eup %1205  ;;  %1225 = vrcp.f32 %v524_v59  ;;  %v526_v24 = vadd.f32 1.0, %v1204_v4  ;;  %v211_v56 = vmul.f32 %v1869_v6, %v992_v41  ;;  %v993_v45 = vunpack.c.h.bf16 %v1024_v63 }
  0x6f   :  { %v1208_v32 = vpop.eup %1207  ;;  %1227 = vrcp.f32 %v525_v28  ;;  %v527_v33 = vadd.f32 1.0, %v1206_v27  ;;  %v859_v8 = vmul.f32 -1.442695, %v1917_v3  ;;  %v1937_v60 = vadd.f32 %v1878_v0, %v209_v31 }
  0x70   :  { %v1210_v14 = vpop.eup %1209  ;;  %v707_v48 = vmul.f32 %v1208_v32, %v1704_v17  ;;  %1229 = vrcp.f32 %v526_v24  ;;  %v1944_v11 = vadd.f32 %v1878_v0, %v210_v36  ;;  %v212_v37 = vmul.f32 %v1869_v6, %v993_v45 }
  0x71   :  { %v1212_v57 = vpop.eup %1211  ;;  %v708_v19 = vmul.f32 %v1210_v14, %v1721_v5  ;;  %1231 = vrcp.f32 %v527_v33  ;;  %v860_v43 = vmul.f32 -1.442695, %v1924_v18  ;;  %v1953_v44 = vadd.f32 %v1878_v0, %v211_v56 }
  0x72   :  { %v1214_v34 = vpop.eup %1213  ;;  %771 = vst [vmem:[%s2052_s3 + $0x138] sm:$0xff] %v707_v48  ;;  %v709_v17 = vmul.f32 %v1212_v57, %v1724_v54  ;;  %1233 = vpow2.f32 %v854_v47  ;;  %v1961_v9 = vadd.f32 %v1878_v0, %v212_v37  ;;  %v862_v49 = vmul.f32 -1.442695, %v1937_v60 }
  0x73   :  { %v1216_v35 = vpop.eup %1215  ;;  %772 = vst [vmem:[%s2052_s3 + $0x140] sm:$0xff] %v708_v19  ;;  %v710_v5 = vmul.f32 %v1214_v34, %v1743_v16  ;;  %1235 = vpow2.f32 %v855_v62  ;;  %v861_v62 = vmul.f32 -1.442695, %v1927_v50  ;;  %v863_v0 = vmul.f32 -1.442695, %v1944_v11 }
  0x74   :  { %v1218_v54 = vpop.eup %1217  ;;  %773 = vst [vmem:[%s2052_s3 + $0x148] sm:$0xff] %v709_v17  ;;  %v711_v47 = vmul.f32 %v1216_v35, %v1753_v55  ;;  %1237 = vpow2.f32 %v856_v22  ;;  %v864_v53 = vmul.f32 -1.442695, %v1953_v44  ;;  %v865_v40 = vmul.f32 -1.442695, %v1961_v9 }
  0x75   :  { %v1220_v16 = vpop.eup %1219  ;;  %774 = vst [vmem:[%s2052_s3 + $0x150] sm:$0xff] %v710_v5  ;;  %v712_v6 = vmul.f32 %v1218_v54, %v1761_v38  ;;  %1239 = vpow2.f32 %v857_v1 }
  0x76   :  { %v1222_v55 = vpop.eup %1221  ;;  %775 = vst [vmem:[%s2052_s3 + $0x158] sm:$0xff] %v711_v47  ;;  %v713_v2 = vmul.f32 %v1220_v16, %v1764_v15  ;;  %1241 = vpow2.f32 %v858_v12 }
  0x77   :  { %v1224_v21 = vpop.eup %1223  ;;  %776 = vst [vmem:[%s2052_s3 + $0x160] sm:$0xff] %v712_v6  ;;  %v714_v38 = vmul.f32 %v1222_v55, %v1773_v25  ;;  %1243 = vpow2.f32 %v859_v8 }
  0x78   :  { %v1226_v22 = vpop.eup %1225  ;;  %777 = vst [vmem:[%s2052_s3 + $0x168] sm:$0xff] %v713_v2  ;;  %v715_v15 = vmul.f32 %v1224_v21, %v1781_v46  ;;  %1245 = vpow2.f32 %v860_v43 }
  0x79   :  { %v1228_v61 = vpop.eup %1227  ;;  %778 = vst [vmem:[%s2052_s3 + $0x170] sm:$0xff] %v714_v38  ;;  %v716_v25 = vmul.f32 %v1226_v22, %v1794_v13  ;;  %1247 = vpow2.f32 %v861_v62 }
  0x7a   :  { %v1230_v7 = vpop.eup %1229  ;;  %779 = vst [vmem:[%s2052_s3 + $0x178] sm:$0xff] %v715_v15  ;;  %v717_v46 = vmul.f32 %v1228_v61, %v1797_v26  ;;  %1249 = vpow2.f32 %v862_v49 }
  0x7b   :  { %v1232_v23 = vpop.eup %1231  ;;  %780 = vst [vmem:[%s2052_s3 + $0x180] sm:$0xff] %v716_v25  ;;  %v718_v59 = vmul.f32 %v1230_v7, %v1821_v58  ;;  %1251 = vpow2.f32 %v863_v0 }
  0x7c   :  { %v1234_v13 = vpop.eup %1233  ;;  %781 = vst [vmem:[%s2052_s3 + $0x188] sm:$0xff] %v717_v46  ;;  %v719_v30 = vmul.f32 %v1232_v23, %v1837_v52  ;;  %1253 = vpow2.f32 %v864_v53 }
  0x7d   :  { %v1236_v51 = vpop.eup %1235  ;;  %782 = vst [vmem:[%s2052_s3 + $0x190] sm:$0xff] %v718_v59  ;;  %v528_v26 = vadd.f32 1.0, %v1234_v13  ;;  %1255 = vpow2.f32 %v865_v40 }
  0x7e   :  { %v1238_v63 = vpop.eup %1237  ;;  %783 = vst [vmem:[%s2052_s3 + $0x198] sm:$0xff] %v719_v30  ;;  %v529_v58 = vadd.f32 1.0, %v1236_v51 }
  0x7f   :  { %v1240_v4 = vpop.eup %1239  ;;  %1257 = vrcp.f32 %v528_v26  ;;  %v530_v28 = vadd.f32 1.0, %v1238_v63 }
  0x80   :  { %v1242_v1 = vpop.eup %1241  ;;  %1259 = vrcp.f32 %v529_v58  ;;  %v531_v52 = vadd.f32 1.0, %v1240_v4 }
  0x81   :  { %v1244_v27 = vpop.eup %1243  ;;  %1261 = vrcp.f32 %v530_v28  ;;  %v532_v24 = vadd.f32 1.0, %v1242_v1 }
  0x82   :  { %v1246_v12 = vpop.eup %1245  ;;  %1263 = vrcp.f32 %v531_v52  ;;  %v533_v31 = vadd.f32 1.0, %v1244_v27 }
  0x83   :  { %v1248_v32 = vpop.eup %1247  ;;  %1265 = vrcp.f32 %v532_v24  ;;  %v534_v33 = vadd.f32 1.0, %v1246_v12 }
  0x84   :  { %v1250_v36 = vpop.eup %1249  ;;  %1267 = vrcp.f32 %v533_v31  ;;  %v535_v41 = vadd.f32 1.0, %v1248_v32 }
  0x85   :  { %v1252_v14 = vpop.eup %1251  ;;  %1269 = vrcp.f32 %v534_v33  ;;  %v536_v48 = vadd.f32 1.0, %v1250_v36 }
  0x86   :  { %v1254_v57 = vpop.eup %1253  ;;  %1271 = vrcp.f32 %v535_v41  ;;  %v537_v19 = vadd.f32 1.0, %v1252_v14 }
  0x87   :  { %v1256_v56 = vpop.eup %1255  ;;  %1273 = vrcp.f32 %v536_v48  ;;  %v538_v45 = vadd.f32 1.0, %v1254_v57 }
  0x88   :  { %1275 = vrcp.f32 %v537_v19  ;;  %v539_v34 = vadd.f32 1.0, %v1256_v56 }
  0x89   :  { %v1258_v17 = vpop.eup %1257  ;;  %1277 = vrcp.f32 %v538_v45 }
  0x8a   :  { %v1260_v8 = vpop.eup %1259  ;;  %v720_v35 = vmul.f32 %v1258_v17, %v1881_v29  ;;  %1279 = vrcp.f32 %v539_v34 }
  0x8b   :  { %v1262_v5 = vpop.eup %1261  ;;  %v721_v37 = vmul.f32 %v1260_v8, %v1884_v10 }
  0x8c   :  { %v1264_v54 = vpop.eup %1263  ;;  %784 = vst [vmem:[%s2052_s3 + $0x1a0] sm:$0xff] %v720_v35  ;;  %v722_v47 = vmul.f32 %v1262_v5, %v1894_v20 }
  0x8d   :  { %v1266_v43 = vpop.eup %1265  ;;  %785 = vst [vmem:[%s2052_s3 + $0x1a8] sm:$0xff] %v721_v37  ;;  %v723_v16 = vmul.f32 %v1264_v54, %v1900_v39 }
  0x8e   :  { %v1268_v6 = vpop.eup %1267  ;;  %786 = vst [vmem:[%s2052_s3 + $0x1b0] sm:$0xff] %v722_v47  ;;  %v724_v29 = vmul.f32 %v1266_v43, %v1908_v42 }
  0x8f   :  { %v1270_v10 = vpop.eup %1269  ;;  %787 = vst [vmem:[%s2052_s3 + $0x1b8] sm:$0xff] %v723_v16  ;;  %v725_v20 = vmul.f32 %v1268_v6, %v1917_v3 }
  0x90   :  { %v1272_v62 = vpop.eup %1271  ;;  %788 = vst [vmem:[%s2052_s3 + $0x1c0] sm:$0xff] %v724_v29  ;;  %v726_v39 = vmul.f32 %v1270_v10, %v1924_v18 }
  0x91   :  { %v1274_v55 = vpop.eup %1273  ;;  %789 = vst [vmem:[%s2052_s3 + $0x1c8] sm:$0xff] %v725_v20  ;;  %v727_v42 = vmul.f32 %v1272_v62, %v1927_v50 }
  0x92   :  { %v1276_v2 = vpop.eup %1275  ;;  %790 = vst [vmem:[%s2052_s3 + $0x1d0] sm:$0xff] %v726_v39  ;;  %v728_v3 = vmul.f32 %v1274_v55, %v1937_v60 }
  0x93   :  { %v1278_v49 = vpop.eup %1277  ;;  %791 = vst [vmem:[%s2052_s3 + $0x1d8] sm:$0xff] %v727_v42  ;;  %v729_v18 = vmul.f32 %v1276_v2, %v1944_v11 }
  0x94   :  { %v1280_v21 = vpop.eup %1279  ;;  %792 = vst [vmem:[%s2052_s3 + $0x1e0] sm:$0xff] %v728_v3  ;;  %v730_v50 = vmul.f32 %v1278_v49, %v1953_v44 }
  0x95   :  { %793 = vst [vmem:[%s2052_s3 + $0x1e8] sm:$0xff] %v729_v18  ;;  %v731_v60 = vmul.f32 %v1280_v21, %v1961_v9 }
  0x96   :  { %794 = vst [vmem:[%s2052_s3 + $0x1f0] sm:$0xff] %v730_v50 }
  0x97   :  { %795 = vst [vmem:[%s2052_s3 + $0x1f8] sm:$0xff] %v731_v60 }

// kernel: c3_forward.8
= control target key start
LH: loop header
LB: loop body
LE: loop exit
PB: predicated region body
PF: predicated region fallthrough
CT: control target
= control target key end

     0   :  { %vm4138_vm0 = vcmask 1040384   ;;  %s8615_s0 = inlined_call_operand.vmem [shape: bf16[512,128], index: 0, kind: input, shape index: {}]   ;;  %s8616_s1 = inlined_call_operand.vmem [shape: f32[1,128], index: 1, kind: input, shape index: {}]   ;;  %s8617_s2 = inlined_call_operand.vmem [shape: f32[1,128], index: 2, kind: input, shape index: {}]   ;;  %s8618_s3 = inlined_call_operand.vmem [shape: bf16[512,256], index: 3, kind: input, shape index: {}, may-alias: {3,7}]   ;;  %s8619_s4 = inlined_call_operand.vmem [shape: f32[1,128], index: 4, kind: input, shape index: {}]   ;;  %s8620_s5 = inlined_call_operand.vmem [shape: f32[1,128], index: 5, kind: input, shape index: {}]   ;;  %s8621_s6 = inlined_call_operand.vmem [shape: bf16[128,128], index: 6, kind: input, shape index: {}]   ;;  %s8622_s7 = inlined_call_operand.vmem [shape: bf16[512,256], index: 7, kind: input, shape index: {}, may-alias: {3,7}]   ;;  %s8623_s8 = inlined_call_operand.vmem [shape: f32[1,128], index: 8, kind: input, shape index: {}]   ;;  %s8624_s9 = inlined_call_operand.vmem [shape: f32[1,128], index: 9, kind: input, shape index: {}]   ;;  %s8625_s10 = inlined_call_operand.vmem [shape: bf16[128,128], index: 10, kind: input, shape index: {}]   ;;  %s8626_s11 = inlined_call_operand.vmem [shape: bf16[512,128], index: 11, kind: output, shape index: {0}]   ;;  %s8627_s12 = inlined_call_operand.vmem [shape: f32[2,128], index: 12, kind: output, shape index: {1}]  }
   0x1   :  { %v5535_v0 = vld [vmem:[%s8625_s10] sm:$0xff]   ;;  %v5537_v2 = vld [vmem:[%s8625_s10 + $0x8] sm:$0xff]   ;;  %v5539_v4 = vld [vmem:[%s8625_s10 + $0x10] sm:$0xff]  }
   0x2   :  { %v5536_v1 = vld [vmem:[%s8621_s6] sm:$0xff]   ;;  %5311 = vmatprep.subr.bf16.mxu1 %v5535_v0  ;;  %v5538_v3 = vld [vmem:[%s8621_s6 + $0x8] sm:$0xff]   ;;  %v5540_v5 = vld [vmem:[%s8621_s6 + $0x10] sm:$0xff]  }
   0x3   :  { %5312 = vmatpush3.bf16.msra.mxu1 %v5535_v0  ;;  %5391 = vmatprep.subr.bf16.mxu0 %v5536_v1  ;;  %v5541_v6 = vld [vmem:[%s8625_s10 + $0x18] sm:$0xff]   ;;  %v5543_v8 = vld [vmem:[%s8625_s10 + $0x20] sm:$0xff]   ;;  %v5545_v10 = vld [vmem:[%s8625_s10 + $0x28] sm:$0xff]  }
   0x4   :  { %5392 = vmatpush3.bf16.msra.mxu0 %v5536_v1  ;;  %5313 = vmatprep.subr.bf16.mxu1 %v5537_v2  ;;  %v5542_v7 = vld [vmem:[%s8621_s6 + $0x18] sm:$0xff]   ;;  %v5544_v9 = vld [vmem:[%s8621_s6 + $0x20] sm:$0xff]   ;;  %v4158_v12 = vld [vmem:[%s8622_s7 + $0xc] sm:$0xf] }
   0x5   :  { %5393 = vmatprep.subr.bf16.mxu0 %v5538_v3  ;;  %v4157_v11 = vld [vmem:[%s8622_s7 + $0x4] sm:$0xf]  ;;  %v5546_v13 = vld [vmem:[%s8621_s6 + $0x28] sm:$0xff]   ;;  %344 = vst [vmem:[#allocation3 + $0x4] sm:$0xf] %v4158_v12  ;;  %v6466_v19 = vld [vmem:[%s8625_s10 + $0x30] sm:$0xff]  }
   0x6   :  { %342 = vst [vmem:[#allocation3] sm:$0xf] %v4157_v11  ;;  %v4159_v14 = vld [vmem:[%s8622_s7 + $0x14] sm:$0xf]  ;;  %v4160_v15 = vld [vmem:[%s8622_s7 + $0x1c] sm:$0xf] }
   0x7   :  { %5314 = vmatpush3.bf16.msra.mxu1 %v5537_v2  ;;  %346 = vst [vmem:[#allocation3 + $0x8] sm:$0xf] %v4159_v14  ;;  %348 = vst [vmem:[#allocation3 + $0xc] sm:$0xf] %v4160_v15  ;;  %v41_v16 = vld [vmem:[%s8618_s3] sm:$0xf] }
   0x8   :  { %5394 = vmatpush3.bf16.msra.mxu0 %v5538_v3  ;;  %5315 = vmatprep.subr.bf16.mxu1 %v5539_v4  ;;  %v43_v17 = vld [vmem:[%s8618_s3 + $0x8] sm:$0xf]  ;;  %v4564_v18 = vld [vmem:[%s8615_s0] sm:$0xff]   ;;  %v6471_v20 = vld [vmem:[%s8621_s6 + $0x30] sm:$0xff]   ;;  %42 = vst [vmem:[#allocation2] sm:$0xf] %v41_v16 }
   0x9   :  { %5395 = vmatprep.subr.bf16.mxu0 %v5540_v5  ;;  %44 = vst [vmem:[#allocation2 + $0x4] sm:$0xf] %v43_v17  ;;  %v4565_v21 = vunpack.c.l.bf16 %v4564_v18  ;;  %v4566_v22 = vunpack.c.h.bf16 %v4564_v18  ;;  %v6476_v23 = vld [vmem:[%s8616_s1] ss:$0 sm:$0xff]  ;;  %v45_v25 = vld [vmem:[%s8618_s3 + $0x10] sm:$0xf] }
   0xa   :  { %v6481_v24 = vld [vmem:[%s8617_s2] ss:$0 sm:$0xff]  ;;  %v47_v26 = vld [vmem:[%s8618_s3 + $0x18] sm:$0xf]  ;;  %46 = vst [vmem:[#allocation2 + $0x8] sm:$0xf] %v45_v25 }
   0xb   :  { %5316 = vmatpush3.bf16.msra.mxu1 %v5539_v4  ;;  %v763_v27 = vmul.f32 %v4565_v21, %v6476_v23  ;;  %v764_v28 = vmul.f32 %v4566_v22, %v6476_v23  ;;  %48 = vst [vmem:[#allocation2 + $0xc] sm:$0xf] %v47_v26  ;;  %v5107_v29 = vld [vmem:[%s8615_s0 + $0x8] sm:$0xff]   ;;  %v4161_v30 = vld [vmem:[%s8622_s7 + $0x24] sm:$0xf]  ;;  %v6503_v32 = vld [vmem:[%s8625_s10 + $0x38] sm:$0xff]  }
   0xc   :  { %5396 = vmatpush3.bf16.msra.mxu0 %v5540_v5  ;;  %5317 = vmatprep.subr.bf16.mxu1 %v5541_v6  ;;  %v4162_v31 = vld [vmem:[%s8622_s7 + $0x2c] sm:$0xf]  ;;  %v6508_v33 = vld [vmem:[%s8623_s8] ss:$0 sm:$0xff]  ;;  %v4569_v34 = vunpack.c.l.bf16 %v5107_v29  ;;  %v4570_v35 = vunpack.c.h.bf16 %v5107_v29  ;;  %350 = vst [vmem:[#allocation3 + $0x10] sm:$0xf] %v4161_v30 }
   0xd   :  { %5397 = vmatprep.subr.bf16.mxu0 %v5542_v7  ;;  %352 = vst [vmem:[#allocation3 + $0x14] sm:$0xf] %v4162_v31  ;;  %v4163_v36 = vld [vmem:[%s8622_s7 + $0x34] sm:$0xf]  ;;  %v4164_v37 = vld [vmem:[%s8622_s7 + $0x3c] sm:$0xf]  ;;  %v6520_v39 = vadd.f32 %v6481_v24, %v763_v27  ;;  %v6523_v40 = vadd.f32 %v6481_v24, %v764_v28 }
   0xe   :  { %v49_v38 = vld [vmem:[%s8618_s3 + $0x20] sm:$0xf]  ;;  %354 = vst [vmem:[#allocation3 + $0x18] sm:$0xf] %v4163_v36  ;;  %356 = vst [vmem:[#allocation3 + $0x1c] sm:$0xf] %v4164_v37  ;;  %v765_v47 = vmul.f32 %v4569_v34, %v6476_v23  ;;  %v766_v48 = vmul.f32 %v4570_v35, %v6476_v23 }
   0xf   :  { %5318 = vmatpush3.bf16.msra.mxu1 %v5541_v6  ;;  %50 = vst [vmem:[#allocation2 + $0x10] sm:$0xf] %v49_v38  ;;  %v51_v41 = vld [vmem:[%s8618_s3 + $0x28] sm:$0xf]  ;;  %v6531_v42 = vld [vmem:[%s8615_s0 + $0x10] sm:$0xff]   ;;  %v4820_v44 = vld [vmem:[#allocation3] sm:$0xff]  }
  0x10   :  { %5398 = vmatpush3.bf16.msra.mxu0 %v5542_v7  ;;  %5319 = vmatprep.subr.bf16.mxu1 %v5543_v8  ;;  %v53_v43 = vld [vmem:[%s8618_s3 + $0x30] sm:$0xf]  ;;  %v6540_v45 = vld [vmem:[%s8624_s9] ss:$0 sm:$0xff]  ;;  %52 = vst [vmem:[#allocation2 + $0x14] sm:$0xf] %v51_v41  ;;  %v4573_v49 = vunpack.c.l.bf16 %v6531_v42  ;;  %v4574_v50 = vunpack.c.h.bf16 %v6531_v42  ;;  %v4821_v53 = vunpack.c.l.bf16 %v4820_v44  ;;  %v4822_v54 = vunpack.c.h.bf16 %v4820_v44 }
  0x11   :  { %5399 = vmatprep.subr.bf16.mxu0 %v5544_v9  ;;  %v6545_v46 = vld [vmem:[%s8619_s4] ss:$0 sm:$0xff]  ;;  %54 = vst [vmem:[#allocation2 + $0x18] sm:$0xf] %v53_v43  ;;  %v55_v51 = vld [vmem:[%s8618_s3 + $0x38] sm:$0xf]  ;;  %v6561_v61 = vadd.f32 %v6481_v24, %v765_v47  ;;  %v6564_v62 = vadd.f32 %v6481_v24, %v766_v48 }
  0x12   :  { %v5550_v52 = vld [vmem:[%s8621_s6 + $0x38] sm:$0xff]   ;;  %v5169_v55 = vld [vmem:[#allocation3 + $0x8] sm:$0xff]   ;;  %v4223_v56 = vmul.f32 -1.442695, %v6520_v39  ;;  %v4224_v57 = vmul.f32 -1.442695, %v6523_v40  ;;  %v2311_v1 = vmul.f32 %v4821_v53, %v6508_v33  ;;  %v2312_v2 = vmul.f32 %v4822_v54, %v6508_v33 }
  0x13   :  { %5320 = vmatpush3.bf16.msra.mxu1 %v5543_v8  ;;  %56 = vst [vmem:[#allocation2 + $0x1c] sm:$0xf] %v55_v51  ;;  %v4825_v58 = vunpack.c.l.bf16 %v5169_v55  ;;  %v4826_v59 = vunpack.c.h.bf16 %v5169_v55  ;;  %v4692_v60 = vld [vmem:[#allocation2] sm:$0xff]   ;;  %v4166_v0 = vld [vmem:[%s8622_s7 + $0x4c] sm:$0xf] }
  0x14   :  { %5400 = vmatpush3.bf16.msra.mxu0 %v5544_v9  ;;  %5321 = vmatprep.subr.bf16.mxu1 %v5545_v10  ;;  %v4165_v63 = vld [vmem:[%s8622_s7 + $0x44] sm:$0xf]  ;;  %5551 = vpow2.f32 %v4223_v56  ;;  %v4693_v3 = vunpack.c.l.bf16 %v4692_v60  ;;  %360 = vst [vmem:[#allocation3 + $0x24] sm:$0xf] %v4166_v0  ;;  %v4167_v4 = vld [vmem:[%s8622_s7 + $0x54] sm:$0xf]  ;;  %v4694_v9 = vunpack.c.h.bf16 %v4692_v60  ;;  %v6603_v14 = vadd.f32 %v6540_v45, %v2312_v2 }
  0x15   :  { %5401 = vmatprep.subr.bf16.mxu0 %v5546_v13  ;;  %358 = vst [vmem:[#allocation3 + $0x20] sm:$0xf] %v4165_v63  ;;  %v4168_v5 = vld [vmem:[%s8622_s7 + $0x5c] sm:$0xf]  ;;  %v57_v6 = vld [vmem:[%s8618_s3 + $0x40] sm:$0xf]  ;;  %v2313_v7 = vmul.f32 %v4825_v58, %v6508_v33  ;;  %v2314_v8 = vmul.f32 %v4826_v59, %v6508_v33  ;;  %5553 = vpow2.f32 %v4224_v57 }
  0x16   :  { %362 = vst [vmem:[#allocation3 + $0x28] sm:$0xf] %v4167_v4  ;;  %364 = vst [vmem:[#allocation3 + $0x2c] sm:$0xf] %v4168_v5  ;;  %v59_v11 = vld [vmem:[%s8618_s3 + $0x48] sm:$0xf]  ;;  %v1481_v15 = vmul.f32 %v4693_v3, %v6545_v46 }
  0x17   :  { %5322 = vmatpush3.bf16.msra.mxu1 %v5545_v10  ;;  %v6591_v10 = vld [vmem:[%s8620_s5] ss:$0 sm:$0xff]  ;;  %58 = vst [vmem:[#allocation2 + $0x20] sm:$0xf] %v57_v6  ;;  %v61_v12 = vld [vmem:[%s8618_s3 + $0x50] sm:$0xf]  ;;  %v6611_v18 = vadd.f32 %v6540_v45, %v2313_v7 }
  0x18   :  { %5402 = vmatpush3.bf16.msra.mxu0 %v5546_v13  ;;  %5323 = vmatprep.subr.bf16.mxu1 %v6466_v19  ;;  %v6600_v13 = vadd.f32 %v6540_v45, %v2311_v1  ;;  %v4225_v16 = vmul.f32 -1.442695, %v6561_v61  ;;  %60 = vst [vmem:[#allocation2 + $0x24] sm:$0xf] %v59_v11  ;;  %62 = vst [vmem:[#allocation2 + $0x28] sm:$0xf] %v61_v12  ;;  %v6625_v28 = vadd.f32 %v6591_v10, %v1481_v15 }
  0x19   :  { %5403 = vmatprep.subr.bf16.mxu0 %v6471_v20  ;;  %v63_v17 = vld [vmem:[%s8618_s3 + $0x58] sm:$0xf]  ;;  %v4226_v21 = vmul.f32 -1.442695, %v6564_v62  ;;  %v5138_v22 = vld [vmem:[#allocation2 + $0x8] sm:$0xff]   ;;  %v5170_v29 = vld [vmem:[#allocation3 + $0x10] sm:$0xff]  }
  0x1a   :  { %64 = vst [vmem:[#allocation2 + $0x2c] sm:$0xf] %v63_v17  ;;  %v4169_v25 = vld [vmem:[%s8622_s7 + $0x64] sm:$0xf]  ;;  %v4355_v26 = vmul.f32 -1.442695, %v6600_v13  ;;  %5555 = vpow2.f32 %v4225_v16  ;;  %v4697_v36 = vunpack.c.l.bf16 %v5138_v22  ;;  %v4698_v37 = vunpack.c.h.bf16 %v5138_v22 }
  0x1b   :  { %5324 = vmatpush3.bf16.msra.mxu1 %v6466_v19  ;;  %v6614_v19 = vadd.f32 %v6540_v45, %v2314_v8  ;;  %v4356_v27 = vmul.f32 -1.442695, %v6603_v14  ;;  %366 = vst [vmem:[#allocation3 + $0x30] sm:$0xf] %v4169_v25  ;;  %v4357_v30 = vmul.f32 -1.442695, %v6611_v18  ;;  %5557 = vpow2.f32 %v4226_v21 }
  0x1c   :  { %5404 = vmatpush3.bf16.msra.mxu0 %v6471_v20  ;;  %5325 = vmatprep.subr.bf16.mxu1 %v6503_v32  ;;  %v1482_v20 = vmul.f32 %v4694_v9, %v6545_v46  ;;  %5559 = vpow2.f32 %v4355_v26  ;;  %v4289_v35 = vmul.f32 -1.442695, %v6625_v28  ;;  %v4170_v38 = vld [vmem:[%s8622_s7 + $0x6c] sm:$0xf]  ;;  %v4171_v41 = vld [vmem:[%s8622_s7 + $0x74] sm:$0xf]  ;;  %v4829_v44 = vunpack.c.l.bf16 %v5170_v29 }
  0x1d   :  { %5405 = vmatprep.subr.bf16.mxu0 %v5550_v52  ;;  %v4358_v31 = vmul.f32 -1.442695, %v6614_v19  ;;  %5561 = vpow2.f32 %v4356_v27  ;;  %v4830_v47 = vunpack.c.h.bf16 %v5170_v29  ;;  %368 = vst [vmem:[#allocation3 + $0x34] sm:$0xf] %v4170_v38  ;;  %370 = vst [vmem:[#allocation3 + $0x38] sm:$0xf] %v4171_v41  ;;  %v1483_v51 = vmul.f32 %v4697_v36, %v6545_v46 }
  0x1e   :  { %v6630_v34 = vadd.f32 %v6591_v10, %v1482_v20  ;;  %v4172_v48 = vld [vmem:[%s8622_s7 + $0x7c] sm:$0xf]  ;;  %5563 = vpow2.f32 %v4357_v30  ;;  %v65_v54 = vld [vmem:[%s8618_s3 + $0x60] sm:$0xf]  ;;  %v67_v55 = vld [vmem:[%s8618_s3 + $0x68] sm:$0xf]  ;;  %v2315_v56 = vmul.f32 %v4829_v44, %v6508_v33  ;;  %v5552_v63 = vpop.eup %5551  ;;  %v767_v30 = vmul.f32 %v4573_v49, %v6476_v23 }
  0x1f   :  { %5326 = vmatpush3.bf16.msra.mxu1 %v6503_v32  ;;  %v5171_v32 = vld [vmem:[#allocation3 + $0x18] sm:$0xff]   ;;  %372 = vst [vmem:[#allocation3 + $0x3c] sm:$0xf] %v4172_v48  ;;  %5565 = vpow2.f32 %v4358_v31  ;;  %v2316_v57 = vmul.f32 %v4830_v47, %v6508_v33  ;;  %66 = vst [vmem:[#allocation2 + $0x30] sm:$0xf] %v65_v54  ;;  %v6660_v0 = vadd.f32 %v6591_v10, %v1483_v51  ;;  %v5554_v5 = vpop.eup %5553  ;;  %v1090_v6 = vadd.f32 1.0, %v5552_v63 }
  0x20   :  { %5406 = vmatpush3.bf16.msra.mxu0 %v5550_v52  ;;  %v4290_v43 = vmul.f32 -1.442695, %v6630_v34  ;;  %v1484_v52 = vmul.f32 %v4698_v37, %v6545_v46  ;;  %v4833_v53 = vunpack.c.l.bf16 %v5171_v32  ;;  %v4834_v58 = vunpack.c.h.bf16 %v5171_v32  ;;  %68 = vst [vmem:[#allocation2 + $0x34] sm:$0xf] %v67_v55  ;;  %v69_v59 = vld [vmem:[%s8618_s3 + $0x70] sm:$0xf] }
  0x21   :  { %v71_v60 = vld [vmem:[%s8618_s3 + $0x78] sm:$0xf]  ;;  %5567 = vpow2.f32 %v4289_v35  ;;  %70 = vst [vmem:[#allocation2 + $0x38] sm:$0xf] %v69_v59  ;;  %v4173_v3 = vld [vmem:[%s8622_s7 + $0x84] sm:$0xf]  ;;  %v6673_v7 = vadd.f32 %v6540_v45, %v2315_v56  ;;  %v6676_v8 = vadd.f32 %v6540_v45, %v2316_v57  ;;  %v768_v31 = vmul.f32 %v4574_v50, %v6476_v23 }
  0x22   :  { %v6663_v1 = vadd.f32 %v6591_v10, %v1484_v52  ;;  %v2317_v2 = vmul.f32 %v4833_v53, %v6508_v33  ;;  %72 = vst [vmem:[#allocation2 + $0x3c] sm:$0xf] %v71_v60  ;;  %v4174_v4 = vld [vmem:[%s8622_s7 + $0x8c] sm:$0xf]  ;;  %5569 = vpow2.f32 %v4290_v43  ;;  %374 = vst [vmem:[#allocation3 + $0x40] sm:$0xf] %v4173_v3  ;;  %v2318_v17 = vmul.f32 %v4834_v58, %v6508_v33 }
  0x23   :  { %376 = vst [vmem:[#allocation3 + $0x44] sm:$0xf] %v4174_v4  ;;  %v4175_v9 = vld [vmem:[%s8622_s7 + $0x94] sm:$0xf]  ;;  %v4176_v11 = vld [vmem:[%s8622_s7 + $0x9c] sm:$0xf]  ;;  %5571 = vrcp.f32 %v1090_v6  ;;  %v6724_v44 = vadd.f32 %v6481_v24, %v767_v30  ;;  %v6730_v52 = vadd.f32 %v6481_v24, %v768_v31 }
  0x24   :  { %v1091_v12 = vadd.f32 1.0, %v5554_v5  ;;  %v4291_v15 = vmul.f32 -1.442695, %v6660_v0  ;;  %v4292_v16 = vmul.f32 -1.442695, %v6663_v1  ;;  %v5139_v20 = vld [vmem:[#allocation2 + $0x10] sm:$0xff]   ;;  %v6694_v25 = vadd.f32 %v6540_v45, %v2317_v2  ;;  %v5556_v27 = vpop.eup %5555 }
  0x25   :  { %378 = vst [vmem:[#allocation3 + $0x48] sm:$0xf] %v4175_v9  ;;  %380 = vst [vmem:[#allocation3 + $0x4c] sm:$0xf] %v4176_v11  ;;  %v6688_v21 = vmul.f32 -1.442695, %v6673_v7  ;;  %v6700_v29 = vadd.f32 %v6540_v45, %v2318_v17  ;;  %v5558_v36 = vpop.eup %5557  ;;  %v4701_v49 = vunpack.c.l.bf16 %v5139_v20  ;;  %v4702_v53 = vunpack.c.h.bf16 %v5139_v20 }
  0x26   :  { %v6691_v22 = vmul.f32 -1.442695, %v6676_v8  ;;  %v73_v26 = vld [vmem:[%s8618_s3 + $0x80] sm:$0xf]  ;;  %5573 = vrcp.f32 %v1091_v12  ;;  %v75_v32 = vld [vmem:[%s8618_s3 + $0x88] sm:$0xf]  ;;  %v5560_v50 = vpop.eup %5559 }
  0x27   :  { %74 = vst [vmem:[#allocation2 + $0x40] sm:$0xf] %v73_v26  ;;  %v77_v35 = vld [vmem:[%s8618_s3 + $0x90] sm:$0xf]  ;;  %v1092_v37 = vadd.f32 1.0, %v5556_v27  ;;  %5575 = vpow2.f32 %v4291_v15  ;;  %v1093_v41 = vadd.f32 1.0, %v5558_v36  ;;  %v5562_v48 = vpop.eup %5561  ;;  %v1485_v60 = vmul.f32 %v4701_v49, %v6545_v46 }
  0x28   :  { %v6715_v38 = vmul.f32 -1.442695, %v6694_v25  ;;  %76 = vst [vmem:[#allocation2 + $0x44] sm:$0xf] %v75_v32  ;;  %78 = vst [vmem:[#allocation2 + $0x48] sm:$0xf] %v77_v35  ;;  %5577 = vpow2.f32 %v4292_v16  ;;  %v5564_v57 = vpop.eup %5563  ;;  %v1486_v5 = vmul.f32 %v4702_v53, %v6545_v46 }
  0x29   :  { %v79_v42 = vld [vmem:[%s8618_s3 + $0x98] sm:$0xf]  ;;  %v6721_v43 = vmul.f32 -1.442695, %v6700_v29  ;;  %v4177_v47 = vld [vmem:[%s8622_s7 + $0xa4] sm:$0xf]  ;;  %5579 = vrcp.f32 %v1092_v37  ;;  %v5566_v2 = vpop.eup %5565  ;;  %v6756_v12 = vadd.f32 %v6591_v10, %v1485_v60 }
  0x2a   :  { %80 = vst [vmem:[#allocation2 + $0x4c] sm:$0xf] %v79_v42  ;;  %v2638_v51 = vadd.f32 1.0, %v5560_v50  ;;  %v5109_v54 = vld [vmem:[%s8615_s0 + $0x18] sm:$0xff]   ;;  %382 = vst [vmem:[#allocation3 + $0x50] sm:$0xf] %v4177_v47  ;;  %5581 = vrcp.f32 %v1093_v41  ;;  %v6765_v30 = vadd.f32 %v6591_v10, %v1486_v5 }
  0x2b   :  { %v4178_v55 = vld [vmem:[%s8622_s7 + $0xac] sm:$0xf]  ;;  %v4179_v56 = vld [vmem:[%s8622_s7 + $0xb4] sm:$0xf]  ;;  %v2639_v58 = vadd.f32 1.0, %v5562_v48  ;;  %v2640_v3 = vadd.f32 1.0, %v5564_v57  ;;  %v5568_v9 = vpop.eup %5567  ;;  %v4577_v15 = vunpack.c.l.bf16 %v5109_v54  ;;  %v4578_v31 = vunpack.c.h.bf16 %v5109_v54 }
  0x2c   :  { %v6742_v59 = vmul.f32 -1.442695, %v6724_v44  ;;  %384 = vst [vmem:[#allocation3 + $0x54] sm:$0xf] %v4178_v55  ;;  %386 = vst [vmem:[#allocation3 + $0x58] sm:$0xf] %v4179_v56  ;;  %5583 = vrcp.f32 %v2638_v51  ;;  %v5570_v26 = vpop.eup %5569 }
  0x2d   :  { %v4180_v63 = vld [vmem:[%s8622_s7 + $0xbc] sm:$0xf]  ;;  %v6749_v4 = vmul.f32 -1.442695, %v6730_v52  ;;  %v81_v6 = vld [vmem:[%s8618_s3 + $0xa0] sm:$0xf]  ;;  %5585 = vrcp.f32 %v2639_v58  ;;  %v769_v49 = vmul.f32 %v4577_v15, %v6476_v23  ;;  %v5572_v50 = vpop.eup %5571  ;;  %v770_v47 = vmul.f32 %v4578_v31, %v6476_v23 }
  0x2e   :  { %388 = vst [vmem:[#allocation3 + $0x5c] sm:$0xf] %v4180_v63  ;;  %v2641_v11 = vadd.f32 1.0, %v5566_v2  ;;  %v5140_v16 = vld [vmem:[#allocation2 + $0x18] sm:$0xff]   ;;  %82 = vst [vmem:[#allocation2 + $0x50] sm:$0xf] %v81_v6  ;;  %5587 = vrcp.f32 %v2640_v3  ;;  %v6788_v54 = vmul.f32 %v5572_v50, %v6520_v39 }
  0x2f   :  { %v83_v17 = vld [vmem:[%s8618_s3 + $0xa8] sm:$0xf]  ;;  %v85_v20 = vld [vmem:[%s8618_s3 + $0xb0] sm:$0xf]  ;;  %v1808_v27 = vadd.f32 1.0, %v5568_v9  ;;  %v1809_v36 = vadd.f32 1.0, %v5570_v26  ;;  %v4705_v48 = vunpack.c.l.bf16 %v5140_v16  ;;  %v6791_v55 = vadd.f32 %v6481_v24, %v769_v49 }
  0x30   :  { %84 = vst [vmem:[#allocation2 + $0x54] sm:$0xf] %v83_v17  ;;  %86 = vst [vmem:[#allocation2 + $0x58] sm:$0xf] %v85_v20  ;;  %v87_v32 = vld [vmem:[%s8618_s3 + $0xb8] sm:$0xf]  ;;  %5589 = vrcp.f32 %v2641_v11  ;;  %v5574_v53 = vpop.eup %5573  ;;  %v4706_v56 = vunpack.c.h.bf16 %v5140_v16  ;;  %v6807_v2 = vadd.f32 %v6481_v24, %v770_v47 }
  0x31   :  { %v4181_v35 = vld [vmem:[%s8622_s7 + $0xc4] sm:$0xf]  ;;  %v6774_v37 = vmul.f32 -1.442695, %v6756_v12  ;;  %88 = vst [vmem:[#allocation2 + $0x5c] sm:$0xf] %v87_v32  ;;  %5591 = vrcp.f32 %v1808_v27  ;;  %v5576_v39 = vpop.eup %5575  ;;  %v6803_v63 = vmul.f32 %v5574_v53, %v6523_v40  ;;  %v1487_v3 = vmul.f32 %v4705_v48, %v6545_v46 }
  0x32   :  { %390 = vst [vmem:[#allocation3 + $0x60] sm:$0xf] %v4181_v35  ;;  %v4182_v42 = vld [vmem:[%s8622_s7 + $0xcc] sm:$0xf]  ;;  %v6781_v41 = vmul.f32 -1.442695, %v6765_v30  ;;  %5593 = vrcp.f32 %v1809_v36  ;;  %v5578_v9 = vpop.eup %5577  ;;  %v1488_v15 = vmul.f32 %v4706_v56, %v6545_v46 }
  0x33   :  { %392 = vst [vmem:[#allocation3 + $0x64] sm:$0xf] %v4182_v42  ;;  %v4183_v51 = vld [vmem:[%s8622_s7 + $0xd4] sm:$0xf]  ;;  %v4184_v57 = vld [vmem:[%s8622_s7 + $0xdc] sm:$0xf]  ;;  %5595 = vpow2.f32 %v6688_v21  ;;  %v5580_v16 = vpop.eup %5579  ;;  %v6822_v26 = vadd.f32 %v6591_v10, %v1487_v3 }
  0x34   :  { %394 = vst [vmem:[#allocation3 + $0x68] sm:$0xf] %v4183_v51  ;;  %v89_v58 = vld [vmem:[%s8618_s3 + $0xc0] sm:$0xf]  ;;  %v91_v60 = vld [vmem:[%s8618_s3 + $0xc8] sm:$0xf]  ;;  %5597 = vpow2.f32 %v6691_v22  ;;  %v5582_v27 = vpop.eup %5581  ;;  %v6825_v31 = vmul.f32 %v5580_v16, %v6561_v61  ;;  %v6828_v22 = vadd.f32 %v6591_v10, %v1488_v15 }
  0x35   :  { %v5172_v5 = vld [vmem:[#allocation3 + $0x20] sm:$0xff]   ;;  %396 = vst [vmem:[#allocation3 + $0x6c] sm:$0xf] %v4184_v57  ;;  %90 = vst [vmem:[#allocation2 + $0x60] sm:$0xf] %v89_v58  ;;  %v1810_v11 = vadd.f32 1.0, %v5576_v39  ;;  %5599 = vpow2.f32 %v6715_v38  ;;  %v6831_v49 = vmul.f32 %v5582_v27, %v6564_v62 }
  0x36   :  { %92 = vst [vmem:[#allocation2 + $0x64] sm:$0xf] %v91_v60  ;;  %v93_v6 = vld [vmem:[%s8618_s3 + $0xd0] sm:$0xf]  ;;  %v95_v40 = vld [vmem:[%s8618_s3 + $0xd8] sm:$0xf]  ;;  %v4837_v32 = vunpack.c.l.bf16 %v5172_v5  ;;  %v5584_v36 = vpop.eup %5583  ;;  %v4838_v42 = vunpack.c.h.bf16 %v5172_v5 }
  0x37   :  { %v4229_v21 = vmul.f32 -1.442695, %v6791_v55  ;;  %94 = vst [vmem:[#allocation2 + $0x68] sm:$0xf] %v93_v6  ;;  %96 = vst [vmem:[#allocation2 + $0x6c] sm:$0xf] %v95_v40  ;;  %5601 = vrcp.f32 %v1810_v11  ;;  %v5586_v50 = vpop.eup %5585  ;;  %v2830_v47 = vmul.f32 %v5584_v36, %v6600_v13 }
  0x38   :  { %v1811_v17 = vadd.f32 1.0, %v5578_v9  ;;  %v4230_v20 = vmul.f32 -1.442695, %v6807_v2  ;;  %v5173_v35 = vld [vmem:[#allocation3 + $0x28] sm:$0xff]   ;;  %v4295_v38 = vmul.f32 -1.442695, %v6822_v26  ;;  %v2319_v48 = vmul.f32 %v4837_v32, %v6508_v33  ;;  %v5588_v51 = vpop.eup %5587 }
  0x39   :  { %v6837_v61 = vmul.f32 -1.442695, %v6828_v22  ;;  %v2831_v53 = vmul.f32 %v5586_v50, %v6603_v14  ;;  %v2320_v62 = vmul.f32 %v4838_v42, %v6508_v33  ;;  %v4841_v56 = vunpack.c.l.bf16 %v5173_v35  ;;  %v4187_v40 = vld [vmem:[%s8622_s7 + $0xf4] sm:$0xf]  ;;  %v4188_v9 = vld [vmem:[%s8622_s7 + $0xfc] sm:$0xf] }
  0x3a   :  { %5603 = vrcp.f32 %v1811_v17  ;;  %v5590_v57 = vpop.eup %5589  ;;  %v2832_v58 = vmul.f32 %v5588_v51, %v6611_v18  ;;  %v6846_v13 = vadd.f32 %v6540_v45, %v2319_v48  ;;  %v4185_v18 = vld [vmem:[%s8622_s7 + $0xe4] sm:$0xf]  ;;  %402 = vst [vmem:[#allocation3 + $0x78] sm:$0xf] %v4187_v40  ;;  %404 = vst [vmem:[#allocation3 + $0x7c] sm:$0xf] %v4188_v9 }
  0x3b   :  { %5605 = vpow2.f32 %v6721_v43  ;;  %v4842_v43 = vunpack.c.h.bf16 %v5173_v35  ;;  %v5592_v60 = vpop.eup %5591  ;;  %v2894_v39 = vpack.c.bf16 %v2831_v53, %v2830_v47  ;;  %v2833_v3 = vmul.f32 %v5590_v57, %v6614_v19  ;;  %398 = vst [vmem:[#allocation3 + $0x70] sm:$0xf] %v4185_v18  ;;  %v97_v16 = vld [vmem:[%s8618_s3 + $0xe0] sm:$0xf]  ;;  %v99_v17 = vld [vmem:[%s8618_s3 + $0xe8] sm:$0xf] }
  0x3c   :  { %5607 = vpow2.f32 %v6742_v59  ;;  %v6851_v14 = vadd.f32 %v6540_v45, %v2320_v62  ;;  %v5110_v59 = vld [vmem:[%s8615_s0 + $0x20] sm:$0xff]   ;;  %v5594_v5 = vpop.eup %5593  ;;  %v2000_v19 = vmul.f32 %v5592_v60, %v6625_v28  ;;  %v2321_v6 = vmul.f32 %v4841_v56, %v6508_v33  ;;  %98 = vst [vmem:[#allocation2 + $0x70] sm:$0xf] %v97_v16  ;;  %100 = vst [vmem:[#allocation2 + $0x74] sm:$0xf] %v99_v17 }
  0x3d   :  { %5609 = vpow2.f32 %v6749_v4  ;;  %v4186_v4 = vld [vmem:[%s8622_s7 + $0xec] sm:$0xf]  ;;  %v5596_v11 = vpop.eup %5595  ;;  %5327 = vmatprep.mubr.bf16.mxu1 %v2894_v39  ;;  %v2895_v15 = vpack.c.bf16 %v2833_v3, %v2832_v58  ;;  %v2001_v28 = vmul.f32 %v5594_v5, %v6630_v34  ;;  %v2322_v34 = vmul.f32 %v4842_v43, %v6508_v33  ;;  %v5141_v43 = vld [vmem:[#allocation2 + $0x20] sm:$0xff]   ;;  %v101_v17 = vld [vmem:[%s8618_s3 + $0xf0] sm:$0xf] }
  0x3e   :  { %5611 = vpow2.f32 %v6774_v37  ;;  %v4363_v37 = vmul.f32 -1.442695, %v6846_v13  ;;  %400 = vst [vmem:[#allocation3 + $0x74] sm:$0xf] %v4186_v4  ;;  %v5598_v27 = vpop.eup %5597  ;;  %v2064_v32 = vadd.f32 %v2000_v19, %v6788_v54  ;;  %v2642_v35 = vadd.f32 1.0, %v5596_v11 }
  0x3f   :  { %5613 = vpow2.f32 %v6781_v41  ;;  %v6874_v41 = vmul.f32 -1.442695, %v6851_v14  ;;  %5328 = vmatmul.mubr.bf16.vlgmr.msra.gmra.mrb[0].mxu1 %v2895_v15  ;;  %v2065_v36 = vadd.f32 %v2001_v28, %v6803_v63  ;;  %v2643_v42 = vadd.f32 1.0, %v5598_v27  ;;  %102 = vst [vmem:[#allocation2 + $0x78] sm:$0xf] %v101_v17 }
  0x40   :  { %5615 = vpow2.f32 %v4229_v21  ;;  %v5600_v21 = vpop.eup %5599  ;;  %v6886_v50 = vadd.f32 %v6540_v45, %v2321_v6  ;;  %v6889_v54 = vadd.f32 %v6540_v45, %v2322_v34  ;;  %v4582_v58 = vunpack.c.h.bf16 %v5110_v59 }
  0x41   :  { %5617 = vpow2.f32 %v4230_v20  ;;  %v5602_v47 = vpop.eup %5601  ;;  %v2644_v48 = vadd.f32 1.0, %v5600_v21  ;;  %v4581_v20 = vunpack.c.l.bf16 %v5110_v59  ;;  %v2128_v53 = vpack.c.bf16 %v2065_v36, %v2064_v32  ;;  %v103_v21 = vld [vmem:[%s8618_s3 + $0xf8] sm:$0xf] }
  0x42   :  { %5619 = vpow2.f32 %v4295_v38  ;;  %v2002_v62 = vmul.f32 %v5602_v47, %v6660_v0  ;;  %v6893_v56 = vmul.f32 -1.442695, %v6886_v50  ;;  %v6897_v57 = vmul.f32 -1.442695, %v6889_v54  ;;  %104 = vst [vmem:[#allocation2 + $0x7c] sm:$0xf] %v103_v21 }
  0x43   :  { %5621 = vrcp.f32 %v2642_v35  ;;  %5407 = vmatprep.mubr.bf16.mxu0 %v2128_v53  ;;  %v771_v0 = vmul.f32 %v4581_v20, %v6476_v23  ;;  %v4709_v40 = vunpack.c.l.bf16 %v5141_v43  ;;  %v4710_v16 = vunpack.c.h.bf16 %v5141_v43 }
  0x44   :  { %v5604_v51 = vpop.eup %5603  ;;  %5623 = vrcp.f32 %v2643_v42  ;;  %v2066_v39 = vadd.f32 %v2002_v62, %v6825_v31 }
  0x45   :  { %v5606_v63 = vpop.eup %5605  ;;  %v2003_v38 = vmul.f32 %v5604_v51, %v6663_v1  ;;  %5625 = vrcp.f32 %v2644_v48  ;;  %v772_v1 = vmul.f32 %v4582_v58, %v6476_v23  ;;  %v6905_v6 = vadd.f32 %v6481_v24, %v771_v0 }
  0x46   :  { %v5608_v60 = vpop.eup %5607  ;;  %v2645_v3 = vadd.f32 1.0, %v5606_v63  ;;  %5627 = vpow2.f32 %v6837_v61  ;;  %v1489_v34 = vmul.f32 %v4709_v40, %v6545_v46  ;;  %v1490_v47 = vmul.f32 %v4710_v16, %v6545_v46 }
  0x47   :  { %v5610_v18 = vpop.eup %5609  ;;  %v2067_v4 = vadd.f32 %v2003_v38, %v6831_v49  ;;  %v1094_v5 = vadd.f32 1.0, %v5608_v60  ;;  %5629 = vpow2.f32 %v4363_v37  ;;  %v6908_v11 = vadd.f32 %v6481_v24, %v772_v1  ;;  %v5111_v49 = vld [vmem:[%s8615_s0 + $0x28] sm:$0xff]  }
  0x48   :  { %v5612_v19 = vpop.eup %5611  ;;  %5631 = vrcp.f32 %v2645_v3  ;;  %v1095_v59 = vadd.f32 1.0, %v5610_v18  ;;  %v6914_v28 = vmul.f32 -1.442695, %v6905_v6  ;;  %v4585_v48 = vunpack.c.l.bf16 %v5111_v49  ;;  %v5142_v18 = vld [vmem:[#allocation2 + $0x28] sm:$0xff]  }
  0x49   :  { %v5614_v31 = vpop.eup %5613  ;;  %v2129_v9 = vpack.c.bf16 %v2067_v4, %v2066_v39  ;;  %5633 = vrcp.f32 %v1094_v5  ;;  %v1812_v61 = vadd.f32 1.0, %v5612_v19  ;;  %v4232_v35 = vmul.f32 -1.442695, %v6908_v11 }
  0x4a   :  { %v5616_v37 = vpop.eup %5615  ;;  %5635 = vrcp.f32 %v1095_v59  ;;  %v1813_v15 = vadd.f32 1.0, %v5614_v31  ;;  %v6926_v53 = vadd.f32 %v6591_v10, %v1489_v34  ;;  %v4586_v62 = vunpack.c.h.bf16 %v5111_v49 }
  0x4b   :  { %v5618_v27 = vpop.eup %5617  ;;  %5408 = vmatmul.mubr.bf16.vlgmr.msra.gmra.mrb[0].mxu0 %v2129_v9  ;;  %5637 = vrcp.f32 %v1812_v61  ;;  %v1096_v32 = vadd.f32 1.0, %v5616_v37  ;;  %v6930_v58 = vadd.f32 %v6591_v10, %v1490_v47  ;;  %v773_v43 = vmul.f32 %v4585_v48, %v6476_v23 }
  0x4c   :  { %v5620_v36 = vpop.eup %5619  ;;  %5639 = vrcp.f32 %v1813_v15  ;;  %v1097_v42 = vadd.f32 1.0, %v5618_v27  ;;  %v4297_v3 = vmul.f32 -1.442695, %v6926_v53  ;;  %v774_v0 = vmul.f32 %v4586_v62, %v6476_v23  ;;  %v5174_v23 = vld [vmem:[#allocation3 + $0x30] sm:$0xff]  }
  0x4d   :  { %v5622_v20 = vpop.eup %5621  ;;  %5641 = vrcp.f32 %v1096_v32  ;;  %v1814_v51 = vadd.f32 1.0, %v5620_v36  ;;  %v6940_v1 = vadd.f32 %v6481_v24, %v773_v43  ;;  %v4714_v15 = vunpack.c.h.bf16 %v5142_v18  ;;  %v4191_v62 = vld [vmem:[%s8622_s7 + $0x114] sm:$0xf] }
  0x4e   :  { %v5624_v63 = vpop.eup %5623  ;;  %v2834_v38 = vmul.f32 %v5622_v20, %v6673_v7  ;;  %5643 = vrcp.f32 %v1097_v42  ;;  %v4298_v7 = vmul.f32 -1.442695, %v6930_v58  ;;  %v4845_v17 = vunpack.c.l.bf16 %v5174_v23  ;;  %410 = vst [vmem:[#allocation3 + $0x88] sm:$0xf] %v4191_v62  ;;  %v111_v62 = vld [vmem:[%s8618_s3 + $0x118] sm:$0xf] }
  0x4f   :  { %v5626_v60 = vpop.eup %5625  ;;  %v2835_v39 = vmul.f32 %v5624_v63, %v6676_v8  ;;  %5645 = vrcp.f32 %v1814_v51  ;;  %v6944_v8 = vadd.f32 %v6481_v24, %v774_v0  ;;  %v1492_v34 = vmul.f32 %v4714_v15, %v6545_v46  ;;  %v4192_v63 = vld [vmem:[%s8622_s7 + $0x11c] sm:$0xf]  ;;  %112 = vst [vmem:[#allocation2 + $0x8c] sm:$0xf] %v111_v62 }
  0x50   :  { %v5628_v4 = vpop.eup %5627  ;;  %v2836_v5 = vmul.f32 %v5626_v60, %v6694_v25  ;;  %5647 = vpow2.f32 %v6874_v41  ;;  %v4233_v25 = vmul.f32 -1.442695, %v6940_v1  ;;  %v4713_v41 = vunpack.c.l.bf16 %v5142_v18  ;;  %412 = vst [vmem:[#allocation3 + $0x8c] sm:$0xf] %v4192_v63 }
  0x51   :  { %v5630_v19 = vpop.eup %5629  ;;  %v2896_v59 = vpack.c.bf16 %v2835_v39, %v2834_v38  ;;  %v1815_v40 = vadd.f32 1.0, %v5628_v4  ;;  %5649 = vpow2.f32 %v6893_v56  ;;  %v4234_v37 = vmul.f32 -1.442695, %v6944_v8  ;;  %v105_v39 = vld [vmem:[%s8618_s3 + $0x100] sm:$0xf] }
  0x52   :  { %v5632_v31 = vpop.eup %5631  ;;  %v2646_v9 = vadd.f32 1.0, %v5630_v19  ;;  %5651 = vpow2.f32 %v6897_v57  ;;  %v1491_v16 = vmul.f32 %v4713_v41, %v6545_v46  ;;  %v6961_v48 = vadd.f32 %v6591_v10, %v1492_v34  ;;  %v4189_v46 = vld [vmem:[%s8622_s7 + $0x104] sm:$0xf]  ;;  %106 = vst [vmem:[#allocation2 + $0x80] sm:$0xf] %v105_v39 }
  0x53   :  { %v5634_v61 = vpop.eup %5633  ;;  %5331 = vmatprep.mubr.bf16.mxu1 %v2896_v59  ;;  %v2837_v49 = vmul.f32 %v5632_v31, %v6700_v29  ;;  %5653 = vrcp.f32 %v1815_v40  ;;  %406 = vst [vmem:[#allocation3 + $0x80] sm:$0xf] %v4189_v46 }
  0x54   :  { %v5636_v56 = vpop.eup %5635  ;;  %v1286_v24 = vmul.f32 %v5634_v61, %v6724_v44  ;;  %5655 = vrcp.f32 %v2646_v9  ;;  %v6957_v36 = vadd.f32 %v6591_v10, %v1491_v16  ;;  %v4846_v44 = vunpack.c.h.bf16 %v5174_v23 }
  0x55   :  { %v5638_v27 = vpop.eup %5637  ;;  %v2897_v57 = vpack.c.bf16 %v2837_v49, %v2836_v5  ;;  %v1287_v32 = vmul.f32 %v5636_v56, %v6730_v52  ;;  %5657 = vpow2.f32 %v6914_v28  ;;  %v2323_v52 = vmul.f32 %v4845_v17, %v6508_v33  ;;  %v5175_v28 = vld [vmem:[#allocation3 + $0x38] sm:$0xff]  }
  0x56   :  { %v5640_v29 = vpop.eup %5639  ;;  %v2004_v21 = vmul.f32 %v5638_v27, %v6756_v12  ;;  %5659 = vpow2.f32 %v4232_v35  ;;  %v4190_v12 = vld [vmem:[%s8622_s7 + $0x10c] sm:$0xf]  ;;  %v2324_v4 = vmul.f32 %v4846_v44, %v6508_v33  ;;  %v4849_v59 = vunpack.c.l.bf16 %v5175_v28 }
  0x57   :  { %v5642_v42 = vpop.eup %5641  ;;  %5332 = vmatmul.mubr.bf16.gmra.mrb[4].mxu1 %v2897_v57  ;;  %v2005_v47 = vmul.f32 %v5640_v29, %v6765_v30  ;;  %5661 = vpow2.f32 %v4297_v3  ;;  %v4299_v30 = vmul.f32 -1.442695, %v6957_v36  ;;  %408 = vst [vmem:[#allocation3 + $0x84] sm:$0xf] %v4190_v12  ;;  %v107_v3 = vld [vmem:[%s8618_s3 + $0x108] sm:$0xf]  ;;  %v4850_v49 = vunpack.c.h.bf16 %v5175_v28 }
  0x58   :  { %v5644_v35 = vpop.eup %5643  ;;  %v2068_v20 = vadd.f32 %v2004_v21, %v1286_v24  ;;  %v1288_v51 = vmul.f32 %v5642_v42, %v6791_v55  ;;  %5663 = vpow2.f32 %v4298_v7  ;;  %v4300_v55 = vmul.f32 -1.442695, %v6961_v48  ;;  %108 = vst [vmem:[#allocation2 + $0x84] sm:$0xf] %v107_v3  ;;  %v109_v12 = vld [vmem:[%s8618_s3 + $0x110] sm:$0xf] }
  0x59   :  { %v5646_v38 = vpop.eup %5645  ;;  %v2069_v43 = vadd.f32 %v2005_v47, %v1287_v32  ;;  %v1289_v60 = vmul.f32 %v5644_v35, %v6807_v2  ;;  %5665 = vpow2.f32 %v4233_v25  ;;  %v6989_v2 = vadd.f32 %v6540_v45, %v2323_v52  ;;  %110 = vst [vmem:[#allocation2 + $0x88] sm:$0xf] %v109_v12  ;;  %v7029_v3 = vld [vmem:[%s8617_s2] ss:$0 sm:$0xff] }
  0x5a   :  { %v5648_v0 = vpop.eup %5647  ;;  %v2006_v18 = vmul.f32 %v5646_v38, %v6822_v26  ;;  %5667 = vpow2.f32 %v4234_v37  ;;  %v6992_v9 = vadd.f32 %v6540_v45, %v2324_v4  ;;  %v5112_v26 = vld [vmem:[%s8615_s0 + $0x30] sm:$0xff]   ;;  %v2325_v24 = vmul.f32 %v4849_v59, %v6508_v33 }
  0x5b   :  { %v5650_v5 = vpop.eup %5649  ;;  %v2130_v7 = vpack.c.bf16 %v2069_v43, %v2068_v20  ;;  %v2647_v19 = vadd.f32 1.0, %v5648_v0  ;;  %5669 = vpow2.f32 %v4299_v30  ;;  %v4367_v61 = vmul.f32 -1.442695, %v6989_v2 }
  0x5c   :  { %v5652_v40 = vpop.eup %5651  ;;  %v2070_v23 = vadd.f32 %v2006_v18, %v1288_v51  ;;  %v2648_v31 = vadd.f32 1.0, %v5650_v5  ;;  %5671 = vpow2.f32 %v4300_v55  ;;  %v4368_v56 = vmul.f32 -1.442695, %v6992_v9 }
  0x5d   :  { %v5654_v25 = vpop.eup %5653  ;;  %5411 = vmatprep.mubr.bf16.mxu0 %v2130_v7  ;;  %5673 = vrcp.f32 %v2647_v19  ;;  %v2649_v41 = vadd.f32 1.0, %v5652_v40  ;;  %v2326_v27 = vmul.f32 %v4850_v49, %v6508_v33  ;;  %v4589_v57 = vunpack.c.l.bf16 %v5112_v26  ;;  %v7040_v19 = vld [vmem:[%s8619_s4] ss:$0 sm:$0xff]  ;;  %v5113_v40 = vld [vmem:[%s8615_s0 + $0x38] sm:$0xff]  }
  0x5e   :  { %v5656_v37 = vpop.eup %5655  ;;  %v2007_v15 = vmul.f32 %v5654_v25, %v6828_v22  ;;  %5675 = vrcp.f32 %v2648_v31  ;;  %v7006_v21 = vadd.f32 %v6540_v45, %v2325_v24  ;;  %v4590_v47 = vunpack.c.h.bf16 %v5112_v26 }
  0x5f   :  { %v5658_v16 = vpop.eup %5657  ;;  %v7002_v17 = vmul.f32 %v5656_v37, %v6846_v13  ;;  %5677 = vrcp.f32 %v2649_v41  ;;  %v7009_v42 = vadd.f32 %v6540_v45, %v2326_v27  ;;  %v5143_v13 = vld [vmem:[#allocation2 + $0x30] sm:$0xff]   ;;  %v7019_v45 = vld [vmem:[%s8616_s1] ss:$0 sm:$0xff] }
  0x60   :  { %v5660_v32 = vpop.eup %5659  ;;  %v2071_v34 = vadd.f32 %v2007_v15, %v1289_v60  ;;  %v1098_v29 = vadd.f32 1.0, %v5658_v16  ;;  %5679 = vpow2.f32 %v4367_v61  ;;  %v4369_v46 = vmul.f32 -1.442695, %v7006_v21 }
  0x61   :  { %v5662_v22 = vpop.eup %5661  ;;  %v1099_v44 = vadd.f32 1.0, %v5660_v32  ;;  %5681 = vpow2.f32 %v4368_v56  ;;  %v4370_v51 = vmul.f32 -1.442695, %v7009_v42  ;;  %v775_v30 = vmul.f32 %v7019_v45, %v4589_v57 }
  0x62   :  { %v5664_v52 = vpop.eup %5663  ;;  %v2131_v28 = vpack.c.bf16 %v2071_v34, %v2070_v23  ;;  %5683 = vrcp.f32 %v1098_v29  ;;  %v1816_v33 = vadd.f32 1.0, %v5662_v22  ;;  %v776_v43 = vmul.f32 %v7019_v45, %v4590_v47  ;;  %v5144_v34 = vld [vmem:[#allocation2 + $0x38] sm:$0xff]  }
  0x63   :  { %v5666_v35 = vpop.eup %5665  ;;  %5685 = vrcp.f32 %v1099_v44  ;;  %v1817_v20 = vadd.f32 1.0, %v5664_v52  ;;  %v4717_v60 = vunpack.c.l.bf16 %v5143_v13  ;;  %v7032_v0 = vadd.f32 %v7029_v3, %v775_v30 }
  0x64   :  { %v5668_v63 = vpop.eup %5667  ;;  %5412 = vmatmul.mubr.bf16.gmra.mrb[4].mxu0 %v2131_v28  ;;  %5687 = vrcp.f32 %v1816_v33  ;;  %v1100_v38 = vadd.f32 1.0, %v5666_v35  ;;  %v4718_v18 = vunpack.c.h.bf16 %v5143_v13  ;;  %v7035_v7 = vadd.f32 %v7029_v3, %v776_v43 }
  0x65   :  { %v5670_v55 = vpop.eup %5669  ;;  %5689 = vrcp.f32 %v1817_v20  ;;  %v1101_v39 = vadd.f32 1.0, %v5668_v63  ;;  %v1493_v59 = vmul.f32 %v7040_v19, %v4717_v60  ;;  %v4235_v26 = vmul.f32 -1.442695, %v7032_v0  ;;  %v4193_v63 = vld [vmem:[%s8622_s7 + $0x124] sm:$0xf] }
  0x66   :  { %v5672_v4 = vpop.eup %5671  ;;  %5691 = vrcp.f32 %v1100_v38  ;;  %v1818_v5 = vadd.f32 1.0, %v5670_v55  ;;  %v1494_v25 = vmul.f32 %v7040_v19, %v4718_v18  ;;  %v4236_v49 = vmul.f32 -1.442695, %v7035_v7  ;;  %v5176_v55 = vld [vmem:[#allocation3 + $0x40] sm:$0xff]   ;;  %414 = vst [vmem:[#allocation3 + $0x90] sm:$0xf] %v4193_v63 }
  0x67   :  { %v5674_v23 = vpop.eup %5673  ;;  %5693 = vrcp.f32 %v1101_v39  ;;  %v1819_v31 = vadd.f32 1.0, %v5672_v4  ;;  %v7051_v37 = vadd.f32 %v6591_v10, %v1493_v59  ;;  %v4593_v16 = vunpack.c.l.bf16 %v5113_v40 }
  0x68   :  { %v5676_v41 = vpop.eup %5675  ;;  %v2839_v61 = vmul.f32 %v5674_v23, %v6851_v14  ;;  %5695 = vrcp.f32 %v1818_v5  ;;  %v7055_v24 = vadd.f32 %v6591_v10, %v1494_v25  ;;  %v4721_v33 = vunpack.c.l.bf16 %v5144_v34 }
  0x69   :  { %v5678_v15 = vpop.eup %5677  ;;  %v2840_v56 = vmul.f32 %v5676_v41, %v6886_v50  ;;  %5697 = vrcp.f32 %v1819_v31  ;;  %v4301_v14 = vmul.f32 -1.442695, %v7051_v37  ;;  %v4594_v50 = vunpack.c.h.bf16 %v5113_v40 }
  0x6a   :  { %v5680_v27 = vpop.eup %5679  ;;  %v2898_v57 = vpack.c.bf16 %v2839_v61, %v7002_v17  ;;  %v2841_v32 = vmul.f32 %v5678_v15, %v6889_v54  ;;  %5699 = vpow2.f32 %v4369_v46  ;;  %v4302_v44 = vmul.f32 -1.442695, %v7055_v24  ;;  %v4196_v61 = vld [vmem:[%s8622_s7 + $0x13c] sm:$0xf] }
  0x6b   :  { %v5682_v29 = vpop.eup %5681  ;;  %v2650_v22 = vadd.f32 1.0, %v5680_v27  ;;  %5701 = vpow2.f32 %v4370_v51  ;;  %v777_v52 = vmul.f32 %v7019_v45, %v4593_v16  ;;  %v778_v28 = vmul.f32 %v7019_v45, %v4594_v50  ;;  %v5177_v27 = vld [vmem:[#allocation3 + $0x48] sm:$0xff]   ;;  %420 = vst [vmem:[#allocation3 + $0x9c] sm:$0xf] %v4196_v61 }
  0x6c   :  { %v5684_v47 = vpop.eup %5683  ;;  %5335 = vmatprep.mubr.bf16.mxu1 %v2898_v57  ;;  %v2899_v10 = vpack.c.bf16 %v2841_v32, %v2840_v56  ;;  %v2651_v13 = vadd.f32 1.0, %v5682_v29  ;;  %5703 = vpow2.f32 %v4235_v26  ;;  %v4722_v20 = vunpack.c.h.bf16 %v5144_v34  ;;  %v7109_v29 = vld [vmem:[%s8623_s8] ss:$0 sm:$0xff] }
  0x6d   :  { %v5686_v17 = vpop.eup %5685  ;;  %v1290_v54 = vmul.f32 %v5684_v47, %v6905_v6  ;;  %5705 = vrcp.f32 %v2650_v22  ;;  %v7066_v35 = vadd.f32 %v7029_v3, %v777_v52  ;;  %v7070_v62 = vadd.f32 %v7029_v3, %v778_v28 }
  0x6e   :  { %v5688_v46 = vpop.eup %5687  ;;  %5336 = vmatmul.mubr.bf16.gmra.mrb[8].mxu1 %v2899_v10  ;;  %v1291_v12 = vmul.f32 %v5686_v17, %v6908_v11  ;;  %5707 = vrcp.f32 %v2651_v13  ;;  %v1495_v6 = vmul.f32 %v7040_v19, %v4721_v33  ;;  %v4194_v11 = vld [vmem:[%s8622_s7 + $0x12c] sm:$0xf]  ;;  %v1496_v60 = vmul.f32 %v7040_v19, %v4722_v20  ;;  %v115_v13 = vld [vmem:[%s8618_s3 + $0x128] sm:$0xf] }
  0x6f   :  { %v5690_v51 = vpop.eup %5689  ;;  %v2008_v30 = vmul.f32 %v5688_v46, %v6926_v53  ;;  %5709 = vpow2.f32 %v4236_v49  ;;  %v4237_v53 = vmul.f32 -1.442695, %v7066_v35  ;;  %416 = vst [vmem:[#allocation3 + $0x94] sm:$0xf] %v4194_v11  ;;  %v4238_v5 = vmul.f32 -1.442695, %v7070_v62 }
  0x70   :  { %v5692_v38 = vpop.eup %5691  ;;  %v2009_v43 = vmul.f32 %v5690_v51, %v6930_v58  ;;  %5711 = vpow2.f32 %v4301_v14  ;;  %v7088_v58 = vld [vmem:[%s8620_s5] ss:$0 sm:$0xff]  ;;  %v4853_v41 = vunpack.c.l.bf16 %v5176_v55  ;;  %v4857_v33 = vunpack.c.l.bf16 %v5177_v27  ;;  %116 = vst [vmem:[#allocation2 + $0x94] sm:$0xf] %v115_v13 }
  0x71   :  { %v5694_v39 = vpop.eup %5693  ;;  %v2072_v18 = vadd.f32 %v2008_v30, %v1290_v54  ;;  %v1292_v4 = vmul.f32 %v5692_v38, %v6940_v1  ;;  %5713 = vpow2.f32 %v4302_v44  ;;  %v7091_v31 = vadd.f32 %v7088_v58, %v1495_v6  ;;  %v7122_v54 = vld [vmem:[%s8624_s9] ss:$0 sm:$0xff] }
  0x72   :  { %v5696_v59 = vpop.eup %5695  ;;  %v2073_v40 = vadd.f32 %v2009_v43, %v1291_v12  ;;  %v1293_v23 = vmul.f32 %v5694_v39, %v6944_v8  ;;  %5715 = vpow2.f32 %v4237_v53  ;;  %v7095_v1 = vadd.f32 %v7088_v58, %v1496_v60  ;;  %v4195_v8 = vld [vmem:[%s8622_s7 + $0x134] sm:$0xf]  ;;  %v5114_v38 = vld [vmem:[%s8615_s0 + $0x40] sm:$0xff]  }
  0x73   :  { %v5698_v26 = vpop.eup %5697  ;;  %v2010_v25 = vmul.f32 %v5696_v59, %v6957_v36  ;;  %5717 = vpow2.f32 %v4238_v5  ;;  %v4303_v16 = vmul.f32 -1.442695, %v7091_v31  ;;  %v4854_v36 = vunpack.c.h.bf16 %v5176_v55  ;;  %418 = vst [vmem:[#allocation3 + $0x98] sm:$0xf] %v4195_v8 }
  0x74   :  { %v5700_v49 = vpop.eup %5699  ;;  %v2132_v15 = vpack.c.bf16 %v2073_v40, %v2072_v18  ;;  %v2011_v56 = vmul.f32 %v5698_v26, %v6961_v48  ;;  %v4304_v34 = vmul.f32 -1.442695, %v7095_v1  ;;  %v2327_v22 = vmul.f32 %v7109_v29, %v4853_v41  ;;  %v113_v48 = vld [vmem:[%s8618_s3 + $0x120] sm:$0xf]  ;;  %v117_v26 = vld [vmem:[%s8618_s3 + $0x130] sm:$0xf] }
  0x75   :  { %v5702_v57 = vpop.eup %5701  ;;  %v2074_v32 = vadd.f32 %v2010_v25, %v1292_v4  ;;  %v2652_v14 = vadd.f32 1.0, %v5700_v49  ;;  %5719 = vpow2.f32 %v4303_v16  ;;  %v2328_v10 = vmul.f32 %v7109_v29, %v4854_v36  ;;  %114 = vst [vmem:[#allocation2 + $0x90] sm:$0xf] %v113_v48  ;;  %v119_v25 = vld [vmem:[%s8618_s3 + $0x138] sm:$0xf] }
  0x76   :  { %v5704_v44 = vpop.eup %5703  ;;  %5415 = vmatprep.mubr.bf16.mxu0 %v2132_v15  ;;  %v2075_v50 = vadd.f32 %v2011_v56, %v1293_v23  ;;  %v2653_v47 = vadd.f32 1.0, %v5702_v57  ;;  %v7125_v28 = vadd.f32 %v7122_v54, %v2327_v22  ;;  %v4858_v11 = vunpack.c.h.bf16 %v5177_v27  ;;  %v5145_v23 = vld [vmem:[#allocation2 + $0x40] sm:$0xff]   ;;  %v5115_v15 = vld [vmem:[%s8615_s0 + $0x48] sm:$0xff]   ;;  %118 = vst [vmem:[#allocation2 + $0x98] sm:$0xf] %v117_v26 }
  0x77   :  { %v5706_v52 = vpop.eup %5705  ;;  %5721 = vrcp.f32 %v2652_v14  ;;  %v1102_v17 = vadd.f32 1.0, %v5704_v44  ;;  %v7129_v51 = vadd.f32 %v7122_v54, %v2328_v10  ;;  %v2329_v60 = vmul.f32 %v7109_v29, %v4857_v33  ;;  %120 = vst [vmem:[#allocation2 + $0x9c] sm:$0xf] %v119_v25 }
  0x78   :  { %v5708_v46 = vpop.eup %5707  ;;  %v2133_v12 = vpack.c.bf16 %v2075_v50, %v2074_v32  ;;  %v2842_v20 = vmul.f32 %v5706_v52, %v6989_v2  ;;  %5723 = vrcp.f32 %v2653_v47  ;;  %v4371_v63 = vmul.f32 -1.442695, %v7125_v28 }
  0x79   :  { %v5710_v30 = vpop.eup %5709  ;;  %v2843_v6 = vmul.f32 %v5708_v46, %v6992_v9  ;;  %5725 = vrcp.f32 %v1102_v17  ;;  %v4372_v2 = vmul.f32 -1.442695, %v7129_v51  ;;  %v2330_v9 = vmul.f32 %v7109_v29, %v4858_v11 }
  0x7a   :  { %v5712_v43 = vpop.eup %5711  ;;  %5416 = vmatmul.mubr.bf16.gmra.mrb[8].mxu0 %v2133_v12  ;;  %v1103_v53 = vadd.f32 1.0, %v5710_v30  ;;  %5727 = vpow2.f32 %v4304_v34  ;;  %v7140_v59 = vadd.f32 %v7122_v54, %v2329_v60  ;;  %v4597_v40 = vunpack.c.l.bf16 %v5114_v38 }
  0x7b   :  { %v5714_v55 = vpop.eup %5713  ;;  %v2900_v39 = vpack.c.bf16 %v2843_v6, %v2842_v20  ;;  %v1820_v18 = vadd.f32 1.0, %v5712_v43  ;;  %5729 = vpow2.f32 %v4371_v63  ;;  %v7149_v61 = vadd.f32 %v7122_v54, %v2330_v9 }
  0x7c   :  { %v5716_v4 = vpop.eup %5715  ;;  %5731 = vrcp.f32 %v1103_v53  ;;  %v1821_v5 = vadd.f32 1.0, %v5714_v55  ;;  %v4598_v49 = vunpack.c.h.bf16 %v5114_v38  ;;  %v4373_v16 = vmul.f32 -1.442695, %v7140_v59  ;;  %v5146_v38 = vld [vmem:[#allocation2 + $0x48] sm:$0xff]  }
  0x7d   :  { %v5718_v41 = vpop.eup %5717  ;;  %5339 = vmatprep.mubr.bf16.mxu1 %v2900_v39  ;;  %5733 = vrcp.f32 %v1820_v18  ;;  %v1104_v8 = vadd.f32 1.0, %v5716_v4  ;;  %v779_v36 = vmul.f32 %v7019_v45, %v4597_v40  ;;  %v4374_v27 = vmul.f32 -1.442695, %v7149_v61 }
  0x7e   :  { %5735 = vrcp.f32 %v1821_v5  ;;  %v1105_v56 = vadd.f32 1.0, %v5718_v41  ;;  %v780_v57 = vmul.f32 %v7019_v45, %v4598_v49  ;;  %v4725_v32 = vunpack.c.l.bf16 %v5145_v23 }
  0x7f   :  { %5737 = vrcp.f32 %v1104_v8  ;;  %v5720_v14 = vpop.eup %5719  ;;  %v7159_v34 = vadd.f32 %v7029_v3, %v779_v36  ;;  %v4726_v22 = vunpack.c.h.bf16 %v5145_v23  ;;  %v4601_v48 = vunpack.c.l.bf16 %v5115_v15 }
  0x80   :  { %5739 = vrcp.f32 %v1105_v56  ;;  %v1822_v50 = vadd.f32 1.0, %v5720_v14  ;;  %v7162_v47 = vadd.f32 %v7029_v3, %v780_v57  ;;  %v1497_v10 = vmul.f32 %v7040_v19, %v4725_v32  ;;  %v4197_v56 = vld [vmem:[%s8622_s7 + $0x144] sm:$0xf]  ;;  %v4199_v57 = vld [vmem:[%s8622_s7 + $0x154] sm:$0xf] }
  0x81   :  { %v5722_v44 = vpop.eup %5721  ;;  %5741 = vpow2.f32 %v4372_v2  ;;  %v4239_v17 = vmul.f32 -1.442695, %v7159_v34  ;;  %v1498_v33 = vmul.f32 %v7040_v19, %v4726_v22  ;;  %v4602_v11 = vunpack.c.h.bf16 %v5115_v15  ;;  %v5178_v15 = vld [vmem:[#allocation3 + $0x50] sm:$0xff]   ;;  %422 = vst [vmem:[#allocation3 + $0xa0] sm:$0xf] %v4197_v56 }
  0x82   :  { %v5724_v13 = vpop.eup %5723  ;;  %v2844_v52 = vmul.f32 %v5722_v44, %v7006_v21  ;;  %5743 = vpow2.f32 %v4373_v16  ;;  %v4240_v20 = vmul.f32 -1.442695, %v7162_v47  ;;  %v7171_v30 = vadd.f32 %v7088_v58, %v1497_v10  ;;  %v4200_v32 = vld [vmem:[%s8622_s7 + $0x15c] sm:$0xf]  ;;  %426 = vst [vmem:[#allocation3 + $0xa8] sm:$0xf] %v4199_v57 }
  0x83   :  { %v5726_v46 = vpop.eup %5725  ;;  %v2845_v12 = vmul.f32 %v5724_v13, %v7009_v42  ;;  %5745 = vrcp.f32 %v1822_v50  ;;  %v7175_v21 = vadd.f32 %v7088_v58, %v1498_v33  ;;  %v781_v18 = vmul.f32 %v7019_v45, %v4601_v48  ;;  %428 = vst [vmem:[#allocation3 + $0xac] sm:$0xf] %v4200_v32 }
  0x84   :  { %v5728_v6 = vpop.eup %5727  ;;  %v1294_v63 = vmul.f32 %v5726_v46, %v7032_v0  ;;  %5747 = vpow2.f32 %v4374_v27  ;;  %v4305_v42 = vmul.f32 -1.442695, %v7171_v30  ;;  %v782_v4 = vmul.f32 %v7019_v45, %v4602_v11 }
  0x85   :  { %v5730_v43 = vpop.eup %5729  ;;  %v2901_v53 = vpack.c.bf16 %v2845_v12, %v2844_v52  ;;  %v1823_v2 = vadd.f32 1.0, %v5728_v6  ;;  %5749 = vpow2.f32 %v4239_v17  ;;  %v4306_v39 = vmul.f32 -1.442695, %v7175_v21  ;;  %v121_v17 = vld [vmem:[%s8618_s3 + $0x140] sm:$0xf] }
  0x86   :  { %v5732_v60 = vpop.eup %5731  ;;  %v2654_v55 = vadd.f32 1.0, %v5730_v43  ;;  %5751 = vpow2.f32 %v4240_v20  ;;  %v4729_v5 = vunpack.c.l.bf16 %v5146_v38  ;;  %v7184_v26 = vadd.f32 %v7029_v3, %v781_v18  ;;  %122 = vst [vmem:[#allocation2 + $0xa0] sm:$0xf] %v121_v17  ;;  %v5179_v43 = vld [vmem:[#allocation3 + $0x58] sm:$0xff]  }
  0x87   :  { %v5734_v0 = vpop.eup %5733  ;;  %5340 = vmatmul.mubr.bf16.gmra.mrb[12].mxu1 %v2901_v53  ;;  %v1295_v9 = vmul.f32 %v5732_v60, %v7035_v7  ;;  %5753 = vrcp.f32 %v1823_v2  ;;  %v4730_v25 = vunpack.c.h.bf16 %v5146_v38  ;;  %v7188_v49 = vadd.f32 %v7029_v3, %v782_v4 }
  0x88   :  { %v5736_v40 = vpop.eup %5735  ;;  %v2012_v23 = vmul.f32 %v5734_v0, %v7051_v37  ;;  %5755 = vrcp.f32 %v2654_v55  ;;  %v1499_v7 = vmul.f32 %v7040_v19, %v4729_v5  ;;  %v4198_v37 = vld [vmem:[%s8622_s7 + $0x14c] sm:$0xf]  ;;  %v4861_v52 = vunpack.c.l.bf16 %v5178_v15 }
  0x89   :  { %v5738_v41 = vpop.eup %5737  ;;  %v2013_v8 = vmul.f32 %v5736_v40, %v7055_v24  ;;  %5757 = vpow2.f32 %v4305_v42  ;;  %v4241_v24 = vmul.f32 -1.442695, %v7184_v26  ;;  %424 = vst [vmem:[#allocation3 + $0xa4] sm:$0xf] %v4198_v37  ;;  %v4242_v44 = vmul.f32 -1.442695, %v7188_v49 }
  0x8a   :  { %v5740_v16 = vpop.eup %5739  ;;  %v2076_v36 = vadd.f32 %v2012_v23, %v1294_v63  ;;  %v1296_v27 = vmul.f32 %v5738_v41, %v7066_v35  ;;  %5759 = vpow2.f32 %v4306_v39  ;;  %v1500_v35 = vmul.f32 %v7040_v19, %v4730_v25  ;;  %v5116_v37 = vld [vmem:[%s8615_s0 + $0x50] sm:$0xff]  }
  0x8b   :  { %v5742_v14 = vpop.eup %5741  ;;  %v2077_v22 = vadd.f32 %v2013_v8, %v1295_v9  ;;  %v1297_v48 = vmul.f32 %v5740_v16, %v7070_v62  ;;  %5761 = vpow2.f32 %v4241_v24  ;;  %v7209_v13 = vadd.f32 %v7088_v58, %v1499_v7  ;;  %v123_v62 = vld [vmem:[%s8618_s3 + $0x148] sm:$0xf] }
  0x8c   :  { %v5744_v50 = vpop.eup %5743  ;;  %v2655_v10 = vadd.f32 1.0, %v5742_v14  ;;  %5763 = vpow2.f32 %v4242_v44  ;;  %v7218_v20 = vadd.f32 %v7088_v58, %v1500_v35  ;;  %124 = vst [vmem:[#allocation2 + $0xa4] sm:$0xf] %v123_v62  ;;  %v4862_v38 = vunpack.c.h.bf16 %v5178_v15  ;;  %v5147_v35 = vld [vmem:[#allocation2 + $0x50] sm:$0xff]  }
  0x8d   :  { %v5746_v33 = vpop.eup %5745  ;;  %v2134_v46 = vpack.c.bf16 %v2077_v22, %v2076_v36  ;;  %v2656_v12 = vadd.f32 1.0, %v5744_v50  ;;  %v4307_v11 = vmul.f32 -1.442695, %v7209_v13  ;;  %v2331_v60 = vmul.f32 %v7109_v29, %v4861_v52  ;;  %v127_v50 = vld [vmem:[%s8618_s3 + $0x158] sm:$0xf] }
  0x8e   :  { %v5748_v6 = vpop.eup %5747  ;;  %v2014_v63 = vmul.f32 %v5746_v33, %v7091_v31  ;;  %5765 = vrcp.f32 %v2655_v10  ;;  %v4308_v42 = vmul.f32 -1.442695, %v7218_v20  ;;  %v2332_v0 = vmul.f32 %v7109_v29, %v4862_v38  ;;  %128 = vst [vmem:[#allocation2 + $0xac] sm:$0xf] %v127_v50 }
  0x8f   :  { %v5750_v53 = vpop.eup %5749  ;;  %5419 = vmatprep.mubr.bf16.mxu0 %v2134_v46  ;;  %v2657_v2 = vadd.f32 1.0, %v5748_v6  ;;  %5767 = vrcp.f32 %v2656_v12  ;;  %v7226_v4 = vadd.f32 %v7122_v54, %v2331_v60  ;;  %v4865_v5 = vunpack.c.l.bf16 %v5179_v43 }
  0x90   :  { %v5752_v55 = vpop.eup %5751  ;;  %v2078_v39 = vadd.f32 %v2014_v63, %v1296_v27  ;;  %v1106_v18 = vadd.f32 1.0, %v5750_v53  ;;  %5769 = vpow2.f32 %v4307_v11  ;;  %v7230_v25 = vadd.f32 %v7122_v54, %v2332_v0 }
  0x91   :  { %v5754_v31 = vpop.eup %5753  ;;  %5771 = vrcp.f32 %v2657_v2  ;;  %v1107_v9 = vadd.f32 1.0, %v5752_v55  ;;  %v4866_v41 = vunpack.c.h.bf16 %v5179_v43  ;;  %v4375_v15 = vmul.f32 -1.442695, %v7226_v4 }
  0x92   :  { %v5756_v40 = vpop.eup %5755  ;;  %v2015_v23 = vmul.f32 %v5754_v31, %v7095_v1  ;;  %5773 = vrcp.f32 %v1106_v18  ;;  %v2333_v56 = vmul.f32 %v7109_v29, %v4865_v5  ;;  %v4376_v27 = vmul.f32 -1.442695, %v7230_v25 }
  0x93   :  { %v5758_v8 = vpop.eup %5757  ;;  %v2846_v7 = vmul.f32 %v5756_v40, %v7125_v28  ;;  %5775 = vrcp.f32 %v1107_v9  ;;  %v2334_v57 = vmul.f32 %v7109_v29, %v4866_v41  ;;  %v4605_v22 = vunpack.c.l.bf16 %v5116_v37 }
  0x94   :  { %v5760_v16 = vpop.eup %5759  ;;  %v2079_v36 = vadd.f32 %v2015_v23, %v1297_v48  ;;  %v1824_v1 = vadd.f32 1.0, %v5758_v8  ;;  %5777 = vpow2.f32 %v4308_v42  ;;  %v7241_v28 = vadd.f32 %v7122_v54, %v2333_v56  ;;  %v125_v48 = vld [vmem:[%s8618_s3 + $0x150] sm:$0xf] }
  0x95   :  { %v1825_v24 = vadd.f32 1.0, %v5760_v16  ;;  %5779 = vpow2.f32 %v4375_v15  ;;  %v5762_v32 = vpop.eup %5761  ;;  %v4606_v44 = vunpack.c.h.bf16 %v5116_v37  ;;  %v7250_v17 = vadd.f32 %v7122_v54, %v2334_v57  ;;  %126 = vst [vmem:[#allocation2 + $0xa8] sm:$0xf] %v125_v48 }
  0x96   :  { %v2135_v14 = vpack.c.bf16 %v2079_v36, %v2078_v39  ;;  %5781 = vrcp.f32 %v1824_v1  ;;  %v5764_v10 = vpop.eup %5763  ;;  %v1108_v52 = vadd.f32 1.0, %v5762_v32  ;;  %v4377_v62 = vmul.f32 -1.442695, %v7241_v28 }
  0x97   :  { %5783 = vrcp.f32 %v1825_v24  ;;  %v1109_v46 = vadd.f32 1.0, %v5764_v10  ;;  %v783_v12 = vmul.f32 %v7019_v45, %v4605_v22  ;;  %v784_v6 = vmul.f32 %v7019_v45, %v4606_v44 }
  0x98   :  { %v5766_v33 = vpop.eup %5765  ;;  %5420 = vmatmul.mubr.bf16.gmra.mrb[12].mxu0 %v2135_v14  ;;  %5785 = vpow2.f32 %v4376_v27  ;;  %v4378_v38 = vmul.f32 -1.442695, %v7250_v17  ;;  %v4733_v43 = vunpack.c.l.bf16 %v5147_v35  ;;  %v4734_v0 = vunpack.c.h.bf16 %v5147_v35 }
  0x99   :  { %v5768_v63 = vpop.eup %5767  ;;  %v2847_v11 = vmul.f32 %v5766_v33, %v7129_v51  ;;  %5787 = vrcp.f32 %v1108_v52  ;;  %v7259_v42 = vadd.f32 %v7029_v3, %v783_v12  ;;  %v7262_v60 = vadd.f32 %v7029_v3, %v784_v6  ;;  %v5117_v51 = vld [vmem:[%s8615_s0 + $0x58] sm:$0xff]  }
  0x9a   :  { %v5770_v53 = vpop.eup %5769  ;;  %v2848_v2 = vmul.f32 %v5768_v63, %v7140_v59  ;;  %5789 = vrcp.f32 %v1109_v46  ;;  %v1501_v41 = vmul.f32 %v7040_v19, %v4733_v43  ;;  %v1502_v8 = vmul.f32 %v7040_v19, %v4734_v0 }
  0x9b   :  { %v5772_v55 = vpop.eup %5771  ;;  %v2902_v39 = vpack.c.bf16 %v2847_v11, %v2846_v7  ;;  %v1826_v18 = vadd.f32 1.0, %v5770_v53  ;;  %5791 = vpow2.f32 %v4377_v62  ;;  %v4243_v59 = vmul.f32 -1.442695, %v7259_v42  ;;  %v5148_v7 = vld [vmem:[#allocation2 + $0x58] sm:$0xff]  }
  0x9c   :  { %v5774_v31 = vpop.eup %5773  ;;  %v2849_v9 = vmul.f32 %v5772_v55, %v7149_v61  ;;  %5793 = vpow2.f32 %v4378_v38  ;;  %v4244_v5 = vmul.f32 -1.442695, %v7262_v60  ;;  %v4609_v61 = vunpack.c.l.bf16 %v5117_v51 }
  0x9d   :  { %v5776_v40 = vpop.eup %5775  ;;  %5343 = vmatprep.mubr.bf16.mxu1 %v2902_v39  ;;  %v1298_v23 = vmul.f32 %v5774_v31, %v7159_v34  ;;  %5795 = vrcp.f32 %v1826_v18  ;;  %v7275_v1 = vadd.f32 %v7088_v58, %v1501_v41  ;;  %v7278_v34 = vadd.f32 %v7088_v58, %v1502_v8 }
  0x9e   :  { %v5778_v15 = vpop.eup %5777  ;;  %v2903_v56 = vpack.c.bf16 %v2849_v9, %v2848_v2  ;;  %v1299_v37 = vmul.f32 %v5776_v40, %v7162_v47  ;;  %5797 = vpow2.f32 %v4243_v59  ;;  %v4610_v57 = vunpack.c.h.bf16 %v5117_v51  ;;  %v4202_v40 = vld [vmem:[%s8622_s7 + $0x16c] sm:$0xf] }
  0x9f   :  { %v5780_v16 = vpop.eup %5779  ;;  %v1827_v36 = vadd.f32 1.0, %v5778_v15  ;;  %5799 = vpow2.f32 %v4244_v5  ;;  %v785_v32 = vmul.f32 %v7019_v45, %v4609_v61  ;;  %v4737_v14 = vunpack.c.l.bf16 %v5148_v7  ;;  %v4201_v5 = vld [vmem:[%s8622_s7 + $0x164] sm:$0xf]  ;;  %432 = vst [vmem:[#allocation3 + $0xb4] sm:$0xf] %v4202_v40 }
  0xa0   :  { %v5782_v27 = vpop.eup %5781  ;;  %5344 = vmatmul.mubr.bf16.gmra.mrb[16].mxu1 %v2903_v56  ;;  %v2658_v24 = vadd.f32 1.0, %v5780_v16  ;;  %v4309_v44 = vmul.f32 -1.442695, %v7275_v1  ;;  %v4310_v35 = vmul.f32 -1.442695, %v7278_v34  ;;  %v786_v10 = vmul.f32 %v7019_v45, %v4610_v57 }
  0xa1   :  { %v5784_v22 = vpop.eup %5783  ;;  %v2016_v47 = vmul.f32 %v5782_v27, %v7171_v30  ;;  %5801 = vrcp.f32 %v1827_v36  ;;  %v7287_v52 = vadd.f32 %v7029_v3, %v785_v32  ;;  %v4738_v12 = vunpack.c.h.bf16 %v5148_v7  ;;  %430 = vst [vmem:[#allocation3 + $0xb0] sm:$0xf] %v4201_v5  ;;  %v4203_v15 = vld [vmem:[%s8622_s7 + $0x174] sm:$0xf]  ;;  %v4204_v56 = vld [vmem:[%s8622_s7 + $0x17c] sm:$0xf] }
  0xa2   :  { %v5786_v48 = vpop.eup %5785  ;;  %v2017_v50 = vmul.f32 %v5784_v22, %v7175_v21  ;;  %5803 = vrcp.f32 %v2658_v24  ;;  %v7291_v11 = vadd.f32 %v7029_v3, %v786_v10  ;;  %v5180_v21 = vld [vmem:[#allocation3 + $0x60] sm:$0xff]   ;;  %v1503_v2 = vmul.f32 %v7040_v19, %v4737_v14  ;;  %434 = vst [vmem:[#allocation3 + $0xb8] sm:$0xf] %v4203_v15  ;;  %436 = vst [vmem:[#allocation3 + $0xbc] sm:$0xf] %v4204_v56 }
  0xa3   :  { %v5788_v62 = vpop.eup %5787  ;;  %v2080_v33 = vadd.f32 %v2016_v47, %v1298_v23  ;;  %v2659_v46 = vadd.f32 1.0, %v5786_v48  ;;  %5805 = vpow2.f32 %v4309_v44  ;;  %v4245_v53 = vmul.f32 -1.442695, %v7287_v52  ;;  %v5118_v27 = vld [vmem:[%s8615_s0 + $0x60] sm:$0xff]   ;;  %v131_v24 = vld [vmem:[%s8618_s3 + $0x168] sm:$0xf] }
  0xa4   :  { %v5790_v30 = vpop.eup %5789  ;;  %v2081_v6 = vadd.f32 %v2017_v50, %v1299_v37  ;;  %v1300_v63 = vmul.f32 %v5788_v62, %v7184_v26  ;;  %5807 = vpow2.f32 %v4310_v35  ;;  %v4246_v0 = vmul.f32 -1.442695, %v7291_v11  ;;  %v129_v37 = vld [vmem:[%s8618_s3 + $0x160] sm:$0xf]  ;;  %132 = vst [vmem:[#allocation2 + $0xb4] sm:$0xf] %v131_v24 }
  0xa5   :  { %v5792_v38 = vpop.eup %5791  ;;  %v1301_v43 = vmul.f32 %v5790_v30, %v7188_v49  ;;  %5809 = vrcp.f32 %v2659_v46  ;;  %v1504_v26 = vmul.f32 %v7040_v19, %v4738_v12  ;;  %v7299_v9 = vadd.f32 %v7088_v58, %v1503_v2  ;;  %v5181_v49 = vld [vmem:[#allocation3 + $0x68] sm:$0xff]   ;;  %130 = vst [vmem:[#allocation2 + $0xb0] sm:$0xf] %v129_v37 }
  0xa6   :  { %v5794_v55 = vpop.eup %5793  ;;  %v2136_v39 = vpack.c.bf16 %v2081_v6, %v2080_v33  ;;  %v2660_v18 = vadd.f32 1.0, %v5792_v38  ;;  %5811 = vpow2.f32 %v4245_v53  ;;  %v4869_v59 = vunpack.c.l.bf16 %v5180_v21 }
  0xa7   :  { %v5796_v51 = vpop.eup %5795  ;;  %v2661_v31 = vadd.f32 1.0, %v5794_v55  ;;  %v7309_v8 = vadd.f32 %v7088_v58, %v1504_v26  ;;  %v4870_v7 = vunpack.c.h.bf16 %v5180_v21  ;;  %v4311_v16 = vmul.f32 -1.442695, %v7299_v9 }
  0xa8   :  { %v5798_v23 = vpop.eup %5797  ;;  %5423 = vmatprep.mubr.bf16.mxu0 %v2136_v39  ;;  %v2018_v41 = vmul.f32 %v5796_v51, %v7209_v13  ;;  %5813 = vrcp.f32 %v2660_v18  ;;  %v2335_v36 = vmul.f32 %v7109_v29, %v4869_v59  ;;  %v4873_v35 = vunpack.c.l.bf16 %v5181_v49  ;;  %v5149_v59 = vld [vmem:[#allocation2 + $0x60] sm:$0xff]  }
  0xa9   :  { %v5800_v13 = vpop.eup %5799  ;;  %5815 = vrcp.f32 %v2661_v31  ;;  %v1110_v61 = vadd.f32 1.0, %v5798_v23  ;;  %v4312_v14 = vmul.f32 -1.442695, %v7309_v8  ;;  %v2336_v47 = vmul.f32 %v7109_v29, %v4870_v7 }
  0xaa   :  { %v2082_v57 = vadd.f32 %v2018_v41, %v1300_v63  ;;  %v1111_v32 = vadd.f32 1.0, %v5800_v13  ;;  %5817 = vpow2.f32 %v4246_v0  ;;  %v7331_v44 = vadd.f32 %v7122_v54, %v2335_v36  ;;  %v135_v0 = vld [vmem:[%s8618_s3 + $0x178] sm:$0xf] }
  0xab   :  { %v5802_v22 = vpop.eup %5801  ;;  %5819 = vrcp.f32 %v1110_v61  ;;  %v4874_v10 = vunpack.c.h.bf16 %v5181_v49  ;;  %v4613_v62 = vunpack.c.l.bf16 %v5118_v27  ;;  %v7336_v12 = vadd.f32 %v7122_v54, %v2336_v47  ;;  %136 = vst [vmem:[#allocation2 + $0xbc] sm:$0xf] %v135_v0  ;;  %v7396_v0 = vld [vmem:[%s8617_s2] ss:$0 sm:$0xff] }
  0xac   :  { %v5804_v48 = vpop.eup %5803  ;;  %v2019_v50 = vmul.f32 %v5802_v22, %v7218_v20  ;;  %5821 = vrcp.f32 %v1111_v32  ;;  %v4379_v30 = vmul.f32 -1.442695, %v7331_v44  ;;  %v2337_v38 = vmul.f32 %v7109_v29, %v4873_v35 }
  0xad   :  { %v5806_v33 = vpop.eup %5805  ;;  %v2850_v46 = vmul.f32 %v5804_v48, %v7226_v4  ;;  %5823 = vpow2.f32 %v4311_v16  ;;  %v4380_v2 = vmul.f32 -1.442695, %v7336_v12  ;;  %v2338_v55 = vmul.f32 %v7109_v29, %v4874_v10 }
  0xae   :  { %v5808_v6 = vpop.eup %5807  ;;  %v2083_v63 = vadd.f32 %v2019_v50, %v1301_v43  ;;  %v1828_v21 = vadd.f32 1.0, %v5806_v33  ;;  %5825 = vpow2.f32 %v4312_v14  ;;  %v7344_v18 = vadd.f32 %v7122_v54, %v2337_v38  ;;  %v133_v43 = vld [vmem:[%s8618_s3 + $0x170] sm:$0xf]  ;;  %v7386_v38 = vld [vmem:[%s8616_s1] ss:$0 sm:$0xff] }
  0xaf   :  { %v5810_v53 = vpop.eup %5809  ;;  %v1829_v20 = vadd.f32 1.0, %v5808_v6  ;;  %5827 = vpow2.f32 %v4379_v30  ;;  %v7353_v51 = vadd.f32 %v7122_v54, %v2338_v55  ;;  %v4614_v31 = vunpack.c.h.bf16 %v5118_v27  ;;  %134 = vst [vmem:[#allocation2 + $0xb8] sm:$0xf] %v133_v43  ;;  %v5150_v6 = vld [vmem:[#allocation2 + $0x68] sm:$0xff]  }
  0xb0   :  { %v2137_v4 = vpack.c.bf16 %v2083_v63, %v2082_v57  ;;  %v2851_v39 = vmul.f32 %v5810_v53, %v7230_v25  ;;  %5829 = vrcp.f32 %v1828_v21  ;;  %v5812_v26 = vpop.eup %5811  ;;  %v787_v25 = vmul.f32 %v7019_v45, %v4613_v62 }
  0xb1   :  { %5831 = vrcp.f32 %v1829_v20  ;;  %v1112_v40 = vadd.f32 1.0, %v5812_v26  ;;  %v4381_v23 = vmul.f32 -1.442695, %v7344_v18  ;;  %v4382_v15 = vmul.f32 -1.442695, %v7353_v51 }
  0xb2   :  { %v5814_v49 = vpop.eup %5813  ;;  %5424 = vmatmul.mubr.bf16.gmra.mrb[16].mxu0 %v2137_v4  ;;  %v2904_v5 = vpack.c.bf16 %v2851_v39, %v2850_v46  ;;  %5833 = vpow2.f32 %v4380_v2  ;;  %v788_v56 = vmul.f32 %v7019_v45, %v4614_v31  ;;  %v7361_v37 = vadd.f32 %v7029_v3, %v787_v25  ;;  %v5119_v45 = vld [vmem:[%s8615_s0 + $0x68] sm:$0xff]  }
  0xb3   :  { %v5816_v41 = vpop.eup %5815  ;;  %v2852_v7 = vmul.f32 %v5814_v49, %v7241_v28  ;;  %5835 = vrcp.f32 %v1112_v40  ;;  %v4741_v16 = vunpack.c.l.bf16 %v5149_v59  ;;  %v4742_v36 = vunpack.c.h.bf16 %v5149_v59 }
  0xb4   :  { %v5818_v13 = vpop.eup %5817  ;;  %5347 = vmatprep.mubr.bf16.mxu1 %v2904_v5  ;;  %v2853_v61 = vmul.f32 %v5816_v41, %v7250_v17  ;;  %5837 = vpow2.f32 %v4381_v23  ;;  %v7365_v57 = vadd.f32 %v7029_v3, %v788_v56  ;;  %v4247_v28 = vmul.f32 -1.442695, %v7361_v37  ;;  %v5182_v23 = vld [vmem:[#allocation3 + $0x70] sm:$0xff]   ;;  %v7410_v56 = vld [vmem:[%s8619_s4] ss:$0 sm:$0xff] }
  0xb5   :  { %v5820_v27 = vpop.eup %5819  ;;  %v1113_v24 = vadd.f32 1.0, %v5818_v13  ;;  %5839 = vpow2.f32 %v4382_v15  ;;  %v1505_v17 = vmul.f32 %v7040_v19, %v4741_v16  ;;  %v1506_v48 = vmul.f32 %v7040_v19, %v4742_v36 }
  0xb6   :  { %v5822_v32 = vpop.eup %5821  ;;  %v2905_v14 = vpack.c.bf16 %v2853_v61, %v2852_v7  ;;  %v1302_v22 = vmul.f32 %v5820_v27, %v7259_v42  ;;  %v4248_v3 = vmul.f32 -1.442695, %v7365_v57  ;;  %v4617_v33 = vunpack.c.l.bf16 %v5119_v45 }
  0xb7   :  { %v5824_v47 = vpop.eup %5823  ;;  %v1303_v35 = vmul.f32 %v5822_v32, %v7262_v60  ;;  %5841 = vrcp.f32 %v1113_v24  ;;  %v7377_v62 = vadd.f32 %v7088_v58, %v1505_v17  ;;  %v7380_v30 = vadd.f32 %v7088_v58, %v1506_v48  ;;  %v4206_v24 = vld [vmem:[%s8622_s7 + $0x18c] sm:$0xf]  ;;  %v4207_v17 = vld [vmem:[%s8622_s7 + $0x194] sm:$0xf] }
  0xb8   :  { %v5826_v50 = vpop.eup %5825  ;;  %5348 = vmatmul.mubr.bf16.gmra.mrb[20].mxu1 %v2905_v14  ;;  %v1830_v10 = vadd.f32 1.0, %v5824_v47  ;;  %5843 = vpow2.f32 %v4247_v28  ;;  %v4618_v60 = vunpack.c.h.bf16 %v5119_v45  ;;  %v789_v53 = vmul.f32 %v7386_v38, %v4617_v33  ;;  %440 = vst [vmem:[#allocation3 + $0xc4] sm:$0xf] %v4206_v24  ;;  %v4208_v47 = vld [vmem:[%s8622_s7 + $0x19c] sm:$0xf] }
  0xb9   :  { %v5828_v42 = vpop.eup %5827  ;;  %v1831_v46 = vadd.f32 1.0, %v5826_v50  ;;  %5845 = vpow2.f32 %v4248_v3  ;;  %v4313_v19 = vmul.f32 -1.442695, %v7377_v62  ;;  %v4314_v55 = vmul.f32 -1.442695, %v7380_v30 }
  0xba   :  { %v5830_v63 = vpop.eup %5829  ;;  %5847 = vrcp.f32 %v1830_v10  ;;  %v2662_v21 = vadd.f32 1.0, %v5828_v42  ;;  %v790_v4 = vmul.f32 %v7386_v38, %v4618_v60  ;;  %v7399_v26 = vadd.f32 %v7396_v0, %v789_v53  ;;  %442 = vst [vmem:[#allocation3 + $0xc8] sm:$0xf] %v4207_v17  ;;  %444 = vst [vmem:[#allocation3 + $0xcc] sm:$0xf] %v4208_v47 }
  0xbb   :  { %v5832_v20 = vpop.eup %5831  ;;  %v2020_v2 = vmul.f32 %v5830_v63, %v7275_v1  ;;  %5849 = vrcp.f32 %v1831_v46  ;;  %v4745_v31 = vunpack.c.l.bf16 %v5150_v6  ;;  %v4746_v40 = vunpack.c.h.bf16 %v5150_v6  ;;  %v137_v10 = vld [vmem:[%s8618_s3 + $0x180] sm:$0xf]  ;;  %v139_v33 = vld [vmem:[%s8618_s3 + $0x188] sm:$0xf] }
  0xbc   :  { %v5834_v39 = vpop.eup %5833  ;;  %v2021_v43 = vmul.f32 %v5832_v20, %v7278_v34  ;;  %5851 = vrcp.f32 %v2662_v21  ;;  %v7402_v59 = vadd.f32 %v7396_v0, %v790_v4  ;;  %v4249_v34 = vmul.f32 -1.442695, %v7399_v26  ;;  %138 = vst [vmem:[#allocation2 + $0xc0] sm:$0xf] %v137_v10  ;;  %140 = vst [vmem:[#allocation2 + $0xc4] sm:$0xf] %v139_v33 }
  0xbd   :  { %v2084_v25 = vadd.f32 %v2020_v2, %v1302_v22  ;;  %v2663_v1 = vadd.f32 1.0, %v5834_v39  ;;  %5853 = vpow2.f32 %v4313_v19  ;;  %v5836_v49 = vpop.eup %5835  ;;  %v1507_v13 = vmul.f32 %v7410_v56, %v4745_v31  ;;  %v5183_v22 = vld [vmem:[#allocation3 + $0x78] sm:$0xff]  }
  0xbe   :  { %v2085_v5 = vadd.f32 %v2021_v43, %v1303_v35  ;;  %5855 = vpow2.f32 %v4314_v55  ;;  %v5838_v41 = vpop.eup %5837  ;;  %v1304_v7 = vmul.f32 %v5836_v49, %v7287_v52  ;;  %v4250_v15 = vmul.f32 -1.442695, %v7402_v59  ;;  %v4205_v52 = vld [vmem:[%s8622_s7 + $0x184] sm:$0xf] }
  0xbf   :  { %5857 = vrcp.f32 %v2663_v1  ;;  %v5840_v61 = vpop.eup %5839  ;;  %v2664_v36 = vadd.f32 1.0, %v5838_v41  ;;  %v1508_v27 = vmul.f32 %v7410_v56, %v4746_v40  ;;  %v7421_v32 = vadd.f32 %v7088_v58, %v1507_v13  ;;  %438 = vst [vmem:[#allocation3 + $0xc0] sm:$0xf] %v4205_v52  ;;  %v143_v52 = vld [vmem:[%s8618_s3 + $0x198] sm:$0xf] }
  0xc0   :  { %v2138_v16 = vpack.c.bf16 %v2085_v5, %v2084_v25  ;;  %5859 = vpow2.f32 %v4249_v34  ;;  %v2665_v45 = vadd.f32 1.0, %v5840_v61  ;;  %v4877_v14 = vunpack.c.l.bf16 %v5182_v23  ;;  %v5120_v5 = vld [vmem:[%s8615_s0 + $0x70] sm:$0xff]   ;;  %144 = vst [vmem:[#allocation2 + $0xcc] sm:$0xf] %v143_v52 }
  0xc1   :  { %v5842_v28 = vpop.eup %5841  ;;  %5861 = vpow2.f32 %v4250_v15  ;;  %v7431_v48 = vadd.f32 %v7088_v58, %v1508_v27  ;;  %v4878_v50 = vunpack.c.h.bf16 %v5182_v23  ;;  %v4881_v19 = vunpack.c.l.bf16 %v5183_v22  ;;  %v141_v27 = vld [vmem:[%s8618_s3 + $0x190] sm:$0xf] }
  0xc2   :  { %v5844_v35 = vpop.eup %5843  ;;  %5427 = vmatprep.mubr.bf16.mxu0 %v2138_v16  ;;  %v1305_v3 = vmul.f32 %v5842_v28, %v7291_v11  ;;  %5863 = vrcp.f32 %v2664_v36  ;;  %v4315_v11 = vmul.f32 -1.442695, %v7421_v32  ;;  %v2339_v60 = vmul.f32 %v7109_v29, %v4877_v14  ;;  %v5151_v14 = vld [vmem:[#allocation2 + $0x70] sm:$0xff]   ;;  %142 = vst [vmem:[#allocation2 + $0xc8] sm:$0xf] %v141_v27 }
  0xc3   :  { %v5846_v42 = vpop.eup %5845  ;;  %5865 = vrcp.f32 %v2665_v45  ;;  %v1114_v46 = vadd.f32 1.0, %v5844_v35  ;;  %v4316_v63 = vmul.f32 -1.442695, %v7431_v48  ;;  %v2340_v21 = vmul.f32 %v7109_v29, %v4878_v50  ;;  %v5121_v35 = vld [vmem:[%s8615_s0 + $0x78] sm:$0xff]  }
  0xc4   :  { %v5848_v58 = vpop.eup %5847  ;;  %v1115_v6 = vadd.f32 1.0, %v5846_v42  ;;  %v7445_v2 = vadd.f32 %v7122_v54, %v2339_v60  ;;  %v4882_v55 = vunpack.c.h.bf16 %v5183_v22  ;;  %v2341_v31 = vmul.f32 %v7109_v29, %v4881_v19 }
  0xc5   :  { %v5850_v53 = vpop.eup %5849  ;;  %v2022_v20 = vmul.f32 %v5848_v58, %v7299_v9  ;;  %5867 = vrcp.f32 %v1114_v46  ;;  %v7449_v43 = vadd.f32 %v7122_v54, %v2340_v21  ;;  %v4621_v36 = vunpack.c.l.bf16 %v5120_v5 }
  0xc6   :  { %v5852_v4 = vpop.eup %5851  ;;  %v2023_v39 = vmul.f32 %v5850_v53, %v7309_v8  ;;  %5869 = vrcp.f32 %v1115_v6  ;;  %v4383_v9 = vmul.f32 -1.442695, %v7445_v2  ;;  %v4622_v47 = vunpack.c.h.bf16 %v5120_v5 }
  0xc7   :  { %v5854_v25 = vpop.eup %5853  ;;  %v2086_v1 = vadd.f32 %v2022_v20, %v1304_v7  ;;  %v2854_v49 = vmul.f32 %v5852_v4, %v7331_v44  ;;  %5871 = vpow2.f32 %v4315_v11  ;;  %v4384_v23 = vmul.f32 -1.442695, %v7449_v43 }
  0xc8   :  { %v5856_v34 = vpop.eup %5855  ;;  %v2087_v40 = vadd.f32 %v2023_v39, %v1305_v3  ;;  %v1832_v8 = vadd.f32 1.0, %v5854_v25  ;;  %5873 = vpow2.f32 %v4316_v63  ;;  %v2342_v7 = vmul.f32 %v7109_v29, %v4882_v55 }
  0xc9   :  { %v5858_v41 = vpop.eup %5857  ;;  %v1833_v15 = vadd.f32 1.0, %v5856_v34  ;;  %5875 = vpow2.f32 %v4383_v9  ;;  %v7460_v44 = vadd.f32 %v7122_v54, %v2341_v31  ;;  %v791_v10 = vmul.f32 %v7386_v38, %v4621_v36 }
  0xca   :  { %v5860_v13 = vpop.eup %5859  ;;  %v2139_v61 = vpack.c.bf16 %v2087_v40, %v2086_v1  ;;  %v2855_v16 = vmul.f32 %v5858_v41, %v7336_v12  ;;  %5877 = vrcp.f32 %v1832_v8  ;;  %v7470_v28 = vadd.f32 %v7122_v54, %v2342_v7 }
  0xcb   :  { %v5862_v24 = vpop.eup %5861  ;;  %5879 = vrcp.f32 %v1833_v15  ;;  %v1116_v29 = vadd.f32 1.0, %v5860_v13  ;;  %v4385_v45 = vmul.f32 -1.442695, %v7460_v44  ;;  %v792_v42 = vmul.f32 %v7386_v38, %v4622_v47  ;;  %v5152_v15 = vld [vmem:[#allocation2 + $0x78] sm:$0xff]  }
  0xcc   :  { %v5864_v12 = vpop.eup %5863  ;;  %5428 = vmatmul.mubr.bf16.gmra.mrb[20].mxu0 %v2139_v61  ;;  %v2906_v22 = vpack.c.bf16 %v2855_v16, %v2854_v49  ;;  %v1117_v17 = vadd.f32 1.0, %v5862_v24  ;;  %5881 = vpow2.f32 %v4384_v23  ;;  %v4386_v54 = vmul.f32 -1.442695, %v7470_v28 }
  0xcd   :  { %v5866_v3 = vpop.eup %5865  ;;  %v2856_v50 = vmul.f32 %v5864_v12, %v7344_v18  ;;  %5883 = vrcp.f32 %v1116_v29  ;;  %v4749_v46 = vunpack.c.l.bf16 %v5151_v14  ;;  %v7482_v60 = vadd.f32 %v7396_v0, %v791_v10  ;;  %v5185_v10 = vld [vmem:[#allocation3 + $0x88] sm:$0xff]  }
  0xce   :  { %5351 = vmatprep.mubr.bf16.mxu1 %v2906_v22  ;;  %v2857_v33 = vmul.f32 %v5866_v3, %v7353_v51  ;;  %5885 = vrcp.f32 %v1117_v17  ;;  %v4750_v58 = vunpack.c.h.bf16 %v5151_v14  ;;  %v4625_v6 = vunpack.c.l.bf16 %v5121_v35 }
  0xcf   :  { %v5868_v11 = vpop.eup %5867  ;;  %5887 = vpow2.f32 %v4385_v45  ;;  %v7486_v19 = vadd.f32 %v7396_v0, %v792_v42  ;;  %v4251_v20 = vmul.f32 -1.442695, %v7482_v60  ;;  %v1509_v55 = vmul.f32 %v7410_v56, %v4749_v46 }
  0xd0   :  { %v5870_v18 = vpop.eup %5869  ;;  %v2907_v63 = vpack.c.bf16 %v2857_v33, %v2856_v50  ;;  %v1306_v21 = vmul.f32 %v5868_v11, %v7361_v37  ;;  %5889 = vpow2.f32 %v4386_v54  ;;  %v1510_v4 = vmul.f32 %v7410_v56, %v4750_v58  ;;  %v4210_v58 = vld [vmem:[%s8622_s7 + $0x1ac] sm:$0xf] }
  0xd1   :  { %v5872_v51 = vpop.eup %5871  ;;  %v1307_v53 = vmul.f32 %v5870_v18, %v7365_v57  ;;  %v4252_v25 = vmul.f32 -1.442695, %v7486_v19  ;;  %v4626_v1 = vunpack.c.h.bf16 %v5121_v35  ;;  %v793_v37 = vmul.f32 %v7386_v38, %v4625_v6  ;;  %v7497_v57 = vld [vmem:[%s8620_s5] ss:$0 sm:$0xff]  ;;  %448 = vst [vmem:[#allocation3 + $0xd4] sm:$0xf] %v4210_v58 }
  0xd2   :  { %v5874_v39 = vpop.eup %5873  ;;  %5352 = vmatmul.mubr.bf16.gmra.mrb[24].mxu1 %v2907_v63  ;;  %v1834_v31 = vadd.f32 1.0, %v5872_v51  ;;  %5891 = vpow2.f32 %v4251_v20  ;;  %v7500_v5 = vadd.f32 %v7497_v57, %v1509_v55  ;;  %v7503_v34 = vadd.f32 %v7497_v57, %v1510_v4  ;;  %v4211_v63 = vld [vmem:[%s8622_s7 + $0x1b4] sm:$0xf]  ;;  %v145_v4 = vld [vmem:[%s8618_s3 + $0x1a0] sm:$0xf] }
  0xd3   :  { %v5876_v49 = vpop.eup %5875  ;;  %v1835_v9 = vadd.f32 1.0, %v5874_v39  ;;  %v794_v23 = vmul.f32 %v7386_v38, %v4626_v1  ;;  %v7507_v41 = vadd.f32 %v7396_v0, %v793_v37  ;;  %v4753_v12 = vunpack.c.l.bf16 %v5152_v15  ;;  %450 = vst [vmem:[#allocation3 + $0xd8] sm:$0xf] %v4211_v63  ;;  %v147_v39 = vld [vmem:[%s8618_s3 + $0x1a8] sm:$0xf] }
  0xd4   :  { %v5878_v40 = vpop.eup %5877  ;;  %5893 = vrcp.f32 %v1834_v31  ;;  %v2666_v8 = vadd.f32 1.0, %v5876_v49  ;;  %v4317_v61 = vmul.f32 -1.442695, %v7500_v5  ;;  %v4318_v16 = vmul.f32 -1.442695, %v7503_v34 }
  0xd5   :  { %v5880_v7 = vpop.eup %5879  ;;  %v2024_v13 = vmul.f32 %v5878_v40, %v7377_v62  ;;  %5895 = vrcp.f32 %v1835_v9  ;;  %v7514_v52 = vadd.f32 %v7396_v0, %v794_v23  ;;  %v4253_v24 = vmul.f32 -1.442695, %v7507_v41  ;;  %v5184_v62 = vld [vmem:[#allocation3 + $0x80] sm:$0xff]   ;;  %146 = vst [vmem:[#allocation2 + $0xd0] sm:$0xf] %v145_v4 }
  0xd6   :  { %v5882_v36 = vpop.eup %5881  ;;  %v2025_v27 = vmul.f32 %v5880_v7, %v7380_v30  ;;  %5897 = vrcp.f32 %v2666_v8  ;;  %v4754_v50 = vunpack.c.h.bf16 %v5152_v15  ;;  %v1511_v54 = vmul.f32 %v7410_v56, %v4753_v12  ;;  %148 = vst [vmem:[#allocation2 + $0xd4] sm:$0xf] %v147_v39  ;;  %v7557_v8 = vld [vmem:[%s8624_s9] ss:$0 sm:$0xff] }
  0xd7   :  { %v5884_v29 = vpop.eup %5883  ;;  %v2088_v45 = vadd.f32 %v2024_v13, %v1306_v21  ;;  %v2667_v14 = vadd.f32 1.0, %v5882_v36  ;;  %5899 = vpow2.f32 %v4252_v25  ;;  %v4254_v35 = vmul.f32 -1.442695, %v7514_v52  ;;  %v4212_v21 = vld [vmem:[%s8622_s7 + $0x1bc] sm:$0xf] }
  0xd8   :  { %v5886_v22 = vpop.eup %5885  ;;  %v2089_v17 = vadd.f32 %v2025_v27, %v1307_v53  ;;  %v1308_v47 = vmul.f32 %v5884_v29, %v7399_v26  ;;  %5901 = vpow2.f32 %v4317_v61  ;;  %v4885_v11 = vunpack.c.l.bf16 %v5184_v62  ;;  %v4209_v26 = vld [vmem:[%s8622_s7 + $0x1a4] sm:$0xf]  ;;  %v7540_v53 = vld [vmem:[%s8623_s8] ss:$0 sm:$0xff]  ;;  %452 = vst [vmem:[#allocation3 + $0xdc] sm:$0xf] %v4212_v21 }
  0xd9   :  { %v5888_v30 = vpop.eup %5887  ;;  %v1309_v3 = vmul.f32 %v5886_v22, %v7402_v59  ;;  %5903 = vrcp.f32 %v2667_v14  ;;  %v1512_v59 = vmul.f32 %v7410_v56, %v4754_v50  ;;  %v7529_v18 = vadd.f32 %v7497_v57, %v1511_v54  ;;  %446 = vst [vmem:[#allocation3 + $0xd0] sm:$0xf] %v4209_v26  ;;  %v5122_v29 = vld [vmem:[%s8615_s0 + $0x80] sm:$0xff]  }
  0xda   :  { %v5890_v33 = vpop.eup %5889  ;;  %v2140_v42 = vpack.c.bf16 %v2089_v17, %v2088_v45  ;;  %v2668_v46 = vadd.f32 1.0, %v5888_v30  ;;  %5905 = vpow2.f32 %v4318_v16  ;;  %v4886_v51 = vunpack.c.h.bf16 %v5184_v62 }
  0xdb   :  { %v2669_v6 = vadd.f32 1.0, %v5890_v33  ;;  %5907 = vpow2.f32 %v4253_v24  ;;  %v2343_v20 = vmul.f32 %v7540_v53, %v4885_v11  ;;  %v4889_v55 = vunpack.c.l.bf16 %v5185_v10 }
  0xdc   :  { %5431 = vmatprep.mubr.bf16.mxu0 %v2140_v42  ;;  %5909 = vrcp.f32 %v2668_v46  ;;  %v5892_v31 = vpop.eup %5891  ;;  %v7550_v25 = vadd.f32 %v7497_v57, %v1512_v59  ;;  %v4319_v1 = vmul.f32 -1.442695, %v7529_v18  ;;  %v4890_v37 = vunpack.c.h.bf16 %v5185_v10 }
  0xdd   :  { %5911 = vrcp.f32 %v2669_v6  ;;  %v1118_v9 = vadd.f32 1.0, %v5892_v31  ;;  %v2344_v40 = vmul.f32 %v7540_v53, %v4886_v51  ;;  %v7560_v23 = vadd.f32 %v7557_v8, %v2343_v20  ;;  %v151_v51 = vld [vmem:[%s8618_s3 + $0x1b8] sm:$0xf] }
  0xde   :  { %v5894_v49 = vpop.eup %5893  ;;  %5913 = vpow2.f32 %v4254_v35  ;;  %v4320_v13 = vmul.f32 -1.442695, %v7550_v25  ;;  %v2345_v61 = vmul.f32 %v7540_v53, %v4889_v55  ;;  %v2346_v12 = vmul.f32 %v7540_v53, %v4890_v37  ;;  %152 = vst [vmem:[#allocation2 + $0xdc] sm:$0xf] %v151_v51 }
  0xdf   :  { %v5896_v15 = vpop.eup %5895  ;;  %v2026_v7 = vmul.f32 %v5894_v49, %v7421_v32  ;;  %5915 = vpow2.f32 %v4319_v1  ;;  %v7567_v27 = vadd.f32 %v7557_v8, %v2344_v40  ;;  %v4387_v24 = vmul.f32 -1.442695, %v7560_v23 }
  0xe0   :  { %v5898_v16 = vpop.eup %5897  ;;  %v2027_v36 = vmul.f32 %v5896_v15, %v7431_v48  ;;  %5917 = vrcp.f32 %v1118_v9  ;;  %v7577_v50 = vadd.f32 %v7557_v8, %v2345_v61  ;;  %v7580_v54 = vadd.f32 %v7557_v8, %v2346_v12 }
  0xe1   :  { %v5900_v45 = vpop.eup %5899  ;;  %v2090_v32 = vadd.f32 %v2026_v7, %v1308_v47  ;;  %v2858_v14 = vmul.f32 %v5898_v16, %v7445_v2  ;;  %5919 = vpow2.f32 %v4320_v13  ;;  %v4388_v17 = vmul.f32 -1.442695, %v7567_v27  ;;  %v5123_v7 = vld [vmem:[%s8615_s0 + $0x88] sm:$0xff]  }
  0xe2   :  { %v5902_v62 = vpop.eup %5901  ;;  %v2091_v22 = vadd.f32 %v2027_v36, %v1309_v3  ;;  %v1119_v48 = vadd.f32 1.0, %v5900_v45  ;;  %5921 = vpow2.f32 %v4387_v24  ;;  %v4629_v47 = vunpack.c.l.bf16 %v5122_v29  ;;  %v5153_v3 = vld [vmem:[#allocation2 + $0x80] sm:$0xff]  }
  0xe3   :  { %v5904_v35 = vpop.eup %5903  ;;  %v1836_v30 = vadd.f32 1.0, %v5902_v62  ;;  %v4630_v42 = vunpack.c.h.bf16 %v5122_v29  ;;  %v4389_v26 = vmul.f32 -1.442695, %v7577_v50  ;;  %v4390_v58 = vmul.f32 -1.442695, %v7580_v54 }
  0xe4   :  { %v5906_v10 = vpop.eup %5905  ;;  %v2141_v2 = vpack.c.bf16 %v2091_v22, %v2090_v32  ;;  %v2859_v33 = vmul.f32 %v5904_v35, %v7449_v43  ;;  %5923 = vrcp.f32 %v1119_v48  ;;  %v795_v21 = vmul.f32 %v7386_v38, %v4629_v47  ;;  %v149_v43 = vld [vmem:[%s8618_s3 + $0x1b0] sm:$0xf]  ;;  %v5154_v32 = vld [vmem:[#allocation2 + $0x88] sm:$0xff]  }
  0xe5   :  { %v5908_v46 = vpop.eup %5907  ;;  %v1837_v11 = vadd.f32 1.0, %v5906_v10  ;;  %5925 = vrcp.f32 %v1836_v30  ;;  %v796_v4 = vmul.f32 %v7386_v38, %v4630_v42  ;;  %v4757_v39 = vunpack.c.l.bf16 %v5153_v3  ;;  %150 = vst [vmem:[#allocation2 + $0xd8] sm:$0xf] %v149_v43 }
  0xe6   :  { %v5910_v6 = vpop.eup %5909  ;;  %5432 = vmatmul.mubr.bf16.gmra.mrb[24].mxu0 %v2141_v2  ;;  %v2908_v59 = vpack.c.bf16 %v2859_v33, %v2858_v14  ;;  %v1120_v63 = vadd.f32 1.0, %v5908_v46  ;;  %5927 = vpow2.f32 %v4388_v17  ;;  %v7596_v37 = vadd.f32 %v7396_v0, %v795_v21 }
  0xe7   :  { %v5912_v20 = vpop.eup %5911  ;;  %v2860_v55 = vmul.f32 %v5910_v6, %v7460_v44  ;;  %5929 = vrcp.f32 %v1837_v11  ;;  %v4758_v49 = vunpack.c.h.bf16 %v5153_v3  ;;  %v7599_v44 = vadd.f32 %v7396_v0, %v796_v4 }
  0xe8   :  { %v5914_v31 = vpop.eup %5913  ;;  %5355 = vmatprep.mubr.bf16.mxu1 %v2908_v59  ;;  %v2861_v1 = vmul.f32 %v5912_v20, %v7470_v28  ;;  %5931 = vrcp.f32 %v1120_v63  ;;  %v1513_v15 = vmul.f32 %v7410_v56, %v4757_v39  ;;  %v4255_v16 = vmul.f32 -1.442695, %v7596_v37  ;;  %v5186_v20 = vld [vmem:[#allocation3 + $0x90] sm:$0xff]  }
  0xe9   :  { %v5916_v9 = vpop.eup %5915  ;;  %v1121_v40 = vadd.f32 1.0, %v5914_v31  ;;  %5933 = vpow2.f32 %v4389_v26  ;;  %v4256_v29 = vmul.f32 -1.442695, %v7599_v44  ;;  %v1514_v45 = vmul.f32 %v7410_v56, %v4758_v49 }
  0xea   :  { %v5918_v13 = vpop.eup %5917  ;;  %v2909_v61 = vpack.c.bf16 %v2861_v1, %v2860_v55  ;;  %v1838_v28 = vadd.f32 1.0, %v5916_v9  ;;  %5935 = vpow2.f32 %v4390_v58  ;;  %v7610_v62 = vadd.f32 %v7497_v57, %v1513_v15  ;;  %v4213_v1 = vld [vmem:[%s8622_s7 + $0x1c4] sm:$0xf] }
  0xeb   :  { %v5920_v36 = vpop.eup %5919  ;;  %v1310_v24 = vmul.f32 %v5918_v13, %v7482_v60  ;;  %5937 = vrcp.f32 %v1121_v40  ;;  %v4633_v22 = vunpack.c.l.bf16 %v5123_v7  ;;  %v7613_v17 = vadd.f32 %v7497_v57, %v1514_v45  ;;  %454 = vst [vmem:[#allocation3 + $0xe0] sm:$0xf] %v4213_v1 }
  0xec   :  { %v5922_v14 = vpop.eup %5921  ;;  %5356 = vmatmul.mubr.bf16.gmra.mrb[28].mxu1 %v2909_v61  ;;  %v1839_v12 = vadd.f32 1.0, %v5920_v36  ;;  %5939 = vrcp.f32 %v1838_v28  ;;  %v4634_v60 = vunpack.c.h.bf16 %v5123_v7  ;;  %v4321_v30 = vmul.f32 -1.442695, %v7610_v62  ;;  %v4216_v7 = vld [vmem:[%s8622_s7 + $0x1dc] sm:$0xf] }
  0xed   :  { %v2670_v48 = vadd.f32 1.0, %v5922_v14  ;;  %5941 = vpow2.f32 %v4255_v16  ;;  %v797_v47 = vmul.f32 %v7386_v38, %v4633_v22  ;;  %v4761_v10 = vunpack.c.l.bf16 %v5154_v32  ;;  %v5187_v36 = vld [vmem:[#allocation3 + $0x98] sm:$0xff]   ;;  %460 = vst [vmem:[#allocation3 + $0xec] sm:$0xf] %v4216_v7 }
  0xee   :  { %v5924_v35 = vpop.eup %5923  ;;  %5943 = vrcp.f32 %v1839_v12  ;;  %v4322_v42 = vmul.f32 -1.442695, %v7613_v17  ;;  %v798_v3 = vmul.f32 %v7386_v38, %v4634_v60  ;;  %v4762_v58 = vunpack.c.h.bf16 %v5154_v32  ;;  %v159_v7 = vld [vmem:[%s8618_s3 + $0x1d8] sm:$0xf] }
  0xef   :  { %v5926_v2 = vpop.eup %5925  ;;  %v1311_v33 = vmul.f32 %v5924_v35, %v7486_v19  ;;  %5945 = vrcp.f32 %v2670_v48  ;;  %v7622_v26 = vadd.f32 %v7396_v0, %v797_v47  ;;  %v1515_v19 = vmul.f32 %v7410_v56, %v4761_v10  ;;  %160 = vst [vmem:[#allocation2 + $0xec] sm:$0xf] %v159_v7 }
  0xf0   :  { %v5928_v46 = vpop.eup %5927  ;;  %v2028_v11 = vmul.f32 %v5926_v2, %v7500_v5  ;;  %5947 = vpow2.f32 %v4256_v29  ;;  %v7625_v63 = vadd.f32 %v7396_v0, %v798_v3  ;;  %v1516_v31 = vmul.f32 %v7410_v56, %v4762_v58  ;;  %v155_v29 = vld [vmem:[%s8618_s3 + $0x1c8] sm:$0xf] }
  0xf1   :  { %v5930_v6 = vpop.eup %5929  ;;  %v2671_v59 = vadd.f32 1.0, %v5928_v46  ;;  %5949 = vpow2.f32 %v4321_v30  ;;  %v4257_v5 = vmul.f32 -1.442695, %v7622_v26  ;;  %v7640_v15 = vadd.f32 %v7497_v57, %v1515_v19  ;;  %156 = vst [vmem:[#allocation2 + $0xe4] sm:$0xf] %v155_v29 }
  0xf2   :  { %v5932_v21 = vpop.eup %5931  ;;  %v2029_v43 = vmul.f32 %v5930_v6, %v7503_v34  ;;  %v2092_v51 = vadd.f32 %v2028_v11, %v1310_v24  ;;  %5951 = vpow2.f32 %v4322_v42  ;;  %v4258_v39 = vmul.f32 -1.442695, %v7625_v63  ;;  %v4214_v34 = vld [vmem:[%s8622_s7 + $0x1cc] sm:$0xf]  ;;  %v153_v24 = vld [vmem:[%s8618_s3 + $0x1c0] sm:$0xf] }
  0xf3   :  { %v5934_v55 = vpop.eup %5933  ;;  %v1312_v4 = vmul.f32 %v5932_v21, %v7507_v41  ;;  %5953 = vrcp.f32 %v2671_v59  ;;  %456 = vst [vmem:[#allocation3 + $0xe4] sm:$0xf] %v4214_v34  ;;  %v4215_v41 = vld [vmem:[%s8622_s7 + $0x1d4] sm:$0xf]  ;;  %v7649_v28 = vadd.f32 %v7497_v57, %v1516_v31  ;;  %v4893_v16 = vunpack.c.l.bf16 %v5186_v20  ;;  %154 = vst [vmem:[#allocation2 + $0xe0] sm:$0xf] %v153_v24 }
  0xf4   :  { %v5936_v49 = vpop.eup %5935  ;;  %v2093_v9 = vadd.f32 %v2029_v43, %v1311_v33  ;;  %v2672_v40 = vadd.f32 1.0, %v5934_v55  ;;  %5955 = vpow2.f32 %v4257_v5  ;;  %458 = vst [vmem:[#allocation3 + $0xe8] sm:$0xf] %v4215_v41  ;;  %v4323_v12 = vmul.f32 -1.442695, %v7640_v15 }
  0xf5   :  { %v5938_v13 = vpop.eup %5937  ;;  %v2673_v61 = vadd.f32 1.0, %v5936_v49  ;;  %5957 = vpow2.f32 %v4258_v39  ;;  %v4324_v60 = vmul.f32 -1.442695, %v7649_v28  ;;  %v4894_v35 = vunpack.c.h.bf16 %v5186_v20  ;;  %v157_v41 = vld [vmem:[%s8618_s3 + $0x1d0] sm:$0xf] }
  0xf6   :  { %v5940_v45 = vpop.eup %5939  ;;  %v2142_v32 = vpack.c.bf16 %v2093_v9, %v2092_v51  ;;  %v1313_v14 = vmul.f32 %v5938_v13, %v7514_v52  ;;  %5959 = vrcp.f32 %v2672_v40  ;;  %v2347_v10 = vmul.f32 %v7540_v53, %v4893_v16  ;;  %158 = vst [vmem:[#allocation2 + $0xe8] sm:$0xf] %v157_v41 }
  0xf7   :  { %v5942_v22 = vpop.eup %5941  ;;  %v2030_v48 = vmul.f32 %v5940_v45, %v7529_v18  ;;  %5961 = vrcp.f32 %v2673_v61  ;;  %v4897_v2 = vunpack.c.l.bf16 %v5187_v36  ;;  %v2348_v3 = vmul.f32 %v7540_v53, %v4894_v35  ;;  %v5124_v18 = vld [vmem:[%s8615_s0 + $0x90] sm:$0xff]  }
  0xf8   :  { %v5944_v30 = vpop.eup %5943  ;;  %5435 = vmatprep.mubr.bf16.mxu0 %v2142_v32  ;;  %v1122_v47 = vadd.f32 1.0, %v5942_v22  ;;  %5963 = vpow2.f32 %v4323_v12  ;;  %v7669_v58 = vadd.f32 %v7557_v8, %v2347_v10  ;;  %v4898_v6 = vunpack.c.h.bf16 %v5187_v36  ;;  %v5155_v36 = vld [vmem:[#allocation2 + $0x90] sm:$0xff]  }
  0xf9   :  { %v5946_v52 = vpop.eup %5945  ;;  %v2031_v33 = vmul.f32 %v5944_v30, %v7550_v25  ;;  %v2094_v42 = vadd.f32 %v2030_v48, %v1312_v4  ;;  %5965 = vpow2.f32 %v4324_v60  ;;  %v7672_v25 = vadd.f32 %v7557_v8, %v2348_v3 }
  0xfa   :  { %v5948_v46 = vpop.eup %5947  ;;  %v2862_v11 = vmul.f32 %v5946_v52, %v7560_v23  ;;  %5967 = vrcp.f32 %v1122_v47  ;;  %v2349_v43 = vmul.f32 %v7540_v53, %v4897_v2  ;;  %v4391_v20 = vmul.f32 -1.442695, %v7669_v58 }
  0xfb   :  { %v5950_v59 = vpop.eup %5949  ;;  %v2095_v19 = vadd.f32 %v2031_v33, %v1313_v14  ;;  %v1123_v21 = vadd.f32 1.0, %v5948_v46  ;;  %v2350_v55 = vmul.f32 %v7540_v53, %v4898_v6  ;;  %v4637_v23 = vunpack.c.l.bf16 %v5124_v18  ;;  %v5125_v33 = vld [vmem:[%s8615_s0 + $0x98] sm:$0xff]  }
  0xfc   :  { %v5952_v51 = vpop.eup %5951  ;;  %v1840_v5 = vadd.f32 1.0, %v5950_v59  ;;  %v4392_v1 = vmul.f32 -1.442695, %v7672_v25  ;;  %v7680_v9 = vadd.f32 %v7557_v8, %v2349_v43  ;;  %v4765_v47 = vunpack.c.l.bf16 %v5155_v36  ;;  %v5156_v46 = vld [vmem:[#allocation2 + $0x98] sm:$0xff]  }
  0xfd   :  { %v5954_v4 = vpop.eup %5953  ;;  %v2143_v39 = vpack.c.bf16 %v2095_v19, %v2094_v42  ;;  %5969 = vrcp.f32 %v1123_v21  ;;  %v1841_v31 = vadd.f32 1.0, %v5952_v51  ;;  %v7683_v40 = vadd.f32 %v7557_v8, %v2350_v55 }
  0xfe   :  { %v5956_v34 = vpop.eup %5955  ;;  %v2863_v49 = vmul.f32 %v5954_v4, %v7567_v27  ;;  %5971 = vrcp.f32 %v1840_v5  ;;  %v4638_v27 = vunpack.c.h.bf16 %v5124_v18  ;;  %v799_v16 = vmul.f32 %v7386_v38, %v4637_v23 }
  0xff   :  { %v5958_v13 = vpop.eup %5957  ;;  %5436 = vmatmul.mubr.bf16.gmra.mrb[28].mxu0 %v2143_v39  ;;  %5973 = vrcp.f32 %v1841_v31  ;;  %v1124_v61 = vadd.f32 1.0, %v5956_v34  ;;  %v4393_v32 = vmul.f32 -1.442695, %v7680_v9  ;;  %v4394_v22 = vmul.f32 -1.442695, %v7683_v40 }
 0x100   :  { %v5960_v24 = vpop.eup %5959  ;;  %v2910_v29 = vpack.c.bf16 %v2863_v49, %v2862_v11  ;;  %v1125_v45 = vadd.f32 1.0, %v5958_v13  ;;  %5975 = vpow2.f32 %v4391_v20  ;;  %v800_v48 = vmul.f32 %v7386_v38, %v4638_v27 }
 0x101   :  { %v5962_v14 = vpop.eup %5961  ;;  %v2864_v12 = vmul.f32 %v5960_v24, %v7577_v50  ;;  %5977 = vrcp.f32 %v1124_v61  ;;  %v7698_v30 = vadd.f32 %v7396_v0, %v799_v16  ;;  %v4766_v50 = vunpack.c.h.bf16 %v5155_v36 }
 0x102   :  { %v5964_v60 = vpop.eup %5963  ;;  %5359 = vmatprep.mubr.bf16.mxu1 %v2910_v29  ;;  %v2865_v35 = vmul.f32 %v5962_v14, %v7580_v54  ;;  %5979 = vrcp.f32 %v1125_v45  ;;  %v7701_v52 = vadd.f32 %v7396_v0, %v800_v48  ;;  %v1517_v59 = vmul.f32 %v7410_v56, %v4765_v47  ;;  %v5188_v14 = vld [vmem:[#allocation3 + $0xa0] sm:$0xff]  }
 0x103   :  { %v5966_v10 = vpop.eup %5965  ;;  %v1842_v2 = vadd.f32 1.0, %v5964_v60  ;;  %5981 = vpow2.f32 %v4392_v1  ;;  %v4259_v54 = vmul.f32 -1.442695, %v7698_v30  ;;  %v1518_v19 = vmul.f32 %v7410_v56, %v4766_v50 }
 0x104   :  { %v5968_v42 = vpop.eup %5967  ;;  %v2911_v3 = vpack.c.bf16 %v2865_v35, %v2864_v12  ;;  %v1843_v18 = vadd.f32 1.0, %v5966_v10  ;;  %5983 = vpow2.f32 %v4393_v32  ;;  %v4260_v6 = vmul.f32 -1.442695, %v7701_v52 }
 0x105   :  { %v1314_v11 = vmul.f32 %v5968_v42, %v7596_v37  ;;  %5985 = vrcp.f32 %v1842_v2  ;;  %v4641_v21 = vunpack.c.l.bf16 %v5125_v33  ;;  %v4642_v43 = vunpack.c.h.bf16 %v5125_v33 }
 0x106   :  { %5360 = vmatmul.mubr.bf16.gmra.mrb[32].mxu1 %v2911_v3  ;;  %5987 = vrcp.f32 %v1843_v18  ;;  %v7712_v5 = vadd.f32 %v7497_v57, %v1517_v59  ;;  %v4769_v20 = vunpack.c.l.bf16 %v5156_v46  ;;  %v4770_v55 = vunpack.c.h.bf16 %v5156_v46  ;;  %v5189_v46 = vld [vmem:[#allocation3 + $0xa8] sm:$0xff]  }
 0x107   :  { %v5970_v51 = vpop.eup %5969  ;;  %5989 = vpow2.f32 %v4394_v22  ;;  %v7716_v4 = vadd.f32 %v7497_v57, %v1518_v19  ;;  %v801_v39 = vmul.f32 %v7386_v38, %v4641_v21  ;;  %v802_v49 = vmul.f32 %v7386_v38, %v4642_v43  ;;  %v4217_v38 = vld [vmem:[%s8622_s7 + $0x1e4] sm:$0xf]  ;;  %v161_v21 = vld [vmem:[%s8618_s3 + $0x1e0] sm:$0xf] }
 0x108   :  { %v5972_v23 = vpop.eup %5971  ;;  %v1315_v37 = vmul.f32 %v5970_v51, %v7599_v44  ;;  %5991 = vpow2.f32 %v4259_v54  ;;  %v4325_v34 = vmul.f32 -1.442695, %v7712_v5  ;;  %v1519_v61 = vmul.f32 %v7410_v56, %v4769_v20  ;;  %462 = vst [vmem:[#allocation3 + $0xf0] sm:$0xf] %v4217_v38  ;;  %162 = vst [vmem:[#allocation2 + $0xf0] sm:$0xf] %v161_v21 }
 0x109   :  { %v5974_v31 = vpop.eup %5973  ;;  %v2032_v1 = vmul.f32 %v5972_v23, %v7610_v62  ;;  %5993 = vpow2.f32 %v4260_v6  ;;  %v4326_v13 = vmul.f32 -1.442695, %v7716_v4  ;;  %v7725_v44 = vadd.f32 %v7396_v0, %v801_v39 }
 0x10a   :  { %v5976_v41 = vpop.eup %5975  ;;  %v2033_v7 = vmul.f32 %v5974_v31, %v7613_v17  ;;  %5995 = vpow2.f32 %v4325_v34  ;;  %v7729_v62 = vadd.f32 %v7396_v0, %v802_v49  ;;  %v4218_v17 = vld [vmem:[%s8622_s7 + $0x1ec] sm:$0xf]  ;;  %v1520_v48 = vmul.f32 %v7410_v56, %v4770_v55  ;;  %v4220_v56 = vld [vmem:[%s8622_s7 + $0x1fc] sm:$0xf]  ;;  %v5126_v49 = vld [vmem:[%s8615_s0 + $0xa0] sm:$0xff]  }
 0x10b   :  { %v5978_v27 = vpop.eup %5977  ;;  %v2096_v16 = vadd.f32 %v2032_v1, %v1314_v11  ;;  %v2674_v36 = vadd.f32 1.0, %v5976_v41  ;;  %5997 = vpow2.f32 %v4326_v13  ;;  %v4261_v32 = vmul.f32 -1.442695, %v7725_v44  ;;  %464 = vst [vmem:[#allocation3 + $0xf4] sm:$0xf] %v4218_v17 }
 0x10c   :  { %v5980_v24 = vpop.eup %5979  ;;  %v2097_v29 = vadd.f32 %v2033_v7, %v1315_v37  ;;  %v1316_v45 = vmul.f32 %v5978_v27, %v7622_v26  ;;  %v4262_v22 = vmul.f32 -1.442695, %v7729_v62  ;;  %v7743_v26 = vadd.f32 %v7497_v57, %v1519_v61  ;;  %468 = vst [vmem:[#allocation3 + $0xfc] sm:$0xf] %v4220_v56 }
 0x10d   :  { %v5982_v0 = vpop.eup %5981  ;;  %v1317_v12 = vmul.f32 %v5980_v24, %v7625_v63  ;;  %5999 = vrcp.f32 %v2674_v36  ;;  %v7746_v50 = vadd.f32 %v7497_v57, %v1520_v48  ;;  %v4901_v33 = vunpack.c.l.bf16 %v5188_v14  ;;  %v4219_v63 = vld [vmem:[%s8622_s7 + $0x1f4] sm:$0xf]  ;;  %v167_v48 = vld [vmem:[%s8618_s3 + $0x1f8] sm:$0xf] }
 0x10e   :  { %v5984_v60 = vpop.eup %5983  ;;  %v2144_v35 = vpack.c.bf16 %v2097_v29, %v2096_v16  ;;  %v2675_v47 = vadd.f32 1.0, %v5982_v0  ;;  %6001 = vpow2.f32 %v4261_v32  ;;  %v4327_v18 = vmul.f32 -1.442695, %v7743_v26  ;;  %466 = vst [vmem:[#allocation3 + $0xf8] sm:$0xf] %v4219_v63 }
 0x10f   :  { %v5986_v10 = vpop.eup %5985  ;;  %v2676_v2 = vadd.f32 1.0, %v5984_v60  ;;  %6003 = vpow2.f32 %v4262_v22  ;;  %v4902_v54 = vunpack.c.h.bf16 %v5188_v14  ;;  %v4328_v59 = vmul.f32 -1.442695, %v7746_v50  ;;  %v165_v22 = vld [vmem:[%s8618_s3 + $0x1f0] sm:$0xf] }
 0x110   :  { %v5988_v42 = vpop.eup %5987  ;;  %5439 = vmatprep.mubr.bf16.mxu0 %v2144_v35  ;;  %v2034_v3 = vmul.f32 %v5986_v10, %v7640_v15  ;;  %6005 = vrcp.f32 %v2675_v47  ;;  %v2351_v19 = vmul.f32 %v7540_v53, %v4901_v33  ;;  %v163_v15 = vld [vmem:[%s8618_s3 + $0x1e8] sm:$0xf]  ;;  %v4905_v34 = vunpack.c.l.bf16 %v5189_v46  ;;  %166 = vst [vmem:[#allocation2 + $0xf8] sm:$0xf] %v165_v22  ;;  %168 = vst [vmem:[#allocation2 + $0xfc] sm:$0xf] %v167_v48 }
 0x111   :  { %v5990_v11 = vpop.eup %5989  ;;  %v2035_v6 = vmul.f32 %v5988_v42, %v7649_v28  ;;  %6007 = vrcp.f32 %v2676_v2  ;;  %v2352_v55 = vmul.f32 %v7540_v53, %v4902_v54  ;;  %164 = vst [vmem:[#allocation2 + $0xf4] sm:$0xf] %v163_v15  ;;  %v4906_v61 = vunpack.c.h.bf16 %v5189_v46  ;;  %v5157_v2 = vld [vmem:[#allocation2 + $0xa0] sm:$0xff]  }
 0x112   :  { %v5992_v43 = vpop.eup %5991  ;;  %v2098_v51 = vadd.f32 %v2034_v3, %v1316_v45  ;;  %v2677_v20 = vadd.f32 1.0, %v5990_v11  ;;  %6009 = vpow2.f32 %v4327_v18  ;;  %v7767_v39 = vadd.f32 %v7557_v8, %v2351_v19  ;;  %v7805_v46 = vld [vmem:[%s8617_s2] ss:$0 sm:$0xff] }
 0x113   :  { %v5994_v28 = vpop.eup %5993  ;;  %v2099_v23 = vadd.f32 %v2035_v6, %v1317_v12  ;;  %v1126_v37 = vadd.f32 1.0, %v5992_v43  ;;  %6011 = vpow2.f32 %v4328_v59  ;;  %v7770_v1 = vadd.f32 %v7557_v8, %v2352_v55 }
 0x114   :  { %6013 = vrcp.f32 %v2677_v20  ;;  %v1127_v31 = vadd.f32 1.0, %v5994_v28  ;;  %v5996_v41 = vpop.eup %5995  ;;  %v4395_v13 = vmul.f32 -1.442695, %v7767_v39  ;;  %v2353_v38 = vmul.f32 %v7540_v53, %v4905_v34  ;;  %v7823_v34 = vld [vmem:[%s8619_s4] ss:$0 sm:$0xff] }
 0x115   :  { %v2145_v7 = vpack.c.bf16 %v2099_v23, %v2098_v51  ;;  %6015 = vrcp.f32 %v1126_v37  ;;  %v5998_v27 = vpop.eup %5997  ;;  %v1844_v16 = vadd.f32 1.0, %v5996_v41  ;;  %v4396_v36 = vmul.f32 -1.442695, %v7770_v1 }
 0x116   :  { %6017 = vrcp.f32 %v1127_v31  ;;  %v1845_v24 = vadd.f32 1.0, %v5998_v27  ;;  %v2354_v29 = vmul.f32 %v7540_v53, %v4906_v61  ;;  %v4645_v45 = vunpack.c.l.bf16 %v5126_v49 }
 0x117   :  { %v6000_v17 = vpop.eup %5999  ;;  %5440 = vmatmul.mubr.bf16.gmra.mrb[32].mxu0 %v2145_v7  ;;  %6019 = vpow2.f32 %v4395_v13  ;;  %v7781_v0 = vadd.f32 %v7557_v8, %v2353_v38  ;;  %v4646_v12 = vunpack.c.h.bf16 %v5126_v49  ;;  %v4773_v21 = vunpack.c.l.bf16 %v5157_v2 }
 0x118   :  { %v6002_v32 = vpop.eup %6001  ;;  %v2866_v14 = vmul.f32 %v6000_v17, %v7669_v58  ;;  %6021 = vrcp.f32 %v1844_v16  ;;  %v7790_v47 = vadd.f32 %v7557_v8, %v2354_v29  ;;  %v7795_v58 = vld [vmem:[%s8616_s1] ss:$0 sm:$0xff]  ;;  %v4774_v23 = vunpack.c.h.bf16 %v5157_v2  ;;  %v5158_v16 = vld [vmem:[#allocation2 + $0xa8] sm:$0xff]  }
 0x119   :  { %v6004_v60 = vpop.eup %6003  ;;  %6023 = vrcp.f32 %v1845_v24  ;;  %v1128_v35 = vadd.f32 1.0, %v6002_v32  ;;  %v803_v10 = vmul.f32 %v7795_v58, %v4645_v45  ;;  %v4397_v56 = vmul.f32 -1.442695, %v7781_v0 }
 0x11a   :  { %v6006_v33 = vpop.eup %6005  ;;  %v1129_v63 = vadd.f32 1.0, %v6004_v60  ;;  %6025 = vpow2.f32 %v4396_v36  ;;  %v804_v42 = vmul.f32 %v7795_v58, %v4646_v12  ;;  %v4398_v54 = vmul.f32 -1.442695, %v7790_v47 }
 0x11b   :  { %v6008_v3 = vpop.eup %6007  ;;  %v2867_v18 = vmul.f32 %v6006_v33, %v7672_v25  ;;  %6027 = vrcp.f32 %v1128_v35  ;;  %v7808_v11 = vadd.f32 %v7805_v46, %v803_v10  ;;  %v5127_v25 = vld [vmem:[%s8615_s0 + $0xa8] sm:$0xff]   ;;  %v1521_v49 = vmul.f32 %v7823_v34, %v4773_v21 }
 0x11c   :  { %v6010_v6 = vpop.eup %6009  ;;  %v2868_v59 = vmul.f32 %v6008_v3, %v7680_v9  ;;  %6029 = vrcp.f32 %v1129_v63  ;;  %v7812_v19 = vadd.f32 %v7805_v46, %v804_v42  ;;  %v4649_v41 = vunpack.c.l.bf16 %v5127_v25 }
 0x11d   :  { %v6012_v15 = vpop.eup %6011  ;;  %v2912_v43 = vpack.c.bf16 %v2867_v18, %v2866_v14  ;;  %v1846_v51 = vadd.f32 1.0, %v6010_v6  ;;  %6031 = vpow2.f32 %v4397_v56  ;;  %v4263_v20 = vmul.f32 -1.442695, %v7808_v11  ;;  %v5190_v18 = vld [vmem:[#allocation3 + $0xb0] sm:$0xff]  }
 0x11e   :  { %v6014_v55 = vpop.eup %6013  ;;  %v1847_v28 = vadd.f32 1.0, %v6012_v15  ;;  %6033 = vpow2.f32 %v4398_v54  ;;  %v4264_v9 = vmul.f32 -1.442695, %v7812_v19  ;;  %v1522_v61 = vmul.f32 %v7823_v34, %v4774_v23 }
 0x11f   :  { %v6016_v37 = vpop.eup %6015  ;;  %5363 = vmatprep.mubr.bf16.mxu1 %v2912_v43  ;;  %v2869_v31 = vmul.f32 %v6014_v55, %v7683_v40  ;;  %6035 = vrcp.f32 %v1846_v51  ;;  %v4650_v27 = vunpack.c.h.bf16 %v5127_v25  ;;  %v7830_v17 = vadd.f32 %v7497_v57, %v1521_v49 }
 0x120   :  { %v6018_v7 = vpop.eup %6017  ;;  %v1318_v13 = vmul.f32 %v6016_v37, %v7698_v30  ;;  %6037 = vrcp.f32 %v1847_v28  ;;  %v7833_v45 = vadd.f32 %v7497_v57, %v1522_v61  ;;  %v805_v30 = vmul.f32 %v7795_v58, %v4649_v41  ;;  %v7861_v41 = vld [vmem:[%s8620_s5] ss:$0 sm:$0xff] }
 0x121   :  { %v6020_v36 = vpop.eup %6019  ;;  %v2913_v38 = vpack.c.bf16 %v2869_v31, %v2868_v59  ;;  %v1319_v40 = vmul.f32 %v6018_v7, %v7701_v52  ;;  %6039 = vpow2.f32 %v4263_v20  ;;  %v4329_v12 = vmul.f32 -1.442695, %v7830_v17 }
 0x122   :  { %v6022_v24 = vpop.eup %6021  ;;  %v2678_v29 = vadd.f32 1.0, %v6020_v36  ;;  %6041 = vpow2.f32 %v4264_v9  ;;  %v806_v52 = vmul.f32 %v7795_v58, %v4650_v27  ;;  %v4777_v22 = vunpack.c.l.bf16 %v5158_v16 }
 0x123   :  { %v6024_v32 = vpop.eup %6023  ;;  %5364 = vmatmul.mubr.bf16.gmra.mrb[36].mxu1 %v2913_v38  ;;  %v2036_v14 = vmul.f32 %v6022_v24, %v7712_v5  ;;  %v4330_v35 = vmul.f32 -1.442695, %v7833_v45  ;;  %v7842_v10 = vadd.f32 %v7805_v46, %v805_v30  ;;  %v4778_v21 = vunpack.c.h.bf16 %v5158_v16 }
 0x124   :  { %v6026_v48 = vpop.eup %6025  ;;  %v2037_v60 = vmul.f32 %v6024_v32, %v7716_v4  ;;  %6043 = vrcp.f32 %v2678_v29  ;;  %v7845_v5 = vadd.f32 %v7805_v46, %v806_v52  ;;  %v1523_v51 = vmul.f32 %v7823_v34, %v4777_v22 }
 0x125   :  { %v6028_v2 = vpop.eup %6027  ;;  %v2100_v33 = vadd.f32 %v2036_v14, %v1318_v13  ;;  %v2679_v63 = vadd.f32 1.0, %v6026_v48  ;;  %6045 = vpow2.f32 %v4329_v12  ;;  %v4265_v4 = vmul.f32 -1.442695, %v7842_v10  ;;  %v5128_v12 = vld [vmem:[%s8615_s0 + $0xb0] sm:$0xff]  }
 0x126   :  { %v6030_v56 = vpop.eup %6029  ;;  %v2101_v42 = vadd.f32 %v2037_v60, %v1319_v40  ;;  %v1320_v3 = vmul.f32 %v6028_v2, %v7725_v44  ;;  %6047 = vpow2.f32 %v4330_v35  ;;  %v4266_v59 = vmul.f32 -1.442695, %v7845_v5 }
 0x127   :  { %v6032_v54 = vpop.eup %6031  ;;  %v1321_v6 = vmul.f32 %v6030_v56, %v7729_v62  ;;  %6049 = vrcp.f32 %v2679_v63  ;;  %v1524_v44 = vmul.f32 %v7823_v34, %v4778_v21  ;;  %v4909_v28 = vunpack.c.l.bf16 %v5190_v18 }
 0x128   :  { %v6034_v25 = vpop.eup %6033  ;;  %v2146_v15 = vpack.c.bf16 %v2101_v42, %v2100_v33  ;;  %v2680_v43 = vadd.f32 1.0, %v6032_v54  ;;  %6051 = vpow2.f32 %v4265_v4  ;;  %v7855_v23 = vadd.f32 %v7497_v57, %v1523_v51 }
 0x129   :  { %v6036_v20 = vpop.eup %6035  ;;  %v2681_v55 = vadd.f32 1.0, %v6034_v25  ;;  %6053 = vpow2.f32 %v4266_v59  ;;  %v4910_v37 = vunpack.c.h.bf16 %v5190_v18  ;;  %v7864_v7 = vadd.f32 %v7861_v41, %v1524_v44 }
 0x12a   :  { %v6038_v9 = vpop.eup %6037  ;;  %5443 = vmatprep.mubr.bf16.mxu0 %v2146_v15  ;;  %v2038_v62 = vmul.f32 %v6036_v20, %v7743_v26  ;;  %6055 = vrcp.f32 %v2680_v43  ;;  %v2355_v13 = vmul.f32 %v7540_v53, %v4909_v28  ;;  %v5191_v26 = vld [vmem:[#allocation3 + $0xb8] sm:$0xff]   ;;  %v4331_v16 = vmul.f32 -1.442695, %v7855_v23  ;;  %v5159_v43 = vld [vmem:[#allocation2 + $0xb0] sm:$0xff]  }
 0x12b   :  { %v6040_v31 = vpop.eup %6039  ;;  %v2039_v49 = vmul.f32 %v6038_v9, %v7746_v50  ;;  %6057 = vrcp.f32 %v2681_v55  ;;  %v2356_v36 = vmul.f32 %v7540_v53, %v4910_v37  ;;  %v4332_v40 = vmul.f32 -1.442695, %v7864_v7  ;;  %v5129_v55 = vld [vmem:[%s8615_s0 + $0xb8] sm:$0xff]  }
 0x12c   :  { %v6042_v61 = vpop.eup %6041  ;;  %v2102_v27 = vadd.f32 %v2038_v62, %v1320_v3  ;;  %v1130_v57 = vadd.f32 1.0, %v6040_v31  ;;  %v7871_v24 = vadd.f32 %v7557_v8, %v2355_v13  ;;  %v4913_v32 = vunpack.c.l.bf16 %v5191_v26 }
 0x12d   :  { %v2103_v50 = vadd.f32 %v2039_v49, %v1321_v6  ;;  %v1131_v38 = vadd.f32 1.0, %v6042_v61  ;;  %v7874_v30 = vadd.f32 %v7557_v8, %v2356_v36  ;;  %v4914_v14 = vunpack.c.h.bf16 %v5191_v26 }
 0x12e   :  { %v6044_v29 = vpop.eup %6043  ;;  %6059 = vrcp.f32 %v1130_v57  ;;  %v4399_v60 = vmul.f32 -1.442695, %v7871_v24  ;;  %v2357_v63 = vmul.f32 %v7540_v53, %v4913_v32  ;;  %v4653_v4 = vunpack.c.l.bf16 %v5128_v12 }
 0x12f   :  { %v6046_v52 = vpop.eup %6045  ;;  %v2147_v22 = vpack.c.bf16 %v2103_v50, %v2102_v27  ;;  %v2870_v48 = vmul.f32 %v6044_v29, %v7767_v39  ;;  %6061 = vrcp.f32 %v1131_v38  ;;  %v4400_v33 = vmul.f32 -1.442695, %v7874_v30  ;;  %v5160_v38 = vld [vmem:[#allocation2 + $0xb8] sm:$0xff]  }
 0x130   :  { %v6048_v35 = vpop.eup %6047  ;;  %v1848_v2 = vadd.f32 1.0, %v6046_v52  ;;  %6063 = vpow2.f32 %v4331_v16  ;;  %v2358_v3 = vmul.f32 %v7540_v53, %v4914_v14  ;;  %v7886_v54 = vadd.f32 %v7557_v8, %v2357_v63 }
 0x131   :  { %v6050_v56 = vpop.eup %6049  ;;  %5444 = vmatmul.mubr.bf16.gmra.mrb[36].mxu0 %v2147_v22  ;;  %v1849_v42 = vadd.f32 1.0, %v6048_v35  ;;  %6065 = vpow2.f32 %v4332_v40  ;;  %v4654_v6 = vunpack.c.h.bf16 %v5128_v12  ;;  %v807_v15 = vmul.f32 %v7795_v58, %v4653_v4 }
 0x132   :  { %v6052_v18 = vpop.eup %6051  ;;  %v2871_v39 = vmul.f32 %v6050_v56, %v7770_v1  ;;  %6067 = vrcp.f32 %v1848_v2  ;;  %v7889_v25 = vadd.f32 %v7557_v8, %v2358_v3  ;;  %v4401_v1 = vmul.f32 -1.442695, %v7886_v54 }
 0x133   :  { %v6054_v59 = vpop.eup %6053  ;;  %6069 = vrcp.f32 %v1849_v42  ;;  %v1132_v21 = vadd.f32 1.0, %v6052_v18  ;;  %v808_v9 = vmul.f32 %v7795_v58, %v4654_v6  ;;  %v7901_v37 = vadd.f32 %v7805_v46, %v807_v15  ;;  %v5192_v15 = vld [vmem:[#allocation3 + $0xc0] sm:$0xff]  }
 0x134   :  { %v6056_v51 = vpop.eup %6055  ;;  %v2914_v53 = vpack.c.bf16 %v2871_v39, %v2870_v48  ;;  %v1133_v20 = vadd.f32 1.0, %v6054_v59  ;;  %6071 = vpow2.f32 %v4399_v60  ;;  %v4402_v8 = vmul.f32 -1.442695, %v7889_v25 }
 0x135   :  { %v6058_v44 = vpop.eup %6057  ;;  %v2872_v28 = vmul.f32 %v6056_v51, %v7781_v0  ;;  %6073 = vrcp.f32 %v1132_v21  ;;  %v4781_v31 = vunpack.c.l.bf16 %v5159_v43  ;;  %v7904_v49 = vadd.f32 %v7805_v46, %v808_v9 }
 0x136   :  { %5367 = vmatprep.mubr.bf16.mxu1 %v2914_v53  ;;  %v2873_v62 = vmul.f32 %v6058_v44, %v7790_v47  ;;  %6075 = vrcp.f32 %v1133_v20  ;;  %v4782_v13 = vunpack.c.h.bf16 %v5159_v43  ;;  %v4657_v26 = vunpack.c.l.bf16 %v5129_v55 }
 0x137   :  { %6077 = vpow2.f32 %v4400_v33  ;;  %v4267_v27 = vmul.f32 -1.442695, %v7901_v37  ;;  %v1525_v57 = vmul.f32 %v7823_v34, %v4781_v31  ;;  %v4268_v36 = vmul.f32 -1.442695, %v7904_v49 }
 0x138   :  { %v6060_v0 = vpop.eup %6059  ;;  %v2915_v61 = vpack.c.bf16 %v2873_v62, %v2872_v28  ;;  %6079 = vpow2.f32 %v4401_v1  ;;  %v1526_v50 = vmul.f32 %v7823_v34, %v4782_v13  ;;  %v4658_v14 = vunpack.c.h.bf16 %v5129_v55 }
 0x139   :  { %v6062_v16 = vpop.eup %6061  ;;  %v1322_v47 = vmul.f32 %v6060_v0, %v7808_v11  ;;  %6081 = vpow2.f32 %v4402_v8  ;;  %v7913_v32 = vadd.f32 %v7861_v41, %v1525_v57  ;;  %v809_v22 = vmul.f32 %v7795_v58, %v4657_v26 }
 0x13a   :  { %v6064_v40 = vpop.eup %6063  ;;  %5368 = vmatmul.mubr.bf16.gmra.mrb[40].mxu1 %v2915_v61  ;;  %v1323_v29 = vmul.f32 %v6062_v16, %v7812_v19  ;;  %6083 = vpow2.f32 %v4267_v27  ;;  %v7916_v11 = vadd.f32 %v7861_v41, %v1526_v50  ;;  %v810_v2 = vmul.f32 %v7795_v58, %v4658_v14  ;;  %v7945_v27 = vld [vmem:[%s8623_s8] ss:$0 sm:$0xff]  ;;  %v5193_v16 = vld [vmem:[#allocation3 + $0xc8] sm:$0xff]  }
 0x13b   :  { %v6066_v12 = vpop.eup %6065  ;;  %v1850_v52 = vadd.f32 1.0, %v6064_v40  ;;  %6085 = vpow2.f32 %v4268_v36  ;;  %v4333_v35 = vmul.f32 -1.442695, %v7913_v32  ;;  %v4785_v19 = vunpack.c.l.bf16 %v5160_v38 }
 0x13c   :  { %v6068_v48 = vpop.eup %6067  ;;  %v1851_v60 = vadd.f32 1.0, %v6066_v12  ;;  %v4334_v56 = vmul.f32 -1.442695, %v7916_v11  ;;  %v7924_v42 = vadd.f32 %v7805_v46, %v809_v22  ;;  %v7928_v18 = vadd.f32 %v7805_v46, %v810_v2  ;;  %v7957_v12 = vld [vmem:[%s8624_s9] ss:$0 sm:$0xff] }
 0x13d   :  { %v6070_v33 = vpop.eup %6069  ;;  %v2040_v63 = vmul.f32 %v6068_v48, %v7830_v17  ;;  %6087 = vrcp.f32 %v1850_v52  ;;  %v4786_v39 = vunpack.c.h.bf16 %v5160_v38  ;;  %v1527_v55 = vmul.f32 %v7823_v34, %v4785_v19 }
 0x13e   :  { %v6072_v3 = vpop.eup %6071  ;;  %v2041_v4 = vmul.f32 %v6070_v33, %v7833_v45  ;;  %6089 = vrcp.f32 %v1851_v60  ;;  %v4269_v17 = vmul.f32 -1.442695, %v7924_v42  ;;  %v4270_v20 = vmul.f32 -1.442695, %v7928_v18 }
 0x13f   :  { %v6074_v6 = vpop.eup %6073  ;;  %v2104_v59 = vadd.f32 %v2040_v63, %v1322_v47  ;;  %v2682_v21 = vadd.f32 1.0, %v6072_v3  ;;  %6091 = vpow2.f32 %v4333_v35  ;;  %v1528_v44 = vmul.f32 %v7823_v34, %v4786_v39  ;;  %v5130_v47 = vld [vmem:[%s8615_s0 + $0xc0] sm:$0xff]  }
 0x140   :  { %v6076_v43 = vpop.eup %6075  ;;  %v2105_v51 = vadd.f32 %v2041_v4, %v1323_v29  ;;  %v1324_v53 = vmul.f32 %v6074_v6, %v7842_v10  ;;  %6093 = vpow2.f32 %v4334_v56  ;;  %v4917_v62 = vunpack.c.l.bf16 %v5192_v15 }
 0x141   :  { %v6078_v45 = vpop.eup %6077  ;;  %v1325_v1 = vmul.f32 %v6076_v43, %v7845_v5  ;;  %6095 = vrcp.f32 %v2682_v21  ;;  %v7937_v10 = vadd.f32 %v7861_v41, %v1527_v55  ;;  %v7940_v26 = vadd.f32 %v7861_v41, %v1528_v44 }
 0x142   :  { %v6080_v28 = vpop.eup %6079  ;;  %v2148_v8 = vpack.c.bf16 %v2105_v51, %v2104_v59  ;;  %v2683_v9 = vadd.f32 1.0, %v6078_v45  ;;  %6097 = vpow2.f32 %v4269_v17  ;;  %v4918_v61 = vunpack.c.h.bf16 %v5192_v15 }
 0x143   :  { %v6082_v31 = vpop.eup %6081  ;;  %v2684_v13 = vadd.f32 1.0, %v6080_v28  ;;  %6099 = vpow2.f32 %v4270_v20  ;;  %v2359_v57 = vmul.f32 %v7945_v27, %v4917_v62  ;;  %v4335_v38 = vmul.f32 -1.442695, %v7937_v10  ;;  %v7981_v62 = vpop.f32.mrb[0].mxu0 }
 0x144   :  { %v6084_v5 = vpop.eup %6083  ;;  %5447 = vmatprep.mubr.bf16.mxu0 %v2148_v8  ;;  %6101 = vrcp.f32 %v2683_v9  ;;  %v2685_v0 = vadd.f32 1.0, %v6082_v31  ;;  %v4336_v40 = vmul.f32 -1.442695, %v7940_v26  ;;  %v2360_v14 = vmul.f32 %v7945_v27, %v4918_v61  ;;  %v7979_v9 = vpop.f32.mrb[0].mxu1 }
 0x145   :  { %v6086_v36 = vpop.eup %6085  ;;  %6103 = vrcp.f32 %v2684_v13  ;;  %v1134_v50 = vadd.f32 1.0, %v6084_v5  ;;  %v7960_v52 = vadd.f32 %v7957_v12, %v2359_v57  ;;  %v4921_v48 = vunpack.c.l.bf16 %v5193_v16  ;;  %v7987_v61 = vpop.f32.mrb[1].mxu0 }
 0x146   :  { %6105 = vrcp.f32 %v2685_v0  ;;  %v1135_v29 = vadd.f32 1.0, %v6086_v36  ;;  %v4922_v60 = vunpack.c.h.bf16 %v5193_v16  ;;  %v4661_v35 = vunpack.c.l.bf16 %v5130_v47  ;;  %v7985_v0 = vpop.f32.mrb[1].mxu1 }
 0x147   :  { %v6088_v22 = vpop.eup %6087  ;;  %6107 = vrcp.f32 %v1134_v50  ;;  %v7964_v33 = vadd.f32 %v7957_v12, %v2360_v14  ;;  %v4403_v63 = vmul.f32 -1.442695, %v7960_v52  ;;  %v2361_v4 = vmul.f32 %v7945_v27, %v4921_v48  ;;  %v7991_v50 = vpop.f32.mrb[2].mxu1 }
 0x148   :  { %v6090_v2 = vpop.eup %6089  ;;  %v2042_v19 = vmul.f32 %v6088_v22, %v7855_v23  ;;  %6109 = vrcp.f32 %v1135_v29  ;;  %v2362_v39 = vmul.f32 %v7945_v27, %v4922_v60  ;;  %v4662_v55 = vunpack.c.h.bf16 %v5130_v47  ;;  %v7999_v48 = vpop.f32.mrb[3].mxu1 }
 0x149   :  { %v6092_v56 = vpop.eup %6091  ;;  %v2043_v3 = vmul.f32 %v6090_v2, %v7864_v7  ;;  %6111 = vpow2.f32 %v4335_v38  ;;  %v4404_v23 = vmul.f32 -1.442695, %v7964_v33  ;;  %v7972_v51 = vadd.f32 %v7957_v12, %v2361_v4  ;;  %v7993_v38 = vpop.f32.mrb[2].mxu0 }
 0x14a   :  { %v6094_v6 = vpop.eup %6093  ;;  %v2106_v59 = vadd.f32 %v2042_v19, %v1324_v53  ;;  %v1852_v21 = vadd.f32 1.0, %v6092_v56  ;;  %6113 = vpow2.f32 %v4336_v40  ;;  %v7976_v45 = vadd.f32 %v7957_v12, %v2362_v39  ;;  %v5161_v53 = vld [vmem:[#allocation2 + $0xc0] sm:$0xff]   ;;  %v8001_v60 = vpop.f32.mrb[3].mxu0 }
 0x14b   :  { %v6096_v17 = vpop.eup %6095  ;;  %v2107_v15 = vadd.f32 %v2043_v3, %v1325_v1  ;;  %v1853_v43 = vadd.f32 1.0, %v6094_v6  ;;  %6115 = vpow2.f32 %v4403_v63  ;;  %v4405_v1 = vmul.f32 -1.442695, %v7972_v51  ;;  %v8010_v63 = vpop.f32.mrb[4].mxu1 }
 0x14c   :  { %v6098_v20 = vpop.eup %6097  ;;  %v2874_v7 = vmul.f32 %v6096_v17, %v7871_v24  ;;  %6117 = vrcp.f32 %v1852_v21  ;;  %v4406_v24 = vmul.f32 -1.442695, %v7976_v45  ;;  %v811_v5 = vmul.f32 %v7795_v58, %v4661_v35  ;;  %v8012_v56 = vpop.f32.mrb[4].mxu0 }
 0x14d   :  { %v6100_v44 = vpop.eup %6099  ;;  %v2149_v28 = vpack.c.bf16 %v2107_v15, %v2106_v59  ;;  %6119 = vrcp.f32 %v1853_v43  ;;  %v1136_v8 = vadd.f32 1.0, %v6098_v20  ;;  %v812_v47 = vmul.f32 %v7795_v58, %v4662_v55  ;;  %v8017_v6 = vpop.f32.mrb[5].mxu1 }
 0x14e   :  { %v6102_v31 = vpop.eup %6101  ;;  %v1137_v13 = vadd.f32 1.0, %v6100_v44  ;;  %6121 = vpow2.f32 %v4404_v23  ;;  %v4789_v36 = vunpack.c.l.bf16 %v5161_v53  ;;  %v7997_v14 = vadd.f32 %v7805_v46, %v811_v5  ;;  %v8019_v59 = vpop.f32.mrb[5].mxu0 }
 0x14f   :  { %v6104_v57 = vpop.eup %6103  ;;  %5448 = vmatmul.mubr.bf16.gmra.mrb[40].mxu0 %v2149_v28  ;;  %v2875_v16 = vmul.f32 %v6102_v31, %v7874_v30  ;;  %6123 = vrcp.f32 %v1136_v8  ;;  %v4790_v22 = vunpack.c.h.bf16 %v5161_v53  ;;  %v8005_v19 = vadd.f32 %v7805_v46, %v812_v47  ;;  %v8024_v20 = vpop.f32.mrb[6].mxu1 }
 0x150   :  { %v6106_v40 = vpop.eup %6105  ;;  %v2876_v29 = vmul.f32 %v6104_v57, %v7886_v54  ;;  %6125 = vrcp.f32 %v1137_v13  ;;  %v5131_v54 = vld [vmem:[%s8615_s0 + $0xc8] sm:$0xff]   ;;  %v4271_v39 = vmul.f32 -1.442695, %v7997_v14  ;;  %v8031_v28 = vpop.f32.mrb[7].mxu1 }
 0x151   :  { %v6108_v30 = vpop.eup %6107  ;;  %v2916_v35 = vpack.c.bf16 %v2875_v16, %v2874_v7  ;;  %v2877_v2 = vmul.f32 %v6106_v40, %v7889_v25  ;;  %6127 = vpow2.f32 %v4405_v1  ;;  %v1529_v25 = vmul.f32 %v7823_v34, %v4789_v36  ;;  %v8038_v5 = vpop.f32.mrb[8].mxu1 }
 0x152   :  { %v6110_v3 = vpop.eup %6109  ;;  %v1326_v4 = vmul.f32 %v6108_v30, %v7901_v37  ;;  %6129 = vpow2.f32 %v4406_v24  ;;  %v4272_v15 = vmul.f32 -1.442695, %v8005_v19  ;;  %v1530_v43 = vmul.f32 %v7823_v34, %v4790_v22  ;;  %v8026_v37 = vpop.f32.mrb[6].mxu0  ;;  %v5162_v24 = vld [vmem:[#allocation2 + $0xc8] sm:$0xff]  }
 0x153   :  { %v6112_v21 = vpop.eup %6111  ;;  %5371 = vmatprep.mubr.bf16.mxu1 %v2916_v35  ;;  %v2917_v23 = vpack.c.bf16 %v2877_v2, %v2876_v29  ;;  %v1327_v17 = vmul.f32 %v6110_v3, %v7904_v49  ;;  %6131 = vpow2.f32 %v4271_v39  ;;  %v8029_v53 = vadd.f32 %v7861_v41, %v1529_v25  ;;  %v8033_v8 = vpop.f32.mrb[7].mxu0 }
 0x154   :  { %v6114_v7 = vpop.eup %6113  ;;  %v1854_v55 = vadd.f32 1.0, %v6112_v21  ;;  %v4665_v44 = vunpack.c.l.bf16 %v5131_v54  ;;  %6133 = vpow2.f32 %v4272_v15  ;;  %v8036_v31 = vadd.f32 %v7861_v41, %v1530_v43  ;;  %v8040_v57 = vpop.f32.mrb[8].mxu0 }
 0x155   :  { %v6116_v49 = vpop.eup %6115  ;;  %5372 = vmatmul.mubr.bf16.gmra.mrb[44].mxu1 %v2917_v23  ;;  %v1855_v1 = vadd.f32 1.0, %v6114_v7  ;;  %v4666_v13 = vunpack.c.h.bf16 %v5131_v54  ;;  %v4337_v36 = vmul.f32 -1.442695, %v8029_v53  ;;  %v8044_v29 = vpop.f32.mrb[9].mxu1  ;;  %v4793_v15 = vunpack.c.l.bf16 %v5162_v24 }
 0x156   :  { %v6118_v16 = vpop.eup %6117  ;;  %6135 = vrcp.f32 %v1854_v55  ;;  %v2686_v47 = vadd.f32 1.0, %v6116_v49  ;;  %v813_v40 = vmul.f32 %v7795_v58, %v4665_v44  ;;  %v8046_v22 = vpop.f32.mrb[9].mxu0  ;;  %v4338_v2 = vmul.f32 -1.442695, %v8036_v31 }
 0x157   :  { %v6120_v30 = vpop.eup %6119  ;;  %v2044_v35 = vmul.f32 %v6118_v16, %v7913_v32  ;;  %6137 = vrcp.f32 %v1855_v1  ;;  %v814_v54 = vmul.f32 %v7795_v58, %v4666_v13  ;;  %v8051_v3 = vpop.f32.mrb[10].mxu1 }
 0x158   :  { %v8053_v39 = vpop.f32.mrb[10].mxu0  ;;  %v6122_v25 = vpop.eup %6121  ;;  %v2045_v21 = vmul.f32 %v6120_v30, %v7916_v11  ;;  %6139 = vrcp.f32 %v2686_v47  ;;  %v8057_v23 = vadd.f32 %v7805_v46, %v813_v40  ;;  %v5194_v47 = vld [vmem:[#allocation3 + $0xd0] sm:$0xff]  }
 0x159   :  { %v8059_v43 = vpop.f32.mrb[11].mxu1  ;;  %v8061_v32 = vpop.f32.mrb[11].mxu0  ;;  %v2108_v55 = vadd.f32 %v2044_v35, %v1326_v4  ;;  %v2687_v44 = vadd.f32 1.0, %v6122_v25  ;;  %6141 = vpow2.f32 %v4337_v36  ;;  %v8064_v49 = vadd.f32 %v7805_v46, %v814_v54  ;;  %v5195_v35 = vld [vmem:[#allocation3 + $0xd8] sm:$0xff]  }
 0x15a   :  { %8628 = vst [vmem:[#allocation4_spill] sm:$0xff] %v8059_v43  ;;  %8629 = vst [vmem:[#allocation5_spill] sm:$0xff] %v8061_v32  ;;  %v6124_v7 = vpop.eup %6123  ;;  %v2109_v13 = vadd.f32 %v2045_v21, %v1327_v17  ;;  %6143 = vpow2.f32 %v4338_v2  ;;  %v4273_v16 = vmul.f32 -1.442695, %v8057_v23  ;;  %v8068_v40 = vpop.f32.mrb[12].mxu1  ;;  %v4794_v36 = vunpack.c.h.bf16 %v5162_v24 }
 0x15b   :  { %v6126_v1 = vpop.eup %6125  ;;  %v1328_v11 = vmul.f32 %v6124_v7, %v7924_v42  ;;  %8630 = vst [vmem:[#allocation6_spill] sm:$0xff] %v8068_v40  ;;  %6145 = vrcp.f32 %v2687_v44  ;;  %v4274_v4 = vmul.f32 -1.442695, %v8064_v49  ;;  %v8072_v54 = vpop.f32.mrb[13].mxu1  ;;  %v1531_v42 = vmul.f32 %v7823_v34, %v4793_v15 }
 0x15c   :  { %v6128_v30 = vpop.eup %6127  ;;  %v1329_v32 = vmul.f32 %v6126_v1, %v7928_v18  ;;  %8631 = vst [vmem:[#allocation7_spill] sm:$0xff] %v8072_v54  ;;  %v2150_v17 = vpack.c.bf16 %v2109_v13, %v2108_v55  ;;  %6147 = vpow2.f32 %v4273_v16  ;;  %v8075_v2 = vpop.f32.mrb[14].mxu1  ;;  %v1532_v40 = vmul.f32 %v7823_v34, %v4794_v36 }
 0x15d   :  { %v6130_v25 = vpop.eup %6129  ;;  %v2688_v21 = vadd.f32 1.0, %v6128_v30  ;;  %8632 = vst [vmem:[#allocation8_spill] sm:$0xff] %v8075_v2  ;;  %6149 = vpow2.f32 %v4274_v4  ;;  %v4925_v18 = vunpack.c.l.bf16 %v5194_v47  ;;  %v8078_v44 = vpop.f32.mrb[15].mxu1  ;;  %v8081_v24 = vadd.f32 %v7861_v41, %v1531_v42 }
 0x15e   :  { %v2689_v7 = vadd.f32 1.0, %v6130_v25  ;;  %8633 = vst [vmem:[#allocation9_spill] sm:$0xff] %v8078_v44  ;;  %v6132_v1 = vpop.eup %6131  ;;  %5451 = vmatprep.mubr.bf16.mxu0 %v2150_v17  ;;  %v4926_v55 = vunpack.c.h.bf16 %v5194_v47  ;;  %v4929_v13 = vunpack.c.l.bf16 %v5195_v35  ;;  %v8084_v30 = vadd.f32 %v7861_v41, %v1532_v40 }
 0x15f   :  { %6151 = vrcp.f32 %v2688_v21  ;;  %v6134_v16 = vpop.eup %6133  ;;  %v1138_v15 = vadd.f32 1.0, %v6132_v1  ;;  %v2363_v4 = vmul.f32 %v7945_v27, %v4925_v18  ;;  %v4339_v44 = vmul.f32 -1.442695, %v8081_v24 }
 0x160   :  { %6153 = vrcp.f32 %v2689_v7  ;;  %v6136_v36 = vpop.eup %6135  ;;  %v1139_v25 = vadd.f32 1.0, %v6134_v16  ;;  %v2364_v17 = vmul.f32 %v7945_v27, %v4926_v55  ;;  %v4930_v21 = vunpack.c.h.bf16 %v5195_v35 }
 0x161   :  { %v6138_v2 = vpop.eup %6137  ;;  %v2046_v42 = vmul.f32 %v6136_v36, %v7937_v10  ;;  %6155 = vrcp.f32 %v1138_v15  ;;  %v4340_v47 = vmul.f32 -1.442695, %v8084_v30  ;;  %v8092_v7 = vadd.f32 %v7957_v12, %v2363_v4  ;;  %v5132_v15 = vld [vmem:[%s8615_s0 + $0xd0] sm:$0xff]  }
 0x162   :  { %v6140_v40 = vpop.eup %6139  ;;  %v2047_v1 = vmul.f32 %v6138_v2, %v7940_v26  ;;  %6157 = vrcp.f32 %v1139_v25  ;;  %v8096_v18 = vadd.f32 %v7957_v12, %v2364_v17  ;;  %v2365_v16 = vmul.f32 %v7945_v27, %v4929_v13 }
 0x163   :  { %v6142_v55 = vpop.eup %6141  ;;  %v2110_v35 = vadd.f32 %v2046_v42, %v1328_v11  ;;  %v2878_v54 = vmul.f32 %v6140_v40, %v7960_v52  ;;  %6159 = vpow2.f32 %v4339_v44  ;;  %v4407_v10 = vmul.f32 -1.442695, %v8092_v7 }
 0x164   :  { %v6144_v4 = vpop.eup %6143  ;;  %v2111_v36 = vadd.f32 %v2047_v1, %v1329_v32  ;;  %v1856_v26 = vadd.f32 1.0, %v6142_v55  ;;  %6161 = vpow2.f32 %v4340_v47  ;;  %v4408_v2 = vmul.f32 -1.442695, %v8096_v18  ;;  %v5163_v55 = vld [vmem:[#allocation2 + $0xd0] sm:$0xff]  }
 0x165   :  { %v6146_v25 = vpop.eup %6145  ;;  %v1857_v17 = vadd.f32 1.0, %v6144_v4  ;;  %6163 = vpow2.f32 %v4407_v10  ;;  %v2366_v11 = vmul.f32 %v7945_v27, %v4930_v21  ;;  %v8107_v52 = vadd.f32 %v7957_v12, %v2365_v16 }
 0x166   :  { %v6148_v44 = vpop.eup %6147  ;;  %v2151_v13 = vpack.c.bf16 %v2111_v36, %v2110_v35  ;;  %v2879_v42 = vmul.f32 %v6146_v25, %v7964_v33  ;;  %6165 = vrcp.f32 %v1856_v26  ;;  %v4669_v40 = vunpack.c.l.bf16 %v5132_v15  ;;  %v5133_v33 = vld [vmem:[%s8615_s0 + $0xd8] sm:$0xff]  }
 0x167   :  { %v6150_v43 = vpop.eup %6149  ;;  %6167 = vrcp.f32 %v1857_v17  ;;  %v1140_v32 = vadd.f32 1.0, %v6148_v44  ;;  %v8111_v47 = vadd.f32 %v7957_v12, %v2366_v11  ;;  %v4409_v1 = vmul.f32 -1.442695, %v8107_v52 }
 0x168   :  { %5452 = vmatmul.mubr.bf16.gmra.mrb[44].mxu0 %v2151_v13  ;;  %v2918_v21 = vpack.c.bf16 %v2879_v42, %v2878_v54  ;;  %v1141_v16 = vadd.f32 1.0, %v6150_v43  ;;  %6169 = vpow2.f32 %v4408_v2  ;;  %v4670_v4 = vunpack.c.h.bf16 %v5132_v15 }
 0x169   :  { %v6152_v10 = vpop.eup %6151  ;;  %6171 = vrcp.f32 %v1140_v32  ;;  %v4410_v26 = vmul.f32 -1.442695, %v8111_v47  ;;  %v815_v25 = vmul.f32 %v7795_v58, %v4669_v40  ;;  %v4797_v54 = vunpack.c.l.bf16 %v5163_v55 }
 0x16a   :  { %v6154_v35 = vpop.eup %6153  ;;  %v2880_v36 = vmul.f32 %v6152_v10, %v7972_v51  ;;  %5375 = vmatprep.mubr.bf16.mxu1 %v2918_v21  ;;  %6173 = vrcp.f32 %v1141_v16  ;;  %v816_v43 = vmul.f32 %v7795_v58, %v4670_v4  ;;  %v4798_v11 = vunpack.c.h.bf16 %v5163_v55 }
 0x16b   :  { %v2881_v17 = vmul.f32 %v6154_v35, %v7976_v45  ;;  %v6156_v15 = vpop.eup %6155  ;;  %6175 = vpow2.f32 %v4409_v1  ;;  %v8123_v2 = vadd.f32 %v7805_v46, %v815_v25  ;;  %v4673_v44 = vunpack.c.l.bf16 %v5133_v33  ;;  %v8125_v51 = vpop.f32.mrb[12].mxu0 }
 0x16c   :  { %8634 = vst [vmem:[#allocation10_spill] sm:$0xff] %v8125_v51  ;;  %v6158_v13 = vpop.eup %6157  ;;  %v1330_v40 = vmul.f32 %v6156_v15, %v7997_v14  ;;  %6177 = vpow2.f32 %v4410_v26  ;;  %v8129_v45 = vadd.f32 %v7805_v46, %v816_v43  ;;  %v8131_v32 = vpop.f32.mrb[13].mxu0  ;;  %v1533_v55 = vmul.f32 %v7823_v34, %v4797_v54 }
 0x16d   :  { %v2919_v42 = vpack.c.bf16 %v2881_v17, %v2880_v36  ;;  %8635 = vst [vmem:[#allocation11_spill] sm:$0xff] %v8131_v32  ;;  %v6160_v10 = vpop.eup %6159  ;;  %v1331_v1 = vmul.f32 %v6158_v13, %v8005_v19  ;;  %v4275_v21 = vmul.f32 -1.442695, %v8123_v2  ;;  %v1534_v16 = vmul.f32 %v7823_v34, %v4798_v11  ;;  %v8137_v4 = vpop.f32.mrb[14].mxu0 }
 0x16e   :  { %8636 = vst [vmem:[#allocation12_spill] sm:$0xff] %v8137_v4  ;;  %v6162_v35 = vpop.eup %6161  ;;  %v1858_v14 = vadd.f32 1.0, %v6160_v10  ;;  %v4276_v36 = vmul.f32 -1.442695, %v8129_v45  ;;  %v4674_v26 = vunpack.c.h.bf16 %v5133_v33  ;;  %v817_v25 = vmul.f32 %v7795_v58, %v4673_v44  ;;  %v8141_v17 = vpop.f32.mrb[15].mxu0  ;;  %v5164_v44 = vld [vmem:[#allocation2 + $0xd8] sm:$0xff]  }
 0x16f   :  { %5376 = vmatmul.mubr.bf16.gmra.mrb[48].mxu1 %v2919_v42  ;;  %8637 = vst [vmem:[#allocation13_spill] sm:$0xff] %v8141_v17  ;;  %v6164_v43 = vpop.eup %6163  ;;  %v1859_v19 = vadd.f32 1.0, %v6162_v35  ;;  %6179 = vpow2.f32 %v4275_v21  ;;  %v8144_v15 = vadd.f32 %v7861_v41, %v1533_v55  ;;  %v8147_v54 = vadd.f32 %v7861_v41, %v1534_v16 }
 0x170   :  { %v6166_v11 = vpop.eup %6165  ;;  %6181 = vrcp.f32 %v1858_v14  ;;  %v2690_v13 = vadd.f32 1.0, %v6164_v43  ;;  %v818_v42 = vmul.f32 %v7795_v58, %v4674_v26  ;;  %v8151_v33 = vadd.f32 %v7805_v46, %v817_v25 }
 0x171   :  { %v6168_v10 = vpop.eup %6167  ;;  %v2048_v17 = vmul.f32 %v6166_v11, %v8029_v53  ;;  %6183 = vrcp.f32 %v1859_v19  ;;  %v4341_v21 = vmul.f32 -1.442695, %v8144_v15  ;;  %v4342_v55 = vmul.f32 -1.442695, %v8147_v54  ;;  %v5196_v53 = vld [vmem:[#allocation3 + $0xe0] sm:$0xff]  }
 0x172   :  { %v6170_v35 = vpop.eup %6169  ;;  %v2049_v16 = vmul.f32 %v6168_v10, %v8036_v31  ;;  %6185 = vrcp.f32 %v2690_v13  ;;  %v8158_v14 = vadd.f32 %v7805_v46, %v818_v42  ;;  %v4277_v58 = vmul.f32 -1.442695, %v8151_v33 }
 0x173   :  { %v6172_v26 = vpop.eup %6171  ;;  %v2112_v25 = vadd.f32 %v2048_v17, %v1330_v40  ;;  %v2691_v43 = vadd.f32 1.0, %v6170_v35  ;;  %6187 = vpow2.f32 %v4276_v36  ;;  %v4801_v4 = vunpack.c.l.bf16 %v5164_v44  ;;  %v8161_v19 = vpop.f32.mrb[16].mxu1  ;;  %v5197_v17 = vld [vmem:[#allocation3 + $0xe8] sm:$0xff]  }
 0x174   :  { %8638 = vst [vmem:[#allocation14_spill] sm:$0xff] %v8161_v19  ;;  %v6174_v11 = vpop.eup %6173  ;;  %v2113_v32 = vadd.f32 %v2049_v16, %v1331_v1  ;;  %v1332_v51 = vmul.f32 %v6172_v26, %v8057_v23  ;;  %6189 = vpow2.f32 %v4341_v21  ;;  %v4278_v31 = vmul.f32 -1.442695, %v8158_v14  ;;  %v8165_v13 = vpop.f32.mrb[17].mxu1 }
 0x175   :  { %8639 = vst [vmem:[#allocation15_spill] sm:$0xff] %v8165_v13  ;;  %v6176_v46 = vpop.eup %6175  ;;  %v1333_v42 = vmul.f32 %v6174_v11, %v8064_v49  ;;  %6191 = vrcp.f32 %v2691_v43  ;;  %v4802_v40 = vunpack.c.h.bf16 %v5164_v44  ;;  %v1535_v36 = vmul.f32 %v7823_v34, %v4801_v4  ;;  %v8169_v10 = vpop.f32.mrb[18].mxu1 }
 0x176   :  { %8640 = vst [vmem:[#allocation16_spill] sm:$0xff] %v8169_v10  ;;  %v6178_v35 = vpop.eup %6177  ;;  %v2152_v19 = vpack.c.bf16 %v2113_v32, %v2112_v25  ;;  %v2692_v1 = vadd.f32 1.0, %v6176_v46  ;;  %6193 = vpow2.f32 %v4342_v55  ;;  %v4933_v23 = vunpack.c.l.bf16 %v5196_v53  ;;  %v8171_v21 = vpop.f32.mrb[19].mxu1 }
 0x177   :  { %8641 = vst [vmem:[#allocation17_spill] sm:$0xff] %v8171_v21  ;;  %v2693_v16 = vadd.f32 1.0, %v6178_v35  ;;  %6195 = vpow2.f32 %v4277_v58  ;;  %v1536_v26 = vmul.f32 %v7823_v34, %v4802_v40  ;;  %v8175_v49 = vadd.f32 %v7861_v41, %v1535_v36 }
 0x178   :  { %5455 = vmatprep.mubr.bf16.mxu0 %v2152_v19  ;;  %6197 = vrcp.f32 %v2692_v1  ;;  %v4934_v4 = vunpack.c.h.bf16 %v5196_v53  ;;  %v2367_v44 = vmul.f32 %v7945_v27, %v4933_v23  ;;  %v4937_v43 = vunpack.c.l.bf16 %v5197_v17  ;;  %v5134_v23 = vld [vmem:[%s8615_s0 + $0xe0] sm:$0xff]  }
 0x179   :  { %v6180_v11 = vpop.eup %6179  ;;  %6199 = vrcp.f32 %v2693_v16  ;;  %v8179_v32 = vadd.f32 %v7861_v41, %v1536_v26  ;;  %v4343_v55 = vmul.f32 -1.442695, %v8175_v49  ;;  %v4938_v25 = vunpack.c.h.bf16 %v5197_v17 }
 0x17a   :  { %v6182_v58 = vpop.eup %6181  ;;  %v1142_v46 = vadd.f32 1.0, %v6180_v11  ;;  %6201 = vpow2.f32 %v4278_v31  ;;  %v2368_v34 = vmul.f32 %v7945_v27, %v4934_v4  ;;  %v8184_v19 = vadd.f32 %v7957_v12, %v2367_v44 }
 0x17b   :  { %v6184_v53 = vpop.eup %6183  ;;  %v2050_v40 = vmul.f32 %v6182_v58, %v8081_v24  ;;  %6203 = vpow2.f32 %v4343_v55  ;;  %v4344_v36 = vmul.f32 -1.442695, %v8179_v32  ;;  %v2369_v41 = vmul.f32 %v7945_v27, %v4937_v43 }
 0x17c   :  { %v6186_v35 = vpop.eup %6185  ;;  %v2051_v1 = vmul.f32 %v6184_v53, %v8084_v30  ;;  %6205 = vrcp.f32 %v1142_v46  ;;  %v8191_v17 = vadd.f32 %v7957_v12, %v2368_v34  ;;  %v4411_v31 = vmul.f32 -1.442695, %v8184_v19 }
 0x17d   :  { %v6188_v16 = vpop.eup %6187  ;;  %v2114_v24 = vadd.f32 %v2050_v40, %v1332_v51  ;;  %v2882_v26 = vmul.f32 %v6186_v35, %v8092_v7  ;;  %6207 = vpow2.f32 %v4344_v36  ;;  %v2370_v4 = vmul.f32 %v7945_v27, %v4938_v25 }
 0x17e   :  { %v6190_v44 = vpop.eup %6189  ;;  %v2115_v43 = vadd.f32 %v2051_v1, %v1333_v42  ;;  %v1143_v30 = vadd.f32 1.0, %v6188_v16  ;;  %6209 = vpow2.f32 %v4411_v31  ;;  %v4412_v11 = vmul.f32 -1.442695, %v8191_v17  ;;  %v5165_v42 = vld [vmem:[#allocation2 + $0xe0] sm:$0xff]  }
 0x17f   :  { %v6192_v55 = vpop.eup %6191  ;;  %v1860_v58 = vadd.f32 1.0, %v6190_v44  ;;  %v8201_v46 = vadd.f32 %v7957_v12, %v2369_v41  ;;  %v8204_v34 = vadd.f32 %v7957_v12, %v2370_v4  ;;  %v4677_v51 = vunpack.c.l.bf16 %v5134_v23 }
 0x180   :  { %v6194_v53 = vpop.eup %6193  ;;  %v2153_v7 = vpack.c.bf16 %v2115_v43, %v2114_v24  ;;  %v2883_v40 = vmul.f32 %v6192_v55, %v8096_v18  ;;  %6211 = vrcp.f32 %v1143_v30  ;;  %v4678_v25 = vunpack.c.h.bf16 %v5134_v23  ;;  %v8212_v24 = vld [vmem:[%s8616_s1] ss:$0 sm:$0xff] }
 0x181   :  { %v6196_v36 = vpop.eup %6195  ;;  %v1861_v35 = vadd.f32 1.0, %v6194_v53  ;;  %6213 = vrcp.f32 %v1860_v58  ;;  %v4413_v1 = vmul.f32 -1.442695, %v8201_v46  ;;  %v4414_v31 = vmul.f32 -1.442695, %v8204_v34 }
 0x182   :  { %v6198_v41 = vpop.eup %6197  ;;  %5456 = vmatmul.mubr.bf16.gmra.mrb[48].mxu0 %v2153_v7  ;;  %v2920_v16 = vpack.c.bf16 %v2883_v40, %v2882_v26  ;;  %v1144_v4 = vadd.f32 1.0, %v6196_v36  ;;  %6215 = vpow2.f32 %v4412_v11  ;;  %v819_v18 = vmul.f32 %v8212_v24, %v4677_v51  ;;  %v8221_v11 = vld [vmem:[%s8617_s2] ss:$0 sm:$0xff] }
 0x183   :  { %v6200_v23 = vpop.eup %6199  ;;  %v2884_v44 = vmul.f32 %v6198_v41, %v8107_v52  ;;  %6217 = vrcp.f32 %v1861_v35  ;;  %v820_v43 = vmul.f32 %v8212_v24, %v4678_v25  ;;  %v4805_v30 = vunpack.c.l.bf16 %v5165_v42  ;;  %v5135_v25 = vld [vmem:[%s8615_s0 + $0xe8] sm:$0xff]  }
 0x184   :  { %v6202_v55 = vpop.eup %6201  ;;  %5379 = vmatprep.mubr.bf16.mxu1 %v2920_v16  ;;  %v2885_v26 = vmul.f32 %v6200_v23, %v8111_v47  ;;  %6219 = vrcp.f32 %v1144_v4  ;;  %v8224_v58 = vadd.f32 %v8221_v11, %v819_v18  ;;  %v4806_v51 = vunpack.c.h.bf16 %v5165_v42  ;;  %v8232_v47 = vld [vmem:[%s8619_s4] ss:$0 sm:$0xff] }
 0x185   :  { %v6204_v53 = vpop.eup %6203  ;;  %v1145_v52 = vadd.f32 1.0, %v6202_v55  ;;  %6221 = vpow2.f32 %v4413_v1  ;;  %v8227_v7 = vadd.f32 %v8221_v11, %v820_v43  ;;  %v1537_v40 = vmul.f32 %v8232_v47, %v4805_v30  ;;  %v8238_v36 = vpop.f32.mrb[16].mxu0  ;;  %v5166_v30 = vld [vmem:[#allocation2 + $0xe8] sm:$0xff]  }
 0x186   :  { %8642 = vst [vmem:[#allocation18_spill] sm:$0xff] %v8238_v36  ;;  %v6206_v42 = vpop.eup %6205  ;;  %v2921_v35 = vpack.c.bf16 %v2885_v26, %v2884_v44  ;;  %v1862_v41 = vadd.f32 1.0, %v6204_v53  ;;  %6223 = vpow2.f32 %v4414_v31  ;;  %v4279_v1 = vmul.f32 -1.442695, %v8224_v58  ;;  %v8241_v16 = vpop.f32.mrb[17].mxu0 }
 0x187   :  { %8643 = vst [vmem:[#allocation19_spill] sm:$0xff] %v8241_v16  ;;  %v6208_v4 = vpop.eup %6207  ;;  %v1334_v18 = vmul.f32 %v6206_v42, %v8123_v2  ;;  %6225 = vrcp.f32 %v1145_v52  ;;  %v4280_v23 = vmul.f32 -1.442695, %v8227_v7  ;;  %v1538_v43 = vmul.f32 %v8232_v47, %v4806_v51  ;;  %v8246_v55 = vpop.f32.mrb[18].mxu0  ;;  %v8251_v31 = vld [vmem:[%s8620_s5] ss:$0 sm:$0xff] }
 0x188   :  { %8644 = vst [vmem:[#allocation20_spill] sm:$0xff] %v8246_v55  ;;  %v6210_v21 = vpop.eup %6209  ;;  %5380 = vmatmul.mubr.bf16.gmra.mrb[52].mxu1 %v2921_v35  ;;  %v1863_v44 = vadd.f32 1.0, %v6208_v4  ;;  %6227 = vrcp.f32 %v1862_v41  ;;  %v8254_v26 = vadd.f32 %v8251_v31, %v1537_v40  ;;  %v4681_v2 = vunpack.c.l.bf16 %v5135_v25  ;;  %v8256_v53 = vpop.f32.mrb[19].mxu0 }
 0x189   :  { %8645 = vst [vmem:[#allocation21_spill] sm:$0xff] %v8256_v53  ;;  %v2694_v52 = vadd.f32 1.0, %v6210_v21  ;;  %6229 = vpow2.f32 %v4279_v1  ;;  %v8259_v51 = vadd.f32 %v8251_v31, %v1538_v43  ;;  %v4682_v42 = vunpack.c.h.bf16 %v5135_v25 }
 0x18a   :  { %v6212_v35 = vpop.eup %6211  ;;  %6231 = vrcp.f32 %v1863_v44  ;;  %v4345_v41 = vmul.f32 -1.442695, %v8254_v26  ;;  %v821_v4 = vmul.f32 %v8212_v24, %v4681_v2  ;;  %v4809_v55 = vunpack.c.l.bf16 %v5166_v30 }
 0x18b   :  { %v6214_v10 = vpop.eup %6213  ;;  %v1335_v40 = vmul.f32 %v6212_v35, %v8129_v45  ;;  %6233 = vrcp.f32 %v2694_v52  ;;  %v4346_v16 = vmul.f32 -1.442695, %v8259_v51  ;;  %v822_v21 = vmul.f32 %v8212_v24, %v4682_v42  ;;  %v8266_v1 = vpop.f32.mrb[20].mxu1 }
 0x18c   :  { %8646 = vst [vmem:[#allocation22_spill] sm:$0xff] %v8266_v1  ;;  %v6216_v43 = vpop.eup %6215  ;;  %v2052_v25 = vmul.f32 %v6214_v10, %v8144_v15  ;;  %6235 = vpow2.f32 %v4280_v23  ;;  %v8270_v44 = vadd.f32 %v8221_v11, %v821_v4  ;;  %v4810_v53 = vunpack.c.h.bf16 %v5166_v30  ;;  %v8272_v2 = vpop.f32.mrb[21].mxu1  ;;  %v5198_v30 = vld [vmem:[#allocation3 + $0xf0] sm:$0xff]  }
 0x18d   :  { %8647 = vst [vmem:[#allocation23_spill] sm:$0xff] %v8272_v2  ;;  %v6218_v13 = vpop.eup %6217  ;;  %v2695_v36 = vadd.f32 1.0, %v6216_v43  ;;  %6237 = vpow2.f32 %v4345_v41  ;;  %v8275_v45 = vadd.f32 %v8221_v11, %v822_v21  ;;  %v1539_v52 = vmul.f32 %v8232_v47, %v4809_v55  ;;  %v8278_v42 = vpop.f32.mrb[22].mxu1 }
 0x18e   :  { %8648 = vst [vmem:[#allocation24_spill] sm:$0xff] %v8278_v42  ;;  %v6220_v35 = vpop.eup %6219  ;;  %v2053_v15 = vmul.f32 %v6218_v13, %v8147_v54  ;;  %v2116_v10 = vadd.f32 %v2052_v25, %v1334_v18  ;;  %6239 = vpow2.f32 %v4346_v16  ;;  %v4281_v23 = vmul.f32 -1.442695, %v8270_v44  ;;  %v8282_v4 = vpop.f32.mrb[23].mxu1 }
 0x18f   :  { %8649 = vst [vmem:[#allocation25_spill] sm:$0xff] %v8282_v4  ;;  %v6222_v2 = vpop.eup %6221  ;;  %v1336_v41 = vmul.f32 %v6220_v35, %v8151_v33  ;;  %6241 = vrcp.f32 %v2695_v36  ;;  %v4282_v21 = vmul.f32 -1.442695, %v8275_v45  ;;  %v1540_v55 = vmul.f32 %v8232_v47, %v4810_v53  ;;  %v5199_v33 = vld [vmem:[#allocation3 + $0xf8] sm:$0xff]  }
 0x190   :  { %v6224_v43 = vpop.eup %6223  ;;  %v2117_v42 = vadd.f32 %v2053_v15, %v1335_v40  ;;  %v2696_v1 = vadd.f32 1.0, %v6222_v2  ;;  %6243 = vpow2.f32 %v4281_v23  ;;  %v8288_v54 = vadd.f32 %v8251_v31, %v1539_v52 }
 0x191   :  { %v6226_v13 = vpop.eup %6225  ;;  %v2697_v16 = vadd.f32 1.0, %v6224_v43  ;;  %6245 = vpow2.f32 %v4282_v21  ;;  %v8291_v18 = vadd.f32 %v8251_v31, %v1540_v55  ;;  %v4941_v25 = vunpack.c.l.bf16 %v5198_v30 }
 0x192   :  { %v6228_v36 = vpop.eup %6227  ;;  %v2154_v35 = vpack.c.bf16 %v2117_v42, %v2116_v10  ;;  %v1337_v4 = vmul.f32 %v6226_v13, %v8158_v14  ;;  %6247 = vrcp.f32 %v2696_v1  ;;  %v4347_v53 = vmul.f32 -1.442695, %v8288_v54 }
 0x193   :  { %v6230_v40 = vpop.eup %6229  ;;  %v2054_v2 = vmul.f32 %v6228_v36, %v8175_v49  ;;  %6249 = vrcp.f32 %v2697_v16  ;;  %v4348_v52 = vmul.f32 -1.442695, %v8291_v18  ;;  %v4942_v15 = vunpack.c.h.bf16 %v5198_v30  ;;  %v5136_v49 = vld [vmem:[%s8615_s0 + $0xf0] sm:$0xff]  }
 0x194   :  { %v6232_v23 = vpop.eup %6231  ;;  %5459 = vmatprep.mubr.bf16.mxu0 %v2154_v35  ;;  %v1146_v21 = vadd.f32 1.0, %v6230_v40  ;;  %6251 = vpow2.f32 %v4347_v53  ;;  %v2371_v55 = vmul.f32 %v7945_v27, %v4941_v25  ;;  %v4945_v43 = vunpack.c.l.bf16 %v5199_v33 }
 0x195   :  { %v6234_v42 = vpop.eup %6233  ;;  %v2055_v14 = vmul.f32 %v6232_v23, %v8179_v32  ;;  %v2118_v1 = vadd.f32 %v2054_v2, %v1336_v41  ;;  %6253 = vpow2.f32 %v4348_v52  ;;  %v2372_v10 = vmul.f32 %v7945_v27, %v4942_v15 }
 0x196   :  { %v6236_v13 = vpop.eup %6235  ;;  %v2886_v30 = vmul.f32 %v6234_v42, %v8184_v19  ;;  %6255 = vrcp.f32 %v1146_v21  ;;  %v8305_v16 = vadd.f32 %v7957_v12, %v2371_v55  ;;  %v4946_v25 = vunpack.c.h.bf16 %v5199_v33 }
 0x197   :  { %v6238_v36 = vpop.eup %6237  ;;  %v2119_v35 = vadd.f32 %v2055_v14, %v1337_v4  ;;  %v1147_v53 = vadd.f32 1.0, %v6236_v13  ;;  %v8308_v32 = vadd.f32 %v7957_v12, %v2372_v10  ;;  %v2373_v41 = vmul.f32 %v7945_v27, %v4945_v43 }
 0x198   :  { %v6240_v40 = vpop.eup %6239  ;;  %v1864_v2 = vadd.f32 1.0, %v6238_v36  ;;  %v4415_v52 = vmul.f32 -1.442695, %v8305_v16  ;;  %v2374_v15 = vmul.f32 %v7945_v27, %v4946_v25  ;;  %v4685_v19 = vunpack.c.l.bf16 %v5136_v49  ;;  %v5167_v25 = vld [vmem:[#allocation2 + $0xf0] sm:$0xff]  }
 0x199   :  { %v6242_v23 = vpop.eup %6241  ;;  %v2155_v21 = vpack.c.bf16 %v2119_v35, %v2118_v1  ;;  %6257 = vrcp.f32 %v1147_v53  ;;  %v1865_v55 = vadd.f32 1.0, %v6240_v40  ;;  %v4416_v33 = vmul.f32 -1.442695, %v8308_v32 }
 0x19a   :  { %v6244_v4 = vpop.eup %6243  ;;  %v2887_v42 = vmul.f32 %v6242_v23, %v8191_v17  ;;  %6259 = vrcp.f32 %v1864_v2  ;;  %v8316_v14 = vadd.f32 %v7957_v12, %v2373_v41  ;;  %v8319_v43 = vadd.f32 %v7957_v12, %v2374_v15 }
 0x19b   :  { %v6246_v10 = vpop.eup %6245  ;;  %5460 = vmatmul.mubr.bf16.gmra.mrb[52].mxu0 %v2155_v21  ;;  %6261 = vrcp.f32 %v1865_v55  ;;  %v1148_v27 = vadd.f32 1.0, %v6244_v4  ;;  %v4686_v13 = vunpack.c.h.bf16 %v5136_v49  ;;  %v823_v1 = vmul.f32 %v8212_v24, %v4685_v19  ;;  %v5137_v55 = vld [vmem:[%s8615_s0 + $0xf8] sm:$0xff]  }
 0x19c   :  { %v6248_v36 = vpop.eup %6247  ;;  %v2922_v35 = vpack.c.bf16 %v2887_v42, %v2886_v30  ;;  %v1149_v53 = vadd.f32 1.0, %v6246_v10  ;;  %6263 = vpow2.f32 %v4415_v52  ;;  %v4417_v17 = vmul.f32 -1.442695, %v8316_v14 }
 0x19d   :  { %v6250_v40 = vpop.eup %6249  ;;  %v2888_v41 = vmul.f32 %v6248_v36, %v8201_v46  ;;  %6265 = vrcp.f32 %v1148_v27  ;;  %v4418_v12 = vmul.f32 -1.442695, %v8319_v43  ;;  %v824_v2 = vmul.f32 %v8212_v24, %v4686_v13  ;;  %v5168_v13 = vld [vmem:[#allocation2 + $0xf8] sm:$0xff]  }
 0x19e   :  { %v6252_v15 = vpop.eup %6251  ;;  %5383 = vmatprep.mubr.bf16.mxu1 %v2922_v35  ;;  %v2889_v49 = vmul.f32 %v6250_v40, %v8204_v34  ;;  %6267 = vrcp.f32 %v1149_v53  ;;  %v8328_v19 = vadd.f32 %v8221_v11, %v823_v1  ;;  %v4813_v30 = vunpack.c.l.bf16 %v5167_v25 }
 0x19f   :  { %v6254_v52 = vpop.eup %6253  ;;  %v1866_v23 = vadd.f32 1.0, %v6252_v15  ;;  %6269 = vpow2.f32 %v4416_v33  ;;  %v8331_v21 = vadd.f32 %v8221_v11, %v824_v2  ;;  %v4814_v46 = vunpack.c.h.bf16 %v5167_v25  ;;  %v8336_v4 = vpop.f32.mrb[20].mxu0 }
 0x1a0   :  { %v6256_v42 = vpop.eup %6255  ;;  %v2923_v34 = vpack.c.bf16 %v2889_v49, %v2888_v41  ;;  %v1867_v10 = vadd.f32 1.0, %v6254_v52  ;;  %6271 = vpow2.f32 %v4417_v17  ;;  %v4283_v27 = vmul.f32 -1.442695, %v8328_v19  ;;  %v8339_v1 = vpop.f32.mrb[21].mxu0 }
 0x1a1   :  { %v1338_v33 = vmul.f32 %v6256_v42, %v8224_v58  ;;  %6273 = vrcp.f32 %v1866_v23  ;;  %v4284_v25 = vmul.f32 -1.442695, %v8331_v21  ;;  %v1541_v36 = vmul.f32 %v8232_v47, %v4813_v30  ;;  %v8344_v35 = vpop.f32.mrb[22].mxu0 }
 0x1a2   :  { %5384 = vmatmul.mubr.bf16.gmra.mrb[56].mxu1 %v2923_v34  ;;  %6275 = vrcp.f32 %v1867_v10  ;;  %v1542_v53 = vmul.f32 %v8232_v47, %v4814_v46  ;;  %v4689_v40 = vunpack.c.l.bf16 %v5137_v55  ;;  %v4690_v17 = vunpack.c.h.bf16 %v5137_v55  ;;  %v8347_v41 = vpop.f32.mrb[23].mxu0 }
 0x1a3   :  { %v6258_v2 = vpop.eup %6257  ;;  %6277 = vpow2.f32 %v4418_v12  ;;  %v8350_v15 = vadd.f32 %v8251_v31, %v1541_v36  ;;  %v4817_v58 = vunpack.c.l.bf16 %v5168_v13  ;;  %v4818_v49 = vunpack.c.h.bf16 %v5168_v13 }
 0x1a4   :  { %v6260_v52 = vpop.eup %6259  ;;  %v1339_v30 = vmul.f32 %v6258_v2, %v8227_v7  ;;  %6279 = vpow2.f32 %v4283_v27  ;;  %v8354_v23 = vadd.f32 %v8251_v31, %v1542_v53  ;;  %v825_v46 = vmul.f32 %v8212_v24, %v4689_v40 }
 0x1a5   :  { %v6262_v42 = vpop.eup %6261  ;;  %v2056_v55 = vmul.f32 %v6260_v52, %v8254_v26  ;;  %6281 = vpow2.f32 %v4284_v25  ;;  %v4349_v12 = vmul.f32 -1.442695, %v8350_v15  ;;  %v826_v34 = vmul.f32 %v8212_v24, %v4690_v17  ;;  %v8360_v10 = vpop.f32.mrb[24].mxu1 }
 0x1a6   :  { %8650 = vst [vmem:[#allocation26_spill] sm:$0xff] %v8360_v10  ;;  %v6264_v13 = vpop.eup %6263  ;;  %v2057_v36 = vmul.f32 %v6262_v42, %v8259_v51  ;;  %v4350_v7 = vmul.f32 -1.442695, %v8354_v23  ;;  %v8365_v27 = vadd.f32 %v8221_v11, %v825_v46  ;;  %v1543_v53 = vmul.f32 %v8232_v47, %v4817_v58  ;;  %v8368_v40 = vpop.f32.mrb[25].mxu1 }
 0x1a7   :  { %8651 = vst [vmem:[#allocation27_spill] sm:$0xff] %v8368_v40  ;;  %v6266_v26 = vpop.eup %6265  ;;  %v2120_v25 = vadd.f32 %v2056_v55, %v1338_v33  ;;  %v2698_v2 = vadd.f32 1.0, %v6264_v13  ;;  %6283 = vpow2.f32 %v4349_v12  ;;  %v8371_v24 = vadd.f32 %v8221_v11, %v826_v34  ;;  %v8373_v17 = vpop.f32.mrb[26].mxu1 }
 0x1a8   :  { %v6268_v52 = vpop.eup %6267  ;;  %v2121_v51 = vadd.f32 %v2057_v36, %v1339_v30  ;;  %v1340_v42 = vmul.f32 %v6266_v26, %v8270_v44  ;;  %6285 = vpow2.f32 %v4350_v7  ;;  %v4285_v46 = vmul.f32 -1.442695, %v8365_v27  ;;  %v8377_v10 = vpop.f32.mrb[27].mxu1 }
 0x1a9   :  { %v6270_v58 = vpop.eup %6269  ;;  %v1341_v40 = vmul.f32 %v6268_v52, %v8275_v45  ;;  %6287 = vrcp.f32 %v2698_v2  ;;  %v4286_v33 = vmul.f32 -1.442695, %v8371_v24  ;;  %v1544_v11 = vmul.f32 %v8232_v47, %v4818_v49 }
 0x1aa   :  { %v6272_v55 = vpop.eup %6271  ;;  %v2156_v12 = vpack.c.bf16 %v2121_v51, %v2120_v25  ;;  %v2699_v34 = vadd.f32 1.0, %v6270_v58  ;;  %6289 = vpow2.f32 %v4285_v46  ;;  %v8383_v30 = vadd.f32 %v8251_v31, %v1543_v53 }
 0x1ab   :  { %v6274_v44 = vpop.eup %6273  ;;  %v2700_v13 = vadd.f32 1.0, %v6272_v55  ;;  %6291 = vpow2.f32 %v4286_v33  ;;  %v8386_v36 = vadd.f32 %v8251_v31, %v1544_v11  ;;  %v3370_v45 = vadd.f32 %v7981_v62, %v7979_v9 }
 0x1ac   :  { %v6276_v7 = vpop.eup %6275  ;;  %5463 = vmatprep.mubr.bf16.mxu0 %v2156_v12  ;;  %v2058_v47 = vmul.f32 %v6274_v44, %v8288_v54  ;;  %6293 = vrcp.f32 %v2699_v34  ;;  %v4351_v49 = vmul.f32 -1.442695, %v8383_v30  ;;  %v3362_v53 = vadd.f32 %v7987_v61, %v7985_v0 }
 0x1ad   :  { %v6278_v26 = vpop.eup %6277  ;;  %v2059_v25 = vmul.f32 %v6276_v7, %v8291_v18  ;;  %6295 = vrcp.f32 %v2700_v13  ;;  %v4352_v31 = vmul.f32 -1.442695, %v8386_v36  ;;  %v3373_v54 = vadd.f32 %v7993_v38, %v7991_v50 }
 0x1ae   :  { %v6280_v2 = vpop.eup %6279  ;;  %v2122_v52 = vadd.f32 %v2058_v47, %v1340_v42  ;;  %v2701_v51 = vadd.f32 1.0, %v6278_v26  ;;  %6297 = vpow2.f32 %v4351_v49  ;;  %v3365_v0 = vadd.f32 %v8001_v60, %v7999_v48 }
 0x1af   :  { %v6282_v9 = vpop.eup %6281  ;;  %v2123_v62 = vadd.f32 %v2059_v25, %v1341_v40  ;;  %v1150_v46 = vadd.f32 1.0, %v6280_v2  ;;  %6299 = vpow2.f32 %v4352_v31  ;;  %v8402_v61 = vadd.f32 %v8012_v56, %v8010_v63 }
 0x1b0   :  { %6301 = vrcp.f32 %v2701_v51  ;;  %v1151_v58 = vadd.f32 1.0, %v6282_v9  ;;  %v4007_v33 = vmul.f32 %v3370_v45, %v3370_v45  ;;  %v4955_v11 = vpack.c.bf16 %v3373_v54, %v3370_v45 }
 0x1b1   :  { %v6284_v18 = vpop.eup %6283  ;;  %v2157_v42 = vpack.c.bf16 %v2123_v62, %v2122_v52  ;;  %6303 = vrcp.f32 %v1150_v46  ;;  %v4950_v12 = vpack.c.bf16 %v3365_v0, %v3362_v53  ;;  %v3936_v34 = vadd.f32 %v3365_v0, %v3362_v53 }
 0x1b2   :  { %v6286_v40 = vpop.eup %6285  ;;  %6305 = vrcp.f32 %v1151_v58  ;;  %v1868_v55 = vadd.f32 1.0, %v6284_v18  ;;  %v4005_v44 = vmul.f32 %v3362_v53, %v3362_v53  ;;  %5200 = vst [vmem:[%s8626_s11 + $0x8] sm:$0xff] %v4955_v11   ;;  %v4006_v48 = vmul.f32 %v3365_v0, %v3365_v0 }
 0x1b3   :  { %v6288_v50 = vpop.eup %6287  ;;  %5464 = vmatmul.mubr.bf16.gmra.mrb[56].mxu0 %v2157_v42  ;;  %v1869_v38 = vadd.f32 1.0, %v6286_v40  ;;  %v3378_v60 = vadd.f32 %v8019_v59, %v8017_v6  ;;  %v4008_v56 = vmul.f32 %v3373_v54, %v3373_v54  ;;  %4951 = vst [vmem:[%s8626_s11] sm:$0xff] %v4950_v12   ;;  %v3937_v13 = vadd.f32 %v3936_v34, %v3370_v45 }
 0x1b4   :  { %v6290_v63 = vpop.eup %6289  ;;  %6307 = vrcp.f32 %v1868_v55  ;;  %v3389_v7 = vadd.f32 %v8026_v37, %v8024_v20  ;;  %v2890_v49 = vmul.f32 %v6288_v50, %v8305_v16  ;;  %v4069_v26 = vadd.f32 %v4006_v48, %v4005_v44 }
 0x1b5   :  { %v6292_v47 = vpop.eup %6291  ;;  %6309 = vrcp.f32 %v1869_v38  ;;  %v1152_v53 = vadd.f32 1.0, %v6290_v63  ;;  %v3938_v6 = vadd.f32 %v3937_v13, %v3373_v54  ;;  %v4009_v59 = vmul.f32 %v3378_v60, %v3378_v60 }
 0x1b6   :  { %v6294_v25 = vpop.eup %6293  ;;  %v1153_v31 = vadd.f32 1.0, %v6292_v47  ;;  %v4965_v2 = vpack.c.bf16 %v3389_v7, %v8402_v61  ;;  %v4070_v45 = vadd.f32 %v4069_v26, %v4007_v33  ;;  %v3381_v20 = vadd.f32 %v8033_v8, %v8031_v28 }
 0x1b7   :  { %v6296_v52 = vpop.eup %6295  ;;  %v2891_v51 = vmul.f32 %v6294_v25, %v8308_v32  ;;  %6311 = vrcp.f32 %v1152_v53  ;;  %v3939_v9 = vadd.f32 %v3938_v6, %v3378_v60  ;;  %v8425_v62 = vadd.f32 %v8040_v57, %v8038_v5  ;;  %v8653_v53 = vld [vmem:[#allocation5_spill] sm:$0xff]  ;;  %v8654_v25 = vld [vmem:[#allocation6_spill] sm:$0xff] }
 0x1b8   :  { %v6298_v37 = vpop.eup %6297  ;;  %v2892_v16 = vmul.f32 %v6296_v52, %v8316_v14  ;;  %6313 = vrcp.f32 %v1153_v31  ;;  %5202 = vst [vmem:[%s8626_s11 + $0x18] sm:$0xff] %v4965_v2   ;;  %v4071_v58 = vadd.f32 %v4070_v45, %v4008_v56  ;;  %v4960_v0 = vpack.c.bf16 %v3381_v20, %v3378_v60  ;;  %v8655_v31 = vld [vmem:[#allocation10_spill] sm:$0xff] }
 0x1b9   :  { %v6300_v46 = vpop.eup %6299  ;;  %v2924_v32 = vpack.c.bf16 %v2891_v51, %v2890_v49  ;;  %v1870_v54 = vadd.f32 1.0, %v6298_v37  ;;  %v8427_v18 = vpop.f32.mrb[24].mxu0  ;;  %v4011_v14 = vmul.f32 %v8402_v61, %v8402_v61  ;;  %v3940_v42 = vadd.f32 %v3939_v9, %v3381_v20  ;;  %v8652_v49 = vld [vmem:[#allocation4_spill] sm:$0xff] }
 0x1ba   :  { %v6302_v28 = vpop.eup %6301  ;;  %v1871_v8 = vadd.f32 1.0, %v6300_v46  ;;  %v4010_v33 = vmul.f32 %v3381_v20, %v3381_v20  ;;  %v8431_v11 = vpop.f32.mrb[25].mxu0  ;;  %v4072_v57 = vadd.f32 %v4071_v58, %v4009_v59  ;;  %5201 = vst [vmem:[%s8626_s11 + $0x10] sm:$0xff] %v4960_v0   ;;  %v3394_v55 = vadd.f32 %v8046_v22, %v8044_v29  ;;  %v8658_v58 = vld [vmem:[#allocation8_spill] sm:$0xff] }
 0x1bb   :  { %v6304_v40 = vpop.eup %6303  ;;  %5387 = vmatprep.mubr.bf16.mxu1 %v2924_v32  ;;  %v2893_v5 = vmul.f32 %v6302_v28, %v8319_v43  ;;  %6315 = vrcp.f32 %v1870_v54  ;;  %v8439_v12 = vpop.f32.mrb[26].mxu0  ;;  %v4012_v50 = vmul.f32 %v3389_v7, %v3389_v7  ;;  %v3941_v38 = vadd.f32 %v3940_v42, %v8402_v61  ;;  %v8659_v0 = vld [vmem:[#allocation12_spill] sm:$0xff] }
 0x1bc   :  { %v6306_v34 = vpop.eup %6305  ;;  %6317 = vrcp.f32 %v1871_v8  ;;  %v3405_v44 = vadd.f32 %v8053_v39, %v8051_v3  ;;  %v8444_v43 = vpop.f32.mrb[27].mxu0  ;;  %v1342_v60 = vmul.f32 %v6304_v40, %v8328_v19  ;;  %v4073_v56 = vadd.f32 %v4072_v57, %v4010_v33  ;;  %v8656_v19 = vld [vmem:[#allocation7_spill] sm:$0xff]  ;;  %v8660_v33 = vld [vmem:[#allocation9_spill] sm:$0xff]  ;;  %v8662_v57 = vld [vmem:[#allocation14_spill] sm:$0xff] }
 0x1bd   :  { %v2925_v48 = vpack.c.bf16 %v2893_v5, %v2892_v16  ;;  %v1343_v63 = vmul.f32 %v6306_v34, %v8331_v21  ;;  %v3942_v29 = vadd.f32 %v3941_v38, %v3389_v7  ;;  %v4013_v22 = vmul.f32 %v3394_v55, %v3394_v55  ;;  %v8657_v21 = vld [vmem:[#allocation11_spill] sm:$0xff]  ;;  %v8661_v40 = vld [vmem:[#allocation13_spill] sm:$0xff] }
 0x1be   :  { %v6308_v13 = vpop.eup %6307  ;;  %v4975_v47 = vpack.c.bf16 %v3405_v44, %v8425_v62  ;;  %v3397_v26 = vadd.f32 %v8653_v53, %v8652_v49  ;;  %v4074_v39 = vadd.f32 %v4073_v56, %v4011_v14  ;;  %v8454_v6 = vadd.f32 %v8655_v31, %v8654_v25  ;;  %v8668_v31 = vld [vmem:[#allocation17_spill] sm:$0xff] }
 0x1bf   :  { %v6310_v61 = vpop.eup %6309  ;;  %5388 = vmatmul.mubr.bf16.gmra.mrb[60].mxu1 %v2925_v48  ;;  %v2060_v3 = vmul.f32 %v6308_v13, %v8350_v15  ;;  %v3410_v59 = vadd.f32 %v8657_v21, %v8656_v19  ;;  %v8458_v2 = vpop.f32.mrb[28].mxu1  ;;  %v3943_v52 = vadd.f32 %v3942_v29, %v3394_v55  ;;  %v4015_v54 = vmul.f32 %v8425_v62, %v8425_v62  ;;  %v8670_v19 = vld [vmem:[#allocation22_spill] sm:$0xff] }
 0x1c0   :  { %v2061_v7 = vmul.f32 %v6310_v61, %v8354_v23  ;;  %5204 = vst [vmem:[%s8626_s11 + $0x28] sm:$0xff] %v4975_v47   ;;  %v4970_v51 = vpack.c.bf16 %v3397_v26, %v3394_v55  ;;  %v8464_v45 = vpop.f32.mrb[29].mxu1  ;;  %v4075_v37 = vadd.f32 %v4074_v39, %v4012_v50  ;;  %v4014_v16 = vmul.f32 %v3397_v26, %v3397_v26  ;;  %v8663_v55 = vld [vmem:[#allocation18_spill] sm:$0xff]  ;;  %v8666_v61 = vld [vmem:[#allocation16_spill] sm:$0xff] }
 0x1c1   :  { %v6312_v15 = vpop.eup %6311  ;;  %v2124_v20 = vadd.f32 %v2060_v3, %v1342_v60  ;;  %v8466_v9 = vpop.f32.mrb[30].mxu1  ;;  %v3944_v23 = vadd.f32 %v3943_v52, %v3397_v26  ;;  %v3421_v28 = vadd.f32 %v8659_v0, %v8658_v58  ;;  %v4016_v42 = vmul.f32 %v3405_v44, %v3405_v44  ;;  %v8665_v26 = vld [vmem:[#allocation19_spill] sm:$0xff]  ;;  %v8667_v3 = vld [vmem:[#allocation20_spill] sm:$0xff]  ;;  %v8673_v58 = vld [vmem:[#allocation25_spill] sm:$0xff] }
 0x1c2   :  { %v6314_v46 = vpop.eup %6313  ;;  %v2125_v32 = vadd.f32 %v2061_v7, %v1343_v63  ;;  %5203 = vst [vmem:[%s8626_s11 + $0x20] sm:$0xff] %v4970_v51   ;;  %v8475_v8 = vpop.f32.mrb[31].mxu1  ;;  %v4076_v14 = vadd.f32 %v4075_v37, %v4013_v22  ;;  %v3413_v5 = vadd.f32 %v8661_v40, %v8660_v33  ;;  %v8481_v34 = vadd.f32 %v8663_v55, %v8662_v57  ;;  %v8675_v40 = vld [vmem:[#allocation27_spill] sm:$0xff] }
 0x1c3   :  { %v1344_v38 = vmul.f32 %v6312_v15, %v8365_v27  ;;  %v3945_v48 = vadd.f32 %v3944_v23, %v8425_v62  ;;  %v4985_v60 = vpack.c.bf16 %v3421_v28, %v8454_v6  ;;  %v1345_v56 = vmul.f32 %v6314_v46, %v8371_v24  ;;  %v8664_v27 = vld [vmem:[#allocation15_spill] sm:$0xff] }
 0x1c4   :  { %v2158_v50 = vpack.c.bf16 %v2125_v32, %v2124_v20  ;;  %v4077_v13 = vadd.f32 %v4076_v14, %v4014_v16  ;;  %v4017_v29 = vmul.f32 %v3410_v59, %v3410_v59  ;;  %v4980_v22 = vpack.c.bf16 %v3413_v5, %v3410_v59  ;;  %v8671_v46 = vld [vmem:[#allocation23_spill] sm:$0xff] }
 0x1c5   :  { %v6316_v63 = vpop.eup %6315  ;;  %v3946_v53 = vadd.f32 %v3945_v48, %v3405_v44  ;;  %5206 = vst [vmem:[%s8626_s11 + $0x38] sm:$0xff] %v4985_v60   ;;  %v3426_v62 = vadd.f32 %v8665_v26, %v8664_v27  ;;  %v3437_v39 = vadd.f32 %v8667_v3, %v8666_v61  ;;  %v8503_v21 = vadd.f32 %v8336_v4, %v8670_v19  ;;  %v8672_v4 = vld [vmem:[#allocation24_spill] sm:$0xff] }
 0x1c6   :  { %v6318_v47 = vpop.eup %6317  ;;  %5467 = vmatprep.mubr.bf16.mxu0 %v2158_v50  ;;  %v2062_v49 = vmul.f32 %v6316_v63, %v8383_v30  ;;  %v4078_v25 = vadd.f32 %v4077_v13, %v4015_v54  ;;  %5205 = vst [vmem:[%s8626_s11 + $0x30] sm:$0xff] %v4980_v22   ;;  %v8669_v30 = vld [vmem:[#allocation21_spill] sm:$0xff]  ;;  %v4018_v37 = vmul.f32 %v3413_v5, %v3413_v5 }
 0x1c7   :  { %v2063_v24 = vmul.f32 %v6318_v47, %v8386_v36  ;;  %v3429_v44 = vadd.f32 %v8669_v30, %v8668_v31  ;;  %v3947_v52 = vadd.f32 %v3946_v53, %v3410_v59  ;;  %v4995_v51 = vpack.c.bf16 %v3437_v39, %v8481_v34 }
 0x1c8   :  { %v2126_v7 = vadd.f32 %v2062_v49, %v1344_v38  ;;  %v4079_v20 = vadd.f32 %v4078_v25, %v4016_v42  ;;  %v3442_v32 = vadd.f32 %v8339_v1, %v8671_v46  ;;  %v3453_v59 = vadd.f32 %v8344_v35, %v8672_v4  ;;  %v8674_v42 = vld [vmem:[#allocation26_spill] sm:$0xff] }
 0x1c9   :  { %v2127_v15 = vadd.f32 %v2063_v24, %v1345_v56  ;;  %v4990_v36 = vpack.c.bf16 %v3429_v44, %v3426_v62  ;;  %v3948_v16 = vadd.f32 %v3947_v52, %v3413_v5  ;;  %5208 = vst [vmem:[%s8626_s11 + $0x48] sm:$0xff] %v4995_v51   ;;  %v3445_v0 = vadd.f32 %v8347_v41, %v8673_v58 }
 0x1ca   :  { %v4080_v23 = vadd.f32 %v4079_v20, %v4017_v29  ;;  %v8521_v33 = vadd.f32 %v8427_v18, %v8674_v42  ;;  %v3458_v1 = vadd.f32 %v8431_v11, %v8675_v40  ;;  %v4019_v5 = vmul.f32 %v8454_v6, %v8454_v6 }
 0x1cb   :  { %v2159_v54 = vpack.c.bf16 %v2127_v15, %v2126_v7  ;;  %5207 = vst [vmem:[%s8626_s11 + $0x40] sm:$0xff] %v4990_v36   ;;  %v3949_v14 = vadd.f32 %v3948_v16, %v8454_v6  ;;  %v5005_v55 = vpack.c.bf16 %v3453_v59, %v8503_v21  ;;  %v5000_v35 = vpack.c.bf16 %v3445_v0, %v3442_v32 }
 0x1cc   :  { %v4081_v57 = vadd.f32 %v4080_v23, %v4018_v37  ;;  %v4020_v50 = vmul.f32 %v3421_v28, %v3421_v28  ;;  %v4021_v48 = vmul.f32 %v3426_v62, %v3426_v62  ;;  %v3469_v18 = vadd.f32 %v8439_v12, %v8373_v17 }
 0x1cd   :  { %5468 = vmatmul.mubr.bf16.gmra.mrb[60].mxu0 %v2159_v54  ;;  %v3950_v38 = vadd.f32 %v3949_v14, %v3421_v28  ;;  %5210 = vst [vmem:[%s8626_s11 + $0x58] sm:$0xff] %v5005_v55   ;;  %5209 = vst [vmem:[%s8626_s11 + $0x50] sm:$0xff] %v5000_v35   ;;  %v3461_v11 = vadd.f32 %v8444_v43, %v8377_v10  ;;  %v4022_v63 = vmul.f32 %v3429_v44, %v3429_v44 }
 0x1ce   :  { %v4082_v41 = vadd.f32 %v4081_v57, %v4019_v5  ;;  %v5015_v28 = vpack.c.bf16 %v3469_v18, %v8521_v33  ;;  %v4023_v49 = vmul.f32 %v8481_v34, %v8481_v34  ;;  %v4024_v3 = vmul.f32 %v3437_v39, %v3437_v39 }
 0x1cf   :  { %v3951_v6 = vadd.f32 %v3950_v38, %v3426_v62  ;;  %v5010_v56 = vpack.c.bf16 %v3461_v11, %v3458_v1  ;;  %v4025_v25 = vmul.f32 %v3442_v32, %v3442_v32  ;;  %v4026_v19 = vmul.f32 %v3445_v0, %v3445_v0 }
 0x1d0   :  { %v4083_v60 = vadd.f32 %v4082_v41, %v4020_v50  ;;  %5212 = vst [vmem:[%s8626_s11 + $0x68] sm:$0xff] %v5015_v28   ;;  %v4027_v51 = vmul.f32 %v8503_v21, %v8503_v21  ;;  %v4028_v37 = vmul.f32 %v3453_v59, %v3453_v59  ;;  %v4029_v16 = vmul.f32 %v3458_v1, %v3458_v1 }
 0x1d1   :  { %v3952_v13 = vadd.f32 %v3951_v6, %v3429_v44  ;;  %5211 = vst [vmem:[%s8626_s11 + $0x60] sm:$0xff] %v5010_v56   ;;  %v4030_v54 = vmul.f32 %v3461_v11, %v3461_v11  ;;  %v4032_v40 = vmul.f32 %v3469_v18, %v3469_v18 }
 0x1d2   :  { %v5437_v29 = vpop.f32.mrb[28].mxu0  ;;  %v4084_v22 = vadd.f32 %v4083_v60, %v4021_v48 }
 0x1d3   :  { %v3482_v17 = vadd.f32 %v5437_v29, %v8458_v2  ;;  %v3473_v10 = vpop.f32.mrb[29].mxu0  ;;  %v3953_v12 = vadd.f32 %v3952_v13, %v8481_v34 }
 0x1d4   :  { %v3474_v43 = vadd.f32 %v3473_v10, %v8464_v45  ;;  %v5438_v47 = vpop.f32.mrb[30].mxu0  ;;  %v4085_v53 = vadd.f32 %v4084_v22, %v4022_v63 }
 0x1d5   :  { %v3485_v27 = vadd.f32 %v5438_v47, %v8466_v9  ;;  %v3476_v26 = vpop.f32.mrb[31].mxu0  ;;  %v3954_v62 = vadd.f32 %v3953_v12, %v3437_v39  ;;  %v4035_v60 = vmul.f32 %v3482_v17, %v3482_v17 }
 0x1d6   :  { %v3477_v61 = vadd.f32 %v3476_v26, %v8475_v8  ;;  %v4086_v24 = vadd.f32 %v4085_v53, %v4023_v49 }
 0x1d7   :  { %v5025_v2 = vpack.c.bf16 %v3485_v27, %v3482_v17  ;;  %v3955_v31 = vadd.f32 %v3954_v62, %v3442_v32 }
 0x1d8   :  { %v5020_v30 = vpack.c.bf16 %v3477_v61, %v3474_v43  ;;  %v4087_v44 = vadd.f32 %v4086_v24, %v4024_v3 }
 0x1d9   :  { %5214 = vst [vmem:[%s8626_s11 + $0x78] sm:$0xff] %v5025_v2   ;;  %v5361_v45 = vpop.f32.mrb[32].mxu1  ;;  %v3956_v34 = vadd.f32 %v3955_v31, %v3445_v0  ;;  %v4031_v0 = vmul.f32 %v8521_v33, %v8521_v33 }
 0x1da   :  { %5213 = vst [vmem:[%s8626_s11 + $0x70] sm:$0xff] %v5020_v30   ;;  %v3152_v9 = vpop.f32.mrb[33].mxu1  ;;  %v4088_v8 = vadd.f32 %v4087_v44, %v4025_v25 }
 0x1db   :  { %v5362_v39 = vpop.f32.mrb[34].mxu1  ;;  %v3957_v7 = vadd.f32 %v3956_v34, %v8503_v21  ;;  %v4033_v21 = vmul.f32 %v3474_v43, %v3474_v43 }
 0x1dc   :  { %v3155_v52 = vpop.f32.mrb[35].mxu1  ;;  %v4089_v15 = vadd.f32 %v4088_v8, %v4026_v19 }
 0x1dd   :  { %v3958_v20 = vadd.f32 %v3957_v7, %v3453_v59  ;;  %v4034_v59 = vmul.f32 %v3477_v61, %v3477_v61 }
 0x1de   :  { %v4090_v36 = vadd.f32 %v4089_v15, %v4027_v51 }
 0x1df   :  { %v3959_v46 = vadd.f32 %v3958_v20, %v3458_v1 }
 0x1e0   :  { %v4091_v32 = vadd.f32 %v4090_v36, %v4028_v37 }
 0x1e1   :  { %v3960_v23 = vadd.f32 %v3959_v46, %v3461_v11 }
 0x1e2   :  { %v4092_v4 = vadd.f32 %v4091_v32, %v4029_v16 }
 0x1e3   :  { %v3961_v58 = vadd.f32 %v3960_v23, %v8521_v33 }
 0x1e4   :  { %v4093_v14 = vadd.f32 %v4092_v4, %v4030_v54 }
 0x1e5   :  { %v3962_v42 = vadd.f32 %v3961_v58, %v3469_v18  ;;  %v4036_v18 = vmul.f32 %v3485_v27, %v3485_v27 }
 0x1e6   :  { %v4094_v5 = vadd.f32 %v4093_v14, %v4031_v0 }
 0x1e7   :  { %v3963_v57 = vadd.f32 %v3962_v42, %v3474_v43 }
 0x1e8   :  { %v4095_v55 = vadd.f32 %v4094_v5, %v4032_v40 }
 0x1e9   :  { %v3964_v35 = vadd.f32 %v3963_v57, %v3477_v61 }
 0x1ea   :  { %v5441_v50 = vpop.f32.mrb[32].mxu0  ;;  %v4096_v1 = vadd.f32 %v4095_v55, %v4033_v21 }
 0x1eb   :  { %v3498_v38 = vadd.f32 %v5441_v50, %v5361_v45  ;;  %v3489_v41 = vpop.f32.mrb[33].mxu0  ;;  %v3965_v48 = vadd.f32 %v3964_v35, %v3482_v17 }
 0x1ec   :  { %v3490_v11 = vadd.f32 %v3489_v41, %v3152_v9  ;;  %v5442_v6 = vpop.f32.mrb[34].mxu0  ;;  %v4097_v63 = vadd.f32 %v4096_v1, %v4034_v59 }
 0x1ed   :  { %v3501_v28 = vadd.f32 %v5442_v6, %v5362_v39  ;;  %v3492_v33 = vpop.f32.mrb[35].mxu0  ;;  %v3966_v56 = vadd.f32 %v3965_v48, %v3485_v27  ;;  %v4039_v62 = vmul.f32 %v3498_v38, %v3498_v38 }
 0x1ee   :  { %v3493_v13 = vadd.f32 %v3492_v33, %v3155_v52  ;;  %v4098_v29 = vadd.f32 %v4097_v63, %v4035_v60  ;;  %v4037_v22 = vmul.f32 %v3490_v11, %v3490_v11 }
 0x1ef   :  { %v5035_v10 = vpack.c.bf16 %v3501_v28, %v3498_v38  ;;  %v3967_v12 = vadd.f32 %v3966_v56, %v3490_v11  ;;  %v4040_v24 = vmul.f32 %v3501_v28, %v3501_v28 }
 0x1f0   :  { %v5030_v43 = vpack.c.bf16 %v3493_v13, %v3490_v11  ;;  %v4099_v47 = vadd.f32 %v4098_v29, %v4036_v18  ;;  %v4038_v49 = vmul.f32 %v3493_v13, %v3493_v13 }
 0x1f1   :  { %5216 = vst [vmem:[%s8626_s11 + $0x88] sm:$0xff] %v5035_v10   ;;  %v3968_v17 = vadd.f32 %v3967_v12, %v3493_v13 }
 0x1f2   :  { %5215 = vst [vmem:[%s8626_s11 + $0x80] sm:$0xff] %v5030_v43   ;;  %v4100_v53 = vadd.f32 %v4099_v47, %v4037_v22 }
 0x1f3   :  { %v3969_v26 = vadd.f32 %v3968_v17, %v3498_v38 }
 0x1f4   :  { %v4101_v27 = vadd.f32 %v4100_v53, %v4038_v49 }
 0x1f5   :  { %v3970_v3 = vadd.f32 %v3969_v26, %v3501_v28 }
 0x1f6   :  { %v5365_v61 = vpop.f32.mrb[36].mxu1  ;;  %v4102_v25 = vadd.f32 %v4101_v27, %v4039_v62 }
 0x1f7   :  { %v3168_v2 = vpop.f32.mrb[37].mxu1 }
 0x1f8   :  { %v5366_v31 = vpop.f32.mrb[38].mxu1  ;;  %v4103_v44 = vadd.f32 %v4102_v25, %v4040_v24 }
 0x1f9   :  { %v3171_v30 = vpop.f32.mrb[39].mxu1 }
 0x204   :  { %v5445_v19 = vpop.f32.mrb[36].mxu0 }
 0x205   :  { %v3514_v45 = vadd.f32 %v5445_v19, %v5365_v61  ;;  %v3505_v34 = vpop.f32.mrb[37].mxu0 }
 0x206   :  { %v3506_v9 = vadd.f32 %v3505_v34, %v3168_v2  ;;  %v5446_v8 = vpop.f32.mrb[38].mxu0 }
 0x207   :  { %v3517_v39 = vadd.f32 %v5446_v8, %v5366_v31  ;;  %v3508_v7 = vpop.f32.mrb[39].mxu0  ;;  %v4043_v32 = vmul.f32 %v3514_v45, %v3514_v45 }
 0x208   :  { %v3971_v52 = vadd.f32 %v3970_v3, %v3506_v9  ;;  %v4041_v51 = vmul.f32 %v3506_v9, %v3506_v9  ;;  %v3509_v15 = vadd.f32 %v3508_v7, %v3171_v30 }
 0x209   :  { %v5045_v20 = vpack.c.bf16 %v3517_v39, %v3514_v45  ;;  %v4044_v58 = vmul.f32 %v3517_v39, %v3517_v39 }
 0x20a   :  { %v4104_v37 = vadd.f32 %v4103_v44, %v4041_v51  ;;  %v5040_v36 = vpack.c.bf16 %v3509_v15, %v3506_v9  ;;  %v3972_v16 = vadd.f32 %v3971_v52, %v3509_v15  ;;  %v4042_v46 = vmul.f32 %v3509_v15, %v3509_v15 }
 0x20b   :  { %5218 = vst [vmem:[%s8626_s11 + $0x98] sm:$0xff] %v5045_v20  }
 0x20c   :  { %5217 = vst [vmem:[%s8626_s11 + $0x90] sm:$0xff] %v5040_v36   ;;  %v3973_v54 = vadd.f32 %v3972_v16, %v3514_v45  ;;  %v4105_v23 = vadd.f32 %v4104_v37, %v4042_v46 }
 0x20d   :  { %v5369_v4 = vpop.f32.mrb[40].mxu1 }
 0x20e   :  { %v4106_v0 = vadd.f32 %v4105_v23, %v4043_v32  ;;  %v3184_v14 = vpop.f32.mrb[41].mxu1  ;;  %v3974_v42 = vadd.f32 %v3973_v54, %v3517_v39 }
 0x20f   :  { %v5370_v40 = vpop.f32.mrb[42].mxu1 }
 0x210   :  { %v3187_v5 = vpop.f32.mrb[43].mxu1  ;;  %v4107_v21 = vadd.f32 %v4106_v0, %v4044_v58 }
 0x222   :  { %v5449_v57 = vpop.f32.mrb[40].mxu0 }
 0x223   :  { %v3530_v55 = vadd.f32 %v5449_v57, %v5369_v4  ;;  %v3521_v59 = vpop.f32.mrb[41].mxu0 }
 0x224   :  { %v3522_v35 = vadd.f32 %v3521_v59, %v3184_v14  ;;  %v5450_v50 = vpop.f32.mrb[42].mxu0 }
 0x225   :  { %v3533_v1 = vadd.f32 %v5450_v50, %v5370_v40  ;;  %v3524_v38 = vpop.f32.mrb[43].mxu0  ;;  %v4047_v18 = vmul.f32 %v3530_v55, %v3530_v55 }
 0x226   :  { %v3975_v41 = vadd.f32 %v3974_v42, %v3522_v35  ;;  %v4045_v48 = vmul.f32 %v3522_v35, %v3522_v35  ;;  %v3525_v11 = vadd.f32 %v3524_v38, %v3187_v5 }
 0x227   :  { %v5055_v6 = vpack.c.bf16 %v3533_v1, %v3530_v55  ;;  %v4048_v43 = vmul.f32 %v3533_v1, %v3533_v1 }
 0x228   :  { %v4108_v60 = vadd.f32 %v4107_v21, %v4045_v48  ;;  %v5050_v63 = vpack.c.bf16 %v3525_v11, %v3522_v35  ;;  %v3976_v28 = vadd.f32 %v3975_v41, %v3525_v11  ;;  %v4046_v33 = vmul.f32 %v3525_v11, %v3525_v11  ;;  %v5373_v56 = vpop.f32.mrb[44].mxu1 }
 0x229   :  { %5220 = vst [vmem:[%s8626_s11 + $0xa8] sm:$0xff] %v5055_v6   ;;  %v3200_v13 = vpop.f32.mrb[45].mxu1 }
 0x22a   :  { %5219 = vst [vmem:[%s8626_s11 + $0xa0] sm:$0xff] %v5050_v63   ;;  %v3977_v29 = vadd.f32 %v3976_v28, %v3530_v55  ;;  %v4109_v22 = vadd.f32 %v4108_v60, %v4046_v33  ;;  %v5374_v10 = vpop.f32.mrb[46].mxu1 }
 0x22b   :  { %v3203_v12 = vpop.f32.mrb[47].mxu1 }
 0x22c   :  { %v4110_v47 = vadd.f32 %v4109_v22, %v4047_v18  ;;  %v3978_v49 = vadd.f32 %v3977_v29, %v3533_v1 }
 0x22e   :  { %v4111_v17 = vadd.f32 %v4110_v47, %v4048_v43 }
 0x23b   :  { %v5453_v53 = vpop.f32.mrb[44].mxu0 }
 0x23c   :  { %v3546_v26 = vadd.f32 %v5453_v53, %v5373_v56  ;;  %v3537_v62 = vpop.f32.mrb[45].mxu0 }
 0x23d   :  { %v3538_v27 = vadd.f32 %v3537_v62, %v3200_v13  ;;  %v5454_v61 = vpop.f32.mrb[46].mxu0 }
 0x23e   :  { %v3549_v3 = vadd.f32 %v5454_v61, %v5374_v10  ;;  %v3540_v24 = vpop.f32.mrb[47].mxu0  ;;  %v4051_v39 = vmul.f32 %v3546_v26, %v3546_v26 }
 0x23f   :  { %v3979_v25 = vadd.f32 %v3978_v49, %v3538_v27  ;;  %v4049_v2 = vmul.f32 %v3538_v27, %v3538_v27  ;;  %v3541_v31 = vadd.f32 %v3540_v24, %v3203_v12 }
 0x240   :  { %v5065_v30 = vpack.c.bf16 %v3549_v3, %v3546_v26  ;;  %v4052_v20 = vmul.f32 %v3549_v3, %v3549_v3 }
 0x241   :  { %v4112_v44 = vadd.f32 %v4111_v17, %v4049_v2  ;;  %v5060_v19 = vpack.c.bf16 %v3541_v31, %v3538_v27  ;;  %v3980_v45 = vadd.f32 %v3979_v25, %v3541_v31  ;;  %v4050_v34 = vmul.f32 %v3541_v31, %v3541_v31 }
 0x242   :  { %v5377_v9 = vpop.f32.mrb[48].mxu1  ;;  %5222 = vst [vmem:[%s8626_s11 + $0xb8] sm:$0xff] %v5065_v30  }
 0x243   :  { %v3216_v8 = vpop.f32.mrb[49].mxu1  ;;  %5221 = vst [vmem:[%s8626_s11 + $0xb0] sm:$0xff] %v5060_v19   ;;  %v3981_v7 = vadd.f32 %v3980_v45, %v3546_v26  ;;  %v4113_v52 = vadd.f32 %v4112_v44, %v4050_v34 }
 0x244   :  { %v5378_v51 = vpop.f32.mrb[50].mxu1 }
 0x245   :  { %v3219_v15 = vpop.f32.mrb[51].mxu1  ;;  %v4114_v37 = vadd.f32 %v4113_v52, %v4051_v39  ;;  %v3982_v36 = vadd.f32 %v3981_v7, %v3549_v3 }
 0x247   :  { %v4115_v16 = vadd.f32 %v4114_v37, %v4052_v20 }
 0x255   :  { %v5457_v46 = vpop.f32.mrb[48].mxu0 }
 0x256   :  { %v3562_v32 = vadd.f32 %v5457_v46, %v5377_v9  ;;  %v3553_v54 = vpop.f32.mrb[49].mxu0 }
 0x257   :  { %v3554_v23 = vadd.f32 %v3553_v54, %v3216_v8  ;;  %v5458_v4 = vpop.f32.mrb[50].mxu0 }
 0x258   :  { %v3565_v58 = vadd.f32 %v5458_v4, %v5378_v51  ;;  %v3556_v0 = vpop.f32.mrb[51].mxu0  ;;  %v4055_v1 = vmul.f32 %v3562_v32, %v3562_v32 }
 0x259   :  { %v3983_v14 = vadd.f32 %v3982_v36, %v3554_v23  ;;  %v4053_v42 = vmul.f32 %v3554_v23, %v3554_v23  ;;  %v3557_v40 = vadd.f32 %v3556_v0, %v3219_v15 }
 0x25a   :  { %v5075_v5 = vpack.c.bf16 %v3565_v58, %v3562_v32  ;;  %v4056_v6 = vmul.f32 %v3565_v58, %v3565_v58 }
 0x25b   :  { %v4116_v21 = vadd.f32 %v4115_v16, %v4053_v42  ;;  %v5070_v57 = vpack.c.bf16 %v3557_v40, %v3554_v23  ;;  %v3984_v55 = vadd.f32 %v3983_v14, %v3557_v40  ;;  %v4054_v59 = vmul.f32 %v3557_v40, %v3557_v40  ;;  %v5381_v35 = vpop.f32.mrb[52].mxu1 }
 0x25c   :  { %5224 = vst [vmem:[%s8626_s11 + $0xc8] sm:$0xff] %v5075_v5   ;;  %v3232_v50 = vpop.f32.mrb[53].mxu1 }
 0x25d   :  { %5223 = vst [vmem:[%s8626_s11 + $0xc0] sm:$0xff] %v5070_v57   ;;  %v3985_v38 = vadd.f32 %v3984_v55, %v3562_v32  ;;  %v4117_v41 = vadd.f32 %v4116_v21, %v4054_v59  ;;  %v5382_v48 = vpop.f32.mrb[54].mxu1 }
 0x25e   :  { %v3235_v11 = vpop.f32.mrb[55].mxu1 }
 0x25f   :  { %v4118_v60 = vadd.f32 %v4117_v41, %v4055_v1  ;;  %v3986_v63 = vadd.f32 %v3985_v38, %v3565_v58 }
 0x261   :  { %v4119_v28 = vadd.f32 %v4118_v60, %v4056_v6 }
 0x26e   :  { %v5461_v33 = vpop.f32.mrb[52].mxu0 }
 0x26f   :  { %v3578_v56 = vadd.f32 %v5461_v33, %v5381_v35  ;;  %v3569_v13 = vpop.f32.mrb[53].mxu0 }
 0x270   :  { %v3570_v18 = vadd.f32 %v3569_v13, %v3232_v50  ;;  %v5462_v29 = vpop.f32.mrb[54].mxu0 }
 0x271   :  { %v3581_v22 = vadd.f32 %v5462_v29, %v5382_v48  ;;  %v3572_v10 = vpop.f32.mrb[55].mxu0  ;;  %v4059_v61 = vmul.f32 %v3578_v56, %v3578_v56 }
 0x272   :  { %v3987_v12 = vadd.f32 %v3986_v63, %v3570_v18  ;;  %v4057_v43 = vmul.f32 %v3570_v18, %v3570_v18  ;;  %v3573_v47 = vadd.f32 %v3572_v10, %v3235_v11 }
 0x273   :  { %v5085_v49 = vpack.c.bf16 %v3581_v22, %v3578_v56  ;;  %v4060_v31 = vmul.f32 %v3581_v22, %v3581_v22 }
 0x274   :  { %v4120_v17 = vadd.f32 %v4119_v28, %v4057_v43  ;;  %v5080_v53 = vpack.c.bf16 %v3573_v47, %v3570_v18  ;;  %v3988_v26 = vadd.f32 %v3987_v12, %v3573_v47  ;;  %v4058_v62 = vmul.f32 %v3573_v47, %v3573_v47 }
 0x275   :  { %5226 = vst [vmem:[%s8626_s11 + $0xd8] sm:$0xff] %v5085_v49   ;;  %v5385_v27 = vpop.f32.mrb[56].mxu1 }
 0x276   :  { %5225 = vst [vmem:[%s8626_s11 + $0xd0] sm:$0xff] %v5080_v53   ;;  %v3989_v3 = vadd.f32 %v3988_v26, %v3578_v56  ;;  %v4121_v24 = vadd.f32 %v4120_v17, %v4058_v62  ;;  %v3248_v25 = vpop.f32.mrb[57].mxu1 }
 0x277   :  { %v5386_v2 = vpop.f32.mrb[58].mxu1 }
 0x278   :  { %v4122_v30 = vadd.f32 %v4121_v24, %v4059_v61  ;;  %v3251_v44 = vpop.f32.mrb[59].mxu1  ;;  %v3990_v19 = vadd.f32 %v3989_v3, %v3581_v22 }
 0x27a   :  { %v4123_v45 = vadd.f32 %v4122_v30, %v4060_v31 }
 0x286   :  { %v5465_v34 = vpop.f32.mrb[56].mxu0 }
 0x287   :  { %v3594_v9 = vadd.f32 %v5465_v34, %v5385_v27  ;;  %v3585_v8 = vpop.f32.mrb[57].mxu0 }
 0x288   :  { %v3586_v39 = vadd.f32 %v3585_v8, %v3248_v25  ;;  %v5466_v7 = vpop.f32.mrb[58].mxu0 }
 0x289   :  { %v3597_v52 = vadd.f32 %v5466_v7, %v5386_v2  ;;  %v3588_v51 = vpop.f32.mrb[59].mxu0  ;;  %v4063_v23 = vmul.f32 %v3594_v9, %v3594_v9 }
 0x28a   :  { %v3991_v15 = vadd.f32 %v3990_v19, %v3586_v39  ;;  %v4061_v20 = vmul.f32 %v3586_v39, %v3586_v39  ;;  %v3589_v37 = vadd.f32 %v3588_v51, %v3251_v44 }
 0x28b   :  { %v5095_v36 = vpack.c.bf16 %v3597_v52, %v3594_v9  ;;  %v4064_v0 = vmul.f32 %v3597_v52, %v3597_v52 }
 0x28c   :  { %v4124_v16 = vadd.f32 %v4123_v45, %v4061_v20  ;;  %v5090_v46 = vpack.c.bf16 %v3589_v37, %v3586_v39  ;;  %v3992_v32 = vadd.f32 %v3991_v15, %v3589_v37  ;;  %v4062_v54 = vmul.f32 %v3589_v37, %v3589_v37 }
 0x28d   :  { %5228 = vst [vmem:[%s8626_s11 + $0xe8] sm:$0xff] %v5095_v36  }
 0x28e   :  { %5227 = vst [vmem:[%s8626_s11 + $0xe0] sm:$0xff] %v5090_v46   ;;  %v3993_v4 = vadd.f32 %v3992_v32, %v3594_v9  ;;  %v4125_v58 = vadd.f32 %v4124_v16, %v4062_v54 }
 0x290   :  { %v4126_v14 = vadd.f32 %v4125_v58, %v4063_v23  ;;  %v3994_v42 = vadd.f32 %v3993_v4, %v3597_v52 }
 0x292   :  { %v5389_v40 = vpop.f32.mrb[60].mxu1  ;;  %v4127_v5 = vadd.f32 %v4126_v14, %v4064_v0 }
 0x293   :  { %v3264_v21 = vpop.f32.mrb[61].mxu1 }
 0x294   :  { %v5390_v57 = vpop.f32.mrb[62].mxu1 }
 0x295   :  { %v3267_v55 = vpop.f32.mrb[63].mxu1 }
 0x2a0   :  { %v5469_v59 = vpop.f32.mrb[60].mxu0 }
 0x2a1   :  { %v3610_v35 = vadd.f32 %v5469_v59, %v5389_v40  ;;  %v3601_v50 = vpop.f32.mrb[61].mxu0 }
 0x2a2   :  { %v3602_v1 = vadd.f32 %v3601_v50, %v3264_v21  ;;  %v5470_v38 = vpop.f32.mrb[62].mxu0 }
 0x2a3   :  { %v3613_v41 = vadd.f32 %v5470_v38, %v5390_v57  ;;  %v3604_v48 = vpop.f32.mrb[63].mxu0  ;;  %v4067_v18 = vmul.f32 %v3610_v35, %v3610_v35 }
 0x2a4   :  { %v3995_v11 = vadd.f32 %v3994_v42, %v3602_v1  ;;  %v4065_v6 = vmul.f32 %v3602_v1, %v3602_v1  ;;  %v3605_v60 = vadd.f32 %v3604_v48, %v3267_v55 }
 0x2a5   :  { %v5105_v63 = vpack.c.bf16 %v3613_v41, %v3610_v35  ;;  %v4068_v10 = vmul.f32 %v3613_v41, %v3613_v41 }
 0x2a6   :  { %v4128_v28 = vadd.f32 %v4127_v5, %v4065_v6  ;;  %v5100_v33 = vpack.c.bf16 %v3605_v60, %v3602_v1  ;;  %v3996_v56 = vadd.f32 %v3995_v11, %v3605_v60  ;;  %v4066_v13 = vmul.f32 %v3605_v60, %v3605_v60 }
 0x2a7   :  { %5230 = vst [vmem:[%s8626_s11 + $0xf8] sm:$0xff] %v5105_v63  }
 0x2a8   :  { %5229 = vst [vmem:[%s8626_s11 + $0xf0] sm:$0xff] %v5100_v33   ;;  %v3997_v29 = vadd.f32 %v3996_v56, %v3610_v35  ;;  %v4129_v22 = vadd.f32 %v4128_v28, %v4066_v13 }
 0x2aa   :  { %v3998_v12 = vadd.f32 %v3997_v29, %v3613_v41  ;;  %v4130_v43 = vadd.f32 %v4129_v22, %v4067_v18 }
 0x2ac   :  { %v3999_v47 = vrot.slane %v3998_v12, 4  ;;  %v4131_v49 = vadd.f32 %v4130_v43, %v4068_v10 }
 0x2ae   :  { %v4000_v17 = vadd.f32 %v3999_v47, %v3998_v12  ;;  %v4132_v53 = vrot.slane %v4131_v49, 4 }
 0x2b0   :  { %v4001_v26 = vrot.slane %v4000_v17, 2  ;;  %v4133_v62 = vadd.f32 %v4132_v53, %v4131_v49 }
 0x2b2   :  { %v4002_v27 = vadd.f32 %v4001_v26, %v4000_v17  ;;  %v4134_v61 = vrot.slane %v4133_v62, 2 }
 0x2b4   :  { %v4003_v3 = vrot.slane %v4002_v27, 1  ;;  %v4135_v24 = vadd.f32 %v4134_v61, %v4133_v62 }
 0x2b6   :  { %v4136_v25 = vrot.slane %v4135_v24, 1  ;;  %v4004_v2 = vadd.f32 %v4003_v3, %v4002_v27 }
 0x2b8   :  { %v4137_v31 = vadd.f32 %v4136_v25, %v4135_v24 }
 0x2ba   :  { %v4139_v30 = vsel %vm4138_vm0, %v4004_v2, %v4137_v31 }
 0x2bb   :  { %4140 = vst [vmem:[%s8627_s12] sm:$0x3] %v4139_v30 }

</bundles_post_ra>
